<compile_context>
chip_gen: v7x
topology: tpu7x:2x2x1
jax: 0.10.0
libtpu: 0.0.40
codegen_flags: <defaults>
</compile_context>

<pallas_src>
import jax
import jax.numpy as jnp
from jax.experimental import pallas as pl
from jax.experimental.pallas import tpu as pltpu

H = 51     # logical hidden size
HP = 128   # per-gate lane padding (one lane tile per gate)
NG = 4     # number of LSTM gates
# packed gate order i, f, o, g (indices into the PyTorch i, f, g, o order)
_GATE_ORDER = (0, 1, 3, 2)


def _lstm_gates(pre, c):
    """pre: (B, 4*HP) fused pre-activations in order [i|f|o|g]; c: (B, HP)."""
    s = jax.nn.sigmoid(pre[:, : 3 * HP])      # one wide EUP slab for i, f, o
    i = s[:, 0 * HP:1 * HP]
    f = s[:, 1 * HP:2 * HP]
    o = s[:, 2 * HP:3 * HP]
    g = jnp.tanh(pre[:, 3 * HP:])
    c_new = f * c + i * g
    h_new = o * jnp.tanh(c_new)
    return h_new, c_new


def _sequence_kernel(x_ref, wih1_ref, b1_ref, whh1_ref, wih2_ref, whh2_ref,
                     b2_ref, wl_ref, bl_ref, out_ref, h2_all_ref):
    T = x_ref.shape[0]
    B = x_ref.shape[1]
    T_total = out_ref.shape[0]
    n_future = T_total - T

    # tiny parameters: load once, keep as values
    whh1 = whh1_ref[...]        # (HP, 4*HP)   cell-1 recurrent weights
    wih2 = wih2_ref[...]        # (HP, 4*HP)   cell-2 input weights (from h1)
    whh2 = whh2_ref[...]        # (HP, 4*HP)   cell-2 recurrent weights
    wl = wl_ref[...]            # (1, HP)
    bl = bl_ref[...]            # (1, 1)

    # hoist loop-invariant broadcasts out of the unrolled loop
    wih1_b = jnp.broadcast_to(wih1_ref[...], (B, NG * HP))   # (B, 4*HP)
    b1_b = jnp.broadcast_to(b1_ref[...], (B, NG * HP))       # (B, 4*HP)
    b2_b = jnp.broadcast_to(b2_ref[...], (B, NG * HP))       # (B, 4*HP)
    wl_b = jnp.broadcast_to(wl, (B, HP))                     # (B, HP)

    # recurrent state lives in vregs (python-carried values across a fully unrolled loop)
    zeros = jnp.zeros((B, HP), jnp.float32)
    h1, c1, h2, c2 = zeros, zeros, zeros, zeros

    def step(in1, h1, c1, h2, c2):
        # cell 1
        pre1 = in1 + jnp.dot(h1, whh1, preferred_element_type=jnp.float32)
        h1, c1 = _lstm_gates(pre1, c1)
        # cell 2: split dots -- jnp.dot(h2, whh2) depends only on the previous step's h2,
        # so the scheduler can overlap it with cell-1's critical chain.
        pre2 = (jnp.dot(h1, wih2, preferred_element_type=jnp.float32)
                + jnp.dot(h2, whh2, preferred_element_type=jnp.float32)
                + b2_b)
        h2, c2 = _lstm_gates(pre2, c2)
        return h1, c1, h2, c2

    # ---- observed timesteps (output projection deferred) ----
    # cell-1's input projection is rank-1 (scalar input): VPU broadcast mul, no MXU.
    for t in range(T):
        in1 = x_ref[t] * wih1_b + b1_b                                # (B,1)*(B,4HP)
        h1, c1, h2, c2 = step(in1, h1, c1, h2, c2)
        h2_all_ref[t] = h2

    # ---- autoregressive future timesteps (y feeds back as the input) ----
    # note: if T == 0 this seeds with linear(h2=0); PyTorch would fail (undefined output).
    y = jnp.sum(h2 * wl_b, axis=-1, keepdims=True) + bl               # (B, 1)
    for t in range(n_future):
        in1 = y * wih1_b + b1_b                                       # VPU broadcast mul
        h1, c1, h2, c2 = step(in1, h1, c1, h2, c2)
        h2_all_ref[T + t] = h2
        y = jnp.sum(h2 * wl_b, axis=-1, keepdims=True) + bl           # VPU mul + lane reduce

    # ---- single batched output projection + one store ----
    h2a = h2_all_ref[...]                                             # (T_total, B, HP)
    out_ref[...] = jnp.sum(h2a * wl[None, :, :], axis=-1) + bl        # (T_total, B)


def pack_params(params):
    """Repack logical params (PyTorch layout) into the fused, 128-lane-padded kernel layout."""
    wih1, whh1, b1, wih2, whh2, b2, wl, bl = params

    def pack_w(w, in_pad):
        # w: (4, d_in, H) in gate order (i, f, g, o) -> (in_pad, 4*HP) in order (i, f, o, g)
        d_in = w.shape[1]
        out = jnp.zeros((in_pad, NG * HP), jnp.float32)
        for dst, src in enumerate(_GATE_ORDER):
            out = out.at[:d_in, dst * HP:dst * HP + H].set(w[src])
        return out

    def pack_b(b):
        out = jnp.zeros((1, NG * HP), jnp.float32)
        for dst, src in enumerate(_GATE_ORDER):
            out = out.at[:, dst * HP:dst * HP + H].set(b[src])
        return out

    wih1_p = pack_w(wih1, 1)                                          # (1, 4*HP)
    whh1_p = pack_w(whh1, HP)                                         # (HP, 4*HP)
    b1_p = pack_b(b1)
    wih2_p = pack_w(wih2, HP)                                         # (HP, 4*HP)
    whh2_p = pack_w(whh2, HP)                                         # (HP, 4*HP)
    b2_p = pack_b(b2)
    wl_p = jnp.zeros((1, HP), jnp.float32).at[0, :H].set(wl[:, 0])    # (1, HP)
    bl_p = bl.astype(jnp.float32)                                     # (1, 1)
    return wih1_p, b1_p, whh1_p, wih2_p, whh2_p, b2_p, wl_p, bl_p


def sequence_forward(x, packed_params, future=0):
    """x: (B, T) float32 -> (B, T + future) float32."""
    wih1, b1, whh1, wih2, whh2, b2, wl, bl = packed_params
    B, T = x.shape
    T_total = T + future

    x_tm = jnp.transpose(x).reshape(T, B, 1).astype(jnp.float32)

    vmem = pl.BlockSpec(memory_space=pltpu.MemorySpace.VMEM)
    out = pl.pallas_call(
        _sequence_kernel,
        out_shape=jax.ShapeDtypeStruct((T_total, B), jnp.float32),
        in_specs=[vmem] * 9,
        out_specs=vmem,
        scratch_shapes=[
            pltpu.VMEM((T_total, B, HP), jnp.float32),    # per-step h2 for deferred Linear
        ],
    )(x_tm, wih1, b1, whh1, wih2, whh2, b2, wl, bl)

    return jnp.transpose(out)   # (B, T + future)


def init_params(key):
    """PyTorch-style uniform(-1/sqrt(H), 1/sqrt(H)) init in the 'logical' layout:
      wih: (4, in, H), whh: (4, H, H), b: (4, 1, H), wl: (H, 1), bl: (1, 1)."""
    bound = 1.0 / jnp.sqrt(jnp.float32(H))
    keys = jax.random.split(key, 10)

    def u(k, shape):
        return jax.random.uniform(k, shape, jnp.float32, -bound, bound)

    wih1 = u(keys[0], (4, 1, H))
    whh1 = u(keys[1], (4, H, H))
    b1 = u(keys[2], (4, 1, H)) + u(keys[3], (4, 1, H))   # bias_ih + bias_hh
    wih2 = u(keys[4], (4, H, H))
    whh2 = u(keys[5], (4, H, H))
    b2 = u(keys[6], (4, 1, H)) + u(keys[7], (4, 1, H))
    wl = u(keys[8], (H, 1))
    bl = u(keys[9], (1, 1))
    return (wih1, whh1, b1, wih2, whh2, b2, wl, bl)


def sequence_reference(x, params, future=0):
    """Pure-JAX reference matching the PyTorch forward semantics (float32)."""
    wih1, whh1, b1, wih2, whh2, b2, wl, bl = params
    B, T = x.shape

    def cell(xx, h, c, wih, whh, b):
        gi = jax.nn.sigmoid(xx @ wih[0] + h @ whh[0] + b[0])
        gf = jax.nn.sigmoid(xx @ wih[1] + h @ whh[1] + b[1])
        gg = jnp.tanh(xx @ wih[2] + h @ whh[2] + b[2])
        go = jax.nn.sigmoid(xx @ wih[3] + h @ whh[3] + b[3])
        c_new = gf * c + gi * gg
        h_new = go * jnp.tanh(c_new)
        return h_new, c_new

    h1 = c1 = h2 = c2 = jnp.zeros((B, H), jnp.float32)
    outs = []
    y = None
    for t in range(T):
        xt = x[:, t:t + 1]
        h1, c1 = cell(xt, h1, c1, wih1, whh1, b1)
        h2, c2 = cell(h1, h2, c2, wih2, whh2, b2)
        y = h2 @ wl + bl
        outs.append(y)
    for _ in range(future):
        h1, c1 = cell(y, h1, c1, wih1, whh1, b1)
        h2, c2 = cell(h1, h2, c2, wih2, whh2, b2)
        y = h2 @ wl + bl
        outs.append(y)
    return jnp.concatenate(outs, axis=1)


if __name__ == "__main__":
    key = jax.random.PRNGKey(0)
    pkey, xkey = jax.random.split(key)

    params = init_params(pkey)
    packed = pack_params(params)

    B, T, FUTURE = 2, 8, 4
    x = jax.random.normal(xkey, (B, T), jnp.float32)

    out = sequence_forward(x, packed, future=FUTURE)
    out = jax.block_until_ready(out)

    ref = sequence_reference(x, params, future=FUTURE)
    assert out.shape == (B, T + FUTURE), out.shape
    max_err = float(jnp.max(jnp.abs(out - ref)))
    assert jnp.allclose(out, ref, atol=2e-3, rtol=2e-3), max_err

    print("KERNEL_OK")
</pallas_src>

<mosaic_0001>
module attributes {stable_mosaic.version = 11 : i64} {
  func.func @_sequence_kernel(%arg0: memref<8x2x1xf32, #tpu.memory_space<vmem>>, %arg1: memref<1x512xf32, #tpu.memory_space<vmem>>, %arg2: memref<1x512xf32, #tpu.memory_space<vmem>>, %arg3: memref<128x512xf32, #tpu.memory_space<vmem>>, %arg4: memref<128x512xf32, #tpu.memory_space<vmem>>, %arg5: memref<128x512xf32, #tpu.memory_space<vmem>>, %arg6: memref<1x512xf32, #tpu.memory_space<vmem>>, %arg7: memref<1x128xf32, #tpu.memory_space<vmem>>, %arg8: memref<1x1xf32, #tpu.memory_space<vmem>>, %arg9: memref<12x2xf32, #tpu.memory_space<vmem>>, %arg10: memref<12x2x128xf32, #tpu.memory_space<vmem>>) attributes {dimension_semantics = [], scalar_prefetch = 0 : i64, scratch_operands = 1 : i64, tpu.core_type = #tpu.core_type<tc>} {
    %c0 = arith.constant 0 : index
    %c0_0 = arith.constant 0 : index
    %0 = vector.load %arg3[%c0, %c0_0] : memref<128x512xf32, #tpu.memory_space<vmem>>, vector<128x512xf32>
    %c0_1 = arith.constant 0 : index
    %c0_2 = arith.constant 0 : index
    %1 = vector.load %arg4[%c0_1, %c0_2] : memref<128x512xf32, #tpu.memory_space<vmem>>, vector<128x512xf32>
    %c0_3 = arith.constant 0 : index
    %c0_4 = arith.constant 0 : index
    %2 = vector.load %arg5[%c0_3, %c0_4] : memref<128x512xf32, #tpu.memory_space<vmem>>, vector<128x512xf32>
    %c0_5 = arith.constant 0 : index
    %c0_6 = arith.constant 0 : index
    %3 = vector.load %arg7[%c0_5, %c0_6] : memref<1x128xf32, #tpu.memory_space<vmem>>, vector<1x128xf32>
    %c0_7 = arith.constant 0 : index
    %c0_8 = arith.constant 0 : index
    %4 = vector.load %arg8[%c0_7, %c0_8] : memref<1x1xf32, #tpu.memory_space<vmem>>, vector<1x1xf32>
    %c0_9 = arith.constant 0 : index
    %c0_10 = arith.constant 0 : index
    %5 = vector.load %arg1[%c0_9, %c0_10] : memref<1x512xf32, #tpu.memory_space<vmem>>, vector<1x512xf32>
    %6 = vector.shape_cast %5 : vector<1x512xf32> to vector<1x512xf32>
    %7 = vector.broadcast %6 : vector<1x512xf32> to vector<2x512xf32>
    %c0_11 = arith.constant 0 : index
    %c0_12 = arith.constant 0 : index
    %8 = vector.load %arg2[%c0_11, %c0_12] : memref<1x512xf32, #tpu.memory_space<vmem>>, vector<1x512xf32>
    %9 = vector.shape_cast %8 : vector<1x512xf32> to vector<1x512xf32>
    %10 = vector.broadcast %9 : vector<1x512xf32> to vector<2x512xf32>
    %c0_13 = arith.constant 0 : index
    %c0_14 = arith.constant 0 : index
    %11 = vector.load %arg6[%c0_13, %c0_14] : memref<1x512xf32, #tpu.memory_space<vmem>>, vector<1x512xf32>
    %12 = vector.shape_cast %11 : vector<1x512xf32> to vector<1x512xf32>
    %13 = vector.broadcast %12 : vector<1x512xf32> to vector<2x512xf32>
    %14 = vector.shape_cast %3 : vector<1x128xf32> to vector<1x128xf32>
    %15 = vector.broadcast %14 : vector<1x128xf32> to vector<2x128xf32>
    %cst = arith.constant 0.000000e+00 : f32
    %16 = vector.broadcast %cst : f32 to vector<2x128xf32>
    %c0_15 = arith.constant 0 : index
    %c0_16 = arith.constant 0 : index
    %c0_17 = arith.constant 0 : index
    %17 = vector.load %arg0[%c0_15, %c0_16, %c0_17] : memref<8x2x1xf32, #tpu.memory_space<vmem>>, vector<1x2x1xf32>
    %18 = vector.shape_cast %17 : vector<1x2x1xf32> to vector<2x1xf32>
    %19 = vector.broadcast %18 : vector<2x1xf32> to vector<2x512xf32>
    %20 = arith.mulf %19, %7 : vector<2x512xf32>
    %21 = arith.addf %20, %10 : vector<2x512xf32>
    %cst_18 = arith.constant dense<0.000000e+00> : vector<2x512xf32>
    %22 = tpu.matmul %16, %0, %cst_18 {dimension_numbers = #tpu.dot_dimension_numbers<[1], [0], [0], [1], [0, 0, 1, 1], [], []>} : vector<2x128xf32>, vector<128x512xf32>, vector<2x512xf32> -> vector<2x512xf32>
    %23 = arith.addf %21, %22 : vector<2x512xf32>
    %24 = vector.extract_strided_slice %23 {offsets = [0, 0], sizes = [2, 384], strides = [1, 1]} : vector<2x512xf32> to vector<2x384xf32>
    %25 = arith.negf %24 : vector<2x384xf32>
    %26 = math.exp %25 : vector<2x384xf32>
    %cst_19 = arith.constant 1.000000e+00 : f32
    %27 = vector.broadcast %cst_19 : f32 to vector<2x384xf32>
    %28 = arith.addf %27, %26 : vector<2x384xf32>
    %29 = arith.divf %27, %28 : vector<2x384xf32>
    %30 = vector.extract_strided_slice %29 {offsets = [0, 0], sizes = [2, 128], strides = [1, 1]} : vector<2x384xf32> to vector<2x128xf32>
    %31 = vector.extract_strided_slice %29 {offsets = [0, 128], sizes = [2, 128], strides = [1, 1]} : vector<2x384xf32> to vector<2x128xf32>
    %32 = vector.extract_strided_slice %29 {offsets = [0, 256], sizes = [2, 128], strides = [1, 1]} : vector<2x384xf32> to vector<2x128xf32>
    %33 = vector.extract_strided_slice %23 {offsets = [0, 384], sizes = [2, 128], strides = [1, 1]} : vector<2x512xf32> to vector<2x128xf32>
    %34 = math.tanh %33 : vector<2x128xf32>
    %35 = arith.mulf %31, %16 : vector<2x128xf32>
    %36 = arith.mulf %30, %34 : vector<2x128xf32>
    %37 = arith.addf %35, %36 : vector<2x128xf32>
    %38 = math.tanh %37 : vector<2x128xf32>
    %39 = arith.mulf %32, %38 : vector<2x128xf32>
    %cst_20 = arith.constant dense<0.000000e+00> : vector<2x512xf32>
    %40 = tpu.matmul %39, %1, %cst_20 {dimension_numbers = #tpu.dot_dimension_numbers<[1], [0], [0], [1], [0, 0, 1, 1], [], []>} : vector<2x128xf32>, vector<128x512xf32>, vector<2x512xf32> -> vector<2x512xf32>
    %cst_21 = arith.constant dense<0.000000e+00> : vector<2x512xf32>
    %41 = tpu.matmul %16, %2, %cst_21 {dimension_numbers = #tpu.dot_dimension_numbers<[1], [0], [0], [1], [0, 0, 1, 1], [], []>} : vector<2x128xf32>, vector<128x512xf32>, vector<2x512xf32> -> vector<2x512xf32>
    %42 = arith.addf %40, %41 : vector<2x512xf32>
    %43 = arith.addf %42, %13 : vector<2x512xf32>
    %44 = vector.extract_strided_slice %43 {offsets = [0, 0], sizes = [2, 384], strides = [1, 1]} : vector<2x512xf32> to vector<2x384xf32>
    %45 = arith.negf %44 : vector<2x384xf32>
    %46 = math.exp %45 : vector<2x384xf32>
    %cst_22 = arith.constant 1.000000e+00 : f32
    %47 = vector.broadcast %cst_22 : f32 to vector<2x384xf32>
    %48 = arith.addf %47, %46 : vector<2x384xf32>
    %49 = arith.divf %47, %48 : vector<2x384xf32>
    %50 = vector.extract_strided_slice %49 {offsets = [0, 0], sizes = [2, 128], strides = [1, 1]} : vector<2x384xf32> to vector<2x128xf32>
    %51 = vector.extract_strided_slice %49 {offsets = [0, 128], sizes = [2, 128], strides = [1, 1]} : vector<2x384xf32> to vector<2x128xf32>
    %52 = vector.extract_strided_slice %49 {offsets = [0, 256], sizes = [2, 128], strides = [1, 1]} : vector<2x384xf32> to vector<2x128xf32>
    %53 = vector.extract_strided_slice %43 {offsets = [0, 384], sizes = [2, 128], strides = [1, 1]} : vector<2x512xf32> to vector<2x128xf32>
    %54 = math.tanh %53 : vector<2x128xf32>
    %55 = arith.mulf %51, %16 : vector<2x128xf32>
    %56 = arith.mulf %50, %54 : vector<2x128xf32>
    %57 = arith.addf %55, %56 : vector<2x128xf32>
    %58 = math.tanh %57 : vector<2x128xf32>
    %59 = arith.mulf %52, %58 : vector<2x128xf32>
    %c0_23 = arith.constant 0 : index
    %c0_24 = arith.constant 0 : index
    %c0_25 = arith.constant 0 : index
    %60 = vector.load %arg10[%c0_23, %c0_24, %c0_25] : memref<12x2x128xf32, #tpu.memory_space<vmem>>, vector<1x2x128xf32>
    %61 = vector.shape_cast %60 : vector<1x2x128xf32> to vector<2x128xf32>
    %62 = vector.shape_cast %59 : vector<2x128xf32> to vector<1x2x128xf32>
    tpu.vector_store %arg10[%c0_23, %c0_24, %c0_25], %62 {strides = array<i32>} : memref<12x2x128xf32, #tpu.memory_space<vmem>>, vector<1x2x128xf32>,
    %c1 = arith.constant 1 : index
    %c0_26 = arith.constant 0 : index
    %c0_27 = arith.constant 0 : index
    %63 = vector.load %arg0[%c1, %c0_26, %c0_27] : memref<8x2x1xf32, #tpu.memory_space<vmem>>, vector<1x2x1xf32>
    %64 = vector.shape_cast %63 : vector<1x2x1xf32> to vector<2x1xf32>
    %65 = vector.broadcast %64 : vector<2x1xf32> to vector<2x512xf32>
    %66 = arith.mulf %65, %7 : vector<2x512xf32>
    %67 = arith.addf %66, %10 : vector<2x512xf32>
    %cst_28 = arith.constant dense<0.000000e+00> : vector<2x512xf32>
    %68 = tpu.matmul %39, %0, %cst_28 {dimension_numbers = #tpu.dot_dimension_numbers<[1], [0], [0], [1], [0, 0, 1, 1], [], []>} : vector<2x128xf32>, vector<128x512xf32>, vector<2x512xf32> -> vector<2x512xf32>
    %69 = arith.addf %67, %68 : vector<2x512xf32>
    %70 = vector.extract_strided_slice %69 {offsets = [0, 0], sizes = [2, 384], strides = [1, 1]} : vector<2x512xf32> to vector<2x384xf32>
    %71 = arith.negf %70 : vector<2x384xf32>
    %72 = math.exp %71 : vector<2x384xf32>
    %cst_29 = arith.constant 1.000000e+00 : f32
    %73 = vector.broadcast %cst_29 : f32 to vector<2x384xf32>
    %74 = arith.addf %73, %72 : vector<2x384xf32>
    %75 = arith.divf %73, %74 : vector<2x384xf32>
    %76 = vector.extract_strided_slice %75 {offsets = [0, 0], sizes = [2, 128], strides = [1, 1]} : vector<2x384xf32> to vector<2x128xf32>
    %77 = vector.extract_strided_slice %75 {offsets = [0, 128], sizes = [2, 128], strides = [1, 1]} : vector<2x384xf32> to vector<2x128xf32>
    %78 = vector.extract_strided_slice %75 {offsets = [0, 256], sizes = [2, 128], strides = [1, 1]} : vector<2x384xf32> to vector<2x128xf32>
    %79 = vector.extract_strided_slice %69 {offsets = [0, 384], sizes = [2, 128], strides = [1, 1]} : vector<2x512xf32> to vector<2x128xf32>
    %80 = math.tanh %79 : vector<2x128xf32>
    %81 = arith.mulf %77, %37 : vector<2x128xf32>
    %82 = arith.mulf %76, %80 : vector<2x128xf32>
    %83 = arith.addf %81, %82 : vector<2x128xf32>
    %84 = math.tanh %83 : vector<2x128xf32>
    %85 = arith.mulf %78, %84 : vector<2x128xf32>
    %cst_30 = arith.constant dense<0.000000e+00> : vector<2x512xf32>
    %86 = tpu.matmul %85, %1, %cst_30 {dimension_numbers = #tpu.dot_dimension_numbers<[1], [0], [0], [1], [0, 0, 1, 1], [], []>} : vector<2x128xf32>, vector<128x512xf32>, vector<2x512xf32> -> vector<2x512xf32>
    %cst_31 = arith.constant dense<0.000000e+00> : vector<2x512xf32>
    %87 = tpu.matmul %59, %2, %cst_31 {dimension_numbers = #tpu.dot_dimension_numbers<[1], [0], [0], [1], [0, 0, 1, 1], [], []>} : vector<2x128xf32>, vector<128x512xf32>, vector<2x512xf32> -> vector<2x512xf32>
    %88 = arith.addf %86, %87 : vector<2x512xf32>
    %89 = arith.addf %88, %13 : vector<2x512xf32>
    %90 = vector.extract_strided_slice %89 {offsets = [0, 0], sizes = [2, 384], strides = [1, 1]} : vector<2x512xf32> to vector<2x384xf32>
    %91 = arith.negf %90 : vector<2x384xf32>
    %92 = math.exp %91 : vector<2x384xf32>
    %cst_32 = arith.constant 1.000000e+00 : f32
    %93 = vector.broadcast %cst_32 : f32 to vector<2x384xf32>
    %94 = arith.addf %93, %92 : vector<2x384xf32>
    %95 = arith.divf %93, %94 : vector<2x384xf32>
    %96 = vector.extract_strided_slice %95 {offsets = [0, 0], sizes = [2, 128], strides = [1, 1]} : vector<2x384xf32> to vector<2x128xf32>
    %97 = vector.extract_strided_slice %95 {offsets = [0, 128], sizes = [2, 128], strides = [1, 1]} : vector<2x384xf32> to vector<2x128xf32>
    %98 = vector.extract_strided_slice %95 {offsets = [0, 256], sizes = [2, 128], strides = [1, 1]} : vector<2x384xf32> to vector<2x128xf32>
    %99 = vector.extract_strided_slice %89 {offsets = [0, 384], sizes = [2, 128], strides = [1, 1]} : vector<2x512xf32> to vector<2x128xf32>
    %100 = math.tanh %99 : vector<2x128xf32>
    %101 = arith.mulf %97, %57 : vector<2x128xf32>
    %102 = arith.mulf %96, %100 : vector<2x128xf32>
    %103 = arith.addf %101, %102 : vector<2x128xf32>
    %104 = math.tanh %103 : vector<2x128xf32>
    %105 = arith.mulf %98, %104 : vector<2x128xf32>
    %c1_33 = arith.constant 1 : index
    %c0_34 = arith.constant 0 : index
    %c0_35 = arith.constant 0 : index
    %106 = vector.load %arg10[%c1_33, %c0_34, %c0_35] : memref<12x2x128xf32, #tpu.memory_space<vmem>>, vector<1x2x128xf32>
    %107 = vector.shape_cast %106 : vector<1x2x128xf32> to vector<2x128xf32>
    %108 = vector.shape_cast %105 : vector<2x128xf32> to vector<1x2x128xf32>
    tpu.vector_store %arg10[%c1_33, %c0_34, %c0_35], %108 {strides = array<i32>} : memref<12x2x128xf32, #tpu.memory_space<vmem>>, vector<1x2x128xf32>,
    %c2 = arith.constant 2 : index
    %c0_36 = arith.constant 0 : index
    %c0_37 = arith.constant 0 : index
    %109 = vector.load %arg0[%c2, %c0_36, %c0_37] : memref<8x2x1xf32, #tpu.memory_space<vmem>>, vector<1x2x1xf32>
    %110 = vector.shape_cast %109 : vector<1x2x1xf32> to vector<2x1xf32>
    %111 = vector.broadcast %110 : vector<2x1xf32> to vector<2x512xf32>
    %112 = arith.mulf %111, %7 : vector<2x512xf32>
    %113 = arith.addf %112, %10 : vector<2x512xf32>
    %cst_38 = arith.constant dense<0.000000e+00> : vector<2x512xf32>
    %114 = tpu.matmul %85, %0, %cst_38 {dimension_numbers = #tpu.dot_dimension_numbers<[1], [0], [0], [1], [0, 0, 1, 1], [], []>} : vector<2x128xf32>, vector<128x512xf32>, vector<2x512xf32> -> vector<2x512xf32>
    %115 = arith.addf %113, %114 : vector<2x512xf32>
    %116 = vector.extract_strided_slice %115 {offsets = [0, 0], sizes = [2, 384], strides = [1, 1]} : vector<2x512xf32> to vector<2x384xf32>
    %117 = arith.negf %116 : vector<2x384xf32>
    %118 = math.exp %117 : vector<2x384xf32>
    %cst_39 = arith.constant 1.000000e+00 : f32
    %119 = vector.broadcast %cst_39 : f32 to vector<2x384xf32>
    %120 = arith.addf %119, %118 : vector<2x384xf32>
    %121 = arith.divf %119, %120 : vector<2x384xf32>
    %122 = vector.extract_strided_slice %121 {offsets = [0, 0], sizes = [2, 128], strides = [1, 1]} : vector<2x384xf32> to vector<2x128xf32>
    %123 = vector.extract_strided_slice %121 {offsets = [0, 128], sizes = [2, 128], strides = [1, 1]} : vector<2x384xf32> to vector<2x128xf32>
    %124 = vector.extract_strided_slice %121 {offsets = [0, 256], sizes = [2, 128], strides = [1, 1]} : vector<2x384xf32> to vector<2x128xf32>
    %125 = vector.extract_strided_slice %115 {offsets = [0, 384], sizes = [2, 128], strides = [1, 1]} : vector<2x512xf32> to vector<2x128xf32>
    %126 = math.tanh %125 : vector<2x128xf32>
    %127 = arith.mulf %123, %83 : vector<2x128xf32>
    %128 = arith.mulf %122, %126 : vector<2x128xf32>
    %129 = arith.addf %127, %128 : vector<2x128xf32>
    %130 = math.tanh %129 : vector<2x128xf32>
    %131 = arith.mulf %124, %130 : vector<2x128xf32>
    %cst_40 = arith.constant dense<0.000000e+00> : vector<2x512xf32>
    %132 = tpu.matmul %131, %1, %cst_40 {dimension_numbers = #tpu.dot_dimension_numbers<[1], [0], [0], [1], [0, 0, 1, 1], [], []>} : vector<2x128xf32>, vector<128x512xf32>, vector<2x512xf32> -> vector<2x512xf32>
    %cst_41 = arith.constant dense<0.000000e+00> : vector<2x512xf32>
    %133 = tpu.matmul %105, %2, %cst_41 {dimension_numbers = #tpu.dot_dimension_numbers<[1], [0], [0], [1], [0, 0, 1, 1], [], []>} : vector<2x128xf32>, vector<128x512xf32>, vector<2x512xf32> -> vector<2x512xf32>
    %134 = arith.addf %132, %133 : vector<2x512xf32>
    %135 = arith.addf %134, %13 : vector<2x512xf32>
    %136 = vector.extract_strided_slice %135 {offsets = [0, 0], sizes = [2, 384], strides = [1, 1]} : vector<2x512xf32> to vector<2x384xf32>
    %137 = arith.negf %136 : vector<2x384xf32>
    %138 = math.exp %137 : vector<2x384xf32>
    %cst_42 = arith.constant 1.000000e+00 : f32
    %139 = vector.broadcast %cst_42 : f32 to vector<2x384xf32>
    %140 = arith.addf %139, %138 : vector<2x384xf32>
    %141 = arith.divf %139, %140 : vector<2x384xf32>
    %142 = vector.extract_strided_slice %141 {offsets = [0, 0], sizes = [2, 128], strides = [1, 1]} : vector<2x384xf32> to vector<2x128xf32>
    %143 = vector.extract_strided_slice %141 {offsets = [0, 128], sizes = [2, 128], strides = [1, 1]} : vector<2x384xf32> to vector<2x128xf32>
    %144 = vector.extract_strided_slice %141 {offsets = [0, 256], sizes = [2, 128], strides = [1, 1]} : vector<2x384xf32> to vector<2x128xf32>
    %145 = vector.extract_strided_slice %135 {offsets = [0, 384], sizes = [2, 128], strides = [1, 1]} : vector<2x512xf32> to vector<2x128xf32>
    %146 = math.tanh %145 : vector<2x128xf32>
    %147 = arith.mulf %143, %103 : vector<2x128xf32>
    %148 = arith.mulf %142, %146 : vector<2x128xf32>
    %149 = arith.addf %147, %148 : vector<2x128xf32>
    %150 = math.tanh %149 : vector<2x128xf32>
    %151 = arith.mulf %144, %150 : vector<2x128xf32>
    %c2_43 = arith.constant 2 : index
    %c0_44 = arith.constant 0 : index
    %c0_45 = arith.constant 0 : index
    %152 = vector.load %arg10[%c2_43, %c0_44, %c0_45] : memref<12x2x128xf32, #tpu.memory_space<vmem>>, vector<1x2x128xf32>
    %153 = vector.shape_cast %152 : vector<1x2x128xf32> to vector<2x128xf32>
    %154 = vector.shape_cast %151 : vector<2x128xf32> to vector<1x2x128xf32>
    tpu.vector_store %arg10[%c2_43, %c0_44, %c0_45], %154 {strides = array<i32>} : memref<12x2x128xf32, #tpu.memory_space<vmem>>, vector<1x2x128xf32>,
    %c3 = arith.constant 3 : index
    %c0_46 = arith.constant 0 : index
    %c0_47 = arith.constant 0 : index
    %155 = vector.load %arg0[%c3, %c0_46, %c0_47] : memref<8x2x1xf32, #tpu.memory_space<vmem>>, vector<1x2x1xf32>
    %156 = vector.shape_cast %155 : vector<1x2x1xf32> to vector<2x1xf32>
    %157 = vector.broadcast %156 : vector<2x1xf32> to vector<2x512xf32>
    %158 = arith.mulf %157, %7 : vector<2x512xf32>
    %159 = arith.addf %158, %10 : vector<2x512xf32>
    %cst_48 = arith.constant dense<0.000000e+00> : vector<2x512xf32>
    %160 = tpu.matmul %131, %0, %cst_48 {dimension_numbers = #tpu.dot_dimension_numbers<[1], [0], [0], [1], [0, 0, 1, 1], [], []>} : vector<2x128xf32>, vector<128x512xf32>, vector<2x512xf32> -> vector<2x512xf32>
    %161 = arith.addf %159, %160 : vector<2x512xf32>
    %162 = vector.extract_strided_slice %161 {offsets = [0, 0], sizes = [2, 384], strides = [1, 1]} : vector<2x512xf32> to vector<2x384xf32>
    %163 = arith.negf %162 : vector<2x384xf32>
    %164 = math.exp %163 : vector<2x384xf32>
    %cst_49 = arith.constant 1.000000e+00 : f32
    %165 = vector.broadcast %cst_49 : f32 to vector<2x384xf32>
    %166 = arith.addf %165, %164 : vector<2x384xf32>
    %167 = arith.divf %165, %166 : vector<2x384xf32>
    %168 = vector.extract_strided_slice %167 {offsets = [0, 0], sizes = [2, 128], strides = [1, 1]} : vector<2x384xf32> to vector<2x128xf32>
    %169 = vector.extract_strided_slice %167 {offsets = [0, 128], sizes = [2, 128], strides = [1, 1]} : vector<2x384xf32> to vector<2x128xf32>
    %170 = vector.extract_strided_slice %167 {offsets = [0, 256], sizes = [2, 128], strides = [1, 1]} : vector<2x384xf32> to vector<2x128xf32>
    %171 = vector.extract_strided_slice %161 {offsets = [0, 384], sizes = [2, 128], strides = [1, 1]} : vector<2x512xf32> to vector<2x128xf32>
    %172 = math.tanh %171 : vector<2x128xf32>
    %173 = arith.mulf %169, %129 : vector<2x128xf32>
    %174 = arith.mulf %168, %172 : vector<2x128xf32>
    %175 = arith.addf %173, %174 : vector<2x128xf32>
    %176 = math.tanh %175 : vector<2x128xf32>
    %177 = arith.mulf %170, %176 : vector<2x128xf32>
    %cst_50 = arith.constant dense<0.000000e+00> : vector<2x512xf32>
    %178 = tpu.matmul %177, %1, %cst_50 {dimension_numbers = #tpu.dot_dimension_numbers<[1], [0], [0], [1], [0, 0, 1, 1], [], []>} : vector<2x128xf32>, vector<128x512xf32>, vector<2x512xf32> -> vector<2x512xf32>
    %cst_51 = arith.constant dense<0.000000e+00> : vector<2x512xf32>
    %179 = tpu.matmul %151, %2, %cst_51 {dimension_numbers = #tpu.dot_dimension_numbers<[1], [0], [0], [1], [0, 0, 1, 1], [], []>} : vector<2x128xf32>, vector<128x512xf32>, vector<2x512xf32> -> vector<2x512xf32>
    %180 = arith.addf %178, %179 : vector<2x512xf32>
    %181 = arith.addf %180, %13 : vector<2x512xf32>
    %182 = vector.extract_strided_slice %181 {offsets = [0, 0], sizes = [2, 384], strides = [1, 1]} : vector<2x512xf32> to vector<2x384xf32>
    %183 = arith.negf %182 : vector<2x384xf32>
    %184 = math.exp %183 : vector<2x384xf32>
    %cst_52 = arith.constant 1.000000e+00 : f32
    %185 = vector.broadcast %cst_52 : f32 to vector<2x384xf32>
    %186 = arith.addf %185, %184 : vector<2x384xf32>
    %187 = arith.divf %185, %186 : vector<2x384xf32>
    %188 = vector.extract_strided_slice %187 {offsets = [0, 0], sizes = [2, 128], strides = [1, 1]} : vector<2x384xf32> to vector<2x128xf32>
    %189 = vector.extract_strided_slice %187 {offsets = [0, 128], sizes = [2, 128], strides = [1, 1]} : vector<2x384xf32> to vector<2x128xf32>
    %190 = vector.extract_strided_slice %187 {offsets = [0, 256], sizes = [2, 128], strides = [1, 1]} : vector<2x384xf32> to vector<2x128xf32>
    %191 = vector.extract_strided_slice %181 {offsets = [0, 384], sizes = [2, 128], strides = [1, 1]} : vector<2x512xf32> to vector<2x128xf32>
    %192 = math.tanh %191 : vector<2x128xf32>
    %193 = arith.mulf %189, %149 : vector<2x128xf32>
    %194 = arith.mulf %188, %192 : vector<2x128xf32>
    %195 = arith.addf %193, %194 : vector<2x128xf32>
    %196 = math.tanh %195 : vector<2x128xf32>
    %197 = arith.mulf %190, %196 : vector<2x128xf32>
    %c3_53 = arith.constant 3 : index
    %c0_54 = arith.constant 0 : index
    %c0_55 = arith.constant 0 : index
    %198 = vector.load %arg10[%c3_53, %c0_54, %c0_55] : memref<12x2x128xf32, #tpu.memory_space<vmem>>, vector<1x2x128xf32>
    %199 = vector.shape_cast %198 : vector<1x2x128xf32> to vector<2x128xf32>
    %200 = vector.shape_cast %197 : vector<2x128xf32> to vector<1x2x128xf32>
    tpu.vector_store %arg10[%c3_53, %c0_54, %c0_55], %200 {strides = array<i32>} : memref<12x2x128xf32, #tpu.memory_space<vmem>>, vector<1x2x128xf32>,
    %c4 = arith.constant 4 : index
    %c0_56 = arith.constant 0 : index
    %c0_57 = arith.constant 0 : index
    %201 = vector.load %arg0[%c4, %c0_56, %c0_57] : memref<8x2x1xf32, #tpu.memory_space<vmem>>, vector<1x2x1xf32>
    %202 = vector.shape_cast %201 : vector<1x2x1xf32> to vector<2x1xf32>
    %203 = vector.broadcast %202 : vector<2x1xf32> to vector<2x512xf32>
    %204 = arith.mulf %203, %7 : vector<2x512xf32>
    %205 = arith.addf %204, %10 : vector<2x512xf32>
    %cst_58 = arith.constant dense<0.000000e+00> : vector<2x512xf32>
    %206 = tpu.matmul %177, %0, %cst_58 {dimension_numbers = #tpu.dot_dimension_numbers<[1], [0], [0], [1], [0, 0, 1, 1], [], []>} : vector<2x128xf32>, vector<128x512xf32>, vector<2x512xf32> -> vector<2x512xf32>
    %207 = arith.addf %205, %206 : vector<2x512xf32>
    %208 = vector.extract_strided_slice %207 {offsets = [0, 0], sizes = [2, 384], strides = [1, 1]} : vector<2x512xf32> to vector<2x384xf32>
    %209 = arith.negf %208 : vector<2x384xf32>
    %210 = math.exp %209 : vector<2x384xf32>
    %cst_59 = arith.constant 1.000000e+00 : f32
    %211 = vector.broadcast %cst_59 : f32 to vector<2x384xf32>
    %212 = arith.addf %211, %210 : vector<2x384xf32>
    %213 = arith.divf %211, %212 : vector<2x384xf32>
    %214 = vector.extract_strided_slice %213 {offsets = [0, 0], sizes = [2, 128], strides = [1, 1]} : vector<2x384xf32> to vector<2x128xf32>
    %215 = vector.extract_strided_slice %213 {offsets = [0, 128], sizes = [2, 128], strides = [1, 1]} : vector<2x384xf32> to vector<2x128xf32>
    %216 = vector.extract_strided_slice %213 {offsets = [0, 256], sizes = [2, 128], strides = [1, 1]} : vector<2x384xf32> to vector<2x128xf32>
    %217 = vector.extract_strided_slice %207 {offsets = [0, 384], sizes = [2, 128], strides = [1, 1]} : vector<2x512xf32> to vector<2x128xf32>
    %218 = math.tanh %217 : vector<2x128xf32>
    %219 = arith.mulf %215, %175 : vector<2x128xf32>
    %220 = arith.mulf %214, %218 : vector<2x128xf32>
    %221 = arith.addf %219, %220 : vector<2x128xf32>
    %222 = math.tanh %221 : vector<2x128xf32>
    %223 = arith.mulf %216, %222 : vector<2x128xf32>
    %cst_60 = arith.constant dense<0.000000e+00> : vector<2x512xf32>
    %224 = tpu.matmul %223, %1, %cst_60 {dimension_numbers = #tpu.dot_dimension_numbers<[1], [0], [0], [1], [0, 0, 1, 1], [], []>} : vector<2x128xf32>, vector<128x512xf32>, vector<2x512xf32> -> vector<2x512xf32>
    %cst_61 = arith.constant dense<0.000000e+00> : vector<2x512xf32>
    %225 = tpu.matmul %197, %2, %cst_61 {dimension_numbers = #tpu.dot_dimension_numbers<[1], [0], [0], [1], [0, 0, 1, 1], [], []>} : vector<2x128xf32>, vector<128x512xf32>, vector<2x512xf32> -> vector<2x512xf32>
    %226 = arith.addf %224, %225 : vector<2x512xf32>
    %227 = arith.addf %226, %13 : vector<2x512xf32>
    %228 = vector.extract_strided_slice %227 {offsets = [0, 0], sizes = [2, 384], strides = [1, 1]} : vector<2x512xf32> to vector<2x384xf32>
    %229 = arith.negf %228 : vector<2x384xf32>
    %230 = math.exp %229 : vector<2x384xf32>
    %cst_62 = arith.constant 1.000000e+00 : f32
    %231 = vector.broadcast %cst_62 : f32 to vector<2x384xf32>
    %232 = arith.addf %231, %230 : vector<2x384xf32>
    %233 = arith.divf %231, %232 : vector<2x384xf32>
    %234 = vector.extract_strided_slice %233 {offsets = [0, 0], sizes = [2, 128], strides = [1, 1]} : vector<2x384xf32> to vector<2x128xf32>
    %235 = vector.extract_strided_slice %233 {offsets = [0, 128], sizes = [2, 128], strides = [1, 1]} : vector<2x384xf32> to vector<2x128xf32>
    %236 = vector.extract_strided_slice %233 {offsets = [0, 256], sizes = [2, 128], strides = [1, 1]} : vector<2x384xf32> to vector<2x128xf32>
    %237 = vector.extract_strided_slice %227 {offsets = [0, 384], sizes = [2, 128], strides = [1, 1]} : vector<2x512xf32> to vector<2x128xf32>
    %238 = math.tanh %237 : vector<2x128xf32>
    %239 = arith.mulf %235, %195 : vector<2x128xf32>
    %240 = arith.mulf %234, %238 : vector<2x128xf32>
    %241 = arith.addf %239, %240 : vector<2x128xf32>
    %242 = math.tanh %241 : vector<2x128xf32>
    %243 = arith.mulf %236, %242 : vector<2x128xf32>
    %c4_63 = arith.constant 4 : index
    %c0_64 = arith.constant 0 : index
    %c0_65 = arith.constant 0 : index
    %244 = vector.load %arg10[%c4_63, %c0_64, %c0_65] : memref<12x2x128xf32, #tpu.memory_space<vmem>>, vector<1x2x128xf32>
    %245 = vector.shape_cast %244 : vector<1x2x128xf32> to vector<2x128xf32>
    %246 = vector.shape_cast %243 : vector<2x128xf32> to vector<1x2x128xf32>
    tpu.vector_store %arg10[%c4_63, %c0_64, %c0_65], %246 {strides = array<i32>} : memref<12x2x128xf32, #tpu.memory_space<vmem>>, vector<1x2x128xf32>,
    %c5 = arith.constant 5 : index
    %c0_66 = arith.constant 0 : index
    %c0_67 = arith.constant 0 : index
    %247 = vector.load %arg0[%c5, %c0_66, %c0_67] : memref<8x2x1xf32, #tpu.memory_space<vmem>>, vector<1x2x1xf32>
    %248 = vector.shape_cast %247 : vector<1x2x1xf32> to vector<2x1xf32>
    %249 = vector.broadcast %248 : vector<2x1xf32> to vector<2x512xf32>
    %250 = arith.mulf %249, %7 : vector<2x512xf32>
    %251 = arith.addf %250, %10 : vector<2x512xf32>
    %cst_68 = arith.constant dense<0.000000e+00> : vector<2x512xf32>
    %252 = tpu.matmul %223, %0, %cst_68 {dimension_numbers = #tpu.dot_dimension_numbers<[1], [0], [0], [1], [0, 0, 1, 1], [], []>} : vector<2x128xf32>, vector<128x512xf32>, vector<2x512xf32> -> vector<2x512xf32>
    %253 = arith.addf %251, %252 : vector<2x512xf32>
    %254 = vector.extract_strided_slice %253 {offsets = [0, 0], sizes = [2, 384], strides = [1, 1]} : vector<2x512xf32> to vector<2x384xf32>
    %255 = arith.negf %254 : vector<2x384xf32>
    %256 = math.exp %255 : vector<2x384xf32>
    %cst_69 = arith.constant 1.000000e+00 : f32
    %257 = vector.broadcast %cst_69 : f32 to vector<2x384xf32>
    %258 = arith.addf %257, %256 : vector<2x384xf32>
    %259 = arith.divf %257, %258 : vector<2x384xf32>
    %260 = vector.extract_strided_slice %259 {offsets = [0, 0], sizes = [2, 128], strides = [1, 1]} : vector<2x384xf32> to vector<2x128xf32>
    %261 = vector.extract_strided_slice %259 {offsets = [0, 128], sizes = [2, 128], strides = [1, 1]} : vector<2x384xf32> to vector<2x128xf32>
    %262 = vector.extract_strided_slice %259 {offsets = [0, 256], sizes = [2, 128], strides = [1, 1]} : vector<2x384xf32> to vector<2x128xf32>
    %263 = vector.extract_strided_slice %253 {offsets = [0, 384], sizes = [2, 128], strides = [1, 1]} : vector<2x512xf32> to vector<2x128xf32>
    %264 = math.tanh %263 : vector<2x128xf32>
    %265 = arith.mulf %261, %221 : vector<2x128xf32>
    %266 = arith.mulf %260, %264 : vector<2x128xf32>
    %267 = arith.addf %265, %266 : vector<2x128xf32>
    %268 = math.tanh %267 : vector<2x128xf32>
    %269 = arith.mulf %262, %268 : vector<2x128xf32>
    %cst_70 = arith.constant dense<0.000000e+00> : vector<2x512xf32>
    %270 = tpu.matmul %269, %1, %cst_70 {dimension_numbers = #tpu.dot_dimension_numbers<[1], [0], [0], [1], [0, 0, 1, 1], [], []>} : vector<2x128xf32>, vector<128x512xf32>, vector<2x512xf32> -> vector<2x512xf32>
    %cst_71 = arith.constant dense<0.000000e+00> : vector<2x512xf32>
    %271 = tpu.matmul %243, %2, %cst_71 {dimension_numbers = #tpu.dot_dimension_numbers<[1], [0], [0], [1], [0, 0, 1, 1], [], []>} : vector<2x128xf32>, vector<128x512xf32>, vector<2x512xf32> -> vector<2x512xf32>
    %272 = arith.addf %270, %271 : vector<2x512xf32>
    %273 = arith.addf %272, %13 : vector<2x512xf32>
    %274 = vector.extract_strided_slice %273 {offsets = [0, 0], sizes = [2, 384], strides = [1, 1]} : vector<2x512xf32> to vector<2x384xf32>
    %275 = arith.negf %274 : vector<2x384xf32>
    %276 = math.exp %275 : vector<2x384xf32>
    %cst_72 = arith.constant 1.000000e+00 : f32
    %277 = vector.broadcast %cst_72 : f32 to vector<2x384xf32>
    %278 = arith.addf %277, %276 : vector<2x384xf32>
    %279 = arith.divf %277, %278 : vector<2x384xf32>
    %280 = vector.extract_strided_slice %279 {offsets = [0, 0], sizes = [2, 128], strides = [1, 1]} : vector<2x384xf32> to vector<2x128xf32>
    %281 = vector.extract_strided_slice %279 {offsets = [0, 128], sizes = [2, 128], strides = [1, 1]} : vector<2x384xf32> to vector<2x128xf32>
    %282 = vector.extract_strided_slice %279 {offsets = [0, 256], sizes = [2, 128], strides = [1, 1]} : vector<2x384xf32> to vector<2x128xf32>
    %283 = vector.extract_strided_slice %273 {offsets = [0, 384], sizes = [2, 128], strides = [1, 1]} : vector<2x512xf32> to vector<2x128xf32>
    %284 = math.tanh %283 : vector<2x128xf32>
    %285 = arith.mulf %281, %241 : vector<2x128xf32>
    %286 = arith.mulf %280, %284 : vector<2x128xf32>
    %287 = arith.addf %285, %286 : vector<2x128xf32>
    %288 = math.tanh %287 : vector<2x128xf32>
    %289 = arith.mulf %282, %288 : vector<2x128xf32>
    %c5_73 = arith.constant 5 : index
    %c0_74 = arith.constant 0 : index
    %c0_75 = arith.constant 0 : index
    %290 = vector.load %arg10[%c5_73, %c0_74, %c0_75] : memref<12x2x128xf32, #tpu.memory_space<vmem>>, vector<1x2x128xf32>
    %291 = vector.shape_cast %290 : vector<1x2x128xf32> to vector<2x128xf32>
    %292 = vector.shape_cast %289 : vector<2x128xf32> to vector<1x2x128xf32>
    tpu.vector_store %arg10[%c5_73, %c0_74, %c0_75], %292 {strides = array<i32>} : memref<12x2x128xf32, #tpu.memory_space<vmem>>, vector<1x2x128xf32>,
    %c6 = arith.constant 6 : index
    %c0_76 = arith.constant 0 : index
    %c0_77 = arith.constant 0 : index
    %293 = vector.load %arg0[%c6, %c0_76, %c0_77] : memref<8x2x1xf32, #tpu.memory_space<vmem>>, vector<1x2x1xf32>
    %294 = vector.shape_cast %293 : vector<1x2x1xf32> to vector<2x1xf32>
    %295 = vector.broadcast %294 : vector<2x1xf32> to vector<2x512xf32>
    %296 = arith.mulf %295, %7 : vector<2x512xf32>
    %297 = arith.addf %296, %10 : vector<2x512xf32>
    %cst_78 = arith.constant dense<0.000000e+00> : vector<2x512xf32>
    %298 = tpu.matmul %269, %0, %cst_78 {dimension_numbers = #tpu.dot_dimension_numbers<[1], [0], [0], [1], [0, 0, 1, 1], [], []>} : vector<2x128xf32>, vector<128x512xf32>, vector<2x512xf32> -> vector<2x512xf32>
    %299 = arith.addf %297, %298 : vector<2x512xf32>
    %300 = vector.extract_strided_slice %299 {offsets = [0, 0], sizes = [2, 384], strides = [1, 1]} : vector<2x512xf32> to vector<2x384xf32>
    %301 = arith.negf %300 : vector<2x384xf32>
    %302 = math.exp %301 : vector<2x384xf32>
    %cst_79 = arith.constant 1.000000e+00 : f32
    %303 = vector.broadcast %cst_79 : f32 to vector<2x384xf32>
    %304 = arith.addf %303, %302 : vector<2x384xf32>
    %305 = arith.divf %303, %304 : vector<2x384xf32>
    %306 = vector.extract_strided_slice %305 {offsets = [0, 0], sizes = [2, 128], strides = [1, 1]} : vector<2x384xf32> to vector<2x128xf32>
    %307 = vector.extract_strided_slice %305 {offsets = [0, 128], sizes = [2, 128], strides = [1, 1]} : vector<2x384xf32> to vector<2x128xf32>
    %308 = vector.extract_strided_slice %305 {offsets = [0, 256], sizes = [2, 128], strides = [1, 1]} : vector<2x384xf32> to vector<2x128xf32>
    %309 = vector.extract_strided_slice %299 {offsets = [0, 384], sizes = [2, 128], strides = [1, 1]} : vector<2x512xf32> to vector<2x128xf32>
    %310 = math.tanh %309 : vector<2x128xf32>
    %311 = arith.mulf %307, %267 : vector<2x128xf32>
    %312 = arith.mulf %306, %310 : vector<2x128xf32>
    %313 = arith.addf %311, %312 : vector<2x128xf32>
    %314 = math.tanh %313 : vector<2x128xf32>
    %315 = arith.mulf %308, %314 : vector<2x128xf32>
    %cst_80 = arith.constant dense<0.000000e+00> : vector<2x512xf32>
    %316 = tpu.matmul %315, %1, %cst_80 {dimension_numbers = #tpu.dot_dimension_numbers<[1], [0], [0], [1], [0, 0, 1, 1], [], []>} : vector<2x128xf32>, vector<128x512xf32>, vector<2x512xf32> -> vector<2x512xf32>
    %cst_81 = arith.constant dense<0.000000e+00> : vector<2x512xf32>
    %317 = tpu.matmul %289, %2, %cst_81 {dimension_numbers = #tpu.dot_dimension_numbers<[1], [0], [0], [1], [0, 0, 1, 1], [], []>} : vector<2x128xf32>, vector<128x512xf32>, vector<2x512xf32> -> vector<2x512xf32>
    %318 = arith.addf %316, %317 : vector<2x512xf32>
    %319 = arith.addf %318, %13 : vector<2x512xf32>
    %320 = vector.extract_strided_slice %319 {offsets = [0, 0], sizes = [2, 384], strides = [1, 1]} : vector<2x512xf32> to vector<2x384xf32>
    %321 = arith.negf %320 : vector<2x384xf32>
    %322 = math.exp %321 : vector<2x384xf32>
    %cst_82 = arith.constant 1.000000e+00 : f32
    %323 = vector.broadcast %cst_82 : f32 to vector<2x384xf32>
    %324 = arith.addf %323, %322 : vector<2x384xf32>
    %325 = arith.divf %323, %324 : vector<2x384xf32>
    %326 = vector.extract_strided_slice %325 {offsets = [0, 0], sizes = [2, 128], strides = [1, 1]} : vector<2x384xf32> to vector<2x128xf32>
    %327 = vector.extract_strided_slice %325 {offsets = [0, 128], sizes = [2, 128], strides = [1, 1]} : vector<2x384xf32> to vector<2x128xf32>
    %328 = vector.extract_strided_slice %325 {offsets = [0, 256], sizes = [2, 128], strides = [1, 1]} : vector<2x384xf32> to vector<2x128xf32>
    %329 = vector.extract_strided_slice %319 {offsets = [0, 384], sizes = [2, 128], strides = [1, 1]} : vector<2x512xf32> to vector<2x128xf32>
    %330 = math.tanh %329 : vector<2x128xf32>
    %331 = arith.mulf %327, %287 : vector<2x128xf32>
    %332 = arith.mulf %326, %330 : vector<2x128xf32>
    %333 = arith.addf %331, %332 : vector<2x128xf32>
    %334 = math.tanh %333 : vector<2x128xf32>
    %335 = arith.mulf %328, %334 : vector<2x128xf32>
    %c6_83 = arith.constant 6 : index
    %c0_84 = arith.constant 0 : index
    %c0_85 = arith.constant 0 : index
    %336 = vector.load %arg10[%c6_83, %c0_84, %c0_85] : memref<12x2x128xf32, #tpu.memory_space<vmem>>, vector<1x2x128xf32>
    %337 = vector.shape_cast %336 : vector<1x2x128xf32> to vector<2x128xf32>
    %338 = vector.shape_cast %335 : vector<2x128xf32> to vector<1x2x128xf32>
    tpu.vector_store %arg10[%c6_83, %c0_84, %c0_85], %338 {strides = array<i32>} : memref<12x2x128xf32, #tpu.memory_space<vmem>>, vector<1x2x128xf32>,
    %c7 = arith.constant 7 : index
    %c0_86 = arith.constant 0 : index
    %c0_87 = arith.constant 0 : index
    %339 = vector.load %arg0[%c7, %c0_86, %c0_87] : memref<8x2x1xf32, #tpu.memory_space<vmem>>, vector<1x2x1xf32>
    %340 = vector.shape_cast %339 : vector<1x2x1xf32> to vector<2x1xf32>
    %341 = vector.broadcast %340 : vector<2x1xf32> to vector<2x512xf32>
    %342 = arith.mulf %341, %7 : vector<2x512xf32>
    %343 = arith.addf %342, %10 : vector<2x512xf32>
    %cst_88 = arith.constant dense<0.000000e+00> : vector<2x512xf32>
    %344 = tpu.matmul %315, %0, %cst_88 {dimension_numbers = #tpu.dot_dimension_numbers<[1], [0], [0], [1], [0, 0, 1, 1], [], []>} : vector<2x128xf32>, vector<128x512xf32>, vector<2x512xf32> -> vector<2x512xf32>
    %345 = arith.addf %343, %344 : vector<2x512xf32>
    %346 = vector.extract_strided_slice %345 {offsets = [0, 0], sizes = [2, 384], strides = [1, 1]} : vector<2x512xf32> to vector<2x384xf32>
    %347 = arith.negf %346 : vector<2x384xf32>
    %348 = math.exp %347 : vector<2x384xf32>
    %cst_89 = arith.constant 1.000000e+00 : f32
    %349 = vector.broadcast %cst_89 : f32 to vector<2x384xf32>
    %350 = arith.addf %349, %348 : vector<2x384xf32>
    %351 = arith.divf %349, %350 : vector<2x384xf32>
    %352 = vector.extract_strided_slice %351 {offsets = [0, 0], sizes = [2, 128], strides = [1, 1]} : vector<2x384xf32> to vector<2x128xf32>
    %353 = vector.extract_strided_slice %351 {offsets = [0, 128], sizes = [2, 128], strides = [1, 1]} : vector<2x384xf32> to vector<2x128xf32>
    %354 = vector.extract_strided_slice %351 {offsets = [0, 256], sizes = [2, 128], strides = [1, 1]} : vector<2x384xf32> to vector<2x128xf32>
    %355 = vector.extract_strided_slice %345 {offsets = [0, 384], sizes = [2, 128], strides = [1, 1]} : vector<2x512xf32> to vector<2x128xf32>
    %356 = math.tanh %355 : vector<2x128xf32>
    %357 = arith.mulf %353, %313 : vector<2x128xf32>
    %358 = arith.mulf %352, %356 : vector<2x128xf32>
    %359 = arith.addf %357, %358 : vector<2x128xf32>
    %360 = math.tanh %359 : vector<2x128xf32>
    %361 = arith.mulf %354, %360 : vector<2x128xf32>
    %cst_90 = arith.constant dense<0.000000e+00> : vector<2x512xf32>
    %362 = tpu.matmul %361, %1, %cst_90 {dimension_numbers = #tpu.dot_dimension_numbers<[1], [0], [0], [1], [0, 0, 1, 1], [], []>} : vector<2x128xf32>, vector<128x512xf32>, vector<2x512xf32> -> vector<2x512xf32>
    %cst_91 = arith.constant dense<0.000000e+00> : vector<2x512xf32>
    %363 = tpu.matmul %335, %2, %cst_91 {dimension_numbers = #tpu.dot_dimension_numbers<[1], [0], [0], [1], [0, 0, 1, 1], [], []>} : vector<2x128xf32>, vector<128x512xf32>, vector<2x512xf32> -> vector<2x512xf32>
    %364 = arith.addf %362, %363 : vector<2x512xf32>
    %365 = arith.addf %364, %13 : vector<2x512xf32>
    %366 = vector.extract_strided_slice %365 {offsets = [0, 0], sizes = [2, 384], strides = [1, 1]} : vector<2x512xf32> to vector<2x384xf32>
    %367 = arith.negf %366 : vector<2x384xf32>
    %368 = math.exp %367 : vector<2x384xf32>
    %cst_92 = arith.constant 1.000000e+00 : f32
    %369 = vector.broadcast %cst_92 : f32 to vector<2x384xf32>
    %370 = arith.addf %369, %368 : vector<2x384xf32>
    %371 = arith.divf %369, %370 : vector<2x384xf32>
    %372 = vector.extract_strided_slice %371 {offsets = [0, 0], sizes = [2, 128], strides = [1, 1]} : vector<2x384xf32> to vector<2x128xf32>
    %373 = vector.extract_strided_slice %371 {offsets = [0, 128], sizes = [2, 128], strides = [1, 1]} : vector<2x384xf32> to vector<2x128xf32>
    %374 = vector.extract_strided_slice %371 {offsets = [0, 256], sizes = [2, 128], strides = [1, 1]} : vector<2x384xf32> to vector<2x128xf32>
    %375 = vector.extract_strided_slice %365 {offsets = [0, 384], sizes = [2, 128], strides = [1, 1]} : vector<2x512xf32> to vector<2x128xf32>
    %376 = math.tanh %375 : vector<2x128xf32>
    %377 = arith.mulf %373, %333 : vector<2x128xf32>
    %378 = arith.mulf %372, %376 : vector<2x128xf32>
    %379 = arith.addf %377, %378 : vector<2x128xf32>
    %380 = math.tanh %379 : vector<2x128xf32>
    %381 = arith.mulf %374, %380 : vector<2x128xf32>
    %c7_93 = arith.constant 7 : index
    %c0_94 = arith.constant 0 : index
    %c0_95 = arith.constant 0 : index
    %382 = vector.load %arg10[%c7_93, %c0_94, %c0_95] : memref<12x2x128xf32, #tpu.memory_space<vmem>>, vector<1x2x128xf32>
    %383 = vector.shape_cast %382 : vector<1x2x128xf32> to vector<2x128xf32>
    %384 = vector.shape_cast %381 : vector<2x128xf32> to vector<1x2x128xf32>
    tpu.vector_store %arg10[%c7_93, %c0_94, %c0_95], %384 {strides = array<i32>} : memref<12x2x128xf32, #tpu.memory_space<vmem>>, vector<1x2x128xf32>,
    %385 = arith.mulf %381, %15 : vector<2x128xf32>
    %cst_96 = arith.constant dense<0.000000e+00> : vector<2xf32>
    %386 = vector.multi_reduction <add>, %385, %cst_96 [1] : vector<2x128xf32> to vector<2xf32>
    %387 = vector.shape_cast %386 : vector<2xf32> to vector<2x1xf32>
    %388 = vector.broadcast %4 : vector<1x1xf32> to vector<2x1xf32>
    %389 = arith.addf %387, %388 : vector<2x1xf32>
    %390 = vector.broadcast %389 : vector<2x1xf32> to vector<2x512xf32>
    %391 = arith.mulf %390, %7 : vector<2x512xf32>
    %392 = arith.addf %391, %10 : vector<2x512xf32>
    %cst_97 = arith.constant dense<0.000000e+00> : vector<2x512xf32>
    %393 = tpu.matmul %361, %0, %cst_97 {dimension_numbers = #tpu.dot_dimension_numbers<[1], [0], [0], [1], [0, 0, 1, 1], [], []>} : vector<2x128xf32>, vector<128x512xf32>, vector<2x512xf32> -> vector<2x512xf32>
    %394 = arith.addf %392, %393 : vector<2x512xf32>
    %395 = vector.extract_strided_slice %394 {offsets = [0, 0], sizes = [2, 384], strides = [1, 1]} : vector<2x512xf32> to vector<2x384xf32>
    %396 = arith.negf %395 : vector<2x384xf32>
    %397 = math.exp %396 : vector<2x384xf32>
    %cst_98 = arith.constant 1.000000e+00 : f32
    %398 = vector.broadcast %cst_98 : f32 to vector<2x384xf32>
    %399 = arith.addf %398, %397 : vector<2x384xf32>
    %400 = arith.divf %398, %399 : vector<2x384xf32>
    %401 = vector.extract_strided_slice %400 {offsets = [0, 0], sizes = [2, 128], strides = [1, 1]} : vector<2x384xf32> to vector<2x128xf32>
    %402 = vector.extract_strided_slice %400 {offsets = [0, 128], sizes = [2, 128], strides = [1, 1]} : vector<2x384xf32> to vector<2x128xf32>
    %403 = vector.extract_strided_slice %400 {offsets = [0, 256], sizes = [2, 128], strides = [1, 1]} : vector<2x384xf32> to vector<2x128xf32>
    %404 = vector.extract_strided_slice %394 {offsets = [0, 384], sizes = [2, 128], strides = [1, 1]} : vector<2x512xf32> to vector<2x128xf32>
    %405 = math.tanh %404 : vector<2x128xf32>
    %406 = arith.mulf %402, %359 : vector<2x128xf32>
    %407 = arith.mulf %401, %405 : vector<2x128xf32>
    %408 = arith.addf %406, %407 : vector<2x128xf32>
    %409 = math.tanh %408 : vector<2x128xf32>
    %410 = arith.mulf %403, %409 : vector<2x128xf32>
    %cst_99 = arith.constant dense<0.000000e+00> : vector<2x512xf32>
    %411 = tpu.matmul %410, %1, %cst_99 {dimension_numbers = #tpu.dot_dimension_numbers<[1], [0], [0], [1], [0, 0, 1, 1], [], []>} : vector<2x128xf32>, vector<128x512xf32>, vector<2x512xf32> -> vector<2x512xf32>
    %cst_100 = arith.constant dense<0.000000e+00> : vector<2x512xf32>
    %412 = tpu.matmul %381, %2, %cst_100 {dimension_numbers = #tpu.dot_dimension_numbers<[1], [0], [0], [1], [0, 0, 1, 1], [], []>} : vector<2x128xf32>, vector<128x512xf32>, vector<2x512xf32> -> vector<2x512xf32>
    %413 = arith.addf %411, %412 : vector<2x512xf32>
    %414 = arith.addf %413, %13 : vector<2x512xf32>
    %415 = vector.extract_strided_slice %414 {offsets = [0, 0], sizes = [2, 384], strides = [1, 1]} : vector<2x512xf32> to vector<2x384xf32>
    %416 = arith.negf %415 : vector<2x384xf32>
    %417 = math.exp %416 : vector<2x384xf32>
    %cst_101 = arith.constant 1.000000e+00 : f32
    %418 = vector.broadcast %cst_101 : f32 to vector<2x384xf32>
    %419 = arith.addf %418, %417 : vector<2x384xf32>
    %420 = arith.divf %418, %419 : vector<2x384xf32>
    %421 = vector.extract_strided_slice %420 {offsets = [0, 0], sizes = [2, 128], strides = [1, 1]} : vector<2x384xf32> to vector<2x128xf32>
    %422 = vector.extract_strided_slice %420 {offsets = [0, 128], sizes = [2, 128], strides = [1, 1]} : vector<2x384xf32> to vector<2x128xf32>
    %423 = vector.extract_strided_slice %420 {offsets = [0, 256], sizes = [2, 128], strides = [1, 1]} : vector<2x384xf32> to vector<2x128xf32>
    %424 = vector.extract_strided_slice %414 {offsets = [0, 384], sizes = [2, 128], strides = [1, 1]} : vector<2x512xf32> to vector<2x128xf32>
    %425 = math.tanh %424 : vector<2x128xf32>
    %426 = arith.mulf %422, %379 : vector<2x128xf32>
    %427 = arith.mulf %421, %425 : vector<2x128xf32>
    %428 = arith.addf %426, %427 : vector<2x128xf32>
    %429 = math.tanh %428 : vector<2x128xf32>
    %430 = arith.mulf %423, %429 : vector<2x128xf32>
    %c8 = arith.constant 8 : index
    %c0_102 = arith.constant 0 : index
    %c0_103 = arith.constant 0 : index
    %431 = vector.load %arg10[%c8, %c0_102, %c0_103] : memref<12x2x128xf32, #tpu.memory_space<vmem>>, vector<1x2x128xf32>
    %432 = vector.shape_cast %431 : vector<1x2x128xf32> to vector<2x128xf32>
    %433 = vector.shape_cast %430 : vector<2x128xf32> to vector<1x2x128xf32>
    tpu.vector_store %arg10[%c8, %c0_102, %c0_103], %433 {strides = array<i32>} : memref<12x2x128xf32, #tpu.memory_space<vmem>>, vector<1x2x128xf32>,
    %434 = arith.mulf %430, %15 : vector<2x128xf32>
    %cst_104 = arith.constant dense<0.000000e+00> : vector<2xf32>
    %435 = vector.multi_reduction <add>, %434, %cst_104 [1] : vector<2x128xf32> to vector<2xf32>
    %436 = vector.shape_cast %435 : vector<2xf32> to vector<2x1xf32>
    %437 = vector.broadcast %4 : vector<1x1xf32> to vector<2x1xf32>
    %438 = arith.addf %436, %437 : vector<2x1xf32>
    %439 = vector.broadcast %438 : vector<2x1xf32> to vector<2x512xf32>
    %440 = arith.mulf %439, %7 : vector<2x512xf32>
    %441 = arith.addf %440, %10 : vector<2x512xf32>
    %cst_105 = arith.constant dense<0.000000e+00> : vector<2x512xf32>
    %442 = tpu.matmul %410, %0, %cst_105 {dimension_numbers = #tpu.dot_dimension_numbers<[1], [0], [0], [1], [0, 0, 1, 1], [], []>} : vector<2x128xf32>, vector<128x512xf32>, vector<2x512xf32> -> vector<2x512xf32>
    %443 = arith.addf %441, %442 : vector<2x512xf32>
    %444 = vector.extract_strided_slice %443 {offsets = [0, 0], sizes = [2, 384], strides = [1, 1]} : vector<2x512xf32> to vector<2x384xf32>
    %445 = arith.negf %444 : vector<2x384xf32>
    %446 = math.exp %445 : vector<2x384xf32>
    %cst_106 = arith.constant 1.000000e+00 : f32
    %447 = vector.broadcast %cst_106 : f32 to vector<2x384xf32>
    %448 = arith.addf %447, %446 : vector<2x384xf32>
    %449 = arith.divf %447, %448 : vector<2x384xf32>
    %450 = vector.extract_strided_slice %449 {offsets = [0, 0], sizes = [2, 128], strides = [1, 1]} : vector<2x384xf32> to vector<2x128xf32>
    %451 = vector.extract_strided_slice %449 {offsets = [0, 128], sizes = [2, 128], strides = [1, 1]} : vector<2x384xf32> to vector<2x128xf32>
    %452 = vector.extract_strided_slice %449 {offsets = [0, 256], sizes = [2, 128], strides = [1, 1]} : vector<2x384xf32> to vector<2x128xf32>
    %453 = vector.extract_strided_slice %443 {offsets = [0, 384], sizes = [2, 128], strides = [1, 1]} : vector<2x512xf32> to vector<2x128xf32>
    %454 = math.tanh %453 : vector<2x128xf32>
    %455 = arith.mulf %451, %408 : vector<2x128xf32>
    %456 = arith.mulf %450, %454 : vector<2x128xf32>
    %457 = arith.addf %455, %456 : vector<2x128xf32>
    %458 = math.tanh %457 : vector<2x128xf32>
    %459 = arith.mulf %452, %458 : vector<2x128xf32>
    %cst_107 = arith.constant dense<0.000000e+00> : vector<2x512xf32>
    %460 = tpu.matmul %459, %1, %cst_107 {dimension_numbers = #tpu.dot_dimension_numbers<[1], [0], [0], [1], [0, 0, 1, 1], [], []>} : vector<2x128xf32>, vector<128x512xf32>, vector<2x512xf32> -> vector<2x512xf32>
    %cst_108 = arith.constant dense<0.000000e+00> : vector<2x512xf32>
    %461 = tpu.matmul %430, %2, %cst_108 {dimension_numbers = #tpu.dot_dimension_numbers<[1], [0], [0], [1], [0, 0, 1, 1], [], []>} : vector<2x128xf32>, vector<128x512xf32>, vector<2x512xf32> -> vector<2x512xf32>
    %462 = arith.addf %460, %461 : vector<2x512xf32>
    %463 = arith.addf %462, %13 : vector<2x512xf32>
    %464 = vector.extract_strided_slice %463 {offsets = [0, 0], sizes = [2, 384], strides = [1, 1]} : vector<2x512xf32> to vector<2x384xf32>
    %465 = arith.negf %464 : vector<2x384xf32>
    %466 = math.exp %465 : vector<2x384xf32>
    %cst_109 = arith.constant 1.000000e+00 : f32
    %467 = vector.broadcast %cst_109 : f32 to vector<2x384xf32>
    %468 = arith.addf %467, %466 : vector<2x384xf32>
    %469 = arith.divf %467, %468 : vector<2x384xf32>
    %470 = vector.extract_strided_slice %469 {offsets = [0, 0], sizes = [2, 128], strides = [1, 1]} : vector<2x384xf32> to vector<2x128xf32>
    %471 = vector.extract_strided_slice %469 {offsets = [0, 128], sizes = [2, 128], strides = [1, 1]} : vector<2x384xf32> to vector<2x128xf32>
    %472 = vector.extract_strided_slice %469 {offsets = [0, 256], sizes = [2, 128], strides = [1, 1]} : vector<2x384xf32> to vector<2x128xf32>
    %473 = vector.extract_strided_slice %463 {offsets = [0, 384], sizes = [2, 128], strides = [1, 1]} : vector<2x512xf32> to vector<2x128xf32>
    %474 = math.tanh %473 : vector<2x128xf32>
    %475 = arith.mulf %471, %428 : vector<2x128xf32>
    %476 = arith.mulf %470, %474 : vector<2x128xf32>
    %477 = arith.addf %475, %476 : vector<2x128xf32>
    %478 = math.tanh %477 : vector<2x128xf32>
    %479 = arith.mulf %472, %478 : vector<2x128xf32>
    %c9 = arith.constant 9 : index
    %c0_110 = arith.constant 0 : index
    %c0_111 = arith.constant 0 : index
    %480 = vector.load %arg10[%c9, %c0_110, %c0_111] : memref<12x2x128xf32, #tpu.memory_space<vmem>>, vector<1x2x128xf32>
    %481 = vector.shape_cast %480 : vector<1x2x128xf32> to vector<2x128xf32>
    %482 = vector.shape_cast %479 : vector<2x128xf32> to vector<1x2x128xf32>
    tpu.vector_store %arg10[%c9, %c0_110, %c0_111], %482 {strides = array<i32>} : memref<12x2x128xf32, #tpu.memory_space<vmem>>, vector<1x2x128xf32>,
    %483 = arith.mulf %479, %15 : vector<2x128xf32>
    %cst_112 = arith.constant dense<0.000000e+00> : vector<2xf32>
    %484 = vector.multi_reduction <add>, %483, %cst_112 [1] : vector<2x128xf32> to vector<2xf32>
    %485 = vector.shape_cast %484 : vector<2xf32> to vector<2x1xf32>
    %486 = vector.broadcast %4 : vector<1x1xf32> to vector<2x1xf32>
    %487 = arith.addf %485, %486 : vector<2x1xf32>
    %488 = vector.broadcast %487 : vector<2x1xf32> to vector<2x512xf32>
    %489 = arith.mulf %488, %7 : vector<2x512xf32>
    %490 = arith.addf %489, %10 : vector<2x512xf32>
    %cst_113 = arith.constant dense<0.000000e+00> : vector<2x512xf32>
    %491 = tpu.matmul %459, %0, %cst_113 {dimension_numbers = #tpu.dot_dimension_numbers<[1], [0], [0], [1], [0, 0, 1, 1], [], []>} : vector<2x128xf32>, vector<128x512xf32>, vector<2x512xf32> -> vector<2x512xf32>
    %492 = arith.addf %490, %491 : vector<2x512xf32>
    %493 = vector.extract_strided_slice %492 {offsets = [0, 0], sizes = [2, 384], strides = [1, 1]} : vector<2x512xf32> to vector<2x384xf32>
    %494 = arith.negf %493 : vector<2x384xf32>
    %495 = math.exp %494 : vector<2x384xf32>
    %cst_114 = arith.constant 1.000000e+00 : f32
    %496 = vector.broadcast %cst_114 : f32 to vector<2x384xf32>
    %497 = arith.addf %496, %495 : vector<2x384xf32>
    %498 = arith.divf %496, %497 : vector<2x384xf32>
    %499 = vector.extract_strided_slice %498 {offsets = [0, 0], sizes = [2, 128], strides = [1, 1]} : vector<2x384xf32> to vector<2x128xf32>
    %500 = vector.extract_strided_slice %498 {offsets = [0, 128], sizes = [2, 128], strides = [1, 1]} : vector<2x384xf32> to vector<2x128xf32>
    %501 = vector.extract_strided_slice %498 {offsets = [0, 256], sizes = [2, 128], strides = [1, 1]} : vector<2x384xf32> to vector<2x128xf32>
    %502 = vector.extract_strided_slice %492 {offsets = [0, 384], sizes = [2, 128], strides = [1, 1]} : vector<2x512xf32> to vector<2x128xf32>
    %503 = math.tanh %502 : vector<2x128xf32>
    %504 = arith.mulf %500, %457 : vector<2x128xf32>
    %505 = arith.mulf %499, %503 : vector<2x128xf32>
    %506 = arith.addf %504, %505 : vector<2x128xf32>
    %507 = math.tanh %506 : vector<2x128xf32>
    %508 = arith.mulf %501, %507 : vector<2x128xf32>
    %cst_115 = arith.constant dense<0.000000e+00> : vector<2x512xf32>
    %509 = tpu.matmul %508, %1, %cst_115 {dimension_numbers = #tpu.dot_dimension_numbers<[1], [0], [0], [1], [0, 0, 1, 1], [], []>} : vector<2x128xf32>, vector<128x512xf32>, vector<2x512xf32> -> vector<2x512xf32>
    %cst_116 = arith.constant dense<0.000000e+00> : vector<2x512xf32>
    %510 = tpu.matmul %479, %2, %cst_116 {dimension_numbers = #tpu.dot_dimension_numbers<[1], [0], [0], [1], [0, 0, 1, 1], [], []>} : vector<2x128xf32>, vector<128x512xf32>, vector<2x512xf32> -> vector<2x512xf32>
    %511 = arith.addf %509, %510 : vector<2x512xf32>
    %512 = arith.addf %511, %13 : vector<2x512xf32>
    %513 = vector.extract_strided_slice %512 {offsets = [0, 0], sizes = [2, 384], strides = [1, 1]} : vector<2x512xf32> to vector<2x384xf32>
    %514 = arith.negf %513 : vector<2x384xf32>
    %515 = math.exp %514 : vector<2x384xf32>
    %cst_117 = arith.constant 1.000000e+00 : f32
    %516 = vector.broadcast %cst_117 : f32 to vector<2x384xf32>
    %517 = arith.addf %516, %515 : vector<2x384xf32>
    %518 = arith.divf %516, %517 : vector<2x384xf32>
    %519 = vector.extract_strided_slice %518 {offsets = [0, 0], sizes = [2, 128], strides = [1, 1]} : vector<2x384xf32> to vector<2x128xf32>
    %520 = vector.extract_strided_slice %518 {offsets = [0, 128], sizes = [2, 128], strides = [1, 1]} : vector<2x384xf32> to vector<2x128xf32>
    %521 = vector.extract_strided_slice %518 {offsets = [0, 256], sizes = [2, 128], strides = [1, 1]} : vector<2x384xf32> to vector<2x128xf32>
    %522 = vector.extract_strided_slice %512 {offsets = [0, 384], sizes = [2, 128], strides = [1, 1]} : vector<2x512xf32> to vector<2x128xf32>
    %523 = math.tanh %522 : vector<2x128xf32>
    %524 = arith.mulf %520, %477 : vector<2x128xf32>
    %525 = arith.mulf %519, %523 : vector<2x128xf32>
    %526 = arith.addf %524, %525 : vector<2x128xf32>
    %527 = math.tanh %526 : vector<2x128xf32>
    %528 = arith.mulf %521, %527 : vector<2x128xf32>
    %c10 = arith.constant 10 : index
    %c0_118 = arith.constant 0 : index
    %c0_119 = arith.constant 0 : index
    %529 = vector.load %arg10[%c10, %c0_118, %c0_119] : memref<12x2x128xf32, #tpu.memory_space<vmem>>, vector<1x2x128xf32>
    %530 = vector.shape_cast %529 : vector<1x2x128xf32> to vector<2x128xf32>
    %531 = vector.shape_cast %528 : vector<2x128xf32> to vector<1x2x128xf32>
    tpu.vector_store %arg10[%c10, %c0_118, %c0_119], %531 {strides = array<i32>} : memref<12x2x128xf32, #tpu.memory_space<vmem>>, vector<1x2x128xf32>,
    %532 = arith.mulf %528, %15 : vector<2x128xf32>
    %cst_120 = arith.constant dense<0.000000e+00> : vector<2xf32>
    %533 = vector.multi_reduction <add>, %532, %cst_120 [1] : vector<2x128xf32> to vector<2xf32>
    %534 = vector.shape_cast %533 : vector<2xf32> to vector<2x1xf32>
    %535 = vector.broadcast %4 : vector<1x1xf32> to vector<2x1xf32>
    %536 = arith.addf %534, %535 : vector<2x1xf32>
    %537 = vector.broadcast %536 : vector<2x1xf32> to vector<2x512xf32>
    %538 = arith.mulf %537, %7 : vector<2x512xf32>
    %539 = arith.addf %538, %10 : vector<2x512xf32>
    %cst_121 = arith.constant dense<0.000000e+00> : vector<2x512xf32>
    %540 = tpu.matmul %508, %0, %cst_121 {dimension_numbers = #tpu.dot_dimension_numbers<[1], [0], [0], [1], [0, 0, 1, 1], [], []>} : vector<2x128xf32>, vector<128x512xf32>, vector<2x512xf32> -> vector<2x512xf32>
    %541 = arith.addf %539, %540 : vector<2x512xf32>
    %542 = vector.extract_strided_slice %541 {offsets = [0, 0], sizes = [2, 384], strides = [1, 1]} : vector<2x512xf32> to vector<2x384xf32>
    %543 = arith.negf %542 : vector<2x384xf32>
    %544 = math.exp %543 : vector<2x384xf32>
    %cst_122 = arith.constant 1.000000e+00 : f32
    %545 = vector.broadcast %cst_122 : f32 to vector<2x384xf32>
    %546 = arith.addf %545, %544 : vector<2x384xf32>
    %547 = arith.divf %545, %546 : vector<2x384xf32>
    %548 = vector.extract_strided_slice %547 {offsets = [0, 0], sizes = [2, 128], strides = [1, 1]} : vector<2x384xf32> to vector<2x128xf32>
    %549 = vector.extract_strided_slice %547 {offsets = [0, 128], sizes = [2, 128], strides = [1, 1]} : vector<2x384xf32> to vector<2x128xf32>
    %550 = vector.extract_strided_slice %547 {offsets = [0, 256], sizes = [2, 128], strides = [1, 1]} : vector<2x384xf32> to vector<2x128xf32>
    %551 = vector.extract_strided_slice %541 {offsets = [0, 384], sizes = [2, 128], strides = [1, 1]} : vector<2x512xf32> to vector<2x128xf32>
    %552 = math.tanh %551 : vector<2x128xf32>
    %553 = arith.mulf %549, %506 : vector<2x128xf32>
    %554 = arith.mulf %548, %552 : vector<2x128xf32>
    %555 = arith.addf %553, %554 : vector<2x128xf32>
    %556 = math.tanh %555 : vector<2x128xf32>
    %557 = arith.mulf %550, %556 : vector<2x128xf32>
    %cst_123 = arith.constant dense<0.000000e+00> : vector<2x512xf32>
    %558 = tpu.matmul %557, %1, %cst_123 {dimension_numbers = #tpu.dot_dimension_numbers<[1], [0], [0], [1], [0, 0, 1, 1], [], []>} : vector<2x128xf32>, vector<128x512xf32>, vector<2x512xf32> -> vector<2x512xf32>
    %cst_124 = arith.constant dense<0.000000e+00> : vector<2x512xf32>
    %559 = tpu.matmul %528, %2, %cst_124 {dimension_numbers = #tpu.dot_dimension_numbers<[1], [0], [0], [1], [0, 0, 1, 1], [], []>} : vector<2x128xf32>, vector<128x512xf32>, vector<2x512xf32> -> vector<2x512xf32>
    %560 = arith.addf %558, %559 : vector<2x512xf32>
    %561 = arith.addf %560, %13 : vector<2x512xf32>
    %562 = vector.extract_strided_slice %561 {offsets = [0, 0], sizes = [2, 384], strides = [1, 1]} : vector<2x512xf32> to vector<2x384xf32>
    %563 = arith.negf %562 : vector<2x384xf32>
    %564 = math.exp %563 : vector<2x384xf32>
    %cst_125 = arith.constant 1.000000e+00 : f32
    %565 = vector.broadcast %cst_125 : f32 to vector<2x384xf32>
    %566 = arith.addf %565, %564 : vector<2x384xf32>
    %567 = arith.divf %565, %566 : vector<2x384xf32>
    %568 = vector.extract_strided_slice %567 {offsets = [0, 0], sizes = [2, 128], strides = [1, 1]} : vector<2x384xf32> to vector<2x128xf32>
    %569 = vector.extract_strided_slice %567 {offsets = [0, 128], sizes = [2, 128], strides = [1, 1]} : vector<2x384xf32> to vector<2x128xf32>
    %570 = vector.extract_strided_slice %567 {offsets = [0, 256], sizes = [2, 128], strides = [1, 1]} : vector<2x384xf32> to vector<2x128xf32>
    %571 = vector.extract_strided_slice %561 {offsets = [0, 384], sizes = [2, 128], strides = [1, 1]} : vector<2x512xf32> to vector<2x128xf32>
    %572 = math.tanh %571 : vector<2x128xf32>
    %573 = arith.mulf %569, %526 : vector<2x128xf32>
    %574 = arith.mulf %568, %572 : vector<2x128xf32>
    %575 = arith.addf %573, %574 : vector<2x128xf32>
    %576 = math.tanh %575 : vector<2x128xf32>
    %577 = arith.mulf %570, %576 : vector<2x128xf32>
    %c11 = arith.constant 11 : index
    %c0_126 = arith.constant 0 : index
    %c0_127 = arith.constant 0 : index
    %578 = vector.load %arg10[%c11, %c0_126, %c0_127] : memref<12x2x128xf32, #tpu.memory_space<vmem>>, vector<1x2x128xf32>
    %579 = vector.shape_cast %578 : vector<1x2x128xf32> to vector<2x128xf32>
    %580 = vector.shape_cast %577 : vector<2x128xf32> to vector<1x2x128xf32>
    tpu.vector_store %arg10[%c11, %c0_126, %c0_127], %580 {strides = array<i32>} : memref<12x2x128xf32, #tpu.memory_space<vmem>>, vector<1x2x128xf32>,
    %c0_128 = arith.constant 0 : index
    %c0_129 = arith.constant 0 : index
    %c0_130 = arith.constant 0 : index
    %581 = vector.load %arg10[%c0_128, %c0_129, %c0_130] : memref<12x2x128xf32, #tpu.memory_space<vmem>>, vector<12x2x128xf32>
    %582 = vector.shape_cast %3 : vector<1x128xf32> to vector<1x1x128xf32>
    %583 = vector.broadcast %582 : vector<1x1x128xf32> to vector<12x2x128xf32>
    %584 = arith.mulf %581, %583 : vector<12x2x128xf32>
    %cst_131 = arith.constant dense<0.000000e+00> : vector<12x2xf32>
    %585 = vector.multi_reduction <add>, %584, %cst_131 [2] : vector<12x2x128xf32> to vector<12x2xf32>
    %586 = vector.broadcast %4 : vector<1x1xf32> to vector<12x2xf32>
    %587 = arith.addf %585, %586 : vector<12x2xf32>
    %c0_132 = arith.constant 0 : index
    %c0_133 = arith.constant 0 : index
    %588 = vector.load %arg9[%c0_132, %c0_133] : memref<12x2xf32, #tpu.memory_space<vmem>>, vector<12x2xf32>
    tpu.vector_store %arg9[%c0_132, %c0_133], %587 {strides = array<i32>} : memref<12x2xf32, #tpu.memory_space<vmem>>, vector<12x2xf32>,
    return
  }
}

</mosaic_0001>

<bundles_post_ra>
// kernel: tpu_custom_call.1
= control target key start
LH: loop header
LB: loop body
LE: loop exit
PB: predicated region body
PF: predicated region fallthrough
CT: control target
= control target key end

     0   :  { %s11379_s0 = inlined_call_operand.vmem [shape: f32[8,2,1], index: 0, kind: input, shape index: {}]   ;;  %s11380_s1 = inlined_call_operand.vmem [shape: f32[1,512], index: 1, kind: input, shape index: {}]   ;;  %s11381_s2 = inlined_call_operand.vmem [shape: f32[1,512], index: 2, kind: input, shape index: {}]   ;;  %s11382_s3 = inlined_call_operand.hbm [shape: f32[128,512], index: 3, kind: input, shape index: {}]   ;;  %s11383_s4 = inlined_call_operand.hbm [shape: f32[128,512], index: 4, kind: input, shape index: {}]   ;;  %s11384_s5 = inlined_call_operand.hbm [shape: f32[128,512], index: 5, kind: input, shape index: {}]   ;;  %s11385_s6 = inlined_call_operand.vmem [shape: f32[1,512], index: 6, kind: input, shape index: {}]   ;;  %s11386_s7 = inlined_call_operand.vmem [shape: f32[1,128], index: 7, kind: input, shape index: {}]   ;;  %s11387_s8 = inlined_call_operand.<no memory space> [shape: f32[1,1], index: 8, kind: input, shape index: {}]   ;;  %s11388_s9 = inlined_call_operand.vmem [shape: f32[12,2], index: 9, kind: output, shape index: {}]  }
   0x1   :  { %v14_v0 = vstv %s11387_s8 }
   0x2   :  { %15 = vst [vmem:[#allocation3] sm:$0x1] %v14_v0 }
   0x3   :  { %16 = vsyncpa [#allocation5], 0 }
   0x4   :  { %17 = vsyncpa [#allocation7], 0  ;;  %s9411_s11 = smov [#allocation6]   ;;  %s9412_s13 = smov [#allocation4]  }
   0x5   :  { %s41_s12 = sshll.u32 %s9411_s11, 4  ;;  %s29_s14 = sshll.u32 %s9412_s13, 4  ;;  %s42_s12 = int_to_ptr.vmem [resolvable:$true] %s41_s12  ;;  %s9471_s14 = int_to_ptr.vmem [resolvable:$true] %s29_s14 }
   0x6   :  { %s9341_s17 = scalar_lea.hbm %s11383_s4, 8192 }
   0x7   :  { %p9342_p0 = scmp.ne.s32.totalorder %s11383_s4, %s9341_s17  ;;  %p9345_p1 = scmp.lt.u32.totalorder %s9341_s17, %s11383_s4 }
   0x9   :  { %p9347_p2 = pnand %p9345_p1, %p9342_p0 }
   0xb   :  { %9350 = shalt.err (!%p9347_p2)
}
   0xc   :  { %s9351_s21 = scalar_lea.vmem %s42_s12, 8192  ;;  %p9356_p4 = scmp.lt.s32.totalorder %s42_s12, %s42_s12 }
   0xd   :  { %p9352_p3 = scmp.ne.s32.totalorder %s42_s12, %s9351_s21  ;;  %p9357_p5 = scmp.lt.s32.totalorder %s9351_s21, %s9351_s21 }
   0xf   :  { %p9358_p6 = por %p9357_p5, %p9356_p4 }
  0x11   :  { %p9359_p7 = pnand %p9358_p6, %p9352_p3 }
  0x13   :  { %9362 = shalt.err (!%p9359_p7)
}
  0x14   :  { %s9413_s22 = smov 512   ;;  %s9414_s23 = smov 32  }
  0x15   :  { %47 = dma.hbm_to_vmem [thread:$0]  %s11383_s4, 8192, %s42_s12, [#allocation7], %s9413_s22, %s9413_s22, %s9414_s23  }
  0x16   :  { %s9363_s28 = scalar_lea.hbm %s11382_s3, 8192 }
  0x17   :  { %p9364_p8 = scmp.ne.s32.totalorder %s11382_s3, %s9363_s28  ;;  %p9367_p9 = scmp.lt.u32.totalorder %s9363_s28, %s11382_s3 }
  0x19   :  { %p9369_p10 = pnand %p9367_p9, %p9364_p8 }
  0x1b   :  { %9372 = shalt.err (!%p9369_p10)
}
  0x1c   :  { %s9373_s13 = scalar_lea.vmem %s9471_s14, 8192  ;;  %p9378_p12 = scmp.lt.s32.totalorder %s9471_s14, %s9471_s14 }
  0x1d   :  { %p9374_p11 = scmp.ne.s32.totalorder %s9471_s14, %s9373_s13  ;;  %p9379_p13 = scmp.lt.s32.totalorder %s9373_s13, %s9373_s13 }
  0x1f   :  { %p9380_p0 = por %p9379_p13, %p9378_p12 }
  0x21   :  { %p9381_p1 = pnand %p9380_p0, %p9374_p11 }
  0x23   :  { %9384 = shalt.err (!%p9381_p1)
}
  0x24   :  { %35 = dma.hbm_to_vmem [thread:$0]  %s11382_s3, 8192, %s9471_s14, [#allocation5], %s9413_s22, %s9413_s22, %s9414_s23  }
  0x25   :  { %s9415_s15 = smov [#allocation8]   ;;  %s9385_s19 = scalar_lea.hbm %s11384_s5, 8192 }
  0x26   :  { %s53_s16 = sshll.u32 %s9415_s15, 4  ;;  %p9386_p2 = scmp.ne.s32.totalorder %s11384_s5, %s9385_s19  ;;  %s54_s16 = int_to_ptr.vmem [resolvable:$true] %s53_s16 }
  0x27   :  { %p9389_p3 = scmp.lt.u32.totalorder %s9385_s19, %s11384_s5 }
  0x29   :  { %p9391_p4 = pnand %p9389_p3, %p9386_p2 }
  0x2b   :  { %9394 = shalt.err (!%p9391_p4)
}
  0x2c   :  { %s9395_s25 = scalar_lea.vmem %s54_s16, 8192  ;;  %p9400_p6 = scmp.lt.s32.totalorder %s54_s16, %s54_s16 }
  0x2d   :  { %p9396_p5 = scmp.ne.s32.totalorder %s54_s16, %s9395_s25  ;;  %p9401_p7 = scmp.lt.s32.totalorder %s9395_s25, %s9395_s25 }
  0x2f   :  { %p9402_p8 = por %p9401_p7, %p9400_p6 }
  0x31   :  { %p9403_p9 = pnand %p9402_p8, %p9396_p5 }
  0x33   :  { %9406 = shalt.err (!%p9403_p9)
}
  0x34   :  { %59 = dma.hbm_to_vmem [thread:$0]  %s11384_s5, 8192, %s54_s16, [#allocation7], %s9413_s22, %s9413_s22, %s9414_s23  }
  0x35   :  { %9407 = dma.done.wait [#allocation5], 8192  }
  0x36   :  { %9408 = vsyncadd [#allocation5], 4294959104 }
  0x37   :  { %9409 = dma.done.wait [#allocation7], 16384  }
  0x38   :  { %9410 = vsyncadd [#allocation7], 4294950912  ;;  %v11389_v1 = vmov 0.0   ;;  %v9417_v2 = vmov 0   ;;  %v76_v3 = vld [vmem:[#allocation4 + $0x8] sm:$0xff]  ;;  %v78_v5 = vld [vmem:[#allocation4 + $0x18] sm:$0xff] }
  0x39   :  { %419 = vmatprep.mubr.f32.mxu0 %v11389_v1  ;;  %490 = vmatprep.mubr.f32.mxu1 %v11389_v1  ;;  %v80_v4 = vld [vmem:[#allocation4 + $0x28] sm:$0xff]  ;;  %v82_v7 = vld [vmem:[#allocation4 + $0x38] sm:$0xff]  ;;  %v75_v8 = vld [vmem:[#allocation4] sm:$0xff]  ;;  %vm4332_vm0 = vcmask 1041408   ;;  %vm6484_vm1 = vcmask 1041409   ;;  %vm6486_vm2 = vcmask 1042434  }
  0x3a   :  { %8953 = vset.pattern.permute.xlu0 %v9417_v2  ;;  %8954 = vset.pattern.permute.xlu1 %v9417_v2  ;;  %v9525_v6 = vpack.c.bf16 %v80_v4, %v76_v3  ;;  %v79_v9 = vld [vmem:[#allocation4 + $0x20] sm:$0xff]  ;;  %v9527_v10 = vpack.c.bf16 %v82_v7, %v78_v5  ;;  %v77_v12 = vld [vmem:[#allocation4 + $0x10] sm:$0xff]  ;;  %v84_v14 = vld [vmem:[#allocation4 + $0x48] sm:$0xff]  ;;  %vm6488_vm3 = vcmask 1043459   ;;  %vm6490_vm4 = vcmask 1044484  }
  0x3b   :  { %v9529_v11 = vpack.c.bf16 %v79_v9, %v75_v8  ;;  %v81_v13 = vld [vmem:[#allocation4 + $0x30] sm:$0xff]  ;;  %v88_v16 = vld [vmem:[#allocation4 + $0x68] sm:$0xff]  ;;  %v86_v17 = vld [vmem:[#allocation4 + $0x58] sm:$0xff]  ;;  %vm6492_vm5 = vcmask 1045509   ;;  %vm6494_vm6 = vcmask 1046534   ;;  %vm6496_vm7 = vcmask 1047559  }
  0x3c   :  { %11611 = vst [vmem:[#allocation11_spill] sm:$0xff] %v9525_v6  ;;  %11612 = vst [vmem:[#allocation12_spill] sm:$0xff] %v9527_v10  ;;  %6595 = vmatprep.subr.bf16.mxu0 %v9525_v6  ;;  %v9532_v15 = vpack.c.bf16 %v81_v13, %v77_v12  ;;  %v90_v18 = vld [vmem:[#allocation4 + $0x78] sm:$0xff]  ;;  %6627 = vmatprep.subr.bf16.mxu1 %v9527_v10  ;;  %v9536_v19 = vpack.c.bf16 %v88_v16, %v84_v14  ;;  %v83_v21 = vld [vmem:[#allocation4 + $0x40] sm:$0xff]  ;;  %vm6503_vm8 = vcmask 15360   ;;  %vm6505_vm9 = vcmask 11264  }
  0x3d   :  { %6597 = vmatpush1.bf16.msra.mxu0 %v9529_v11  ;;  %v9538_v20 = vpack.c.bf16 %v90_v18, %v86_v17  ;;  %v87_v22 = vld [vmem:[#allocation4 + $0x60] sm:$0xff]  ;;  %v85_v23 = vld [vmem:[#allocation4 + $0x50] sm:$0xff]  ;;  %v92_v26 = vld [vmem:[#allocation4 + $0x88] sm:$0xff] }
  0x3e   :  { %6629 = vmatpush1.bf16.msra.mxu1 %v9532_v15  ;;  %v9541_v24 = vpack.c.bf16 %v87_v22, %v83_v21  ;;  %v89_v25 = vld [vmem:[#allocation4 + $0x70] sm:$0xff]  ;;  %v96_v27 = vld [vmem:[#allocation4 + $0xa8] sm:$0xff]  ;;  %6599 = vmatprep.subr.bf16.mxu0 %v9536_v19  ;;  %v94_v30 = vld [vmem:[#allocation4 + $0x98] sm:$0xff] }
  0x3f   :  { %11613 = vst [vmem:[#allocation13_spill] sm:$0xff] %v9538_v20  ;;  %6631 = vmatprep.subr.bf16.mxu1 %v9538_v20  ;;  %v9545_v28 = vpack.c.bf16 %v89_v25, %v85_v23  ;;  %v9547_v29 = vpack.c.bf16 %v96_v27, %v92_v26  ;;  %v98_v31 = vld [vmem:[#allocation4 + $0xb8] sm:$0xff]  ;;  %v91_v32 = vld [vmem:[#allocation4 + $0x80] sm:$0xff]  ;;  %v93_v35 = vld [vmem:[#allocation4 + $0x90] sm:$0xff] }
  0x40   :  { %11614 = vst [vmem:[#allocation14_spill] sm:$0xff] %v9541_v24  ;;  %v9549_v33 = vpack.c.bf16 %v98_v31, %v94_v30  ;;  %v95_v34 = vld [vmem:[#allocation4 + $0xa0] sm:$0xff]  ;;  %v97_v36 = vld [vmem:[#allocation4 + $0xb0] sm:$0xff]  ;;  %v100_v38 = vld [vmem:[#allocation4 + $0xc8] sm:$0xff] }
  0x41   :  { %11615 = vst [vmem:[#allocation15_spill] sm:$0xff] %v9545_v28  ;;  %11616 = vst [vmem:[#allocation16_spill] sm:$0xff] %v9547_v29  ;;  %6601 = vmatpush1.bf16.msra.mxu0 %v9541_v24  ;;  %v9552_v37 = vpack.c.bf16 %v95_v34, %v91_v32  ;;  %v104_v39 = vld [vmem:[#allocation4 + $0xe8] sm:$0xff]  ;;  %v102_v40 = vld [vmem:[#allocation4 + $0xd8] sm:$0xff]  ;;  %v9556_v41 = vpack.c.bf16 %v97_v36, %v93_v35 }
  0x42   :  { %11617 = vst [vmem:[#allocation17_spill] sm:$0xff] %v9549_v33  ;;  %6633 = vmatpush1.bf16.msra.mxu1 %v9545_v28  ;;  %6603 = vmatprep.subr.bf16.mxu0 %v9547_v29  ;;  %v9558_v42 = vpack.c.bf16 %v104_v39, %v100_v38  ;;  %v106_v43 = vld [vmem:[#allocation4 + $0xf8] sm:$0xff]  ;;  %v99_v44 = vld [vmem:[#allocation4 + $0xc0] sm:$0xff]  ;;  %v101_v47 = vld [vmem:[#allocation4 + $0xd0] sm:$0xff] }
  0x43   :  { %11618 = vst [vmem:[#allocation18_spill] sm:$0xff] %v9552_v37  ;;  %11619 = vst [vmem:[#allocation19_spill] sm:$0xff] %v9556_v41  ;;  %v103_v45 = vld [vmem:[#allocation4 + $0xe0] sm:$0xff]  ;;  %6635 = vmatprep.subr.bf16.mxu1 %v9549_v33  ;;  %v9561_v46 = vpack.c.bf16 %v106_v43, %v102_v40  ;;  %v105_v48 = vld [vmem:[#allocation4 + $0xf0] sm:$0xff] }
  0x44   :  { %11620 = vst [vmem:[#allocation20_spill] sm:$0xff] %v9558_v42  ;;  %v108_v49 = vld [vmem:[#allocation4 + $0x108] sm:$0xff]  ;;  %v110_v51 = vld [vmem:[#allocation4 + $0x118] sm:$0xff]  ;;  %v9564_v53 = vpack.c.bf16 %v103_v45, %v99_v44  ;;  %v9568_v54 = vpack.c.bf16 %v105_v48, %v101_v47  ;;  %v107_v56 = vld [vmem:[#allocation4 + $0x100] sm:$0xff] }
  0x45   :  { %11621 = vst [vmem:[#allocation21_spill] sm:$0xff] %v9561_v46  ;;  %v112_v50 = vld [vmem:[#allocation4 + $0x128] sm:$0xff]  ;;  %v114_v52 = vld [vmem:[#allocation4 + $0x138] sm:$0xff]  ;;  %6605 = vmatpush1.bf16.msra.mxu0 %v9552_v37  ;;  %v111_v57 = vld [vmem:[#allocation4 + $0x120] sm:$0xff] }
  0x46   :  { %11622 = vst [vmem:[#allocation22_spill] sm:$0xff] %v9564_v53  ;;  %6637 = vmatpush1.bf16.msra.mxu1 %v9556_v41  ;;  %6607 = vmatprep.subr.bf16.mxu0 %v9558_v42  ;;  %11623 = vst [vmem:[#allocation23_spill] sm:$0xff] %v9568_v54  ;;  %v9570_v55 = vpack.c.bf16 %v112_v50, %v108_v49  ;;  %v109_v58 = vld [vmem:[#allocation4 + $0x110] sm:$0xff]  ;;  %v9573_v59 = vpack.c.bf16 %v114_v52, %v110_v51  ;;  %v116_v61 = vld [vmem:[#allocation4 + $0x148] sm:$0xff] }
  0x47   :  { %6639 = vmatprep.subr.bf16.mxu1 %v9561_v46  ;;  %v113_v60 = vld [vmem:[#allocation4 + $0x130] sm:$0xff]  ;;  %v120_v62 = vld [vmem:[#allocation4 + $0x168] sm:$0xff]  ;;  %v118_v63 = vld [vmem:[#allocation4 + $0x158] sm:$0xff]  ;;  %v9576_v2 = vpack.c.bf16 %v111_v57, %v107_v56 }
  0x48   :  { %11624 = vst [vmem:[#allocation24_spill] sm:$0xff] %v9570_v55  ;;  %11625 = vst [vmem:[#allocation25_spill] sm:$0xff] %v9573_v59  ;;  %v122_v0 = vld [vmem:[#allocation4 + $0x178] sm:$0xff]  ;;  %v9580_v3 = vpack.c.bf16 %v113_v60, %v109_v58  ;;  %v9582_v4 = vpack.c.bf16 %v120_v62, %v116_v61  ;;  %v115_v5 = vld [vmem:[#allocation4 + $0x140] sm:$0xff] }
  0x49   :  { %6609 = vmatpush1.bf16.msra.mxu0 %v9564_v53  ;;  %11626 = vst [vmem:[#allocation26_spill] sm:$0xff] %v9576_v2  ;;  %v119_v7 = vld [vmem:[#allocation4 + $0x160] sm:$0xff]  ;;  %v117_v8 = vld [vmem:[#allocation4 + $0x150] sm:$0xff]  ;;  %v9585_v9 = vpack.c.bf16 %v122_v0, %v118_v63  ;;  %v124_v13 = vld [vmem:[#allocation4 + $0x188] sm:$0xff] }
  0x4a   :  { %6641 = vmatpush1.bf16.msra.mxu1 %v9568_v54  ;;  %6611 = vmatprep.subr.bf16.mxu0 %v9570_v55  ;;  %11627 = vst [vmem:[#allocation27_spill] sm:$0xff] %v9580_v3  ;;  %11628 = vst [vmem:[#allocation28_spill] sm:$0xff] %v9582_v4  ;;  %v121_v12 = vld [vmem:[#allocation4 + $0x170] sm:$0xff]  ;;  %v128_v14 = vld [vmem:[#allocation4 + $0x1a8] sm:$0xff]  ;;  %v9588_v18 = vpack.c.bf16 %v119_v7, %v115_v5 }
  0x4b   :  { %6643 = vmatprep.subr.bf16.mxu1 %v9573_v59  ;;  %11629 = vst [vmem:[#allocation29_spill] sm:$0xff] %v9585_v9  ;;  %v126_v16 = vld [vmem:[#allocation4 + $0x198] sm:$0xff]  ;;  %v123_v21 = vld [vmem:[#allocation4 + $0x180] sm:$0xff]  ;;  %v9592_v22 = vpack.c.bf16 %v121_v12, %v117_v8  ;;  %v9594_v23 = vpack.c.bf16 %v128_v14, %v124_v13  ;;  %v125_v26 = vld [vmem:[#allocation4 + $0x190] sm:$0xff] }
  0x4c   :  { %v130_v17 = vld [vmem:[#allocation4 + $0x1b8] sm:$0xff]  ;;  %11630 = vst [vmem:[#allocation30_spill] sm:$0xff] %v9588_v18  ;;  %v127_v25 = vld [vmem:[#allocation4 + $0x1a0] sm:$0xff]  ;;  %v129_v31 = vld [vmem:[#allocation4 + $0x1b0] sm:$0xff] }
  0x4d   :  { %6613 = vmatpush1.bf16.msra.mxu0 %v9576_v2  ;;  %11631 = vst [vmem:[#allocation31_spill] sm:$0xff] %v9592_v22  ;;  %11632 = vst [vmem:[#allocation32_spill] sm:$0xff] %v9594_v23  ;;  %v341_v27 = vld [vmem:[%s11379_s0] sm:$0x3]  ;;  %v9600_v30 = vpack.c.bf16 %v130_v17, %v126_v16  ;;  %v134_v35 = vld [vmem:[#allocation4 + $0x1d8] sm:$0xff]  ;;  %v9606_v39 = vpack.c.bf16 %v127_v25, %v123_v21  ;;  %v9610_v40 = vpack.c.bf16 %v129_v31, %v125_v26 }
  0x4e   :  { %6645 = vmatpush1.bf16.msra.mxu1 %v9580_v3  ;;  %6615 = vmatprep.subr.bf16.mxu0 %v9582_v4  ;;  %v132_v32 = vld [vmem:[#allocation4 + $0x1c8] sm:$0xff]  ;;  %v138_v36 = vld [vmem:[#allocation4 + $0x1f8] sm:$0xff]  ;;  %v131_v44 = vld [vmem:[#allocation4 + $0x1c0] sm:$0xff] }
  0x4f   :  { %6647 = vmatprep.subr.bf16.mxu1 %v9585_v9  ;;  %11633 = vst [vmem:[#allocation33_spill] sm:$0xff] %v9600_v30  ;;  %v136_v34 = vld [vmem:[#allocation4 + $0x1e8] sm:$0xff]  ;;  %344 = vperm.xlu0 %8953, %v341_v27   ;;  %11634 = vst [vmem:[#allocation34_spill] sm:$0xff] %v9606_v39  ;;  %v135_v45 = vld [vmem:[#allocation4 + $0x1e0] sm:$0xff]  ;;  %v9615_v48 = vpack.c.bf16 %v138_v36, %v134_v35 }
  0x50   :  { %v6520_v38 = vld [vmem:[%s11379_s0 + $0x2] sm:$0x3]  ;;  %11635 = vst [vmem:[#allocation35_spill] sm:$0xff] %v9610_v40  ;;  %v9612_v43 = vpack.c.bf16 %v136_v34, %v132_v32  ;;  %v133_v47 = vld [vmem:[#allocation4 + $0x1d0] sm:$0xff]  ;;  %v206_v56 = vld [vmem:[#allocation8 + $0x18] sm:$0xff]  ;;  %v9621_v58 = vpack.c.bf16 %v135_v45, %v131_v44 }
  0x51   :  { %6617 = vmatpush1.bf16.msra.mxu0 %v9588_v18  ;;  %11637 = vst [vmem:[#allocation37_spill] sm:$0xff] %v9615_v48  ;;  %v137_v49 = vld [vmem:[#allocation4 + $0x1f0] sm:$0xff]  ;;  %v204_v50 = vld [vmem:[#allocation8 + $0x8] sm:$0xff]  ;;  %v210_v57 = vld [vmem:[#allocation8 + $0x38] sm:$0xff] }
  0x52   :  { %6649 = vmatpush1.bf16.msra.mxu1 %v9592_v22  ;;  %6619 = vmatprep.subr.bf16.mxu0 %v9594_v23  ;;  %11636 = vst [vmem:[#allocation36_spill] sm:$0xff] %v9612_v43  ;;  %v208_v51 = vld [vmem:[#allocation8 + $0x28] sm:$0xff]  ;;  %11638 = vst [vmem:[#allocation38_spill] sm:$0xff] %v9621_v58  ;;  %v9625_v60 = vpack.c.bf16 %v137_v49, %v133_v47  ;;  %v203_v62 = vld [vmem:[#allocation8] sm:$0xff]  ;;  %v9630_v5 = vpack.c.bf16 %v210_v57, %v206_v56 }
  0x53   :  { %6651 = vmatprep.subr.bf16.mxu1 %v9600_v30  ;;  %842 = vperm.xlu0 %8953, %v6520_v38   ;;  %v6541_v52 = vld [vmem:[%s11379_s0 + $0x8] sm:$0x3]  ;;  %v9627_v61 = vpack.c.bf16 %v208_v51, %v204_v50  ;;  %v207_v63 = vld [vmem:[#allocation8 + $0x20] sm:$0xff]  ;;  %v6555_v13 = vld [vmem:[%s11379_s0 + $0xc] sm:$0x3] }
  0x54   :  { %11639 = vst [vmem:[#allocation39_spill] sm:$0xff] %v9625_v60  ;;  %v205_v0 = vld [vmem:[#allocation8 + $0x10] sm:$0xff]  ;;  %11641 = vst [vmem:[#allocation41_spill] sm:$0xff] %v9630_v5  ;;  %v212_v8 = vld [vmem:[#allocation8 + $0x48] sm:$0xff]  ;;  %v9636_v17 = vpack.c.bf16 %v207_v63, %v203_v62 }
  0x55   :  { %6621 = vmatpush1.bf16.msra.mxu0 %v9606_v39  ;;  %11640 = vst [vmem:[#allocation40_spill] sm:$0xff] %v9627_v61  ;;  %v209_v7 = vld [vmem:[#allocation8 + $0x30] sm:$0xff]  ;;  %v216_v12 = vld [vmem:[#allocation8 + $0x68] sm:$0xff]  ;;  %v214_v14 = vld [vmem:[#allocation8 + $0x58] sm:$0xff] }
  0x56   :  { %6653 = vmatpush1.bf16.msra.mxu1 %v9610_v40  ;;  %6623 = vmatprep.subr.bf16.mxu0 %v9612_v43  ;;  %v218_v16 = vld [vmem:[#allocation8 + $0x78] sm:$0xff]  ;;  %11642 = vst [vmem:[#allocation42_spill] sm:$0xff] %v9636_v17  ;;  %v9640_v21 = vpack.c.bf16 %v209_v7, %v205_v0  ;;  %v9642_v25 = vpack.c.bf16 %v216_v12, %v212_v8  ;;  %v211_v26 = vld [vmem:[#allocation8 + $0x40] sm:$0xff]  ;;  %v213_v31 = vld [vmem:[#allocation8 + $0x50] sm:$0xff] }
  0x57   :  { %6655 = vmatprep.subr.bf16.mxu1 %v9615_v48  ;;  %2339 = vperm.xlu0 %8953, %v6541_v52   ;;  %v215_v27 = vld [vmem:[#allocation8 + $0x60] sm:$0xff]  ;;  %v9645_v32 = vpack.c.bf16 %v218_v16, %v214_v14  ;;  %v217_v34 = vld [vmem:[#allocation8 + $0x70] sm:$0xff]  ;;  %v220_v35 = vld [vmem:[#allocation8 + $0x88] sm:$0xff] }
  0x58   :  { %11643 = vst [vmem:[#allocation43_spill] sm:$0xff] %v9640_v21  ;;  %11644 = vst [vmem:[#allocation44_spill] sm:$0xff] %v9642_v25  ;;  %v224_v36 = vld [vmem:[#allocation8 + $0xa8] sm:$0xff]  ;;  %v222_v38 = vld [vmem:[#allocation8 + $0x98] sm:$0xff]  ;;  %v9650_v45 = vpack.c.bf16 %v215_v27, %v211_v26  ;;  %v9654_v47 = vpack.c.bf16 %v217_v34, %v213_v31 }
  0x59   :  { %6625 = vmatpush1.bf16.msra.mxu0 %v9621_v58  ;;  %11645 = vst [vmem:[#allocation45_spill] sm:$0xff] %v9645_v32  ;;  %v226_v44 = vld [vmem:[#allocation8 + $0xb8] sm:$0xff]  ;;  %v9656_v49 = vpack.c.bf16 %v224_v36, %v220_v35  ;;  %v219_v50 = vld [vmem:[#allocation8 + $0x80] sm:$0xff]  ;;  %v221_v52 = vld [vmem:[#allocation8 + $0x90] sm:$0xff] }
  0x5a   :  { %6657 = vmatpush1.bf16.msra.mxu1 %v9625_v60  ;;  %6659 = vmatprep.subr.bf16.mxu0 %v9627_v61  ;;  %11646 = vst [vmem:[#allocation46_spill] sm:$0xff] %v9650_v45  ;;  %11647 = vst [vmem:[#allocation47_spill] sm:$0xff] %v9654_v47  ;;  %v223_v51 = vld [vmem:[#allocation8 + $0xa0] sm:$0xff]  ;;  %v9659_v56 = vpack.c.bf16 %v226_v44, %v222_v38  ;;  %v225_v57 = vld [vmem:[#allocation8 + $0xb0] sm:$0xff] }
  0x5b   :  { %3337 = vperm.xlu0 %8953, %v6555_v13   ;;  %6691 = vmatprep.subr.bf16.mxu1 %v9630_v5  ;;  %11648 = vst [vmem:[#allocation48_spill] sm:$0xff] %v9656_v49  ;;  %v228_v62 = vld [vmem:[#allocation8 + $0xc8] sm:$0xff]  ;;  %v230_v0 = vld [vmem:[#allocation8 + $0xd8] sm:$0xff]  ;;  %v9664_v8 = vpack.c.bf16 %v223_v51, %v219_v50  ;;  %v9668_v12 = vpack.c.bf16 %v225_v57, %v221_v52  ;;  %v227_v14 = vld [vmem:[#allocation8 + $0xc0] sm:$0xff] }
  0x5c   :  { %420 = vmatmul.mubr.f32.vlgmr.msra.gmra.mrb[0].mxu0 %v11389_v1  ;;  %11649 = vst [vmem:[#allocation49_spill] sm:$0xff] %v9659_v56  ;;  %v232_v63 = vld [vmem:[#allocation8 + $0xe8] sm:$0xff]  ;;  %v234_v7 = vld [vmem:[#allocation8 + $0xf8] sm:$0xff]  ;;  %v231_v16 = vld [vmem:[#allocation8 + $0xe0] sm:$0xff] }
  0x5d   :  { %491 = vmatmul.mubr.f32.vlgmr.msra.gmra.mrb[0].mxu1 %v11389_v1  ;;  %6661 = vmatpush1.bf16.msra.mxu0 %v9636_v17  ;;  %11650 = vst [vmem:[#allocation50_spill] sm:$0xff] %v9664_v8  ;;  %11651 = vst [vmem:[#allocation51_spill] sm:$0xff] %v9668_v12  ;;  %v9670_v13 = vpack.c.bf16 %v232_v63, %v228_v62  ;;  %v229_v26 = vld [vmem:[#allocation8 + $0xd0] sm:$0xff]  ;;  %v9673_v27 = vpack.c.bf16 %v234_v7, %v230_v0  ;;  %v236_v34 = vld [vmem:[#allocation8 + $0x108] sm:$0xff] }
  0x5e   :  { %6693 = vmatpush1.bf16.msra.mxu1 %v9640_v21  ;;  %6663 = vmatprep.subr.bf16.mxu0 %v9642_v25  ;;  %v233_v31 = vld [vmem:[#allocation8 + $0xf0] sm:$0xff]  ;;  %v240_v35 = vld [vmem:[#allocation8 + $0x128] sm:$0xff]  ;;  %v238_v36 = vld [vmem:[#allocation8 + $0x118] sm:$0xff]  ;;  %v9676_v44 = vpack.c.bf16 %v231_v16, %v227_v14 }
  0x5f   :  { %6695 = vmatprep.subr.bf16.mxu1 %v9645_v32  ;;  %589 = vmatprep.mubr.f32.mxu0 %v11389_v1  ;;  %11652 = vst [vmem:[#allocation52_spill] sm:$0xff] %v9670_v13  ;;  %11653 = vst [vmem:[#allocation53_spill] sm:$0xff] %v9673_v27  ;;  %v242_v38 = vld [vmem:[#allocation8 + $0x138] sm:$0xff]  ;;  %v9680_v50 = vpack.c.bf16 %v233_v31, %v229_v26  ;;  %v9682_v51 = vpack.c.bf16 %v240_v35, %v236_v34  ;;  %v235_v52 = vld [vmem:[#allocation8 + $0x100] sm:$0xff] }
  0x60   :  { %660 = vmatprep.mubr.f32.mxu1 %v11389_v1  ;;  %11654 = vst [vmem:[#allocation54_spill] sm:$0xff] %v9676_v44  ;;  %v239_v57 = vld [vmem:[#allocation8 + $0x120] sm:$0xff]  ;;  %v9685_v62 = vpack.c.bf16 %v242_v38, %v238_v36  ;;  %v237_v63 = vld [vmem:[#allocation8 + $0x110] sm:$0xff]  ;;  %v244_v16 = vld [vmem:[#allocation8 + $0x148] sm:$0xff] }
  0x61   :  { %6665 = vmatpush1.bf16.msra.mxu0 %v9650_v45  ;;  %11655 = vst [vmem:[#allocation55_spill] sm:$0xff] %v9680_v50  ;;  %11656 = vst [vmem:[#allocation56_spill] sm:$0xff] %v9682_v51  ;;  %v241_v0 = vld [vmem:[#allocation8 + $0x130] sm:$0xff]  ;;  %v9688_v7 = vpack.c.bf16 %v239_v57, %v235_v52  ;;  %v248_v26 = vld [vmem:[#allocation8 + $0x168] sm:$0xff] }
  0x62   :  { %6697 = vmatpush1.bf16.msra.mxu1 %v9654_v47  ;;  %6667 = vmatprep.subr.bf16.mxu0 %v9656_v49  ;;  %11657 = vst [vmem:[#allocation57_spill] sm:$0xff] %v9685_v62  ;;  %v9692_v14 = vpack.c.bf16 %v241_v0, %v237_v63  ;;  %v246_v31 = vld [vmem:[#allocation8 + $0x158] sm:$0xff]  ;;  %v9697_v34 = vpack.c.bf16 %v248_v26, %v244_v16  ;;  %v243_v36 = vld [vmem:[#allocation8 + $0x140] sm:$0xff]  ;;  %v245_v63 = vld [vmem:[#allocation8 + $0x150] sm:$0xff] }
  0x63   :  { %6699 = vmatprep.subr.bf16.mxu1 %v9659_v56  ;;  %11658 = vst [vmem:[#allocation58_spill] sm:$0xff] %v9688_v7  ;;  %v250_v35 = vld [vmem:[#allocation8 + $0x178] sm:$0xff]  ;;  %v247_v38 = vld [vmem:[#allocation8 + $0x160] sm:$0xff]  ;;  %v249_v0 = vld [vmem:[#allocation8 + $0x170] sm:$0xff] }
  0x64   :  { %11659 = vst [vmem:[#allocation59_spill] sm:$0xff] %v9692_v14  ;;  %11660 = vst [vmem:[#allocation60_spill] sm:$0xff] %v9697_v34  ;;  %v9699_v52 = vpack.c.bf16 %v250_v35, %v246_v31  ;;  %v9701_v57 = vpack.c.bf16 %v247_v38, %v243_v36  ;;  %v9704_v1 = vpack.c.bf16 %v249_v0, %v245_v63  ;;  %v256_v16 = vld [vmem:[#allocation8 + $0x1a8] sm:$0xff]  ;;  %v254_v26 = vld [vmem:[#allocation8 + $0x198] sm:$0xff] }
  0x65   :  { %6669 = vmatpush1.bf16.msra.mxu0 %v9664_v8  ;;  %v258_v31 = vld [vmem:[#allocation8 + $0x1b8] sm:$0xff]  ;;  %v251_v35 = vld [vmem:[#allocation8 + $0x180] sm:$0xff]  ;;  %v253_v63 = vld [vmem:[#allocation8 + $0x190] sm:$0xff] }
  0x66   :  { %6701 = vmatpush1.bf16.msra.mxu1 %v9668_v12  ;;  %6671 = vmatprep.subr.bf16.mxu0 %v9670_v13  ;;  %11661 = vst [vmem:[#allocation61_spill] sm:$0xff] %v9699_v52  ;;  %11662 = vst [vmem:[#allocation62_spill] sm:$0xff] %v9701_v57  ;;  %v255_v36 = vld [vmem:[#allocation8 + $0x1a0] sm:$0xff]  ;;  %v9711_v38 = vpack.c.bf16 %v258_v31, %v254_v26  ;;  %v257_v0 = vld [vmem:[#allocation8 + $0x1b0] sm:$0xff] }
  0x67   :  { %6703 = vmatprep.subr.bf16.mxu1 %v9673_v27  ;;  %11663 = vst [vmem:[#allocation63_spill] sm:$0xff] %v9704_v1  ;;  %v266_v26 = vld [vmem:[#allocation8 + $0x1f8] sm:$0xff]  ;;  %v259_v31 = vld [vmem:[#allocation8 + $0x1c0] sm:$0xff] }
  0x68   :  { %11665 = vst [vmem:[#allocation65_spill] sm:$0xff] %v9711_v38 }
  0x69   :  { %6673 = vmatpush1.bf16.msra.mxu0 %v9676_v44 }
  0x6a   :  { %6705 = vmatpush1.bf16.msra.mxu1 %v9680_v50  ;;  %6675 = vmatprep.subr.bf16.mxu0 %v9682_v51  ;;  %v175_v50 = vld [vmem:[#allocation6 + $0x120] sm:$0xff] }
  0x6b   :  { %6707 = vmatprep.subr.bf16.mxu1 %v9685_v62  ;;  %v9713_v62 = vpack.c.bf16 %v255_v36, %v251_v35  ;;  %v263_v35 = vld [vmem:[#allocation8 + $0x1e0] sm:$0xff] }
  0x6d   :  { %6677 = vmatpush1.bf16.msra.mxu0 %v9688_v7  ;;  %11666 = vst [vmem:[#allocation66_spill] sm:$0xff] %v9713_v62 }
  0x6e   :  { %6709 = vmatpush1.bf16.msra.mxu1 %v9692_v14  ;;  %6679 = vmatprep.subr.bf16.mxu0 %v9697_v34  ;;  %v252_v14 = vld [vmem:[#allocation8 + $0x188] sm:$0xff]  ;;  %v9725_v34 = vpack.c.bf16 %v263_v35, %v259_v31  ;;  %v143_v31 = vld [vmem:[#allocation6 + $0x20] sm:$0xff] }
  0x6f   :  { %6711 = vmatprep.subr.bf16.mxu1 %v9699_v52  ;;  %v9709_v7 = vpack.c.bf16 %v256_v16, %v252_v14  ;;  %v9716_v52 = vpack.c.bf16 %v257_v0, %v253_v63  ;;  %v264_v14 = vld [vmem:[#allocation8 + $0x1e8] sm:$0xff]  ;;  %v262_v16 = vld [vmem:[#allocation8 + $0x1d8] sm:$0xff]  ;;  %v261_v63 = vld [vmem:[#allocation8 + $0x1d0] sm:$0xff] }
  0x70   :  { %v9723_v36 = vpack.c.bf16 %v266_v26, %v262_v16  ;;  %11670 = vst [vmem:[#allocation70_spill] sm:$0xff] %v9725_v34  ;;  %v265_v0 = vld [vmem:[#allocation8 + $0x1f0] sm:$0xff]  ;;  %v146_v16 = vld [vmem:[#allocation6 + $0x38] sm:$0xff]  ;;  %v139_v26 = vld [vmem:[#allocation6] sm:$0xff] }
  0x71   :  { %6681 = vmatpush1.bf16.msra.mxu0 %v9701_v57  ;;  %11664 = vst [vmem:[#allocation64_spill] sm:$0xff] %v9709_v7  ;;  %11667 = vst [vmem:[#allocation67_spill] sm:$0xff] %v9716_v52 }
  0x72   :  { %6713 = vmatpush1.bf16.msra.mxu1 %v9704_v1  ;;  %6683 = vmatprep.subr.bf16.mxu0 %v9709_v7  ;;  %v260_v1 = vld [vmem:[#allocation8 + $0x1c8] sm:$0xff]  ;;  %11669 = vst [vmem:[#allocation69_spill] sm:$0xff] %v9723_v36  ;;  %v9737_v7 = vpack.c.bf16 %v143_v31, %v139_v26  ;;  %v147_v26 = vld [vmem:[#allocation6 + $0x40] sm:$0xff] }
  0x73   :  { %6715 = vmatprep.subr.bf16.mxu1 %v9711_v38  ;;  %v9721_v57 = vpack.c.bf16 %v264_v14, %v260_v1  ;;  %v9728_v38 = vpack.c.bf16 %v265_v0, %v261_v63  ;;  %v144_v1 = vld [vmem:[#allocation6 + $0x28] sm:$0xff]  ;;  %v142_v14 = vld [vmem:[#allocation6 + $0x18] sm:$0xff]  ;;  %v141_v63 = vld [vmem:[#allocation6 + $0x10] sm:$0xff] }
  0x74   :  { %v9735_v35 = vpack.c.bf16 %v146_v16, %v142_v14  ;;  %11674 = vst [vmem:[#allocation74_spill] sm:$0xff] %v9737_v7  ;;  %v145_v0 = vld [vmem:[#allocation6 + $0x30] sm:$0xff]  ;;  %v154_v16 = vld [vmem:[#allocation6 + $0x78] sm:$0xff]  ;;  %v151_v31 = vld [vmem:[#allocation6 + $0x60] sm:$0xff] }
  0x75   :  { %6685 = vmatpush1.bf16.msra.mxu0 %v9713_v62  ;;  %11668 = vst [vmem:[#allocation68_spill] sm:$0xff] %v9721_v57  ;;  %11671 = vst [vmem:[#allocation71_spill] sm:$0xff] %v9728_v38 }
  0x76   :  { %6717 = vmatpush1.bf16.msra.mxu1 %v9716_v52  ;;  %6687 = vmatprep.subr.bf16.mxu0 %v9721_v57  ;;  %v140_v52 = vld [vmem:[#allocation6 + $0x8] sm:$0xff]  ;;  %11673 = vst [vmem:[#allocation73_spill] sm:$0xff] %v9735_v35 }
  0x77   :  { %6719 = vmatprep.subr.bf16.mxu1 %v9723_v36  ;;  %v9733_v62 = vpack.c.bf16 %v144_v1, %v140_v52  ;;  %v11675_v36 = vmov 0.0   ;;  %v148_v52 = vld [vmem:[#allocation6 + $0x48] sm:$0xff] }
  0x78   :  { %v152_v1 = vld [vmem:[#allocation6 + $0x68] sm:$0xff] }
  0x79   :  { %6689 = vmatpush1.bf16.msra.mxu0 %v9725_v34  ;;  %11672 = vst [vmem:[#allocation72_spill] sm:$0xff] %v9733_v62  ;;  %v9741_v34 = vpack.c.bf16 %v145_v0, %v141_v63  ;;  %v9747_v14 = vpack.c.bf16 %v152_v1, %v148_v52  ;;  %v9751_v63 = vpack.c.bf16 %v151_v31, %v147_v26  ;;  %v149_v0 = vld [vmem:[#allocation6 + $0x50] sm:$0xff]  ;;  %v156_v52 = vld [vmem:[#allocation6 + $0x88] sm:$0xff]  ;;  %v155_v26 = vld [vmem:[#allocation6 + $0x80] sm:$0xff] }
  0x7a   :  { %6721 = vmatpush1.bf16.msra.mxu1 %v9728_v38  ;;  %6723 = vmatprep.subr.bf16.mxu0 %v9733_v62  ;;  %v150_v38 = vld [vmem:[#allocation6 + $0x58] sm:$0xff]  ;;  %v160_v1 = vld [vmem:[#allocation6 + $0xa8] sm:$0xff]  ;;  %v159_v31 = vld [vmem:[#allocation6 + $0xa0] sm:$0xff] }
  0x7b   :  { %11676 = vst [vmem:[#allocation75_spill] sm:$0xff] %v9741_v34  ;;  %6755 = vmatprep.subr.bf16.mxu1 %v9735_v35  ;;  %11677 = vst [vmem:[#allocation76_spill] sm:$0xff] %v9747_v14  ;;  %v9749_v62 = vpack.c.bf16 %v154_v16, %v150_v38  ;;  %v153_v35 = vld [vmem:[#allocation6 + $0x70] sm:$0xff]  ;;  %v9761_v38 = vpack.c.bf16 %v160_v1, %v156_v52  ;;  %v162_v16 = vld [vmem:[#allocation6 + $0xb8] sm:$0xff]  ;;  %v9765_v51 = vpack.c.bf16 %v159_v31, %v155_v26 }
  0x7c   :  { %590 = vmatmul.mubr.f32.vlgmr.msra.gmra.mrb[2].mxu0 %v11675_v36  ;;  %11679 = vst [vmem:[#allocation78_spill] sm:$0xff] %v9751_v63  ;;  %v163_v1 = vld [vmem:[#allocation6 + $0xc0] sm:$0xff] }
  0x7d   :  { %661 = vmatmul.mubr.f32.vlgmr.msra.gmra.mrb[2].mxu1 %v11675_v36  ;;  %6725 = vmatpush1.bf16.msra.mxu0 %v9737_v7  ;;  %11678 = vst [vmem:[#allocation77_spill] sm:$0xff] %v9749_v62  ;;  %v9756_v7 = vpack.c.bf16 %v153_v35, %v149_v0  ;;  %11681 = vst [vmem:[#allocation80_spill] sm:$0xff] %v9761_v38  ;;  %v157_v35 = vld [vmem:[#allocation6 + $0x90] sm:$0xff] }
  0x7e   :  { %6757 = vmatpush1.bf16.msra.mxu1 %v9741_v34  ;;  %731 = vmatprep.mubr.f32.mxu0 %v11675_v36  ;;  %v158_v34 = vld [vmem:[#allocation6 + $0x98] sm:$0xff]  ;;  %11683 = vst [vmem:[#allocation82_spill] sm:$0xff] %v9765_v51  ;;  %v161_v0 = vld [vmem:[#allocation6 + $0xb0] sm:$0xff] }
  0x7f   :  { %802 = vmatprep.mubr.f32.mxu1 %v11675_v36  ;;  %6727 = vmatprep.subr.bf16.mxu0 %v9747_v14  ;;  %11680 = vst [vmem:[#allocation79_spill] sm:$0xff] %v9756_v7  ;;  %v9763_v57 = vpack.c.bf16 %v162_v16, %v158_v34  ;;  %v168_v14 = vld [vmem:[#allocation6 + $0xe8] sm:$0xff]  ;;  %v170_v34 = vld [vmem:[#allocation6 + $0xf8] sm:$0xff]  ;;  %v167_v16 = vld [vmem:[#allocation6 + $0xe0] sm:$0xff] }
  0x80   :  { %6759 = vmatprep.subr.bf16.mxu1 %v9749_v62  ;;  %v9768_v62 = vpack.c.bf16 %v161_v0, %v157_v35  ;;  %v9777_v31 = vpack.c.bf16 %v167_v16, %v163_v1  ;;  %v165_v35 = vld [vmem:[#allocation6 + $0xd0] sm:$0xff] }
  0x81   :  { %6729 = vmatpush1.bf16.msra.mxu0 %v9751_v63  ;;  %11682 = vst [vmem:[#allocation81_spill] sm:$0xff] %v9763_v57  ;;  %v164_v63 = vld [vmem:[#allocation6 + $0xc8] sm:$0xff]  ;;  %v169_v0 = vld [vmem:[#allocation6 + $0xf0] sm:$0xff] }
  0x82   :  { %6761 = vmatpush1.bf16.msra.mxu1 %v9756_v7  ;;  %6731 = vmatprep.subr.bf16.mxu0 %v9761_v38  ;;  %11684 = vst [vmem:[#allocation83_spill] sm:$0xff] %v9768_v62  ;;  %v166_v7 = vld [vmem:[#allocation6 + $0xd8] sm:$0xff]  ;;  %v9773_v52 = vpack.c.bf16 %v168_v14, %v164_v63  ;;  %11687 = vst [vmem:[#allocation86_spill] sm:$0xff] %v9777_v31  ;;  %v176_v38 = vld [vmem:[#allocation6 + $0x128] sm:$0xff] }
  0x83   :  { %6763 = vmatprep.subr.bf16.mxu1 %v9763_v57  ;;  %v9775_v26 = vpack.c.bf16 %v170_v34, %v166_v7  ;;  %v9780_v57 = vpack.c.bf16 %v169_v0, %v165_v35  ;;  %v178_v14 = vld [vmem:[#allocation6 + $0x138] sm:$0xff]  ;;  %v171_v63 = vld [vmem:[#allocation6 + $0x100] sm:$0xff]  ;;  %v173_v16 = vld [vmem:[#allocation6 + $0x110] sm:$0xff] }
  0x84   :  { %11685 = vst [vmem:[#allocation84_spill] sm:$0xff] %v9773_v52  ;;  %v9789_v1 = vpack.c.bf16 %v175_v50, %v171_v63  ;;  %v177_v35 = vld [vmem:[#allocation6 + $0x130] sm:$0xff] }
  0x85   :  { %6733 = vmatpush1.bf16.msra.mxu0 %v9765_v51  ;;  %11686 = vst [vmem:[#allocation85_spill] sm:$0xff] %v9775_v26  ;;  %11688 = vst [vmem:[#allocation87_spill] sm:$0xff] %v9780_v57  ;;  %v172_v51 = vld [vmem:[#allocation6 + $0x108] sm:$0xff]  ;;  %v9793_v0 = vpack.c.bf16 %v177_v35, %v173_v16  ;;  %v181_v63 = vld [vmem:[#allocation6 + $0x150] sm:$0xff] }
  0x86   :  { %6765 = vmatpush1.bf16.msra.mxu1 %v9768_v62  ;;  %6735 = vmatprep.subr.bf16.mxu0 %v9773_v52  ;;  %v174_v62 = vld [vmem:[#allocation6 + $0x118] sm:$0xff]  ;;  %v9785_v7 = vpack.c.bf16 %v176_v38, %v172_v51  ;;  %11691 = vst [vmem:[#allocation90_spill] sm:$0xff] %v9789_v1  ;;  %v183_v38 = vld [vmem:[#allocation6 + $0x160] sm:$0xff]  ;;  %v188_v16 = vld [vmem:[#allocation6 + $0x188] sm:$0xff] }
  0x87   :  { %6767 = vmatprep.subr.bf16.mxu1 %v9775_v26  ;;  %v9787_v34 = vpack.c.bf16 %v178_v14, %v174_v62  ;;  %11692 = vst [vmem:[#allocation91_spill] sm:$0xff] %v9793_v0  ;;  %v184_v26 = vld [vmem:[#allocation6 + $0x168] sm:$0xff]  ;;  %v182_v52 = vld [vmem:[#allocation6 + $0x158] sm:$0xff]  ;;  %v179_v62 = vld [vmem:[#allocation6 + $0x140] sm:$0xff] }
  0x88   :  { %11689 = vst [vmem:[#allocation88_spill] sm:$0xff] %v9785_v7  ;;  %v186_v51 = vld [vmem:[#allocation6 + $0x178] sm:$0xff]  ;;  %v9801_v14 = vpack.c.bf16 %v183_v38, %v179_v62  ;;  %v189_v62 = vld [vmem:[#allocation6 + $0x190] sm:$0xff] }
  0x89   :  { %6737 = vmatpush1.bf16.msra.mxu0 %v9777_v31  ;;  %11690 = vst [vmem:[#allocation89_spill] sm:$0xff] %v9787_v34  ;;  %v180_v31 = vld [vmem:[#allocation6 + $0x148] sm:$0xff]  ;;  %v9799_v50 = vpack.c.bf16 %v186_v51, %v182_v52  ;;  %v187_v52 = vld [vmem:[#allocation6 + $0x180] sm:$0xff] }
  0x8a   :  { %6769 = vmatpush1.bf16.msra.mxu1 %v9780_v57  ;;  %6739 = vmatprep.subr.bf16.mxu0 %v9785_v7  ;;  %v9796_v57 = vpack.c.bf16 %v184_v26, %v180_v31  ;;  %11695 = vst [vmem:[#allocation94_spill] sm:$0xff] %v9801_v14  ;;  %v192_v7 = vld [vmem:[#allocation6 + $0x1a8] sm:$0xff]  ;;  %v194_v26 = vld [vmem:[#allocation6 + $0x1b8] sm:$0xff]  ;;  %v191_v51 = vld [vmem:[#allocation6 + $0x1a0] sm:$0xff] }
  0x8b   :  { %6771 = vmatprep.subr.bf16.mxu1 %v9787_v34  ;;  %11694 = vst [vmem:[#allocation93_spill] sm:$0xff] %v9799_v50  ;;  %v185_v34 = vld [vmem:[#allocation6 + $0x170] sm:$0xff]  ;;  %v9807_v31 = vpack.c.bf16 %v192_v7, %v188_v16  ;;  %v9812_v38 = vpack.c.bf16 %v191_v51, %v187_v52  ;;  %v202_v16 = vld [vmem:[#allocation6 + $0x1f8] sm:$0xff]  ;;  %v199_v52 = vld [vmem:[#allocation6 + $0x1e0] sm:$0xff] }
  0x8c   :  { %11693 = vst [vmem:[#allocation92_spill] sm:$0xff] %v9796_v57  ;;  %v9804_v35 = vpack.c.bf16 %v185_v34, %v181_v63  ;;  %v200_v34 = vld [vmem:[#allocation6 + $0x1e8] sm:$0xff]  ;;  %v197_v51 = vld [vmem:[#allocation6 + $0x1d0] sm:$0xff] }
  0x8d   :  { %6741 = vmatpush1.bf16.msra.mxu0 %v9789_v1  ;;  %v190_v1 = vld [vmem:[#allocation6 + $0x198] sm:$0xff]  ;;  %11697 = vst [vmem:[#allocation96_spill] sm:$0xff] %v9807_v31  ;;  %11699 = vst [vmem:[#allocation98_spill] sm:$0xff] %v9812_v38 }
  0x8e   :  { %6773 = vmatpush1.bf16.msra.mxu1 %v9793_v0  ;;  %6743 = vmatprep.subr.bf16.mxu0 %v9796_v57  ;;  %11696 = vst [vmem:[#allocation95_spill] sm:$0xff] %v9804_v35  ;;  %v9809_v44 = vpack.c.bf16 %v194_v26, %v190_v1  ;;  %v193_v0 = vld [vmem:[#allocation6 + $0x1b0] sm:$0xff]  ;;  %v196_v57 = vld [vmem:[#allocation6 + $0x1c8] sm:$0xff]  ;;  %v198_v1 = vld [vmem:[#allocation6 + $0x1d8] sm:$0xff] }
  0x8f   :  { %6775 = vmatprep.subr.bf16.mxu1 %v9799_v50  ;;  %v9816_v63 = vpack.c.bf16 %v193_v0, %v189_v62  ;;  %v9818_v7 = vpack.c.bf16 %v200_v34, %v196_v57  ;;  %v195_v26 = vld [vmem:[#allocation6 + $0x1c0] sm:$0xff]  ;;  %v9821_v50 = vpack.c.bf16 %v202_v16, %v198_v1  ;;  %v11475_v0 = vlaneseq }
  0x90   :  { %11698 = vst [vmem:[#allocation97_spill] sm:$0xff] %v9809_v44  ;;  %v9824_v27 = vpack.c.bf16 %v199_v52, %v195_v26  ;;  %v291_v26 = vld [vmem:[%s11381_s2] sm:$0xf] }
  0x91   :  { %6745 = vmatpush1.bf16.msra.mxu0 %v9801_v14  ;;  %11700 = vst [vmem:[#allocation99_spill] sm:$0xff] %v9816_v63  ;;  %11701 = vst [vmem:[#allocation100_spill] sm:$0xff] %v9818_v7  ;;  %v201_v14 = vld [vmem:[#allocation6 + $0x1f0] sm:$0xff]  ;;  %v9836_v62 = vshrl.u32 %v11475_v0, 7 }
  0x92   :  { %6777 = vmatpush1.bf16.msra.mxu1 %v9804_v35  ;;  %6747 = vmatprep.subr.bf16.mxu0 %v9807_v31  ;;  %11702 = vst [vmem:[#allocation101_spill] sm:$0xff] %v9821_v50  ;;  %11703 = vst [vmem:[#allocation102_spill] sm:$0xff] %v9824_v27  ;;  %v9828_v57 = vpack.c.bf16 %v201_v14, %v197_v51  ;;  %v269_v14 = vld [vmem:[%s11380_s1] sm:$0xf] }
  0x93   :  { %6779 = vmatprep.subr.bf16.mxu1 %v9809_v44  ;;  %11705 = vst [vmem:[#allocation104_spill] sm:$0xff] %v9836_v62  ;;  %v9839_v34 = vsub.s32 0, %v9836_v62  ;;  %v9845_v1 = vsub.s32 1, %v9836_v62  ;;  %v9857_v0 = vsub.s32 2, %v9836_v62 }
  0x94   :  { %11704 = vst [vmem:[#allocation103_spill] sm:$0xff] %v9828_v57 }
  0x95   :  { %6749 = vmatpush1.bf16.msra.mxu0 %v9812_v38  ;;  %11706 = vst [vmem:[#allocation105_spill] sm:$0xff] %v9839_v34  ;;  %11707 = vst [vmem:[#allocation106_spill] sm:$0xff] %v9845_v1  ;;  %v9848_v16 = vrot.slane %v269_v14, %v9839_v34  ;;  %v9854_v52 = vrot.slane %v269_v14, %v9845_v1  ;;  %v9876_v31 = vrot.slane %v291_v26, %v9857_v0 }
  0x96   :  { %6781 = vmatpush1.bf16.msra.mxu1 %v9816_v63  ;;  %6751 = vmatprep.subr.bf16.mxu0 %v9818_v7  ;;  %11710 = vst [vmem:[#allocation109_spill] sm:$0xff] %v9857_v0  ;;  %v9872_v63 = vsub.s32 3, %v9836_v62 }
  0x97   :  { %6783 = vmatprep.subr.bf16.mxu1 %v9821_v50  ;;  %11708 = vst [vmem:[#allocation107_spill] sm:$0xff] %v9848_v16  ;;  %11709 = vst [vmem:[#allocation108_spill] sm:$0xff] %v9854_v52  ;;  %v9868_v50 = vrot.slane %v269_v14, %v9857_v0 }
  0x99   :  { %6753 = vmatpush1.bf16.msra.mxu0 %v9824_v27  ;;  %11713 = vst [vmem:[#allocation112_spill] sm:$0xff] %v9868_v50 }
  0x9a   :  { %6785 = vmatpush1.bf16.msra.mxu1 %v9828_v57  ;;  %6787 = vmatprep.subr.bf16.mxu0 %v9525_v6  ;;  %v9864_v57 = vrot.slane %v291_v26, %v9845_v1 }
  0x9b   :  { %6819 = vmatprep.subr.bf16.mxu1 %v9527_v10  ;;  %v9860_v10 = vrot.slane %v291_v26, %v9839_v34 }
  0x9c   :  { %11712 = vst [vmem:[#allocation111_spill] sm:$0xff] %v9864_v57 }
  0x9d   :  { %11711 = vst [vmem:[#allocation110_spill] sm:$0xff] %v9860_v10 }
  0xce   :  { %v345_v51 = vpop.permute.xlu0 %344 }
  0xcf   :  { %v347_v6 = vmul.f32 %v345_v51, %v9848_v16  ;;  %v348_v27 = vmul.f32 %v345_v51, %v9854_v52  ;;  %v349_v35 = vmul.f32 %v345_v51, %v9868_v50  ;;  %v9880_v52 = vrot.slane %v269_v14, %v9872_v63 }
  0xd1   :  { %v351_v7 = vadd.f32 %v347_v6, %v9860_v10  ;;  %v352_v38 = vadd.f32 %v348_v27, %v9864_v57  ;;  %v353_v62 = vadd.f32 %v349_v35, %v9876_v31  ;;  %v9884_v27 = vrot.slane %v291_v26, %v9872_v63 }
  0xd2   :  { %v350_v57 = vmul.f32 %v345_v51, %v9880_v52 }
 0x12f   :  { %v421_v44 = vpop.f32.mrb[0].mxu0 }
 0x130   :  { %v497_v16 = vadd.f32 %v421_v44, %v351_v7  ;;  %v492_v1 = vpop.f32.mrb[0].mxu1  ;;  %v423_v34 = vpop.f32.mrb[1].mxu0  ;;  %v354_v44 = vadd.f32 %v350_v57, %v9884_v27 }
 0x131   :  { %v498_v13 = vadd.f32 %v423_v34, %v352_v38  ;;  %v494_v12 = vpop.f32.mrb[1].mxu1  ;;  %v499_v50 = vadd.f32 %v492_v1, %v353_v62  ;;  %v11716_v1 = vld [vmem:[#allocation52_spill] sm:$0xff] }
 0x132   :  { %v6514_v6 = vmul.f32 -1.442695, %v497_v16  ;;  %v500_v0 = vadd.f32 %v494_v12, %v354_v44  ;;  %v11717_v44 = vld [vmem:[#allocation53_spill] sm:$0xff] }
 0x133   :  { %v6515_v10 = vmul.f32 -1.442695, %v498_v13  ;;  %v6516_v7 = vmul.f32 -1.442695, %v499_v50 }
 0x134   :  { %8955 = vpow2.f32 %v6514_v6 }
 0x135   :  { %8957 = vpow2.f32 %v6515_v10 }
 0x136   :  { %8959 = vpow2.f32 %v6516_v7  ;;  %v11718_v7 = vld [vmem:[#allocation54_spill] sm:$0xff] }
 0x137   :  { %8961 = vtanh.f32 %v500_v0  ;;  %v11715_v0 = vld [vmem:[#allocation51_spill] sm:$0xff] }
 0x13e   :  { %v8956_v14 = vpop.eup %8955 }
 0x13f   :  { %v510_v8 = vadd.f32 1.0, %v8956_v14  ;;  %v8958_v38 = vpop.eup %8957  ;;  %v11719_v14 = vld [vmem:[#allocation55_spill] sm:$0xff] }
 0x140   :  { %v511_v35 = vadd.f32 1.0, %v8958_v38  ;;  %v8960_v13 = vpop.eup %8959  ;;  %v11720_v38 = vld [vmem:[#allocation56_spill] sm:$0xff] }
 0x141   :  { %8963 = vrcp.f32 %v510_v8  ;;  %v8962_v34 = vpop.eup %8961  ;;  %v512_v51 = vadd.f32 1.0, %v8960_v13  ;;  %v11714_v8 = vld [vmem:[#allocation50_spill] sm:$0xff] }
 0x142   :  { %8965 = vrcp.f32 %v511_v35  ;;  %v11721_v35 = vld [vmem:[#allocation57_spill] sm:$0xff]  ;;  %v11722_v13 = vld [vmem:[#allocation58_spill] sm:$0xff] }
 0x143   :  { %8967 = vrcp.f32 %v512_v51  ;;  %v11727_v51 = vld [vmem:[#allocation63_spill] sm:$0xff] }
 0x14b   :  { %v8964_v16 = vpop.eup %8963 }
 0x14c   :  { %v521_v26 = vmul.f32 %v8964_v16, %v8962_v34  ;;  %v8966_v6 = vpop.eup %8965  ;;  %v11723_v34 = vld [vmem:[#allocation59_spill] sm:$0xff]  ;;  %v11724_v16 = vld [vmem:[#allocation60_spill] sm:$0xff] }
 0x14d   :  { %v520_v10 = vmul.f32 0.0, %v8966_v6  ;;  %v8968_v12 = vpop.eup %8967  ;;  %v11726_v6 = vld [vmem:[#allocation62_spill] sm:$0xff] }
 0x14f   :  { %v9888_v62 = vadd.f32 %v521_v26, %v520_v10  ;;  %v11725_v26 = vld [vmem:[#allocation61_spill] sm:$0xff]  ;;  %v11728_v10 = vld [vmem:[#allocation64_spill] sm:$0xff] }
 0x151   :  { %8969 = vtanh.f32 %v9888_v62 }
 0x15b   :  { %v8970_v50 = vpop.eup %8969 }
 0x15c   :  { %v524_v57 = vmul.f32 %v8970_v50, %v8968_v12  ;;  %v11729_v12 = vld [vmem:[#allocation65_spill] sm:$0xff]  ;;  %v11730_v50 = vld [vmem:[#allocation66_spill] sm:$0xff] }
 0x15e   :  { %732 = vmatmul.mubr.f32.vlgmr.msra.gmra.mrb[2].mxu0 %v524_v57  ;;  %803 = vmatmul.mubr.f32.vlgmr.msra.gmra.mrb[2].mxu1 %v524_v57 }
 0x15f   :  { %6789 = vmatpush1.bf16.msra.mxu0 %v9529_v11  ;;  %6821 = vmatpush1.bf16.msra.mxu1 %v9532_v15 }
 0x160   :  { %6791 = vmatprep.subr.bf16.mxu0 %v9536_v19  ;;  %6823 = vmatprep.subr.bf16.mxu1 %v9538_v20 }
 0x161   :  { %917 = vmatprep.mubr.f32.mxu0 %v11675_v36  ;;  %988 = vmatprep.mubr.f32.mxu1 %v11675_v36 }
 0x163   :  { %6793 = vmatpush1.bf16.msra.mxu0 %v9541_v24  ;;  %6825 = vmatpush1.bf16.msra.mxu1 %v9545_v28 }
 0x164   :  { %6795 = vmatprep.subr.bf16.mxu0 %v9547_v29  ;;  %6827 = vmatprep.subr.bf16.mxu1 %v9549_v33 }
 0x167   :  { %6797 = vmatpush1.bf16.msra.mxu0 %v9552_v37  ;;  %6829 = vmatpush1.bf16.msra.mxu1 %v9556_v41 }
 0x168   :  { %6799 = vmatprep.subr.bf16.mxu0 %v9558_v42  ;;  %6831 = vmatprep.subr.bf16.mxu1 %v9561_v46 }
 0x16b   :  { %6801 = vmatpush1.bf16.msra.mxu0 %v9564_v53  ;;  %6833 = vmatpush1.bf16.msra.mxu1 %v9568_v54 }
 0x16c   :  { %6803 = vmatprep.subr.bf16.mxu0 %v9570_v55  ;;  %6835 = vmatprep.subr.bf16.mxu1 %v9573_v59 }
 0x16f   :  { %6805 = vmatpush1.bf16.msra.mxu0 %v9576_v2  ;;  %6837 = vmatpush1.bf16.msra.mxu1 %v9580_v3 }
 0x170   :  { %6807 = vmatprep.subr.bf16.mxu0 %v9582_v4  ;;  %6839 = vmatprep.subr.bf16.mxu1 %v9585_v9 }
 0x173   :  { %6809 = vmatpush1.bf16.msra.mxu0 %v9588_v18  ;;  %6841 = vmatpush1.bf16.msra.mxu1 %v9592_v22 }
 0x174   :  { %6811 = vmatprep.subr.bf16.mxu0 %v9594_v23  ;;  %6843 = vmatprep.subr.bf16.mxu1 %v9600_v30 }
 0x177   :  { %6813 = vmatpush1.bf16.msra.mxu0 %v9606_v39  ;;  %6845 = vmatpush1.bf16.msra.mxu1 %v9610_v40 }
 0x178   :  { %6815 = vmatprep.subr.bf16.mxu0 %v9612_v43  ;;  %6847 = vmatprep.subr.bf16.mxu1 %v9615_v48 }
 0x17b   :  { %6817 = vmatpush1.bf16.msra.mxu0 %v9621_v58  ;;  %6849 = vmatpush1.bf16.msra.mxu1 %v9625_v60 }
 0x17c   :  { %6851 = vmatprep.subr.bf16.mxu0 %v9627_v61  ;;  %6883 = vmatprep.subr.bf16.mxu1 %v9630_v5 }
 0x17e   :  { %918 = vmatmul.mubr.f32.vlgmr.msra.gmra.mrb[4].mxu0 %v524_v57  ;;  %989 = vmatmul.mubr.f32.vlgmr.msra.gmra.mrb[4].mxu1 %v524_v57  ;;  %v11731_v57 = vld [vmem:[#allocation67_spill] sm:$0xff] }
 0x17f   :  { %6853 = vmatpush1.bf16.msra.mxu0 %v9636_v17  ;;  %6885 = vmatpush1.bf16.msra.mxu1 %v9640_v21 }
 0x180   :  { %6855 = vmatprep.subr.bf16.mxu0 %v9642_v25  ;;  %6887 = vmatprep.subr.bf16.mxu1 %v9645_v32 }
 0x181   :  { %1087 = vmatprep.mubr.f32.mxu0 %v11675_v36  ;;  %1158 = vmatprep.mubr.f32.mxu1 %v11675_v36 }
 0x183   :  { %6857 = vmatpush1.bf16.msra.mxu0 %v9650_v45  ;;  %6889 = vmatpush1.bf16.msra.mxu1 %v9654_v47 }
 0x184   :  { %6859 = vmatprep.subr.bf16.mxu0 %v9656_v49  ;;  %6891 = vmatprep.subr.bf16.mxu1 %v9659_v56 }
 0x187   :  { %6861 = vmatpush1.bf16.msra.mxu0 %v11714_v8  ;;  %6893 = vmatpush1.bf16.msra.mxu1 %v11715_v0 }
 0x188   :  { %6863 = vmatprep.subr.bf16.mxu0 %v11716_v1  ;;  %6895 = vmatprep.subr.bf16.mxu1 %v11717_v44  ;;  %v11742_v44 = vld [vmem:[#allocation109_spill] sm:$0xff] }
 0x18b   :  { %6865 = vmatpush1.bf16.msra.mxu0 %v11718_v7  ;;  %6897 = vmatpush1.bf16.msra.mxu1 %v11719_v14 }
 0x18c   :  { %6867 = vmatprep.subr.bf16.mxu0 %v11720_v38  ;;  %6899 = vmatprep.subr.bf16.mxu1 %v11721_v35  ;;  %v11732_v35 = vld [vmem:[#allocation68_spill] sm:$0xff] }
 0x18f   :  { %6869 = vmatpush1.bf16.msra.mxu0 %v11722_v13  ;;  %6901 = vmatpush1.bf16.msra.mxu1 %v11723_v34  ;;  %v11733_v13 = vld [vmem:[#allocation69_spill] sm:$0xff]  ;;  %v11734_v34 = vld [vmem:[#allocation70_spill] sm:$0xff] }
 0x190   :  { %6871 = vmatprep.subr.bf16.mxu0 %v11724_v16  ;;  %6903 = vmatprep.subr.bf16.mxu1 %v11725_v26  ;;  %v11735_v16 = vld [vmem:[#allocation71_spill] sm:$0xff]  ;;  %v11736_v26 = vld [vmem:[#allocation72_spill] sm:$0xff] }
 0x193   :  { %6873 = vmatpush1.bf16.msra.mxu0 %v11726_v6  ;;  %6905 = vmatpush1.bf16.msra.mxu1 %v11727_v51  ;;  %v11737_v6 = vld [vmem:[#allocation73_spill] sm:$0xff] }
 0x194   :  { %6875 = vmatprep.subr.bf16.mxu0 %v11728_v10  ;;  %6907 = vmatprep.subr.bf16.mxu1 %v11729_v12  ;;  %v6527_v12 = vld [vmem:[%s11379_s0 + $0x4] sm:$0x3] }
 0x195   :  { %1341 = vperm.xlu1 %8954, %v6527_v12  }
 0x197   :  { %6877 = vmatpush1.bf16.msra.mxu0 %v11730_v50  ;;  %6909 = vmatpush1.bf16.msra.mxu1 %v11731_v57  ;;  %v6534_v57 = vld [vmem:[%s11379_s0 + $0x6] sm:$0x3] }
 0x198   :  { %6879 = vmatprep.subr.bf16.mxu0 %v11732_v35  ;;  %6911 = vmatprep.subr.bf16.mxu1 %v11733_v13  ;;  %v11740_v13 = vld [vmem:[#allocation106_spill] sm:$0xff] }
 0x199   :  { %1840 = vperm.xlu1 %8954, %v6534_v57  }
 0x19b   :  { %6881 = vmatpush1.bf16.msra.mxu0 %v11734_v34  ;;  %6913 = vmatpush1.bf16.msra.mxu1 %v11735_v16  ;;  %v6548_v34 = vld [vmem:[%s11379_s0 + $0xa] sm:$0x3] }
 0x19c   :  { %6915 = vmatprep.subr.bf16.mxu0 %v11736_v26  ;;  %6947 = vmatprep.subr.bf16.mxu1 %v11737_v6  ;;  %v313_v26 = vld [vmem:[%s11385_s6] sm:$0xf]  ;;  %v6562_v6 = vld [vmem:[%s11379_s0 + $0xe] sm:$0x3] }
 0x19d   :  { %2838 = vperm.xlu1 %8954, %v6548_v34   ;;  %v11738_v16 = vld [vmem:[#allocation105_spill] sm:$0xff]  ;;  %v9978_v35 = vrot.slane %v313_v26, %v11740_v13  ;;  %v9983_v1 = vrot.slane %v313_v26, %v11742_v44  ;;  %v843_v44 = vpop.permute.xlu0 %842 }
 0x19e   :  { %v9975_v12 = vrot.slane %v313_v26, %v11738_v16  ;;  %v9986_v16 = vrot.slane %v313_v26, %v9872_v63  ;;  %v11746_v26 = vld [vmem:[#allocation108_spill] sm:$0xff] }
 0x19f   :  { %11741 = vst [vmem:[#allocation106_spill] sm:$0xff] %v9978_v35  ;;  %11743 = vst [vmem:[#allocation109_spill] sm:$0xff] %v9983_v1 }
 0x1a0   :  { %11739 = vst [vmem:[#allocation105_spill] sm:$0xff] %v9975_v12  ;;  %11744 = vst [vmem:[#allocation113_spill] sm:$0xff] %v9986_v16 }
 0x1a1   :  { %3836 = vperm.xlu1 %8954, %v6562_v6  }
 0x231   :  { %v733_v57 = vpop.f32.mrb[2].mxu0  ;;  %v804_v50 = vpop.f32.mrb[2].mxu1 }
 0x232   :  { %v809_v10 = vadd.f32 %v733_v57, %v9975_v12  ;;  %v735_v34 = vpop.f32.mrb[3].mxu0  ;;  %v806_v51 = vpop.f32.mrb[3].mxu1  ;;  %v811_v13 = vadd.f32 %v804_v50, %v9983_v1 }
 0x233   :  { %v810_v38 = vadd.f32 %v735_v34, %v9978_v35  ;;  %v812_v6 = vadd.f32 %v806_v51, %v9986_v16  ;;  %v846_v35 = vmul.f32 %v843_v44, %v11746_v26  ;;  %v11747_v16 = vld [vmem:[#allocation110_spill] sm:$0xff] }
 0x234   :  { %v6517_v14 = vmul.f32 -1.442695, %v809_v10  ;;  %v6519_v0 = vmul.f32 -1.442695, %v811_v13 }
 0x235   :  { %v6518_v7 = vmul.f32 -1.442695, %v810_v38 }
 0x236   :  { %8971 = vpow2.f32 %v6517_v14 }
 0x237   :  { %8973 = vpow2.f32 %v6518_v7  ;;  %v11745_v7 = vld [vmem:[#allocation107_spill] sm:$0xff] }
 0x238   :  { %8975 = vtanh.f32 %v812_v6  ;;  %v845_v34 = vmul.f32 %v843_v44, %v11745_v7 }
 0x239   :  { %8977 = vpow2.f32 %v6519_v0  ;;  %v11748_v0 = vld [vmem:[#allocation111_spill] sm:$0xff] }
 0x240   :  { %v8972_v57 = vpop.eup %8971 }
 0x241   :  { %v822_v12 = vadd.f32 1.0, %v8972_v57  ;;  %v8974_v8 = vpop.eup %8973  ;;  %v849_v57 = vadd.f32 %v845_v34, %v11747_v16 }
 0x242   :  { %v823_v38 = vadd.f32 1.0, %v8974_v8  ;;  %v8976_v14 = vpop.eup %8975 }
 0x243   :  { %8979 = vrcp.f32 %v822_v12  ;;  %v8978_v10 = vpop.eup %8977  ;;  %v850_v12 = vadd.f32 %v846_v35, %v11748_v0 }
 0x244   :  { %8981 = vrcp.f32 %v823_v38  ;;  %v824_v51 = vadd.f32 1.0, %v8978_v10 }
 0x246   :  { %8983 = vrcp.f32 %v824_v51 }
 0x24d   :  { %v8980_v63 = vpop.eup %8979 }
 0x24e   :  { %v833_v50 = vmul.f32 %v8980_v63, %v8976_v14  ;;  %v8982_v1 = vpop.eup %8981  ;;  %v11750_v14 = vld [vmem:[#allocation112_spill] sm:$0xff] }
 0x24f   :  { %v832_v13 = vmul.f32 0.0, %v8982_v1  ;;  %v847_v63 = vmul.f32 %v843_v44, %v11750_v14  ;;  %v848_v1 = vmul.f32 %v843_v44, %v9880_v52  ;;  %v11751_v44 = vld [vmem:[#allocation74_spill] sm:$0xff] }
 0x251   :  { %v919_v6 = vpop.f32.mrb[4].mxu0  ;;  %v990_v56 = vpop.f32.mrb[4].mxu1  ;;  %v9994_v8 = vadd.f32 %v833_v50, %v832_v13  ;;  %v851_v34 = vadd.f32 %v847_v63, %v9876_v31  ;;  %v852_v50 = vadd.f32 %v848_v1, %v9884_v27  ;;  %v11755_v63 = vld [vmem:[#allocation78_spill] sm:$0xff]  ;;  %v11757_v1 = vld [vmem:[#allocation80_spill] sm:$0xff] }
 0x252   :  { %v995_v38 = vadd.f32 %v919_v6, %v849_v57  ;;  %v921_v49 = vpop.f32.mrb[5].mxu0  ;;  %v992_v47 = vpop.f32.mrb[5].mxu1 }
 0x253   :  { %11749 = vst [vmem:[#allocation110_spill] sm:$0xff] %v9994_v8  ;;  %v996_v7 = vadd.f32 %v921_v49, %v850_v12  ;;  %8985 = vtanh.f32 %v9994_v8  ;;  %v997_v35 = vadd.f32 %v990_v56, %v851_v34  ;;  %v8984_v13 = vpop.eup %8983  ;;  %v998_v57 = vadd.f32 %v992_v47, %v852_v50  ;;  %v11754_v47 = vld [vmem:[#allocation77_spill] sm:$0xff] }
 0x254   :  { %v6521_v26 = vmul.f32 -1.442695, %v995_v38  ;;  %v11753_v38 = vld [vmem:[#allocation76_spill] sm:$0xff]  ;;  %v11758_v34 = vld [vmem:[#allocation81_spill] sm:$0xff] }
 0x255   :  { %v6522_v10 = vmul.f32 -1.442695, %v996_v7  ;;  %v6523_v51 = vmul.f32 -1.442695, %v997_v35  ;;  %v11759_v35 = vld [vmem:[#allocation82_spill] sm:$0xff] }
 0x256   :  { %8987 = vpow2.f32 %v6521_v26  ;;  %v11752_v26 = vld [vmem:[#allocation75_spill] sm:$0xff] }
 0x257   :  { %8989 = vpow2.f32 %v6522_v10  ;;  %v11756_v10 = vld [vmem:[#allocation79_spill] sm:$0xff] }
 0x258   :  { %8991 = vtanh.f32 %v998_v57  ;;  %v11762_v57 = vld [vmem:[#allocation85_spill] sm:$0xff] }
 0x259   :  { %8993 = vpow2.f32 %v6523_v51 }
 0x25d   :  { %v8986_v6 = vpop.eup %8985 }
 0x25e   :  { %v836_v49 = vmul.f32 %v8986_v6, %v8984_v13  ;;  %v11761_v13 = vld [vmem:[#allocation84_spill] sm:$0xff] }
 0x260   :  { %v8988_v12 = vpop.eup %8987  ;;  %837 = vst [vmem:[#allocation2] sm:$0x3] %v836_v49  ;;  %1088 = vmatmul.mubr.f32.vlgmr.msra.gmra.mrb[6].mxu0 %v836_v49  ;;  %1159 = vmatmul.mubr.f32.vlgmr.msra.gmra.mrb[6].mxu1 %v836_v49 }
 0x261   :  { %v1008_v8 = vadd.f32 1.0, %v8988_v12  ;;  %v8990_v7 = vpop.eup %8989  ;;  %6917 = vmatpush1.bf16.msra.mxu0 %v11751_v44  ;;  %6949 = vmatpush1.bf16.msra.mxu1 %v11752_v26  ;;  %v11763_v12 = vld [vmem:[#allocation86_spill] sm:$0xff] }
 0x262   :  { %v1009_v56 = vadd.f32 1.0, %v8990_v7  ;;  %6919 = vmatprep.subr.bf16.mxu0 %v11753_v38  ;;  %6951 = vmatprep.subr.bf16.mxu1 %v11754_v47  ;;  %v8992_v50 = vpop.eup %8991  ;;  %v11764_v7 = vld [vmem:[#allocation87_spill] sm:$0xff] }
 0x263   :  { %8995 = vrcp.f32 %v1008_v8  ;;  %1229 = vmatprep.mubr.f32.mxu0 %v11675_v36  ;;  %1300 = vmatprep.mubr.f32.mxu1 %v11675_v36  ;;  %v11760_v8 = vld [vmem:[#allocation83_spill] sm:$0xff]  ;;  %v8994_v6 = vpop.eup %8993 }
 0x264   :  { %8997 = vrcp.f32 %v1009_v56 }
 0x265   :  { %6921 = vmatpush1.bf16.msra.mxu0 %v11755_v63  ;;  %6953 = vmatpush1.bf16.msra.mxu1 %v11756_v10  ;;  %v11765_v10 = vld [vmem:[#allocation88_spill] sm:$0xff] }
 0x266   :  { %6923 = vmatprep.subr.bf16.mxu0 %v11757_v1  ;;  %6955 = vmatprep.subr.bf16.mxu1 %v11758_v34  ;;  %v1010_v1 = vadd.f32 1.0, %v8994_v6  ;;  %v11766_v34 = vld [vmem:[#allocation89_spill] sm:$0xff]  ;;  %v11771_v6 = vld [vmem:[#allocation94_spill] sm:$0xff] }
 0x268   :  { %8999 = vrcp.f32 %v1010_v1  ;;  %v11778_v1 = vld [vmem:[#allocation101_spill] sm:$0xff] }
 0x269   :  { %6925 = vmatpush1.bf16.msra.mxu0 %v11759_v35  ;;  %6957 = vmatpush1.bf16.msra.mxu1 %v11760_v8 }
 0x26a   :  { %6927 = vmatprep.subr.bf16.mxu0 %v11761_v13  ;;  %6959 = vmatprep.subr.bf16.mxu1 %v11762_v57  ;;  %v11767_v13 = vld [vmem:[#allocation90_spill] sm:$0xff]  ;;  %v11768_v57 = vld [vmem:[#allocation91_spill] sm:$0xff] }
 0x26d   :  { %v8996_v51 = vpop.eup %8995  ;;  %6929 = vmatpush1.bf16.msra.mxu0 %v11763_v12  ;;  %6961 = vmatpush1.bf16.msra.mxu1 %v11764_v7 }
 0x26e   :  { %v1019_v49 = vmul.f32 %v8996_v51, %v8992_v50  ;;  %v8998_v56 = vpop.eup %8997  ;;  %6931 = vmatprep.subr.bf16.mxu0 %v11765_v10  ;;  %6963 = vmatprep.subr.bf16.mxu1 %v11766_v34  ;;  %v11769_v50 = vld [vmem:[#allocation92_spill] sm:$0xff]  ;;  %v11770_v51 = vld [vmem:[#allocation93_spill] sm:$0xff]  ;;  %v11772_v10 = vld [vmem:[#allocation95_spill] sm:$0xff] }
 0x26f   :  { %v1018_v8 = vmul.f32 %v8998_v56, %v9888_v62  ;;  %v11773_v34 = vld [vmem:[#allocation96_spill] sm:$0xff]  ;;  %v11774_v62 = vld [vmem:[#allocation97_spill] sm:$0xff] }
 0x270   :  { %v11777_v56 = vld [vmem:[#allocation100_spill] sm:$0xff] }
 0x271   :  { %v10020_v35 = vadd.f32 %v1019_v49, %v1018_v8  ;;  %6933 = vmatpush1.bf16.msra.mxu0 %v11767_v13  ;;  %6965 = vmatpush1.bf16.msra.mxu1 %v11768_v57  ;;  %v11775_v8 = vld [vmem:[#allocation98_spill] sm:$0xff]  ;;  %v11776_v49 = vld [vmem:[#allocation99_spill] sm:$0xff] }
 0x272   :  { %6935 = vmatprep.subr.bf16.mxu0 %v11769_v50  ;;  %6967 = vmatprep.subr.bf16.mxu1 %v11770_v51  ;;  %v9000_v50 = vpop.eup %8999  ;;  %v11779_v57 = vld [vmem:[#allocation102_spill] sm:$0xff]  ;;  %v11780_v13 = vld [vmem:[#allocation103_spill] sm:$0xff] }
 0x273   :  { %9001 = vtanh.f32 %v10020_v35 }
 0x275   :  { %6937 = vmatpush1.bf16.msra.mxu0 %v11771_v6  ;;  %6969 = vmatpush1.bf16.msra.mxu1 %v11772_v10  ;;  %v11781_v10 = vld [vmem:[#allocation11_spill] sm:$0xff] }
 0x276   :  { %6939 = vmatprep.subr.bf16.mxu0 %v11773_v34  ;;  %6971 = vmatprep.subr.bf16.mxu1 %v11774_v62  ;;  %v11782_v34 = vld [vmem:[#allocation12_spill] sm:$0xff] }
 0x279   :  { %6941 = vmatpush1.bf16.msra.mxu0 %v11775_v8  ;;  %6973 = vmatpush1.bf16.msra.mxu1 %v11776_v49 }
 0x27a   :  { %6943 = vmatprep.subr.bf16.mxu0 %v11777_v56  ;;  %6975 = vmatprep.subr.bf16.mxu1 %v11778_v1 }
 0x27d   :  { %v9002_v51 = vpop.eup %9001  ;;  %6945 = vmatpush1.bf16.msra.mxu0 %v11779_v57  ;;  %6977 = vmatpush1.bf16.msra.mxu1 %v11780_v13 }
 0x27e   :  { %v1022_v6 = vmul.f32 %v9002_v51, %v9000_v50  ;;  %6979 = vmatprep.subr.bf16.mxu0 %v11781_v10  ;;  %7011 = vmatprep.subr.bf16.mxu1 %v11782_v34  ;;  %v11783_v50 = vld [vmem:[#allocation47_spill] sm:$0xff]  ;;  %v11784_v51 = vld [vmem:[#allocation48_spill] sm:$0xff] }
 0x280   :  { %1230 = vmatmul.mubr.f32.vlgmr.msra.gmra.mrb[6].mxu0 %v1022_v6  ;;  %1301 = vmatmul.mubr.f32.vlgmr.msra.gmra.mrb[6].mxu1 %v1022_v6 }
 0x281   :  { %6981 = vmatpush1.bf16.msra.mxu0 %v9529_v11  ;;  %7013 = vmatpush1.bf16.msra.mxu1 %v9532_v15 }
 0x282   :  { %6983 = vmatprep.subr.bf16.mxu0 %v9536_v19  ;;  %7015 = vmatprep.subr.bf16.mxu1 %v9538_v20 }
 0x283   :  { %1416 = vmatprep.mubr.f32.mxu0 %v11675_v36  ;;  %1487 = vmatprep.mubr.f32.mxu1 %v11675_v36 }
 0x285   :  { %6985 = vmatpush1.bf16.msra.mxu0 %v9541_v24  ;;  %7017 = vmatpush1.bf16.msra.mxu1 %v9545_v28 }
 0x286   :  { %6987 = vmatprep.subr.bf16.mxu0 %v9547_v29  ;;  %7019 = vmatprep.subr.bf16.mxu1 %v9549_v33 }
 0x289   :  { %6989 = vmatpush1.bf16.msra.mxu0 %v9552_v37  ;;  %7021 = vmatpush1.bf16.msra.mxu1 %v9556_v41 }
 0x28a   :  { %6991 = vmatprep.subr.bf16.mxu0 %v9558_v42  ;;  %7023 = vmatprep.subr.bf16.mxu1 %v9561_v46 }
 0x28d   :  { %6993 = vmatpush1.bf16.msra.mxu0 %v9564_v53  ;;  %7025 = vmatpush1.bf16.msra.mxu1 %v9568_v54 }
 0x28e   :  { %6995 = vmatprep.subr.bf16.mxu0 %v9570_v55  ;;  %7027 = vmatprep.subr.bf16.mxu1 %v9573_v59 }
 0x291   :  { %6997 = vmatpush1.bf16.msra.mxu0 %v9576_v2  ;;  %7029 = vmatpush1.bf16.msra.mxu1 %v9580_v3 }
 0x292   :  { %6999 = vmatprep.subr.bf16.mxu0 %v9582_v4  ;;  %7031 = vmatprep.subr.bf16.mxu1 %v9585_v9 }
 0x295   :  { %7001 = vmatpush1.bf16.msra.mxu0 %v9588_v18  ;;  %7033 = vmatpush1.bf16.msra.mxu1 %v9592_v22  ;;  %v11814_v22 = vld [vmem:[#allocation107_spill] sm:$0xff] }
 0x296   :  { %7003 = vmatprep.subr.bf16.mxu0 %v9594_v23  ;;  %7035 = vmatprep.subr.bf16.mxu1 %v9600_v30 }
 0x299   :  { %7005 = vmatpush1.bf16.msra.mxu0 %v9606_v39  ;;  %7037 = vmatpush1.bf16.msra.mxu1 %v9610_v40  ;;  %v11813_v39 = vld [vmem:[#allocation113_spill] sm:$0xff] }
 0x29a   :  { %7007 = vmatprep.subr.bf16.mxu0 %v9612_v43  ;;  %7039 = vmatprep.subr.bf16.mxu1 %v9615_v48  ;;  %v11811_v43 = vld [vmem:[#allocation106_spill] sm:$0xff] }
 0x29d   :  { %7009 = vmatpush1.bf16.msra.mxu0 %v9621_v58  ;;  %7041 = vmatpush1.bf16.msra.mxu1 %v9625_v60  ;;  %v11792_v60 = vld [vmem:[#allocation56_spill] sm:$0xff]  ;;  %v11810_v58 = vld [vmem:[#allocation105_spill] sm:$0xff] }
 0x29e   :  { %7043 = vmatprep.subr.bf16.mxu0 %v9627_v61  ;;  %7075 = vmatprep.subr.bf16.mxu1 %v9630_v5  ;;  %v11785_v5 = vld [vmem:[#allocation49_spill] sm:$0xff]  ;;  %v11791_v61 = vld [vmem:[#allocation55_spill] sm:$0xff] }
 0x2a0   :  { %1417 = vmatmul.mubr.f32.vlgmr.msra.gmra.mrb[8].mxu0 %v1022_v6  ;;  %1488 = vmatmul.mubr.f32.vlgmr.msra.gmra.mrb[8].mxu1 %v1022_v6  ;;  %v11786_v6 = vld [vmem:[#allocation50_spill] sm:$0xff] }
 0x2a1   :  { %7045 = vmatpush1.bf16.msra.mxu0 %v9636_v17  ;;  %7077 = vmatpush1.bf16.msra.mxu1 %v9640_v21  ;;  %v11787_v17 = vld [vmem:[#allocation51_spill] sm:$0xff]  ;;  %v11788_v21 = vld [vmem:[#allocation52_spill] sm:$0xff] }
 0x2a2   :  { %7047 = vmatprep.subr.bf16.mxu0 %v9642_v25  ;;  %7079 = vmatprep.subr.bf16.mxu1 %v9645_v32  ;;  %v11789_v25 = vld [vmem:[#allocation53_spill] sm:$0xff]  ;;  %v11790_v32 = vld [vmem:[#allocation54_spill] sm:$0xff] }
 0x2a3   :  { %1586 = vmatprep.mubr.f32.mxu0 %v11675_v36  ;;  %1657 = vmatprep.mubr.f32.mxu1 %v11675_v36 }
 0x2a5   :  { %7049 = vmatpush1.bf16.msra.mxu0 %v9650_v45  ;;  %7081 = vmatpush1.bf16.msra.mxu1 %v11783_v50  ;;  %v11793_v45 = vld [vmem:[#allocation57_spill] sm:$0xff]  ;;  %v11794_v50 = vld [vmem:[#allocation58_spill] sm:$0xff] }
 0x2a6   :  { %7051 = vmatprep.subr.bf16.mxu0 %v11784_v51  ;;  %7083 = vmatprep.subr.bf16.mxu1 %v11785_v5  ;;  %v11795_v51 = vld [vmem:[#allocation59_spill] sm:$0xff]  ;;  %v11796_v5 = vld [vmem:[#allocation60_spill] sm:$0xff] }
 0x2a9   :  { %7053 = vmatpush1.bf16.msra.mxu0 %v11786_v6  ;;  %7085 = vmatpush1.bf16.msra.mxu1 %v11787_v17  ;;  %v11797_v6 = vld [vmem:[#allocation61_spill] sm:$0xff]  ;;  %v11798_v17 = vld [vmem:[#allocation62_spill] sm:$0xff] }
 0x2aa   :  { %7055 = vmatprep.subr.bf16.mxu0 %v11788_v21  ;;  %7087 = vmatprep.subr.bf16.mxu1 %v11789_v25  ;;  %v11799_v21 = vld [vmem:[#allocation63_spill] sm:$0xff]  ;;  %v11800_v25 = vld [vmem:[#allocation64_spill] sm:$0xff] }
 0x2ad   :  { %7057 = vmatpush1.bf16.msra.mxu0 %v11790_v32  ;;  %7089 = vmatpush1.bf16.msra.mxu1 %v11791_v61  ;;  %v11801_v32 = vld [vmem:[#allocation65_spill] sm:$0xff]  ;;  %v11802_v61 = vld [vmem:[#allocation66_spill] sm:$0xff] }
 0x2ae   :  { %7059 = vmatprep.subr.bf16.mxu0 %v11792_v60  ;;  %7091 = vmatprep.subr.bf16.mxu1 %v11793_v45  ;;  %v11803_v60 = vld [vmem:[#allocation67_spill] sm:$0xff]  ;;  %v11804_v45 = vld [vmem:[#allocation68_spill] sm:$0xff] }
 0x2b1   :  { %7061 = vmatpush1.bf16.msra.mxu0 %v11794_v50  ;;  %7093 = vmatpush1.bf16.msra.mxu1 %v11795_v51  ;;  %v11805_v50 = vld [vmem:[#allocation69_spill] sm:$0xff]  ;;  %v11806_v51 = vld [vmem:[#allocation70_spill] sm:$0xff] }
 0x2b2   :  { %7063 = vmatprep.subr.bf16.mxu0 %v11796_v5  ;;  %7095 = vmatprep.subr.bf16.mxu1 %v11797_v6  ;;  %v11807_v5 = vld [vmem:[#allocation71_spill] sm:$0xff]  ;;  %v11808_v6 = vld [vmem:[#allocation72_spill] sm:$0xff] }
 0x2b5   :  { %7065 = vmatpush1.bf16.msra.mxu0 %v11798_v17  ;;  %7097 = vmatpush1.bf16.msra.mxu1 %v11799_v21  ;;  %v11809_v17 = vld [vmem:[#allocation73_spill] sm:$0xff] }
 0x2b6   :  { %7067 = vmatprep.subr.bf16.mxu0 %v11800_v25  ;;  %7099 = vmatprep.subr.bf16.mxu1 %v11801_v32 }
 0x2b9   :  { %7069 = vmatpush1.bf16.msra.mxu0 %v11802_v61  ;;  %7101 = vmatpush1.bf16.msra.mxu1 %v11803_v60 }
 0x2ba   :  { %7071 = vmatprep.subr.bf16.mxu0 %v11804_v45  ;;  %7103 = vmatprep.subr.bf16.mxu1 %v11805_v50  ;;  %v11812_v50 = vld [vmem:[#allocation109_spill] sm:$0xff] }
 0x2bd   :  { %7073 = vmatpush1.bf16.msra.mxu0 %v11806_v51  ;;  %7105 = vmatpush1.bf16.msra.mxu1 %v11807_v5 }
 0x2be   :  { %7107 = vmatprep.subr.bf16.mxu0 %v11808_v6  ;;  %7139 = vmatprep.subr.bf16.mxu1 %v11809_v17 }
 0x353   :  { %v1231_v21 = vpop.f32.mrb[6].mxu0  ;;  %v1302_v25 = vpop.f32.mrb[6].mxu1 }
 0x354   :  { %v1307_v32 = vadd.f32 %v1231_v21, %v11810_v58  ;;  %v1233_v48 = vpop.f32.mrb[7].mxu0  ;;  %v1304_v61 = vpop.f32.mrb[7].mxu1  ;;  %v1309_v51 = vadd.f32 %v1302_v25, %v11812_v50 }
 0x355   :  { %v1308_v60 = vadd.f32 %v1233_v48, %v11811_v43  ;;  %v1310_v5 = vadd.f32 %v1304_v61, %v11813_v39  ;;  %v1342_v58 = vpop.permute.xlu1 %1341 }
 0x356   :  { %v6524_v40 = vmul.f32 -1.442695, %v1307_v32  ;;  %v6526_v30 = vmul.f32 -1.442695, %v1309_v51  ;;  %v1344_v48 = vmul.f32 %v1342_v58, %v11814_v22  ;;  %v1346_v22 = vmul.f32 %v1342_v58, %v11750_v14 }
 0x357   :  { %v6525_v45 = vmul.f32 -1.442695, %v1308_v60  ;;  %v11815_v60 = vld [vmem:[#allocation108_spill] sm:$0xff] }
 0x358   :  { %9003 = vpow2.f32 %v6524_v40  ;;  %v1345_v40 = vmul.f32 %v1342_v58, %v11815_v60  ;;  %v1348_v61 = vadd.f32 %v1344_v48, %v11747_v16 }
 0x359   :  { %9005 = vpow2.f32 %v6525_v45 }
 0x35a   :  { %9007 = vtanh.f32 %v1310_v5  ;;  %v1349_v5 = vadd.f32 %v1345_v40, %v11748_v0  ;;  %v1350_v40 = vadd.f32 %v1346_v22, %v9876_v31 }
 0x35b   :  { %9009 = vpow2.f32 %v6526_v30 }
 0x362   :  { %v9004_v6 = vpop.eup %9003 }
 0x363   :  { %v1320_v23 = vadd.f32 1.0, %v9004_v6  ;;  %v9006_v17 = vpop.eup %9005  ;;  %v11816_v6 = vld [vmem:[#allocation110_spill] sm:$0xff] }
 0x364   :  { %v1321_v21 = vadd.f32 1.0, %v9006_v17  ;;  %v9008_v32 = vpop.eup %9007 }
 0x365   :  { %9011 = vrcp.f32 %v1320_v23  ;;  %v9010_v45 = vpop.eup %9009 }
 0x366   :  { %9013 = vrcp.f32 %v1321_v21  ;;  %v1322_v39 = vadd.f32 1.0, %v9010_v45 }
 0x368   :  { %9015 = vrcp.f32 %v1322_v39 }
 0x36f   :  { %v9012_v43 = vpop.eup %9011 }
 0x370   :  { %v1331_v25 = vmul.f32 %v9012_v43, %v9008_v32  ;;  %v9014_v51 = vpop.eup %9013  ;;  %v1347_v32 = vmul.f32 %v1342_v58, %v9880_v52  ;;  %v11817_v58 = vld [vmem:[#allocation79_spill] sm:$0xff] }
 0x371   :  { %v1330_v30 = vmul.f32 %v9014_v51, %v11816_v6 }
 0x372   :  { %v1351_v45 = vadd.f32 %v1347_v32, %v9884_v27  ;;  %v11823_v32 = vld [vmem:[#allocation85_spill] sm:$0xff] }
 0x373   :  { %v1418_v23 = vpop.f32.mrb[8].mxu0  ;;  %v1489_v17 = vpop.f32.mrb[8].mxu1  ;;  %v10116_v21 = vadd.f32 %v1331_v25, %v1330_v30 }
 0x374   :  { %v1494_v50 = vadd.f32 %v1418_v23, %v1348_v61  ;;  %v1420_v18 = vpop.f32.mrb[9].mxu0  ;;  %v1491_v60 = vpop.f32.mrb[9].mxu1  ;;  %v1496_v25 = vadd.f32 %v1489_v17, %v1350_v40  ;;  %v11821_v17 = vld [vmem:[#allocation83_spill] sm:$0xff] }
 0x375   :  { %v1495_v9 = vadd.f32 %v1420_v18, %v1349_v5  ;;  %9017 = vtanh.f32 %v10116_v21  ;;  %v9016_v61 = vpop.eup %9015  ;;  %v1497_v51 = vadd.f32 %v1491_v60, %v1351_v45  ;;  %v11819_v60 = vld [vmem:[#allocation81_spill] sm:$0xff]  ;;  %v11820_v5 = vld [vmem:[#allocation82_spill] sm:$0xff] }
 0x376   :  { %v6528_v43 = vmul.f32 -1.442695, %v1494_v50  ;;  %v6530_v30 = vmul.f32 -1.442695, %v1496_v25  ;;  %v11818_v50 = vld [vmem:[#allocation80_spill] sm:$0xff] }
 0x377   :  { %v6529_v48 = vmul.f32 -1.442695, %v1495_v9 }
 0x378   :  { %9019 = vpow2.f32 %v6528_v43 }
 0x379   :  { %9021 = vpow2.f32 %v6529_v48  ;;  %v11822_v48 = vld [vmem:[#allocation84_spill] sm:$0xff] }
 0x37a   :  { %9023 = vtanh.f32 %v1497_v51 }
 0x37b   :  { %9025 = vpow2.f32 %v6530_v30  ;;  %v11825_v30 = vld [vmem:[#allocation89_spill] sm:$0xff] }
 0x37f   :  { %v9018_v6 = vpop.eup %9017 }
 0x380   :  { %v1334_v23 = vmul.f32 %v9018_v6, %v9016_v61  ;;  %v11824_v6 = vld [vmem:[#allocation88_spill] sm:$0xff] }
 0x382   :  { %v9020_v39 = vpop.eup %9019  ;;  %1336 = vst [vmem:[#allocation2 + $0x2] sm:$0x3] %v1334_v23  ;;  %1587 = vmatmul.mubr.f32.vlgmr.msra.gmra.mrb[10].mxu0 %v1334_v23  ;;  %1658 = vmatmul.mubr.f32.vlgmr.msra.gmra.mrb[10].mxu1 %v1334_v23 }
 0x383   :  { %v1507_v18 = vadd.f32 1.0, %v9020_v39  ;;  %v9022_v9 = vpop.eup %9021  ;;  %7109 = vmatpush1.bf16.msra.mxu0 %v11751_v44  ;;  %7141 = vmatpush1.bf16.msra.mxu1 %v11752_v26 }
 0x384   :  { %v1508_v22 = vadd.f32 1.0, %v9022_v9  ;;  %7111 = vmatprep.subr.bf16.mxu0 %v11753_v38  ;;  %7143 = vmatprep.subr.bf16.mxu1 %v11754_v47  ;;  %v9024_v43 = vpop.eup %9023  ;;  %v11827_v9 = vld [vmem:[#allocation91_spill] sm:$0xff] }
 0x385   :  { %9027 = vrcp.f32 %v1507_v18  ;;  %1728 = vmatprep.mubr.f32.mxu0 %v11675_v36  ;;  %1799 = vmatprep.mubr.f32.mxu1 %v11675_v36  ;;  %v9026_v40 = vpop.eup %9025  ;;  %v11826_v18 = vld [vmem:[#allocation90_spill] sm:$0xff] }
 0x386   :  { %9029 = vrcp.f32 %v1508_v22  ;;  %v1509_v51 = vadd.f32 1.0, %v9026_v40  ;;  %v11828_v22 = vld [vmem:[#allocation92_spill] sm:$0xff]  ;;  %v11830_v40 = vld [vmem:[#allocation94_spill] sm:$0xff] }
 0x387   :  { %7113 = vmatpush1.bf16.msra.mxu0 %v11755_v63  ;;  %7145 = vmatpush1.bf16.msra.mxu1 %v11817_v58 }
 0x388   :  { %7115 = vmatprep.subr.bf16.mxu0 %v11818_v50  ;;  %7147 = vmatprep.subr.bf16.mxu1 %v11819_v60  ;;  %9031 = vrcp.f32 %v1509_v51  ;;  %v11833_v51 = vld [vmem:[#allocation29_spill] sm:$0xff] }
 0x38b   :  { %7117 = vmatpush1.bf16.msra.mxu0 %v11820_v5  ;;  %7149 = vmatpush1.bf16.msra.mxu1 %v11821_v17 }
 0x38c   :  { %7119 = vmatprep.subr.bf16.mxu0 %v11822_v48  ;;  %7151 = vmatprep.subr.bf16.mxu1 %v11823_v32 }
 0x38f   :  { %v9028_v45 = vpop.eup %9027  ;;  %7121 = vmatpush1.bf16.msra.mxu0 %v11763_v12  ;;  %7153 = vmatpush1.bf16.msra.mxu1 %v11764_v7 }
 0x390   :  { %v1518_v25 = vmul.f32 %v9028_v45, %v9024_v43  ;;  %v9030_v61 = vpop.eup %9029  ;;  %7123 = vmatprep.subr.bf16.mxu0 %v11824_v6  ;;  %7155 = vmatprep.subr.bf16.mxu1 %v11825_v30  ;;  %v11829_v43 = vld [vmem:[#allocation93_spill] sm:$0xff]  ;;  %v11831_v45 = vld [vmem:[#allocation95_spill] sm:$0xff]  ;;  %v11832_v30 = vld [vmem:[#allocation96_spill] sm:$0xff] }
 0x391   :  { %v1517_v23 = vmul.f32 %v9030_v61, %v10020_v35 }
 0x392   :  { %v9032_v35 = vpop.eup %9031 }
 0x393   :  { %v10142_v39 = vadd.f32 %v1518_v25, %v1517_v23  ;;  %7125 = vmatpush1.bf16.msra.mxu0 %v11826_v18  ;;  %7157 = vmatpush1.bf16.msra.mxu1 %v11827_v9  ;;  %v11834_v23 = vld [vmem:[#allocation30_spill] sm:$0xff] }
 0x394   :  { %7127 = vmatprep.subr.bf16.mxu0 %v11828_v22  ;;  %7159 = vmatprep.subr.bf16.mxu1 %v11829_v43 }
 0x395   :  { %9033 = vtanh.f32 %v10142_v39 }
 0x397   :  { %7129 = vmatpush1.bf16.msra.mxu0 %v11830_v40  ;;  %7161 = vmatpush1.bf16.msra.mxu1 %v11831_v45 }
 0x398   :  { %7131 = vmatprep.subr.bf16.mxu0 %v11832_v30  ;;  %7163 = vmatprep.subr.bf16.mxu1 %v11774_v62 }
 0x39b   :  { %7133 = vmatpush1.bf16.msra.mxu0 %v11775_v8  ;;  %7165 = vmatpush1.bf16.msra.mxu1 %v11776_v49 }
 0x39c   :  { %7135 = vmatprep.subr.bf16.mxu0 %v11777_v56  ;;  %7167 = vmatprep.subr.bf16.mxu1 %v11778_v1 }
 0x39f   :  { %v9034_v25 = vpop.eup %9033  ;;  %7137 = vmatpush1.bf16.msra.mxu0 %v11779_v57  ;;  %7169 = vmatpush1.bf16.msra.mxu1 %v11780_v13 }
 0x3a0   :  { %7171 = vmatprep.subr.bf16.mxu0 %v11781_v10  ;;  %7203 = vmatprep.subr.bf16.mxu1 %v11782_v34  ;;  %v1521_v61 = vmul.f32 %v9034_v25, %v9032_v35  ;;  %v11835_v35 = vld [vmem:[#allocation31_spill] sm:$0xff]  ;;  %v11836_v25 = vld [vmem:[#allocation32_spill] sm:$0xff] }
 0x3a2   :  { %1729 = vmatmul.mubr.f32.vlgmr.msra.gmra.mrb[10].mxu0 %v1521_v61  ;;  %1800 = vmatmul.mubr.f32.vlgmr.msra.gmra.mrb[10].mxu1 %v1521_v61 }
 0x3a3   :  { %7173 = vmatpush1.bf16.msra.mxu0 %v9529_v11  ;;  %7205 = vmatpush1.bf16.msra.mxu1 %v9532_v15 }
 0x3a4   :  { %7175 = vmatprep.subr.bf16.mxu0 %v9536_v19  ;;  %7207 = vmatprep.subr.bf16.mxu1 %v9538_v20 }
 0x3a5   :  { %1915 = vmatprep.mubr.f32.mxu0 %v11675_v36  ;;  %1986 = vmatprep.mubr.f32.mxu1 %v11675_v36 }
 0x3a7   :  { %7177 = vmatpush1.bf16.msra.mxu0 %v9541_v24  ;;  %7209 = vmatpush1.bf16.msra.mxu1 %v9545_v28  ;;  %v1841_v28 = vpop.permute.xlu1 %1840 }
 0x3a8   :  { %7179 = vmatprep.subr.bf16.mxu0 %v9547_v29  ;;  %7211 = vmatprep.subr.bf16.mxu1 %v9549_v33 }
 0x3ab   :  { %7181 = vmatpush1.bf16.msra.mxu0 %v9552_v37  ;;  %7213 = vmatpush1.bf16.msra.mxu1 %v9556_v41  ;;  %v11881_v37 = vld [vmem:[#allocation113_spill] sm:$0xff] }
 0x3ac   :  { %7183 = vmatprep.subr.bf16.mxu0 %v9558_v42  ;;  %7215 = vmatprep.subr.bf16.mxu1 %v9561_v46  ;;  %v11879_v42 = vld [vmem:[#allocation106_spill] sm:$0xff] }
 0x3af   :  { %7185 = vmatpush1.bf16.msra.mxu0 %v9564_v53  ;;  %7217 = vmatpush1.bf16.msra.mxu1 %v9568_v54  ;;  %v11837_v53 = vld [vmem:[#allocation33_spill] sm:$0xff]  ;;  %v11838_v54 = vld [vmem:[#allocation34_spill] sm:$0xff] }
 0x3b0   :  { %7187 = vmatprep.subr.bf16.mxu0 %v9570_v55  ;;  %7219 = vmatprep.subr.bf16.mxu1 %v9573_v59  ;;  %v11839_v55 = vld [vmem:[#allocation35_spill] sm:$0xff]  ;;  %v11840_v59 = vld [vmem:[#allocation36_spill] sm:$0xff] }
 0x3b3   :  { %7189 = vmatpush1.bf16.msra.mxu0 %v9576_v2  ;;  %7221 = vmatpush1.bf16.msra.mxu1 %v9580_v3  ;;  %v11841_v2 = vld [vmem:[#allocation37_spill] sm:$0xff]  ;;  %v11842_v3 = vld [vmem:[#allocation38_spill] sm:$0xff] }
 0x3b4   :  { %7191 = vmatprep.subr.bf16.mxu0 %v9582_v4  ;;  %7223 = vmatprep.subr.bf16.mxu1 %v11833_v51  ;;  %v11843_v4 = vld [vmem:[#allocation39_spill] sm:$0xff]  ;;  %v11844_v51 = vld [vmem:[#allocation40_spill] sm:$0xff] }
 0x3b7   :  { %7193 = vmatpush1.bf16.msra.mxu0 %v11834_v23  ;;  %7225 = vmatpush1.bf16.msra.mxu1 %v11835_v35  ;;  %v11845_v23 = vld [vmem:[#allocation41_spill] sm:$0xff] }
 0x3b8   :  { %7195 = vmatprep.subr.bf16.mxu0 %v11836_v25  ;;  %7227 = vmatprep.subr.bf16.mxu1 %v11837_v53  ;;  %v11846_v25 = vld [vmem:[#allocation42_spill] sm:$0xff]  ;;  %v11847_v53 = vld [vmem:[#allocation43_spill] sm:$0xff]  ;;  %v11878_v35 = vld [vmem:[#allocation105_spill] sm:$0xff] }
 0x3bb   :  { %7197 = vmatpush1.bf16.msra.mxu0 %v11838_v54  ;;  %7229 = vmatpush1.bf16.msra.mxu1 %v11839_v55  ;;  %v11848_v54 = vld [vmem:[#allocation44_spill] sm:$0xff]  ;;  %v11849_v55 = vld [vmem:[#allocation45_spill] sm:$0xff] }
 0x3bc   :  { %7199 = vmatprep.subr.bf16.mxu0 %v11840_v59  ;;  %7231 = vmatprep.subr.bf16.mxu1 %v11841_v2  ;;  %v11859_v2 = vld [vmem:[#allocation55_spill] sm:$0xff]  ;;  %v11860_v59 = vld [vmem:[#allocation56_spill] sm:$0xff] }
 0x3bf   :  { %7201 = vmatpush1.bf16.msra.mxu0 %v11842_v3  ;;  %7233 = vmatpush1.bf16.msra.mxu1 %v11843_v4  ;;  %v11850_v3 = vld [vmem:[#allocation46_spill] sm:$0xff]  ;;  %v11851_v4 = vld [vmem:[#allocation47_spill] sm:$0xff] }
 0x3c0   :  { %7235 = vmatprep.subr.bf16.mxu0 %v11844_v51  ;;  %7267 = vmatprep.subr.bf16.mxu1 %v11845_v23  ;;  %v11852_v51 = vld [vmem:[#allocation48_spill] sm:$0xff]  ;;  %v11853_v23 = vld [vmem:[#allocation49_spill] sm:$0xff] }
 0x3c2   :  { %1916 = vmatmul.mubr.f32.vlgmr.msra.gmra.mrb[12].mxu0 %v1521_v61  ;;  %1987 = vmatmul.mubr.f32.vlgmr.msra.gmra.mrb[12].mxu1 %v1521_v61  ;;  %v11854_v61 = vld [vmem:[#allocation50_spill] sm:$0xff] }
 0x3c3   :  { %7237 = vmatpush1.bf16.msra.mxu0 %v11846_v25  ;;  %7269 = vmatpush1.bf16.msra.mxu1 %v11847_v53  ;;  %v11855_v25 = vld [vmem:[#allocation51_spill] sm:$0xff]  ;;  %v11856_v53 = vld [vmem:[#allocation52_spill] sm:$0xff] }
 0x3c4   :  { %7239 = vmatprep.subr.bf16.mxu0 %v11848_v54  ;;  %7271 = vmatprep.subr.bf16.mxu1 %v11849_v55  ;;  %v11857_v54 = vld [vmem:[#allocation53_spill] sm:$0xff]  ;;  %v11858_v55 = vld [vmem:[#allocation54_spill] sm:$0xff] }
 0x3c5   :  { %2085 = vmatprep.mubr.f32.mxu0 %v11675_v36  ;;  %2156 = vmatprep.mubr.f32.mxu1 %v11675_v36 }
 0x3c7   :  { %7241 = vmatpush1.bf16.msra.mxu0 %v11850_v3  ;;  %7273 = vmatpush1.bf16.msra.mxu1 %v11851_v4  ;;  %v11861_v3 = vld [vmem:[#allocation57_spill] sm:$0xff]  ;;  %v11862_v4 = vld [vmem:[#allocation58_spill] sm:$0xff] }
 0x3c8   :  { %7243 = vmatprep.subr.bf16.mxu0 %v11852_v51  ;;  %7275 = vmatprep.subr.bf16.mxu1 %v11853_v23  ;;  %v11863_v51 = vld [vmem:[#allocation59_spill] sm:$0xff]  ;;  %v11864_v23 = vld [vmem:[#allocation60_spill] sm:$0xff] }
 0x3cb   :  { %7245 = vmatpush1.bf16.msra.mxu0 %v11854_v61  ;;  %7277 = vmatpush1.bf16.msra.mxu1 %v11855_v25  ;;  %v11865_v61 = vld [vmem:[#allocation61_spill] sm:$0xff]  ;;  %v11866_v25 = vld [vmem:[#allocation62_spill] sm:$0xff] }
 0x3cc   :  { %7247 = vmatprep.subr.bf16.mxu0 %v11856_v53  ;;  %7279 = vmatprep.subr.bf16.mxu1 %v11857_v54  ;;  %v11867_v53 = vld [vmem:[#allocation63_spill] sm:$0xff]  ;;  %v11868_v54 = vld [vmem:[#allocation64_spill] sm:$0xff] }
 0x3cf   :  { %7249 = vmatpush1.bf16.msra.mxu0 %v11858_v55  ;;  %7281 = vmatpush1.bf16.msra.mxu1 %v11859_v2  ;;  %v11869_v55 = vld [vmem:[#allocation65_spill] sm:$0xff]  ;;  %v11870_v2 = vld [vmem:[#allocation66_spill] sm:$0xff] }
 0x3d0   :  { %7251 = vmatprep.subr.bf16.mxu0 %v11860_v59  ;;  %7283 = vmatprep.subr.bf16.mxu1 %v11861_v3  ;;  %v11871_v59 = vld [vmem:[#allocation67_spill] sm:$0xff]  ;;  %v11872_v3 = vld [vmem:[#allocation68_spill] sm:$0xff] }
 0x3d3   :  { %7253 = vmatpush1.bf16.msra.mxu0 %v11862_v4  ;;  %7285 = vmatpush1.bf16.msra.mxu1 %v11863_v51  ;;  %v11873_v4 = vld [vmem:[#allocation69_spill] sm:$0xff]  ;;  %v11874_v51 = vld [vmem:[#allocation70_spill] sm:$0xff] }
 0x3d4   :  { %7255 = vmatprep.subr.bf16.mxu0 %v11864_v23  ;;  %7287 = vmatprep.subr.bf16.mxu1 %v11865_v61  ;;  %v11875_v23 = vld [vmem:[#allocation71_spill] sm:$0xff]  ;;  %v11876_v61 = vld [vmem:[#allocation72_spill] sm:$0xff] }
 0x3d7   :  { %7257 = vmatpush1.bf16.msra.mxu0 %v11866_v25  ;;  %7289 = vmatpush1.bf16.msra.mxu1 %v11867_v53  ;;  %v11877_v25 = vld [vmem:[#allocation73_spill] sm:$0xff] }
 0x3d8   :  { %7259 = vmatprep.subr.bf16.mxu0 %v11868_v54  ;;  %7291 = vmatprep.subr.bf16.mxu1 %v11869_v55 }
 0x3db   :  { %7261 = vmatpush1.bf16.msra.mxu0 %v11870_v2  ;;  %7293 = vmatpush1.bf16.msra.mxu1 %v11871_v59 }
 0x3dc   :  { %7263 = vmatprep.subr.bf16.mxu0 %v11872_v3  ;;  %7295 = vmatprep.subr.bf16.mxu1 %v11873_v4  ;;  %v11880_v4 = vld [vmem:[#allocation109_spill] sm:$0xff] }
 0x3df   :  { %7265 = vmatpush1.bf16.msra.mxu0 %v11874_v51  ;;  %7297 = vmatpush1.bf16.msra.mxu1 %v11875_v23 }
 0x3e0   :  { %7299 = vmatprep.subr.bf16.mxu0 %v11876_v61  ;;  %7331 = vmatprep.subr.bf16.mxu1 %v11877_v25 }
 0x475   :  { %v1730_v53 = vpop.f32.mrb[10].mxu0  ;;  %v1801_v54 = vpop.f32.mrb[10].mxu1 }
 0x476   :  { %v1806_v55 = vadd.f32 %v1730_v53, %v11878_v35  ;;  %v1732_v46 = vpop.f32.mrb[11].mxu0  ;;  %v1803_v2 = vpop.f32.mrb[11].mxu1  ;;  %v1808_v51 = vadd.f32 %v1801_v54, %v11880_v4 }
 0x477   :  { %v1807_v59 = vadd.f32 %v1732_v46, %v11879_v42  ;;  %v1809_v23 = vadd.f32 %v1803_v2, %v11881_v37 }
 0x478   :  { %v6531_v41 = vmul.f32 -1.442695, %v1806_v55  ;;  %v6533_v33 = vmul.f32 -1.442695, %v1808_v51  ;;  %v11882_v55 = vld [vmem:[#allocation107_spill] sm:$0xff] }
 0x479   :  { %v6532_v3 = vmul.f32 -1.442695, %v1807_v59  ;;  %v1843_v59 = vmul.f32 %v1841_v28, %v11882_v55 }
 0x47a   :  { %9035 = vpow2.f32 %v6531_v41 }
 0x47b   :  { %9037 = vpow2.f32 %v6532_v3  ;;  %v11883_v3 = vld [vmem:[#allocation108_spill] sm:$0xff] }
 0x47c   :  { %9039 = vtanh.f32 %v1809_v23  ;;  %v1844_v42 = vmul.f32 %v1841_v28, %v11883_v3  ;;  %v1847_v23 = vadd.f32 %v1843_v59, %v11747_v16 }
 0x47d   :  { %9041 = vpow2.f32 %v6533_v33 }
 0x484   :  { %v9036_v61 = vpop.eup %9035 }
 0x485   :  { %v1819_v29 = vadd.f32 1.0, %v9036_v61  ;;  %v9038_v25 = vpop.eup %9037 }
 0x486   :  { %v1820_v53 = vadd.f32 1.0, %v9038_v25  ;;  %v9040_v35 = vpop.eup %9039 }
 0x487   :  { %9043 = vrcp.f32 %v1819_v29  ;;  %v9042_v46 = vpop.eup %9041  ;;  %v1848_v29 = vadd.f32 %v1844_v42, %v11748_v0 }
 0x488   :  { %9045 = vrcp.f32 %v1820_v53  ;;  %v1821_v2 = vadd.f32 1.0, %v9042_v46  ;;  %v1845_v46 = vmul.f32 %v1841_v28, %v11750_v14 }
 0x48a   :  { %9047 = vrcp.f32 %v1821_v2 }
 0x491   :  { %v9044_v41 = vpop.eup %9043 }
 0x492   :  { %v1830_v54 = vmul.f32 %v9044_v41, %v9040_v35  ;;  %v9046_v4 = vpop.eup %9045 }
 0x493   :  { %v1829_v51 = vmul.f32 %v9046_v4, %v10116_v21  ;;  %v1846_v4 = vmul.f32 %v1841_v28, %v9880_v52  ;;  %v1849_v21 = vadd.f32 %v1845_v46, %v9876_v31 }
 0x495   :  { %v1917_v61 = vpop.f32.mrb[12].mxu0  ;;  %v1988_v33 = vpop.f32.mrb[12].mxu1  ;;  %v10238_v25 = vadd.f32 %v1830_v54, %v1829_v51  ;;  %v1850_v59 = vadd.f32 %v1846_v4, %v9884_v27  ;;  %v11884_v4 = vld [vmem:[#allocation89_spill] sm:$0xff] }
 0x496   :  { %v1993_v53 = vadd.f32 %v1917_v61, %v1847_v23  ;;  %v1919_v37 = vpop.f32.mrb[13].mxu0  ;;  %v1990_v24 = vpop.f32.mrb[13].mxu1  ;;  %v1995_v42 = vadd.f32 %v1988_v33, %v1849_v21 }
 0x497   :  { %v1994_v55 = vadd.f32 %v1919_v37, %v1848_v29  ;;  %9049 = vtanh.f32 %v10238_v25  ;;  %v9048_v54 = vpop.eup %9047  ;;  %v1996_v51 = vadd.f32 %v1990_v24, %v1850_v59 }
 0x498   :  { %v6535_v35 = vmul.f32 -1.442695, %v1993_v53  ;;  %v6537_v2 = vmul.f32 -1.442695, %v1995_v42 }
 0x499   :  { %v6536_v41 = vmul.f32 -1.442695, %v1994_v55 }
 0x49a   :  { %9051 = vpow2.f32 %v6535_v35 }
 0x49b   :  { %9053 = vpow2.f32 %v6536_v41 }
 0x49c   :  { %9055 = vtanh.f32 %v1996_v51  ;;  %v11885_v51 = vld [vmem:[#allocation14_spill] sm:$0xff] }
 0x49d   :  { %9057 = vpow2.f32 %v6537_v2  ;;  %v11887_v2 = vld [vmem:[#allocation16_spill] sm:$0xff] }
 0x4a1   :  { %v9050_v23 = vpop.eup %9049 }
 0x4a2   :  { %v1833_v37 = vmul.f32 %v9050_v23, %v9048_v54  ;;  %v11886_v23 = vld [vmem:[#allocation15_spill] sm:$0xff] }
 0x4a4   :  { %v9052_v61 = vpop.eup %9051  ;;  %1835 = vst [vmem:[#allocation2 + $0x4] sm:$0x3] %v1833_v37  ;;  %2086 = vmatmul.mubr.f32.vlgmr.msra.gmra.mrb[14].mxu0 %v1833_v37  ;;  %2157 = vmatmul.mubr.f32.vlgmr.msra.gmra.mrb[14].mxu1 %v1833_v37  ;;  %v11888_v37 = vld [vmem:[#allocation17_spill] sm:$0xff] }
 0x4a5   :  { %v2006_v29 = vadd.f32 1.0, %v9052_v61  ;;  %v9054_v55 = vpop.eup %9053  ;;  %7301 = vmatpush1.bf16.msra.mxu0 %v11751_v44  ;;  %7333 = vmatpush1.bf16.msra.mxu1 %v11752_v26  ;;  %v11889_v61 = vld [vmem:[#allocation18_spill] sm:$0xff] }
 0x4a6   :  { %v2007_v28 = vadd.f32 1.0, %v9054_v55  ;;  %7303 = vmatprep.subr.bf16.mxu0 %v11753_v38  ;;  %7335 = vmatprep.subr.bf16.mxu1 %v11754_v47  ;;  %v9056_v24 = vpop.eup %9055  ;;  %v11891_v55 = vld [vmem:[#allocation20_spill] sm:$0xff] }
 0x4a7   :  { %9059 = vrcp.f32 %v2006_v29  ;;  %2227 = vmatprep.mubr.f32.mxu0 %v11675_v36  ;;  %2298 = vmatprep.mubr.f32.mxu1 %v11675_v36  ;;  %v9058_v33 = vpop.eup %9057  ;;  %v11890_v29 = vld [vmem:[#allocation19_spill] sm:$0xff] }
 0x4a8   :  { %9061 = vrcp.f32 %v2007_v28  ;;  %v2008_v41 = vadd.f32 1.0, %v9058_v33  ;;  %v11892_v28 = vld [vmem:[#allocation21_spill] sm:$0xff]  ;;  %v11894_v33 = vld [vmem:[#allocation23_spill] sm:$0xff] }
 0x4a9   :  { %7305 = vmatpush1.bf16.msra.mxu0 %v11755_v63  ;;  %7337 = vmatpush1.bf16.msra.mxu1 %v11817_v58 }
 0x4aa   :  { %7307 = vmatprep.subr.bf16.mxu0 %v11818_v50  ;;  %7339 = vmatprep.subr.bf16.mxu1 %v11819_v60  ;;  %9063 = vrcp.f32 %v2008_v41  ;;  %v11898_v41 = vld [vmem:[#allocation27_spill] sm:$0xff] }
 0x4ad   :  { %7309 = vmatpush1.bf16.msra.mxu0 %v11820_v5  ;;  %7341 = vmatpush1.bf16.msra.mxu1 %v11821_v17 }
 0x4ae   :  { %7311 = vmatprep.subr.bf16.mxu0 %v11822_v48  ;;  %7343 = vmatprep.subr.bf16.mxu1 %v11823_v32 }
 0x4b1   :  { %v9060_v53 = vpop.eup %9059  ;;  %7313 = vmatpush1.bf16.msra.mxu0 %v11763_v12  ;;  %7345 = vmatpush1.bf16.msra.mxu1 %v11764_v7 }
 0x4b2   :  { %v2017_v35 = vmul.f32 %v9060_v53, %v9056_v24  ;;  %v9062_v46 = vpop.eup %9061  ;;  %7315 = vmatprep.subr.bf16.mxu0 %v11824_v6  ;;  %7347 = vmatprep.subr.bf16.mxu1 %v11884_v4  ;;  %v11893_v24 = vld [vmem:[#allocation22_spill] sm:$0xff]  ;;  %v11895_v53 = vld [vmem:[#allocation24_spill] sm:$0xff] }
 0x4b3   :  { %v2016_v21 = vmul.f32 %v9062_v46, %v10142_v39  ;;  %v11897_v46 = vld [vmem:[#allocation26_spill] sm:$0xff] }
 0x4b4   :  { %v9064_v39 = vpop.eup %9063 }
 0x4b5   :  { %v10264_v42 = vadd.f32 %v2017_v35, %v2016_v21  ;;  %7317 = vmatpush1.bf16.msra.mxu0 %v11826_v18  ;;  %7349 = vmatpush1.bf16.msra.mxu1 %v11827_v9  ;;  %v11896_v35 = vld [vmem:[#allocation25_spill] sm:$0xff]  ;;  %v11899_v21 = vld [vmem:[#allocation28_spill] sm:$0xff] }
 0x4b6   :  { %7319 = vmatprep.subr.bf16.mxu0 %v11828_v22  ;;  %7351 = vmatprep.subr.bf16.mxu1 %v11829_v43 }
 0x4b7   :  { %9065 = vtanh.f32 %v10264_v42 }
 0x4b9   :  { %7321 = vmatpush1.bf16.msra.mxu0 %v11830_v40  ;;  %7353 = vmatpush1.bf16.msra.mxu1 %v11831_v45 }
 0x4ba   :  { %7323 = vmatprep.subr.bf16.mxu0 %v11832_v30  ;;  %7355 = vmatprep.subr.bf16.mxu1 %v11774_v62 }
 0x4bd   :  { %7325 = vmatpush1.bf16.msra.mxu0 %v11775_v8  ;;  %7357 = vmatpush1.bf16.msra.mxu1 %v11776_v49 }
 0x4be   :  { %7327 = vmatprep.subr.bf16.mxu0 %v11777_v56  ;;  %7359 = vmatprep.subr.bf16.mxu1 %v11778_v1 }
 0x4c1   :  { %v9066_v59 = vpop.eup %9065  ;;  %7329 = vmatpush1.bf16.msra.mxu0 %v11779_v57  ;;  %7361 = vmatpush1.bf16.msra.mxu1 %v11780_v13 }
 0x4c2   :  { %v2020_v54 = vmul.f32 %v9066_v59, %v9064_v39  ;;  %7363 = vmatprep.subr.bf16.mxu0 %v11781_v10  ;;  %7395 = vmatprep.subr.bf16.mxu1 %v11782_v34  ;;  %v11900_v39 = vld [vmem:[#allocation29_spill] sm:$0xff]  ;;  %v11901_v59 = vld [vmem:[#allocation30_spill] sm:$0xff] }
 0x4c4   :  { %2228 = vmatmul.mubr.f32.vlgmr.msra.gmra.mrb[14].mxu0 %v2020_v54  ;;  %2299 = vmatmul.mubr.f32.vlgmr.msra.gmra.mrb[14].mxu1 %v2020_v54 }
 0x4c5   :  { %7365 = vmatpush1.bf16.msra.mxu0 %v9529_v11  ;;  %7397 = vmatpush1.bf16.msra.mxu1 %v9532_v15 }
 0x4c6   :  { %7367 = vmatprep.subr.bf16.mxu0 %v9536_v19  ;;  %7399 = vmatprep.subr.bf16.mxu1 %v9538_v20  ;;  %v2340_v20 = vpop.permute.xlu0 %2339 }
 0x4c7   :  { %2414 = vmatprep.mubr.f32.mxu0 %v11675_v36  ;;  %2485 = vmatprep.mubr.f32.mxu1 %v11675_v36 }
 0x4c9   :  { %7369 = vmatpush1.bf16.msra.mxu0 %v11885_v51  ;;  %7401 = vmatpush1.bf16.msra.mxu1 %v11886_v23 }
 0x4ca   :  { %7371 = vmatprep.subr.bf16.mxu0 %v11887_v2  ;;  %7403 = vmatprep.subr.bf16.mxu1 %v11888_v37  ;;  %v11948_v2 = vld [vmem:[#allocation113_spill] sm:$0xff] }
 0x4cd   :  { %7373 = vmatpush1.bf16.msra.mxu0 %v11889_v61  ;;  %7405 = vmatpush1.bf16.msra.mxu1 %v11890_v29  ;;  %v11946_v61 = vld [vmem:[#allocation106_spill] sm:$0xff] }
 0x4ce   :  { %7375 = vmatprep.subr.bf16.mxu0 %v11891_v55  ;;  %7407 = vmatprep.subr.bf16.mxu1 %v11892_v28  ;;  %v11902_v55 = vld [vmem:[#allocation31_spill] sm:$0xff]  ;;  %v11903_v28 = vld [vmem:[#allocation32_spill] sm:$0xff] }
 0x4d1   :  { %7377 = vmatpush1.bf16.msra.mxu0 %v11893_v24  ;;  %7409 = vmatpush1.bf16.msra.mxu1 %v11894_v33  ;;  %v11904_v24 = vld [vmem:[#allocation33_spill] sm:$0xff]  ;;  %v11905_v33 = vld [vmem:[#allocation34_spill] sm:$0xff] }
 0x4d2   :  { %7379 = vmatprep.subr.bf16.mxu0 %v11895_v53  ;;  %7411 = vmatprep.subr.bf16.mxu1 %v11896_v35  ;;  %v11906_v53 = vld [vmem:[#allocation35_spill] sm:$0xff]  ;;  %v11907_v35 = vld [vmem:[#allocation36_spill] sm:$0xff] }
 0x4d5   :  { %7381 = vmatpush1.bf16.msra.mxu0 %v11897_v46  ;;  %7413 = vmatpush1.bf16.msra.mxu1 %v11898_v41  ;;  %v11908_v46 = vld [vmem:[#allocation37_spill] sm:$0xff]  ;;  %v11909_v41 = vld [vmem:[#allocation38_spill] sm:$0xff] }
 0x4d6   :  { %7383 = vmatprep.subr.bf16.mxu0 %v11899_v21  ;;  %7415 = vmatprep.subr.bf16.mxu1 %v11900_v39  ;;  %v11910_v21 = vld [vmem:[#allocation39_spill] sm:$0xff]  ;;  %v11911_v39 = vld [vmem:[#allocation40_spill] sm:$0xff] }
 0x4d9   :  { %7385 = vmatpush1.bf16.msra.mxu0 %v11901_v59  ;;  %7417 = vmatpush1.bf16.msra.mxu1 %v11902_v55  ;;  %v11912_v59 = vld [vmem:[#allocation41_spill] sm:$0xff] }
 0x4da   :  { %7387 = vmatprep.subr.bf16.mxu0 %v11903_v28  ;;  %7419 = vmatprep.subr.bf16.mxu1 %v11904_v24  ;;  %v11913_v28 = vld [vmem:[#allocation42_spill] sm:$0xff]  ;;  %v11914_v24 = vld [vmem:[#allocation43_spill] sm:$0xff]  ;;  %v11945_v55 = vld [vmem:[#allocation105_spill] sm:$0xff] }
 0x4dd   :  { %7389 = vmatpush1.bf16.msra.mxu0 %v11905_v33  ;;  %7421 = vmatpush1.bf16.msra.mxu1 %v11906_v53  ;;  %v11915_v33 = vld [vmem:[#allocation44_spill] sm:$0xff]  ;;  %v11916_v53 = vld [vmem:[#allocation45_spill] sm:$0xff] }
 0x4de   :  { %7391 = vmatprep.subr.bf16.mxu0 %v11907_v35  ;;  %7423 = vmatprep.subr.bf16.mxu1 %v11908_v46  ;;  %v11926_v46 = vld [vmem:[#allocation55_spill] sm:$0xff]  ;;  %v11927_v35 = vld [vmem:[#allocation56_spill] sm:$0xff] }
 0x4e1   :  { %7393 = vmatpush1.bf16.msra.mxu0 %v11909_v41  ;;  %7425 = vmatpush1.bf16.msra.mxu1 %v11910_v21  ;;  %v11917_v41 = vld [vmem:[#allocation46_spill] sm:$0xff]  ;;  %v11918_v21 = vld [vmem:[#allocation47_spill] sm:$0xff] }
 0x4e2   :  { %7427 = vmatprep.subr.bf16.mxu0 %v11911_v39  ;;  %7459 = vmatprep.subr.bf16.mxu1 %v11912_v59  ;;  %v11919_v39 = vld [vmem:[#allocation48_spill] sm:$0xff]  ;;  %v11920_v59 = vld [vmem:[#allocation49_spill] sm:$0xff] }
 0x4e4   :  { %2415 = vmatmul.mubr.f32.vlgmr.msra.gmra.mrb[16].mxu0 %v2020_v54  ;;  %2486 = vmatmul.mubr.f32.vlgmr.msra.gmra.mrb[16].mxu1 %v2020_v54  ;;  %v11921_v54 = vld [vmem:[#allocation50_spill] sm:$0xff] }
 0x4e5   :  { %7429 = vmatpush1.bf16.msra.mxu0 %v11913_v28  ;;  %7461 = vmatpush1.bf16.msra.mxu1 %v11914_v24  ;;  %v11922_v28 = vld [vmem:[#allocation51_spill] sm:$0xff]  ;;  %v11923_v24 = vld [vmem:[#allocation52_spill] sm:$0xff] }
 0x4e6   :  { %7431 = vmatprep.subr.bf16.mxu0 %v11915_v33  ;;  %7463 = vmatprep.subr.bf16.mxu1 %v11916_v53  ;;  %v11924_v33 = vld [vmem:[#allocation53_spill] sm:$0xff]  ;;  %v11925_v53 = vld [vmem:[#allocation54_spill] sm:$0xff] }
 0x4e7   :  { %2584 = vmatprep.mubr.f32.mxu0 %v11675_v36  ;;  %2655 = vmatprep.mubr.f32.mxu1 %v11675_v36 }
 0x4e9   :  { %7433 = vmatpush1.bf16.msra.mxu0 %v11917_v41  ;;  %7465 = vmatpush1.bf16.msra.mxu1 %v11918_v21  ;;  %v11928_v41 = vld [vmem:[#allocation57_spill] sm:$0xff]  ;;  %v11929_v21 = vld [vmem:[#allocation58_spill] sm:$0xff] }
 0x4ea   :  { %7435 = vmatprep.subr.bf16.mxu0 %v11919_v39  ;;  %7467 = vmatprep.subr.bf16.mxu1 %v11920_v59  ;;  %v11930_v39 = vld [vmem:[#allocation59_spill] sm:$0xff]  ;;  %v11931_v59 = vld [vmem:[#allocation60_spill] sm:$0xff] }
 0x4ed   :  { %7437 = vmatpush1.bf16.msra.mxu0 %v11921_v54  ;;  %7469 = vmatpush1.bf16.msra.mxu1 %v11922_v28  ;;  %v11932_v54 = vld [vmem:[#allocation61_spill] sm:$0xff]  ;;  %v11933_v28 = vld [vmem:[#allocation62_spill] sm:$0xff] }
 0x4ee   :  { %7439 = vmatprep.subr.bf16.mxu0 %v11923_v24  ;;  %7471 = vmatprep.subr.bf16.mxu1 %v11924_v33  ;;  %v11934_v24 = vld [vmem:[#allocation63_spill] sm:$0xff]  ;;  %v11935_v33 = vld [vmem:[#allocation64_spill] sm:$0xff] }
 0x4f1   :  { %7441 = vmatpush1.bf16.msra.mxu0 %v11925_v53  ;;  %7473 = vmatpush1.bf16.msra.mxu1 %v11926_v46  ;;  %v11936_v53 = vld [vmem:[#allocation65_spill] sm:$0xff]  ;;  %v11937_v46 = vld [vmem:[#allocation66_spill] sm:$0xff] }
 0x4f2   :  { %7443 = vmatprep.subr.bf16.mxu0 %v11927_v35  ;;  %7475 = vmatprep.subr.bf16.mxu1 %v11928_v41  ;;  %v11938_v35 = vld [vmem:[#allocation67_spill] sm:$0xff]  ;;  %v11939_v41 = vld [vmem:[#allocation68_spill] sm:$0xff] }
 0x4f5   :  { %7445 = vmatpush1.bf16.msra.mxu0 %v11929_v21  ;;  %7477 = vmatpush1.bf16.msra.mxu1 %v11930_v39  ;;  %v11940_v21 = vld [vmem:[#allocation69_spill] sm:$0xff]  ;;  %v11941_v39 = vld [vmem:[#allocation70_spill] sm:$0xff] }
 0x4f6   :  { %7447 = vmatprep.subr.bf16.mxu0 %v11931_v59  ;;  %7479 = vmatprep.subr.bf16.mxu1 %v11932_v54  ;;  %v11942_v59 = vld [vmem:[#allocation71_spill] sm:$0xff]  ;;  %v11943_v54 = vld [vmem:[#allocation72_spill] sm:$0xff] }
 0x4f9   :  { %7449 = vmatpush1.bf16.msra.mxu0 %v11933_v28  ;;  %7481 = vmatpush1.bf16.msra.mxu1 %v11934_v24  ;;  %v11944_v28 = vld [vmem:[#allocation73_spill] sm:$0xff] }
 0x4fa   :  { %7451 = vmatprep.subr.bf16.mxu0 %v11935_v33  ;;  %7483 = vmatprep.subr.bf16.mxu1 %v11936_v53 }
 0x4fd   :  { %7453 = vmatpush1.bf16.msra.mxu0 %v11937_v46  ;;  %7485 = vmatpush1.bf16.msra.mxu1 %v11938_v35 }
 0x4fe   :  { %7455 = vmatprep.subr.bf16.mxu0 %v11939_v41  ;;  %7487 = vmatprep.subr.bf16.mxu1 %v11940_v21  ;;  %v11947_v21 = vld [vmem:[#allocation109_spill] sm:$0xff] }
 0x501   :  { %7457 = vmatpush1.bf16.msra.mxu0 %v11941_v39  ;;  %7489 = vmatpush1.bf16.msra.mxu1 %v11942_v59 }
 0x502   :  { %7491 = vmatprep.subr.bf16.mxu0 %v11943_v54  ;;  %7523 = vmatprep.subr.bf16.mxu1 %v11944_v28 }
 0x597   :  { %v2229_v24 = vpop.f32.mrb[14].mxu0  ;;  %v2300_v33 = vpop.f32.mrb[14].mxu1 }
 0x598   :  { %v2305_v53 = vadd.f32 %v2229_v24, %v11945_v55  ;;  %v2231_v29 = vpop.f32.mrb[15].mxu0  ;;  %v2302_v46 = vpop.f32.mrb[15].mxu1  ;;  %v2307_v39 = vadd.f32 %v2300_v33, %v11947_v21 }
 0x599   :  { %v2306_v35 = vadd.f32 %v2231_v29, %v11946_v61  ;;  %v2308_v59 = vadd.f32 %v2302_v46, %v11948_v2 }
 0x59a   :  { %v6538_v37 = vmul.f32 -1.442695, %v2305_v53  ;;  %v6540_v23 = vmul.f32 -1.442695, %v2307_v39  ;;  %v11949_v53 = vld [vmem:[#allocation107_spill] sm:$0xff] }
 0x59b   :  { %v6539_v41 = vmul.f32 -1.442695, %v2306_v35  ;;  %v2342_v35 = vmul.f32 %v2340_v20, %v11949_v53 }
 0x59c   :  { %9067 = vpow2.f32 %v6538_v37 }
 0x59d   :  { %9069 = vpow2.f32 %v6539_v41  ;;  %v2343_v41 = vmul.f32 %v2340_v20, %v11883_v3 }
 0x59e   :  { %9071 = vtanh.f32 %v2308_v59  ;;  %v2346_v59 = vadd.f32 %v2342_v35, %v11747_v16 }
 0x59f   :  { %9073 = vpow2.f32 %v6540_v23 }
 0x5a6   :  { %v9068_v54 = vpop.eup %9067 }
 0x5a7   :  { %v2318_v51 = vadd.f32 1.0, %v9068_v54  ;;  %v9070_v28 = vpop.eup %9069 }
 0x5a8   :  { %v2319_v24 = vadd.f32 1.0, %v9070_v28  ;;  %v9072_v55 = vpop.eup %9071 }
 0x5a9   :  { %9075 = vrcp.f32 %v2318_v51  ;;  %v9074_v29 = vpop.eup %9073  ;;  %v2347_v51 = vadd.f32 %v2343_v41, %v11748_v0 }
 0x5aa   :  { %9077 = vrcp.f32 %v2319_v24  ;;  %v2320_v46 = vadd.f32 1.0, %v9074_v29  ;;  %v2344_v29 = vmul.f32 %v2340_v20, %v11750_v14 }
 0x5ac   :  { %9079 = vrcp.f32 %v2320_v46 }
 0x5b3   :  { %v9076_v37 = vpop.eup %9075 }
 0x5b4   :  { %v2329_v33 = vmul.f32 %v9076_v37, %v9072_v55  ;;  %v9078_v21 = vpop.eup %9077 }
 0x5b5   :  { %v2328_v39 = vmul.f32 %v9078_v21, %v10238_v25  ;;  %v2345_v25 = vmul.f32 %v2340_v20, %v9880_v52  ;;  %v2348_v21 = vadd.f32 %v2344_v29, %v9876_v31 }
 0x5b7   :  { %v2416_v54 = vpop.f32.mrb[16].mxu0  ;;  %v2487_v23 = vpop.f32.mrb[16].mxu1  ;;  %v10360_v28 = vadd.f32 %v2329_v33, %v2328_v39  ;;  %v2349_v41 = vadd.f32 %v2345_v25, %v9884_v27 }
 0x5b8   :  { %v2492_v24 = vadd.f32 %v2416_v54, %v2346_v59  ;;  %v2418_v2 = vpop.f32.mrb[17].mxu0  ;;  %v2489_v61 = vpop.f32.mrb[17].mxu1  ;;  %v2494_v35 = vadd.f32 %v2487_v23, %v2348_v21 }
 0x5b9   :  { %v2493_v53 = vadd.f32 %v2418_v2, %v2347_v51  ;;  %9081 = vtanh.f32 %v10360_v28  ;;  %v9080_v33 = vpop.eup %9079  ;;  %v2495_v39 = vadd.f32 %v2489_v61, %v2349_v41 }
 0x5ba   :  { %v6542_v55 = vmul.f32 -1.442695, %v2492_v24  ;;  %v6544_v46 = vmul.f32 -1.442695, %v2494_v35 }
 0x5bb   :  { %v6543_v37 = vmul.f32 -1.442695, %v2493_v53 }
 0x5bc   :  { %9083 = vpow2.f32 %v6542_v55 }
 0x5bd   :  { %9085 = vpow2.f32 %v6543_v37 }
 0x5be   :  { %9087 = vtanh.f32 %v2495_v39  ;;  %v11951_v39 = vld [vmem:[#allocation14_spill] sm:$0xff] }
 0x5bf   :  { %9089 = vpow2.f32 %v6544_v46  ;;  %v11953_v46 = vld [vmem:[#allocation16_spill] sm:$0xff] }
 0x5c3   :  { %v9082_v59 = vpop.eup %9081 }
 0x5c4   :  { %v2332_v2 = vmul.f32 %v9082_v59, %v9080_v33  ;;  %v11950_v33 = vld [vmem:[#allocation13_spill] sm:$0xff]  ;;  %v11952_v59 = vld [vmem:[#allocation15_spill] sm:$0xff] }
 0x5c6   :  { %v9084_v54 = vpop.eup %9083  ;;  %2334 = vst [vmem:[#allocation2 + $0x6] sm:$0x3] %v2332_v2  ;;  %2585 = vmatmul.mubr.f32.vlgmr.msra.gmra.mrb[18].mxu0 %v2332_v2  ;;  %2656 = vmatmul.mubr.f32.vlgmr.msra.gmra.mrb[18].mxu1 %v2332_v2  ;;  %v11954_v2 = vld [vmem:[#allocation17_spill] sm:$0xff] }
 0x5c7   :  { %v2505_v51 = vadd.f32 1.0, %v9084_v54  ;;  %v9086_v53 = vpop.eup %9085  ;;  %7493 = vmatpush1.bf16.msra.mxu0 %v11751_v44  ;;  %7525 = vmatpush1.bf16.msra.mxu1 %v11752_v26  ;;  %v11955_v54 = vld [vmem:[#allocation18_spill] sm:$0xff] }
 0x5c8   :  { %v2506_v20 = vadd.f32 1.0, %v9086_v53  ;;  %7495 = vmatprep.subr.bf16.mxu0 %v11753_v38  ;;  %7527 = vmatprep.subr.bf16.mxu1 %v11754_v47  ;;  %v9088_v61 = vpop.eup %9087  ;;  %v11957_v53 = vld [vmem:[#allocation20_spill] sm:$0xff] }
 0x5c9   :  { %9091 = vrcp.f32 %v2505_v51  ;;  %2726 = vmatprep.mubr.f32.mxu0 %v11675_v36  ;;  %2797 = vmatprep.mubr.f32.mxu1 %v11675_v36  ;;  %v9090_v23 = vpop.eup %9089  ;;  %v11956_v51 = vld [vmem:[#allocation19_spill] sm:$0xff] }
 0x5ca   :  { %9093 = vrcp.f32 %v2506_v20  ;;  %v2507_v37 = vadd.f32 1.0, %v9090_v23  ;;  %v11958_v20 = vld [vmem:[#allocation21_spill] sm:$0xff]  ;;  %v11960_v23 = vld [vmem:[#allocation23_spill] sm:$0xff] }
 0x5cb   :  { %7497 = vmatpush1.bf16.msra.mxu0 %v11755_v63  ;;  %7529 = vmatpush1.bf16.msra.mxu1 %v11817_v58 }
 0x5cc   :  { %7499 = vmatprep.subr.bf16.mxu0 %v11818_v50  ;;  %7531 = vmatprep.subr.bf16.mxu1 %v11819_v60  ;;  %9095 = vrcp.f32 %v2507_v37  ;;  %v11964_v37 = vld [vmem:[#allocation27_spill] sm:$0xff] }
 0x5cf   :  { %7501 = vmatpush1.bf16.msra.mxu0 %v11820_v5  ;;  %7533 = vmatpush1.bf16.msra.mxu1 %v11821_v17 }
 0x5d0   :  { %7503 = vmatprep.subr.bf16.mxu0 %v11822_v48  ;;  %7535 = vmatprep.subr.bf16.mxu1 %v11823_v32 }
 0x5d3   :  { %v9092_v24 = vpop.eup %9091  ;;  %7505 = vmatpush1.bf16.msra.mxu0 %v11763_v12  ;;  %7537 = vmatpush1.bf16.msra.mxu1 %v11764_v7 }
 0x5d4   :  { %v2516_v55 = vmul.f32 %v9092_v24, %v9088_v61  ;;  %v9094_v29 = vpop.eup %9093  ;;  %7507 = vmatprep.subr.bf16.mxu0 %v11824_v6  ;;  %7539 = vmatprep.subr.bf16.mxu1 %v11884_v4  ;;  %v11959_v61 = vld [vmem:[#allocation22_spill] sm:$0xff]  ;;  %v11961_v24 = vld [vmem:[#allocation24_spill] sm:$0xff] }
 0x5d5   :  { %v2515_v25 = vmul.f32 %v9094_v29, %v10264_v42  ;;  %v11963_v29 = vld [vmem:[#allocation26_spill] sm:$0xff] }
 0x5d6   :  { %v9096_v42 = vpop.eup %9095 }
 0x5d7   :  { %v10386_v21 = vadd.f32 %v2516_v55, %v2515_v25  ;;  %7509 = vmatpush1.bf16.msra.mxu0 %v11826_v18  ;;  %7541 = vmatpush1.bf16.msra.mxu1 %v11827_v9  ;;  %v11962_v55 = vld [vmem:[#allocation25_spill] sm:$0xff]  ;;  %v11965_v25 = vld [vmem:[#allocation28_spill] sm:$0xff] }
 0x5d8   :  { %7511 = vmatprep.subr.bf16.mxu0 %v11828_v22  ;;  %7543 = vmatprep.subr.bf16.mxu1 %v11829_v43 }
 0x5d9   :  { %9097 = vtanh.f32 %v10386_v21 }
 0x5db   :  { %7513 = vmatpush1.bf16.msra.mxu0 %v11830_v40  ;;  %7545 = vmatpush1.bf16.msra.mxu1 %v11831_v45 }
 0x5dc   :  { %7515 = vmatprep.subr.bf16.mxu0 %v11832_v30  ;;  %7547 = vmatprep.subr.bf16.mxu1 %v11774_v62 }
 0x5df   :  { %7517 = vmatpush1.bf16.msra.mxu0 %v11775_v8  ;;  %7549 = vmatpush1.bf16.msra.mxu1 %v11776_v49 }
 0x5e0   :  { %7519 = vmatprep.subr.bf16.mxu0 %v11777_v56  ;;  %7551 = vmatprep.subr.bf16.mxu1 %v11778_v1 }
 0x5e3   :  { %v9098_v35 = vpop.eup %9097  ;;  %7521 = vmatpush1.bf16.msra.mxu0 %v11779_v57  ;;  %7553 = vmatpush1.bf16.msra.mxu1 %v11780_v13 }
 0x5e4   :  { %7555 = vmatprep.subr.bf16.mxu0 %v11781_v10  ;;  %7587 = vmatprep.subr.bf16.mxu1 %v11782_v34  ;;  %v2519_v41 = vmul.f32 %v9098_v35, %v9096_v42  ;;  %v11966_v42 = vld [vmem:[#allocation29_spill] sm:$0xff]  ;;  %v11967_v35 = vld [vmem:[#allocation30_spill] sm:$0xff] }
 0x5e6   :  { %2727 = vmatmul.mubr.f32.vlgmr.msra.gmra.mrb[18].mxu0 %v2519_v41  ;;  %2798 = vmatmul.mubr.f32.vlgmr.msra.gmra.mrb[18].mxu1 %v2519_v41 }
 0x5e7   :  { %7557 = vmatpush1.bf16.msra.mxu0 %v9529_v11  ;;  %7589 = vmatpush1.bf16.msra.mxu1 %v9532_v15 }
 0x5e8   :  { %7559 = vmatprep.subr.bf16.mxu0 %v9536_v19  ;;  %7591 = vmatprep.subr.bf16.mxu1 %v11950_v33  ;;  %v2839_v33 = vpop.permute.xlu1 %2838 }
 0x5e9   :  { %2913 = vmatprep.mubr.f32.mxu0 %v11675_v36  ;;  %2984 = vmatprep.mubr.f32.mxu1 %v11675_v36 }
 0x5eb   :  { %7561 = vmatpush1.bf16.msra.mxu0 %v11951_v39  ;;  %7593 = vmatpush1.bf16.msra.mxu1 %v11952_v59 }
 0x5ec   :  { %7563 = vmatprep.subr.bf16.mxu0 %v11953_v46  ;;  %7595 = vmatprep.subr.bf16.mxu1 %v11954_v2  ;;  %v12014_v46 = vld [vmem:[#allocation113_spill] sm:$0xff] }
 0x5ef   :  { %7565 = vmatpush1.bf16.msra.mxu0 %v11955_v54  ;;  %7597 = vmatpush1.bf16.msra.mxu1 %v11956_v51  ;;  %v12012_v54 = vld [vmem:[#allocation106_spill] sm:$0xff] }
 0x5f0   :  { %7567 = vmatprep.subr.bf16.mxu0 %v11957_v53  ;;  %7599 = vmatprep.subr.bf16.mxu1 %v11958_v20  ;;  %v11968_v53 = vld [vmem:[#allocation31_spill] sm:$0xff]  ;;  %v11969_v20 = vld [vmem:[#allocation32_spill] sm:$0xff] }
 0x5f3   :  { %7569 = vmatpush1.bf16.msra.mxu0 %v11959_v61  ;;  %7601 = vmatpush1.bf16.msra.mxu1 %v11960_v23  ;;  %v11970_v61 = vld [vmem:[#allocation33_spill] sm:$0xff]  ;;  %v11971_v23 = vld [vmem:[#allocation34_spill] sm:$0xff] }
 0x5f4   :  { %7571 = vmatprep.subr.bf16.mxu0 %v11961_v24  ;;  %7603 = vmatprep.subr.bf16.mxu1 %v11962_v55  ;;  %v11972_v24 = vld [vmem:[#allocation35_spill] sm:$0xff]  ;;  %v11973_v55 = vld [vmem:[#allocation36_spill] sm:$0xff] }
 0x5f7   :  { %7573 = vmatpush1.bf16.msra.mxu0 %v11963_v29  ;;  %7605 = vmatpush1.bf16.msra.mxu1 %v11964_v37  ;;  %v11974_v29 = vld [vmem:[#allocation37_spill] sm:$0xff]  ;;  %v11975_v37 = vld [vmem:[#allocation38_spill] sm:$0xff] }
 0x5f8   :  { %7575 = vmatprep.subr.bf16.mxu0 %v11965_v25  ;;  %7607 = vmatprep.subr.bf16.mxu1 %v11966_v42  ;;  %v11976_v25 = vld [vmem:[#allocation39_spill] sm:$0xff]  ;;  %v11977_v42 = vld [vmem:[#allocation40_spill] sm:$0xff] }
 0x5fb   :  { %7577 = vmatpush1.bf16.msra.mxu0 %v11967_v35  ;;  %7609 = vmatpush1.bf16.msra.mxu1 %v11968_v53  ;;  %v11978_v35 = vld [vmem:[#allocation41_spill] sm:$0xff] }
 0x5fc   :  { %7579 = vmatprep.subr.bf16.mxu0 %v11969_v20  ;;  %7611 = vmatprep.subr.bf16.mxu1 %v11970_v61  ;;  %v11979_v20 = vld [vmem:[#allocation42_spill] sm:$0xff]  ;;  %v11980_v61 = vld [vmem:[#allocation43_spill] sm:$0xff]  ;;  %v12011_v53 = vld [vmem:[#allocation105_spill] sm:$0xff] }
 0x5ff   :  { %7581 = vmatpush1.bf16.msra.mxu0 %v11971_v23  ;;  %7613 = vmatpush1.bf16.msra.mxu1 %v11972_v24  ;;  %v11981_v23 = vld [vmem:[#allocation44_spill] sm:$0xff]  ;;  %v11982_v24 = vld [vmem:[#allocation45_spill] sm:$0xff] }
 0x600   :  { %7583 = vmatprep.subr.bf16.mxu0 %v11973_v55  ;;  %7615 = vmatprep.subr.bf16.mxu1 %v11974_v29  ;;  %v11992_v29 = vld [vmem:[#allocation55_spill] sm:$0xff]  ;;  %v11993_v55 = vld [vmem:[#allocation56_spill] sm:$0xff] }
 0x603   :  { %7585 = vmatpush1.bf16.msra.mxu0 %v11975_v37  ;;  %7617 = vmatpush1.bf16.msra.mxu1 %v11976_v25  ;;  %v11983_v37 = vld [vmem:[#allocation46_spill] sm:$0xff]  ;;  %v11984_v25 = vld [vmem:[#allocation47_spill] sm:$0xff] }
 0x604   :  { %7619 = vmatprep.subr.bf16.mxu0 %v11977_v42  ;;  %7651 = vmatprep.subr.bf16.mxu1 %v11978_v35  ;;  %v11985_v42 = vld [vmem:[#allocation48_spill] sm:$0xff]  ;;  %v11986_v35 = vld [vmem:[#allocation49_spill] sm:$0xff] }
 0x606   :  { %2914 = vmatmul.mubr.f32.vlgmr.msra.gmra.mrb[20].mxu0 %v2519_v41  ;;  %2985 = vmatmul.mubr.f32.vlgmr.msra.gmra.mrb[20].mxu1 %v2519_v41  ;;  %v11987_v41 = vld [vmem:[#allocation50_spill] sm:$0xff] }
 0x607   :  { %7621 = vmatpush1.bf16.msra.mxu0 %v11979_v20  ;;  %7653 = vmatpush1.bf16.msra.mxu1 %v11980_v61  ;;  %v11988_v20 = vld [vmem:[#allocation51_spill] sm:$0xff]  ;;  %v11989_v61 = vld [vmem:[#allocation52_spill] sm:$0xff] }
 0x608   :  { %7623 = vmatprep.subr.bf16.mxu0 %v11981_v23  ;;  %7655 = vmatprep.subr.bf16.mxu1 %v11982_v24  ;;  %v11990_v23 = vld [vmem:[#allocation53_spill] sm:$0xff]  ;;  %v11991_v24 = vld [vmem:[#allocation54_spill] sm:$0xff] }
 0x609   :  { %3083 = vmatprep.mubr.f32.mxu0 %v11675_v36  ;;  %3154 = vmatprep.mubr.f32.mxu1 %v11675_v36 }
 0x60b   :  { %7625 = vmatpush1.bf16.msra.mxu0 %v11983_v37  ;;  %7657 = vmatpush1.bf16.msra.mxu1 %v11984_v25  ;;  %v11994_v37 = vld [vmem:[#allocation57_spill] sm:$0xff]  ;;  %v11995_v25 = vld [vmem:[#allocation58_spill] sm:$0xff] }
 0x60c   :  { %7627 = vmatprep.subr.bf16.mxu0 %v11985_v42  ;;  %7659 = vmatprep.subr.bf16.mxu1 %v11986_v35  ;;  %v11996_v42 = vld [vmem:[#allocation59_spill] sm:$0xff]  ;;  %v11997_v35 = vld [vmem:[#allocation60_spill] sm:$0xff] }
 0x60f   :  { %7629 = vmatpush1.bf16.msra.mxu0 %v11987_v41  ;;  %7661 = vmatpush1.bf16.msra.mxu1 %v11988_v20  ;;  %v11998_v41 = vld [vmem:[#allocation61_spill] sm:$0xff]  ;;  %v11999_v20 = vld [vmem:[#allocation62_spill] sm:$0xff] }
 0x610   :  { %7631 = vmatprep.subr.bf16.mxu0 %v11989_v61  ;;  %7663 = vmatprep.subr.bf16.mxu1 %v11990_v23  ;;  %v12000_v61 = vld [vmem:[#allocation63_spill] sm:$0xff]  ;;  %v12001_v23 = vld [vmem:[#allocation64_spill] sm:$0xff] }
 0x613   :  { %7633 = vmatpush1.bf16.msra.mxu0 %v11991_v24  ;;  %7665 = vmatpush1.bf16.msra.mxu1 %v11992_v29  ;;  %v12002_v24 = vld [vmem:[#allocation65_spill] sm:$0xff]  ;;  %v12003_v29 = vld [vmem:[#allocation66_spill] sm:$0xff] }
 0x614   :  { %7635 = vmatprep.subr.bf16.mxu0 %v11993_v55  ;;  %7667 = vmatprep.subr.bf16.mxu1 %v11994_v37  ;;  %v12004_v55 = vld [vmem:[#allocation67_spill] sm:$0xff]  ;;  %v12005_v37 = vld [vmem:[#allocation68_spill] sm:$0xff] }
 0x617   :  { %7637 = vmatpush1.bf16.msra.mxu0 %v11995_v25  ;;  %7669 = vmatpush1.bf16.msra.mxu1 %v11996_v42  ;;  %v12006_v25 = vld [vmem:[#allocation69_spill] sm:$0xff]  ;;  %v12007_v42 = vld [vmem:[#allocation70_spill] sm:$0xff] }
 0x618   :  { %7639 = vmatprep.subr.bf16.mxu0 %v11997_v35  ;;  %7671 = vmatprep.subr.bf16.mxu1 %v11998_v41  ;;  %v12008_v35 = vld [vmem:[#allocation71_spill] sm:$0xff]  ;;  %v12009_v41 = vld [vmem:[#allocation72_spill] sm:$0xff] }
 0x61b   :  { %7641 = vmatpush1.bf16.msra.mxu0 %v11999_v20  ;;  %7673 = vmatpush1.bf16.msra.mxu1 %v12000_v61  ;;  %v12010_v20 = vld [vmem:[#allocation73_spill] sm:$0xff] }
 0x61c   :  { %7643 = vmatprep.subr.bf16.mxu0 %v12001_v23  ;;  %7675 = vmatprep.subr.bf16.mxu1 %v12002_v24 }
 0x61f   :  { %7645 = vmatpush1.bf16.msra.mxu0 %v12003_v29  ;;  %7677 = vmatpush1.bf16.msra.mxu1 %v12004_v55 }
 0x620   :  { %7647 = vmatprep.subr.bf16.mxu0 %v12005_v37  ;;  %7679 = vmatprep.subr.bf16.mxu1 %v12006_v25  ;;  %v12013_v25 = vld [vmem:[#allocation109_spill] sm:$0xff] }
 0x623   :  { %7649 = vmatpush1.bf16.msra.mxu0 %v12007_v42  ;;  %7681 = vmatpush1.bf16.msra.mxu1 %v12008_v35 }
 0x624   :  { %7683 = vmatprep.subr.bf16.mxu0 %v12009_v41  ;;  %7715 = vmatprep.subr.bf16.mxu1 %v12010_v20 }
 0x6b9   :  { %v2728_v61 = vpop.f32.mrb[18].mxu0  ;;  %v2799_v23 = vpop.f32.mrb[18].mxu1 }
 0x6ba   :  { %v2804_v24 = vadd.f32 %v2728_v61, %v12011_v53  ;;  %v2730_v51 = vpop.f32.mrb[19].mxu0  ;;  %v2801_v29 = vpop.f32.mrb[19].mxu1  ;;  %v2806_v42 = vadd.f32 %v2799_v23, %v12013_v25 }
 0x6bb   :  { %v2805_v55 = vadd.f32 %v2730_v51, %v12012_v54  ;;  %v2807_v35 = vadd.f32 %v2801_v29, %v12014_v46 }
 0x6bc   :  { %v6545_v2 = vmul.f32 -1.442695, %v2804_v24  ;;  %v6547_v59 = vmul.f32 -1.442695, %v2806_v42  ;;  %v12015_v24 = vld [vmem:[#allocation107_spill] sm:$0xff] }
 0x6bd   :  { %v6546_v37 = vmul.f32 -1.442695, %v2805_v55  ;;  %v2841_v55 = vmul.f32 %v2839_v33, %v12015_v24 }
 0x6be   :  { %9099 = vpow2.f32 %v6545_v2 }
 0x6bf   :  { %9101 = vpow2.f32 %v6546_v37  ;;  %v2842_v37 = vmul.f32 %v2839_v33, %v11883_v3 }
 0x6c0   :  { %9103 = vtanh.f32 %v2807_v35  ;;  %v2845_v35 = vadd.f32 %v2841_v55, %v11747_v16 }
 0x6c1   :  { %9105 = vpow2.f32 %v6547_v59 }
 0x6c8   :  { %v9100_v41 = vpop.eup %9099 }
 0x6c9   :  { %v2817_v39 = vadd.f32 1.0, %v9100_v41  ;;  %v9102_v20 = vpop.eup %9101 }
 0x6ca   :  { %v2818_v61 = vadd.f32 1.0, %v9102_v20  ;;  %v9104_v53 = vpop.eup %9103 }
 0x6cb   :  { %9107 = vrcp.f32 %v2817_v39  ;;  %v9106_v51 = vpop.eup %9105  ;;  %v2846_v39 = vadd.f32 %v2842_v37, %v11748_v0 }
 0x6cc   :  { %9109 = vrcp.f32 %v2818_v61  ;;  %v2819_v29 = vadd.f32 1.0, %v9106_v51  ;;  %v2843_v51 = vmul.f32 %v2839_v33, %v11750_v14 }
 0x6ce   :  { %9111 = vrcp.f32 %v2819_v29 }
 0x6d5   :  { %v9108_v2 = vpop.eup %9107 }
 0x6d6   :  { %v2828_v23 = vmul.f32 %v9108_v2, %v9104_v53  ;;  %v9110_v25 = vpop.eup %9109 }
 0x6d7   :  { %v2827_v42 = vmul.f32 %v9110_v25, %v10360_v28  ;;  %v2844_v28 = vmul.f32 %v2839_v33, %v9880_v52  ;;  %v2847_v25 = vadd.f32 %v2843_v51, %v9876_v31 }
 0x6d9   :  { %v2915_v41 = vpop.f32.mrb[20].mxu0  ;;  %v2986_v59 = vpop.f32.mrb[20].mxu1  ;;  %v10482_v20 = vadd.f32 %v2828_v23, %v2827_v42  ;;  %v2848_v37 = vadd.f32 %v2844_v28, %v9884_v27 }
 0x6da   :  { %v2991_v61 = vadd.f32 %v2915_v41, %v2845_v35  ;;  %v2917_v46 = vpop.f32.mrb[21].mxu0  ;;  %v2988_v54 = vpop.f32.mrb[21].mxu1  ;;  %v2993_v55 = vadd.f32 %v2986_v59, %v2847_v25 }
 0x6db   :  { %v2992_v24 = vadd.f32 %v2917_v46, %v2846_v39  ;;  %9113 = vtanh.f32 %v10482_v20  ;;  %v9112_v23 = vpop.eup %9111  ;;  %v2994_v42 = vadd.f32 %v2988_v54, %v2848_v37 }
 0x6dc   :  { %v6549_v53 = vmul.f32 -1.442695, %v2991_v61  ;;  %v6551_v29 = vmul.f32 -1.442695, %v2993_v55 }
 0x6dd   :  { %v6550_v2 = vmul.f32 -1.442695, %v2992_v24 }
 0x6de   :  { %9115 = vpow2.f32 %v6549_v53 }
 0x6df   :  { %9117 = vpow2.f32 %v6550_v2 }
 0x6e0   :  { %9119 = vtanh.f32 %v2994_v42  ;;  %v12017_v42 = vld [vmem:[#allocation14_spill] sm:$0xff] }
 0x6e1   :  { %9121 = vpow2.f32 %v6551_v29  ;;  %v12019_v29 = vld [vmem:[#allocation16_spill] sm:$0xff] }
 0x6e5   :  { %v9114_v35 = vpop.eup %9113 }
 0x6e6   :  { %v2831_v46 = vmul.f32 %v9114_v35, %v9112_v23  ;;  %v12016_v23 = vld [vmem:[#allocation13_spill] sm:$0xff]  ;;  %v12018_v35 = vld [vmem:[#allocation15_spill] sm:$0xff] }
 0x6e8   :  { %v9116_v41 = vpop.eup %9115  ;;  %2833 = vst [vmem:[#allocation2 + $0x8] sm:$0x3] %v2831_v46  ;;  %3084 = vmatmul.mubr.f32.vlgmr.msra.gmra.mrb[22].mxu0 %v2831_v46  ;;  %3155 = vmatmul.mubr.f32.vlgmr.msra.gmra.mrb[22].mxu1 %v2831_v46  ;;  %v12020_v46 = vld [vmem:[#allocation17_spill] sm:$0xff] }
 0x6e9   :  { %v3004_v39 = vadd.f32 1.0, %v9116_v41  ;;  %v9118_v24 = vpop.eup %9117  ;;  %7685 = vmatpush1.bf16.msra.mxu0 %v11751_v44  ;;  %7717 = vmatpush1.bf16.msra.mxu1 %v11752_v26  ;;  %v12021_v41 = vld [vmem:[#allocation18_spill] sm:$0xff] }
 0x6ea   :  { %v3005_v33 = vadd.f32 1.0, %v9118_v24  ;;  %7687 = vmatprep.subr.bf16.mxu0 %v11753_v38  ;;  %7719 = vmatprep.subr.bf16.mxu1 %v11754_v47  ;;  %v9120_v54 = vpop.eup %9119  ;;  %v12023_v24 = vld [vmem:[#allocation20_spill] sm:$0xff] }
 0x6eb   :  { %9123 = vrcp.f32 %v3004_v39  ;;  %3225 = vmatprep.mubr.f32.mxu0 %v11675_v36  ;;  %3296 = vmatprep.mubr.f32.mxu1 %v11675_v36  ;;  %v9122_v59 = vpop.eup %9121  ;;  %v12022_v39 = vld [vmem:[#allocation19_spill] sm:$0xff] }
 0x6ec   :  { %9125 = vrcp.f32 %v3005_v33  ;;  %v3006_v2 = vadd.f32 1.0, %v9122_v59  ;;  %v12024_v33 = vld [vmem:[#allocation21_spill] sm:$0xff]  ;;  %v12026_v59 = vld [vmem:[#allocation23_spill] sm:$0xff] }
 0x6ed   :  { %7689 = vmatpush1.bf16.msra.mxu0 %v11755_v63  ;;  %7721 = vmatpush1.bf16.msra.mxu1 %v11817_v58 }
 0x6ee   :  { %7691 = vmatprep.subr.bf16.mxu0 %v11818_v50  ;;  %7723 = vmatprep.subr.bf16.mxu1 %v11819_v60  ;;  %9127 = vrcp.f32 %v3006_v2  ;;  %v12030_v2 = vld [vmem:[#allocation27_spill] sm:$0xff] }
 0x6f1   :  { %7693 = vmatpush1.bf16.msra.mxu0 %v11820_v5  ;;  %7725 = vmatpush1.bf16.msra.mxu1 %v11821_v17 }
 0x6f2   :  { %7695 = vmatprep.subr.bf16.mxu0 %v11822_v48  ;;  %7727 = vmatprep.subr.bf16.mxu1 %v11823_v32 }
 0x6f5   :  { %v9124_v61 = vpop.eup %9123  ;;  %7697 = vmatpush1.bf16.msra.mxu0 %v11763_v12  ;;  %7729 = vmatpush1.bf16.msra.mxu1 %v11764_v7 }
 0x6f6   :  { %v3015_v53 = vmul.f32 %v9124_v61, %v9120_v54  ;;  %v9126_v51 = vpop.eup %9125  ;;  %7699 = vmatprep.subr.bf16.mxu0 %v11824_v6  ;;  %7731 = vmatprep.subr.bf16.mxu1 %v11884_v4  ;;  %v12025_v54 = vld [vmem:[#allocation22_spill] sm:$0xff]  ;;  %v12027_v61 = vld [vmem:[#allocation24_spill] sm:$0xff] }
 0x6f7   :  { %v3014_v28 = vmul.f32 %v9126_v51, %v10386_v21  ;;  %v12029_v51 = vld [vmem:[#allocation26_spill] sm:$0xff] }
 0x6f8   :  { %v9128_v21 = vpop.eup %9127 }
 0x6f9   :  { %v10508_v25 = vadd.f32 %v3015_v53, %v3014_v28  ;;  %7701 = vmatpush1.bf16.msra.mxu0 %v11826_v18  ;;  %7733 = vmatpush1.bf16.msra.mxu1 %v11827_v9  ;;  %v12028_v53 = vld [vmem:[#allocation25_spill] sm:$0xff]  ;;  %v12031_v28 = vld [vmem:[#allocation28_spill] sm:$0xff] }
 0x6fa   :  { %7703 = vmatprep.subr.bf16.mxu0 %v11828_v22  ;;  %7735 = vmatprep.subr.bf16.mxu1 %v11829_v43 }
 0x6fb   :  { %9129 = vtanh.f32 %v10508_v25 }
 0x6fd   :  { %7705 = vmatpush1.bf16.msra.mxu0 %v11830_v40  ;;  %7737 = vmatpush1.bf16.msra.mxu1 %v11831_v45 }
 0x6fe   :  { %7707 = vmatprep.subr.bf16.mxu0 %v11832_v30  ;;  %7739 = vmatprep.subr.bf16.mxu1 %v11774_v62 }
 0x701   :  { %7709 = vmatpush1.bf16.msra.mxu0 %v11775_v8  ;;  %7741 = vmatpush1.bf16.msra.mxu1 %v11776_v49 }
 0x702   :  { %7711 = vmatprep.subr.bf16.mxu0 %v11777_v56  ;;  %7743 = vmatprep.subr.bf16.mxu1 %v11778_v1 }
 0x705   :  { %v9130_v55 = vpop.eup %9129  ;;  %7713 = vmatpush1.bf16.msra.mxu0 %v11779_v57  ;;  %7745 = vmatpush1.bf16.msra.mxu1 %v11780_v13 }
 0x706   :  { %v3018_v37 = vmul.f32 %v9130_v55, %v9128_v21  ;;  %7747 = vmatprep.subr.bf16.mxu0 %v11781_v10  ;;  %7779 = vmatprep.subr.bf16.mxu1 %v11782_v34  ;;  %v12032_v21 = vld [vmem:[#allocation29_spill] sm:$0xff]  ;;  %v12033_v55 = vld [vmem:[#allocation30_spill] sm:$0xff] }
 0x708   :  { %3226 = vmatmul.mubr.f32.vlgmr.msra.gmra.mrb[22].mxu0 %v3018_v37  ;;  %3297 = vmatmul.mubr.f32.vlgmr.msra.gmra.mrb[22].mxu1 %v3018_v37 }
 0x709   :  { %7749 = vmatpush1.bf16.msra.mxu0 %v9529_v11  ;;  %7781 = vmatpush1.bf16.msra.mxu1 %v9532_v15 }
 0x70a   :  { %7751 = vmatprep.subr.bf16.mxu0 %v9536_v19  ;;  %7783 = vmatprep.subr.bf16.mxu1 %v12016_v23 }
 0x70b   :  { %3412 = vmatprep.mubr.f32.mxu0 %v11675_v36  ;;  %3483 = vmatprep.mubr.f32.mxu1 %v11675_v36 }
 0x70d   :  { %7753 = vmatpush1.bf16.msra.mxu0 %v12017_v42  ;;  %7785 = vmatpush1.bf16.msra.mxu1 %v12018_v35 }
 0x70e   :  { %7755 = vmatprep.subr.bf16.mxu0 %v12019_v29  ;;  %7787 = vmatprep.subr.bf16.mxu1 %v12020_v46  ;;  %v12080_v29 = vld [vmem:[#allocation113_spill] sm:$0xff] }
 0x711   :  { %7757 = vmatpush1.bf16.msra.mxu0 %v12021_v41  ;;  %7789 = vmatpush1.bf16.msra.mxu1 %v12022_v39  ;;  %v12078_v41 = vld [vmem:[#allocation106_spill] sm:$0xff] }
 0x712   :  { %7759 = vmatprep.subr.bf16.mxu0 %v12023_v24  ;;  %7791 = vmatprep.subr.bf16.mxu1 %v12024_v33  ;;  %v12034_v24 = vld [vmem:[#allocation31_spill] sm:$0xff]  ;;  %v12035_v33 = vld [vmem:[#allocation32_spill] sm:$0xff] }
 0x715   :  { %7761 = vmatpush1.bf16.msra.mxu0 %v12025_v54  ;;  %7793 = vmatpush1.bf16.msra.mxu1 %v12026_v59  ;;  %v12036_v54 = vld [vmem:[#allocation33_spill] sm:$0xff]  ;;  %v12037_v59 = vld [vmem:[#allocation34_spill] sm:$0xff] }
 0x716   :  { %7763 = vmatprep.subr.bf16.mxu0 %v12027_v61  ;;  %7795 = vmatprep.subr.bf16.mxu1 %v12028_v53  ;;  %v12038_v61 = vld [vmem:[#allocation35_spill] sm:$0xff]  ;;  %v12039_v53 = vld [vmem:[#allocation36_spill] sm:$0xff] }
 0x719   :  { %7765 = vmatpush1.bf16.msra.mxu0 %v12029_v51  ;;  %7797 = vmatpush1.bf16.msra.mxu1 %v12030_v2  ;;  %v12040_v51 = vld [vmem:[#allocation37_spill] sm:$0xff]  ;;  %v12041_v2 = vld [vmem:[#allocation38_spill] sm:$0xff] }
 0x71a   :  { %7767 = vmatprep.subr.bf16.mxu0 %v12031_v28  ;;  %7799 = vmatprep.subr.bf16.mxu1 %v12032_v21  ;;  %v12042_v28 = vld [vmem:[#allocation39_spill] sm:$0xff]  ;;  %v12043_v21 = vld [vmem:[#allocation40_spill] sm:$0xff] }
 0x71d   :  { %7769 = vmatpush1.bf16.msra.mxu0 %v12033_v55  ;;  %7801 = vmatpush1.bf16.msra.mxu1 %v12034_v24  ;;  %v12044_v55 = vld [vmem:[#allocation41_spill] sm:$0xff] }
 0x71e   :  { %7771 = vmatprep.subr.bf16.mxu0 %v12035_v33  ;;  %7803 = vmatprep.subr.bf16.mxu1 %v12036_v54  ;;  %v12045_v33 = vld [vmem:[#allocation42_spill] sm:$0xff]  ;;  %v12046_v54 = vld [vmem:[#allocation43_spill] sm:$0xff]  ;;  %v12077_v24 = vld [vmem:[#allocation105_spill] sm:$0xff] }
 0x721   :  { %7773 = vmatpush1.bf16.msra.mxu0 %v12037_v59  ;;  %7805 = vmatpush1.bf16.msra.mxu1 %v12038_v61  ;;  %v12047_v59 = vld [vmem:[#allocation44_spill] sm:$0xff]  ;;  %v12048_v61 = vld [vmem:[#allocation45_spill] sm:$0xff] }
 0x722   :  { %7775 = vmatprep.subr.bf16.mxu0 %v12039_v53  ;;  %7807 = vmatprep.subr.bf16.mxu1 %v12040_v51  ;;  %v12058_v51 = vld [vmem:[#allocation55_spill] sm:$0xff]  ;;  %v12059_v53 = vld [vmem:[#allocation56_spill] sm:$0xff] }
 0x725   :  { %7777 = vmatpush1.bf16.msra.mxu0 %v12041_v2  ;;  %7809 = vmatpush1.bf16.msra.mxu1 %v12042_v28  ;;  %v12049_v2 = vld [vmem:[#allocation46_spill] sm:$0xff]  ;;  %v12050_v28 = vld [vmem:[#allocation47_spill] sm:$0xff] }
 0x726   :  { %7811 = vmatprep.subr.bf16.mxu0 %v12043_v21  ;;  %7843 = vmatprep.subr.bf16.mxu1 %v12044_v55  ;;  %v12051_v21 = vld [vmem:[#allocation48_spill] sm:$0xff]  ;;  %v12052_v55 = vld [vmem:[#allocation49_spill] sm:$0xff] }
 0x728   :  { %3413 = vmatmul.mubr.f32.vlgmr.msra.gmra.mrb[24].mxu0 %v3018_v37  ;;  %3484 = vmatmul.mubr.f32.vlgmr.msra.gmra.mrb[24].mxu1 %v3018_v37  ;;  %v12053_v37 = vld [vmem:[#allocation50_spill] sm:$0xff] }
 0x729   :  { %7813 = vmatpush1.bf16.msra.mxu0 %v12045_v33  ;;  %7845 = vmatpush1.bf16.msra.mxu1 %v12046_v54  ;;  %v12054_v33 = vld [vmem:[#allocation51_spill] sm:$0xff]  ;;  %v12055_v54 = vld [vmem:[#allocation52_spill] sm:$0xff] }
 0x72a   :  { %7815 = vmatprep.subr.bf16.mxu0 %v12047_v59  ;;  %7847 = vmatprep.subr.bf16.mxu1 %v12048_v61  ;;  %v12056_v59 = vld [vmem:[#allocation53_spill] sm:$0xff]  ;;  %v12057_v61 = vld [vmem:[#allocation54_spill] sm:$0xff] }
 0x72b   :  { %3582 = vmatprep.mubr.f32.mxu0 %v11675_v36  ;;  %3653 = vmatprep.mubr.f32.mxu1 %v11675_v36 }
 0x72d   :  { %7817 = vmatpush1.bf16.msra.mxu0 %v12049_v2  ;;  %7849 = vmatpush1.bf16.msra.mxu1 %v12050_v28  ;;  %v12060_v2 = vld [vmem:[#allocation57_spill] sm:$0xff]  ;;  %v12061_v28 = vld [vmem:[#allocation58_spill] sm:$0xff] }
 0x72e   :  { %7819 = vmatprep.subr.bf16.mxu0 %v12051_v21  ;;  %7851 = vmatprep.subr.bf16.mxu1 %v12052_v55  ;;  %v12062_v21 = vld [vmem:[#allocation59_spill] sm:$0xff]  ;;  %v12063_v55 = vld [vmem:[#allocation60_spill] sm:$0xff] }
 0x731   :  { %7821 = vmatpush1.bf16.msra.mxu0 %v12053_v37  ;;  %7853 = vmatpush1.bf16.msra.mxu1 %v12054_v33  ;;  %v12064_v37 = vld [vmem:[#allocation61_spill] sm:$0xff]  ;;  %v12065_v33 = vld [vmem:[#allocation62_spill] sm:$0xff] }
 0x732   :  { %7823 = vmatprep.subr.bf16.mxu0 %v12055_v54  ;;  %7855 = vmatprep.subr.bf16.mxu1 %v12056_v59  ;;  %v12066_v54 = vld [vmem:[#allocation63_spill] sm:$0xff]  ;;  %v12067_v59 = vld [vmem:[#allocation64_spill] sm:$0xff] }
 0x735   :  { %7825 = vmatpush1.bf16.msra.mxu0 %v12057_v61  ;;  %7857 = vmatpush1.bf16.msra.mxu1 %v12058_v51  ;;  %v12068_v61 = vld [vmem:[#allocation65_spill] sm:$0xff]  ;;  %v12069_v51 = vld [vmem:[#allocation66_spill] sm:$0xff] }
 0x736   :  { %7827 = vmatprep.subr.bf16.mxu0 %v12059_v53  ;;  %7859 = vmatprep.subr.bf16.mxu1 %v12060_v2  ;;  %v12070_v53 = vld [vmem:[#allocation67_spill] sm:$0xff]  ;;  %v12071_v2 = vld [vmem:[#allocation68_spill] sm:$0xff] }
 0x739   :  { %7829 = vmatpush1.bf16.msra.mxu0 %v12061_v28  ;;  %7861 = vmatpush1.bf16.msra.mxu1 %v12062_v21  ;;  %v12072_v28 = vld [vmem:[#allocation69_spill] sm:$0xff]  ;;  %v12073_v21 = vld [vmem:[#allocation70_spill] sm:$0xff] }
 0x73a   :  { %7831 = vmatprep.subr.bf16.mxu0 %v12063_v55  ;;  %7863 = vmatprep.subr.bf16.mxu1 %v12064_v37  ;;  %v12074_v55 = vld [vmem:[#allocation71_spill] sm:$0xff]  ;;  %v12075_v37 = vld [vmem:[#allocation72_spill] sm:$0xff] }
 0x73d   :  { %7833 = vmatpush1.bf16.msra.mxu0 %v12065_v33  ;;  %7865 = vmatpush1.bf16.msra.mxu1 %v12066_v54  ;;  %v12076_v33 = vld [vmem:[#allocation73_spill] sm:$0xff] }
 0x73e   :  { %7835 = vmatprep.subr.bf16.mxu0 %v12067_v59  ;;  %7867 = vmatprep.subr.bf16.mxu1 %v12068_v61 }
 0x741   :  { %7837 = vmatpush1.bf16.msra.mxu0 %v12069_v51  ;;  %7869 = vmatpush1.bf16.msra.mxu1 %v12070_v53 }
 0x742   :  { %7839 = vmatprep.subr.bf16.mxu0 %v12071_v2  ;;  %7871 = vmatprep.subr.bf16.mxu1 %v12072_v28  ;;  %v12079_v28 = vld [vmem:[#allocation109_spill] sm:$0xff] }
 0x745   :  { %7841 = vmatpush1.bf16.msra.mxu0 %v12073_v21  ;;  %7873 = vmatpush1.bf16.msra.mxu1 %v12074_v55 }
 0x746   :  { %7875 = vmatprep.subr.bf16.mxu0 %v12075_v37  ;;  %7907 = vmatprep.subr.bf16.mxu1 %v12076_v33 }
 0x7db   :  { %v3227_v54 = vpop.f32.mrb[22].mxu0  ;;  %v3298_v59 = vpop.f32.mrb[22].mxu1 }
 0x7dc   :  { %v3303_v61 = vadd.f32 %v3227_v54, %v12077_v24  ;;  %v3229_v39 = vpop.f32.mrb[23].mxu0  ;;  %v3300_v51 = vpop.f32.mrb[23].mxu1  ;;  %v3305_v21 = vadd.f32 %v3298_v59, %v12079_v28 }
 0x7dd   :  { %v3304_v53 = vadd.f32 %v3229_v39, %v12078_v41  ;;  %v3306_v55 = vadd.f32 %v3300_v51, %v12080_v29  ;;  %v3338_v24 = vpop.permute.xlu0 %3337 }
 0x7de   :  { %v6552_v46 = vmul.f32 -1.442695, %v3303_v61  ;;  %v6554_v35 = vmul.f32 -1.442695, %v3305_v21  ;;  %v12081_v61 = vld [vmem:[#allocation107_spill] sm:$0xff] }
 0x7df   :  { %v6553_v2 = vmul.f32 -1.442695, %v3304_v53  ;;  %v3340_v53 = vmul.f32 %v3338_v24, %v12081_v61 }
 0x7e0   :  { %9131 = vpow2.f32 %v6552_v46 }
 0x7e1   :  { %9133 = vpow2.f32 %v6553_v2  ;;  %v3341_v2 = vmul.f32 %v3338_v24, %v11883_v3 }
 0x7e2   :  { %9135 = vtanh.f32 %v3306_v55  ;;  %v3344_v55 = vadd.f32 %v3340_v53, %v11747_v16 }
 0x7e3   :  { %9137 = vpow2.f32 %v6554_v35 }
 0x7ea   :  { %v9132_v37 = vpop.eup %9131 }
 0x7eb   :  { %v3316_v42 = vadd.f32 1.0, %v9132_v37  ;;  %v9134_v33 = vpop.eup %9133 }
 0x7ec   :  { %v3317_v54 = vadd.f32 1.0, %v9134_v33  ;;  %v9136_v23 = vpop.eup %9135 }
 0x7ed   :  { %9139 = vrcp.f32 %v3316_v42  ;;  %v9138_v39 = vpop.eup %9137  ;;  %v3345_v42 = vadd.f32 %v3341_v2, %v11748_v0 }
 0x7ee   :  { %9141 = vrcp.f32 %v3317_v54  ;;  %v3318_v51 = vadd.f32 1.0, %v9138_v39  ;;  %v3342_v39 = vmul.f32 %v3338_v24, %v11750_v14 }
 0x7f0   :  { %9143 = vrcp.f32 %v3318_v51 }
 0x7f7   :  { %v9140_v46 = vpop.eup %9139 }
 0x7f8   :  { %v3327_v59 = vmul.f32 %v9140_v46, %v9136_v23  ;;  %v9142_v28 = vpop.eup %9141 }
 0x7f9   :  { %v3326_v21 = vmul.f32 %v9142_v28, %v10482_v20  ;;  %v3343_v20 = vmul.f32 %v3338_v24, %v9880_v52  ;;  %v3346_v28 = vadd.f32 %v3342_v39, %v9876_v31 }
 0x7fb   :  { %v3414_v37 = vpop.f32.mrb[24].mxu0  ;;  %v3485_v35 = vpop.f32.mrb[24].mxu1  ;;  %v10604_v33 = vadd.f32 %v3327_v59, %v3326_v21  ;;  %v3347_v2 = vadd.f32 %v3343_v20, %v9884_v27 }
 0x7fc   :  { %v3490_v54 = vadd.f32 %v3414_v37, %v3344_v55  ;;  %v3416_v29 = vpop.f32.mrb[25].mxu0  ;;  %v3487_v41 = vpop.f32.mrb[25].mxu1  ;;  %v3492_v53 = vadd.f32 %v3485_v35, %v3346_v28 }
 0x7fd   :  { %v3491_v61 = vadd.f32 %v3416_v29, %v3345_v42  ;;  %9145 = vtanh.f32 %v10604_v33  ;;  %v9144_v59 = vpop.eup %9143  ;;  %v3493_v21 = vadd.f32 %v3487_v41, %v3347_v2 }
 0x7fe   :  { %v6556_v23 = vmul.f32 -1.442695, %v3490_v54  ;;  %v6558_v51 = vmul.f32 -1.442695, %v3492_v53 }
 0x7ff   :  { %v6557_v46 = vmul.f32 -1.442695, %v3491_v61 }
 0x800   :  { %9147 = vpow2.f32 %v6556_v23 }
 0x801   :  { %9149 = vpow2.f32 %v6557_v46 }
 0x802   :  { %9151 = vtanh.f32 %v3493_v21  ;;  %v12083_v21 = vld [vmem:[#allocation14_spill] sm:$0xff] }
 0x803   :  { %9153 = vpow2.f32 %v6558_v51  ;;  %v12085_v51 = vld [vmem:[#allocation16_spill] sm:$0xff] }
 0x807   :  { %v9146_v55 = vpop.eup %9145 }
 0x808   :  { %v3330_v29 = vmul.f32 %v9146_v55, %v9144_v59  ;;  %v12082_v59 = vld [vmem:[#allocation13_spill] sm:$0xff]  ;;  %v12084_v55 = vld [vmem:[#allocation15_spill] sm:$0xff] }
 0x80a   :  { %v9148_v37 = vpop.eup %9147  ;;  %3332 = vst [vmem:[#allocation2 + $0xa] sm:$0x3] %v3330_v29  ;;  %3583 = vmatmul.mubr.f32.vlgmr.msra.gmra.mrb[26].mxu0 %v3330_v29  ;;  %3654 = vmatmul.mubr.f32.vlgmr.msra.gmra.mrb[26].mxu1 %v3330_v29  ;;  %v12086_v29 = vld [vmem:[#allocation17_spill] sm:$0xff] }
 0x80b   :  { %v3503_v42 = vadd.f32 1.0, %v9148_v37  ;;  %v9150_v61 = vpop.eup %9149  ;;  %7877 = vmatpush1.bf16.msra.mxu0 %v11751_v44  ;;  %7909 = vmatpush1.bf16.msra.mxu1 %v11752_v26  ;;  %v12087_v37 = vld [vmem:[#allocation18_spill] sm:$0xff] }
 0x80c   :  { %v3504_v24 = vadd.f32 1.0, %v9150_v61  ;;  %7879 = vmatprep.subr.bf16.mxu0 %v11753_v38  ;;  %7911 = vmatprep.subr.bf16.mxu1 %v11754_v47  ;;  %v9152_v41 = vpop.eup %9151  ;;  %v12089_v61 = vld [vmem:[#allocation20_spill] sm:$0xff] }
 0x80d   :  { %9155 = vrcp.f32 %v3503_v42  ;;  %3724 = vmatprep.mubr.f32.mxu0 %v11675_v36  ;;  %3795 = vmatprep.mubr.f32.mxu1 %v11675_v36  ;;  %v9154_v35 = vpop.eup %9153  ;;  %v12088_v42 = vld [vmem:[#allocation19_spill] sm:$0xff] }
 0x80e   :  { %9157 = vrcp.f32 %v3504_v24  ;;  %v3505_v46 = vadd.f32 1.0, %v9154_v35  ;;  %v12090_v24 = vld [vmem:[#allocation21_spill] sm:$0xff]  ;;  %v12092_v35 = vld [vmem:[#allocation23_spill] sm:$0xff] }
 0x80f   :  { %7881 = vmatpush1.bf16.msra.mxu0 %v11755_v63  ;;  %7913 = vmatpush1.bf16.msra.mxu1 %v11817_v58 }
 0x810   :  { %7883 = vmatprep.subr.bf16.mxu0 %v11818_v50  ;;  %7915 = vmatprep.subr.bf16.mxu1 %v11819_v60  ;;  %9159 = vrcp.f32 %v3505_v46  ;;  %v12096_v46 = vld [vmem:[#allocation27_spill] sm:$0xff] }
 0x813   :  { %7885 = vmatpush1.bf16.msra.mxu0 %v11820_v5  ;;  %7917 = vmatpush1.bf16.msra.mxu1 %v11821_v17 }
 0x814   :  { %7887 = vmatprep.subr.bf16.mxu0 %v11822_v48  ;;  %7919 = vmatprep.subr.bf16.mxu1 %v11823_v32 }
 0x817   :  { %v9156_v54 = vpop.eup %9155  ;;  %7889 = vmatpush1.bf16.msra.mxu0 %v11763_v12  ;;  %7921 = vmatpush1.bf16.msra.mxu1 %v11764_v7 }
 0x818   :  { %v3514_v23 = vmul.f32 %v9156_v54, %v9152_v41  ;;  %v9158_v39 = vpop.eup %9157  ;;  %7891 = vmatprep.subr.bf16.mxu0 %v11824_v6  ;;  %7923 = vmatprep.subr.bf16.mxu1 %v11884_v4  ;;  %v12091_v41 = vld [vmem:[#allocation22_spill] sm:$0xff]  ;;  %v12093_v54 = vld [vmem:[#allocation24_spill] sm:$0xff] }
 0x819   :  { %v3513_v20 = vmul.f32 %v9158_v39, %v10508_v25  ;;  %v12095_v39 = vld [vmem:[#allocation26_spill] sm:$0xff] }
 0x81a   :  { %v9160_v25 = vpop.eup %9159 }
 0x81b   :  { %v10630_v28 = vadd.f32 %v3514_v23, %v3513_v20  ;;  %7893 = vmatpush1.bf16.msra.mxu0 %v11826_v18  ;;  %7925 = vmatpush1.bf16.msra.mxu1 %v11827_v9  ;;  %v12094_v23 = vld [vmem:[#allocation25_spill] sm:$0xff]  ;;  %v12097_v20 = vld [vmem:[#allocation28_spill] sm:$0xff] }
 0x81c   :  { %7895 = vmatprep.subr.bf16.mxu0 %v11828_v22  ;;  %7927 = vmatprep.subr.bf16.mxu1 %v11829_v43 }
 0x81d   :  { %9161 = vtanh.f32 %v10630_v28 }
 0x81f   :  { %7897 = vmatpush1.bf16.msra.mxu0 %v11830_v40  ;;  %7929 = vmatpush1.bf16.msra.mxu1 %v11831_v45 }
 0x820   :  { %7899 = vmatprep.subr.bf16.mxu0 %v11832_v30  ;;  %7931 = vmatprep.subr.bf16.mxu1 %v11774_v62 }
 0x823   :  { %7901 = vmatpush1.bf16.msra.mxu0 %v11775_v8  ;;  %7933 = vmatpush1.bf16.msra.mxu1 %v11776_v49 }
 0x824   :  { %7903 = vmatprep.subr.bf16.mxu0 %v11777_v56  ;;  %7935 = vmatprep.subr.bf16.mxu1 %v11778_v1 }
 0x827   :  { %v9162_v53 = vpop.eup %9161  ;;  %7905 = vmatpush1.bf16.msra.mxu0 %v11779_v57  ;;  %7937 = vmatpush1.bf16.msra.mxu1 %v11780_v13 }
 0x828   :  { %7939 = vmatprep.subr.bf16.mxu0 %v11781_v10  ;;  %7971 = vmatprep.subr.bf16.mxu1 %v11782_v34  ;;  %v3517_v2 = vmul.f32 %v9162_v53, %v9160_v25  ;;  %v12098_v25 = vld [vmem:[#allocation29_spill] sm:$0xff]  ;;  %v12099_v53 = vld [vmem:[#allocation30_spill] sm:$0xff] }
 0x82a   :  { %3725 = vmatmul.mubr.f32.vlgmr.msra.gmra.mrb[26].mxu0 %v3517_v2  ;;  %3796 = vmatmul.mubr.f32.vlgmr.msra.gmra.mrb[26].mxu1 %v3517_v2 }
 0x82b   :  { %7941 = vmatpush1.bf16.msra.mxu0 %v9529_v11  ;;  %7973 = vmatpush1.bf16.msra.mxu1 %v9532_v15 }
 0x82c   :  { %7943 = vmatprep.subr.bf16.mxu0 %v9536_v19  ;;  %7975 = vmatprep.subr.bf16.mxu1 %v12082_v59 }
 0x82d   :  { %3911 = vmatprep.mubr.f32.mxu0 %v11675_v36  ;;  %3982 = vmatprep.mubr.f32.mxu1 %v11675_v36 }
 0x82f   :  { %7945 = vmatpush1.bf16.msra.mxu0 %v12083_v21  ;;  %7977 = vmatpush1.bf16.msra.mxu1 %v12084_v55 }
 0x830   :  { %7947 = vmatprep.subr.bf16.mxu0 %v12085_v51  ;;  %7979 = vmatprep.subr.bf16.mxu1 %v12086_v29  ;;  %v12146_v51 = vld [vmem:[#allocation113_spill] sm:$0xff] }
 0x833   :  { %7949 = vmatpush1.bf16.msra.mxu0 %v12087_v37  ;;  %7981 = vmatpush1.bf16.msra.mxu1 %v12088_v42  ;;  %v12144_v37 = vld [vmem:[#allocation106_spill] sm:$0xff] }
 0x834   :  { %7951 = vmatprep.subr.bf16.mxu0 %v12089_v61  ;;  %7983 = vmatprep.subr.bf16.mxu1 %v12090_v24  ;;  %v12100_v61 = vld [vmem:[#allocation31_spill] sm:$0xff]  ;;  %v12101_v24 = vld [vmem:[#allocation32_spill] sm:$0xff] }
 0x837   :  { %7953 = vmatpush1.bf16.msra.mxu0 %v12091_v41  ;;  %7985 = vmatpush1.bf16.msra.mxu1 %v12092_v35  ;;  %v12102_v41 = vld [vmem:[#allocation33_spill] sm:$0xff]  ;;  %v12103_v35 = vld [vmem:[#allocation34_spill] sm:$0xff] }
 0x838   :  { %7955 = vmatprep.subr.bf16.mxu0 %v12093_v54  ;;  %7987 = vmatprep.subr.bf16.mxu1 %v12094_v23  ;;  %v12104_v54 = vld [vmem:[#allocation35_spill] sm:$0xff]  ;;  %v12105_v23 = vld [vmem:[#allocation36_spill] sm:$0xff] }
 0x83b   :  { %7957 = vmatpush1.bf16.msra.mxu0 %v12095_v39  ;;  %7989 = vmatpush1.bf16.msra.mxu1 %v12096_v46  ;;  %v12106_v39 = vld [vmem:[#allocation37_spill] sm:$0xff]  ;;  %v12107_v46 = vld [vmem:[#allocation38_spill] sm:$0xff] }
 0x83c   :  { %7959 = vmatprep.subr.bf16.mxu0 %v12097_v20  ;;  %7991 = vmatprep.subr.bf16.mxu1 %v12098_v25  ;;  %v12108_v20 = vld [vmem:[#allocation39_spill] sm:$0xff]  ;;  %v12109_v25 = vld [vmem:[#allocation40_spill] sm:$0xff] }
 0x83f   :  { %7961 = vmatpush1.bf16.msra.mxu0 %v12099_v53  ;;  %7993 = vmatpush1.bf16.msra.mxu1 %v12100_v61  ;;  %v12110_v53 = vld [vmem:[#allocation41_spill] sm:$0xff] }
 0x840   :  { %7963 = vmatprep.subr.bf16.mxu0 %v12101_v24  ;;  %7995 = vmatprep.subr.bf16.mxu1 %v12102_v41  ;;  %v12111_v24 = vld [vmem:[#allocation42_spill] sm:$0xff]  ;;  %v12112_v41 = vld [vmem:[#allocation43_spill] sm:$0xff]  ;;  %v12143_v61 = vld [vmem:[#allocation105_spill] sm:$0xff] }
 0x843   :  { %7965 = vmatpush1.bf16.msra.mxu0 %v12103_v35  ;;  %7997 = vmatpush1.bf16.msra.mxu1 %v12104_v54  ;;  %v12113_v35 = vld [vmem:[#allocation44_spill] sm:$0xff]  ;;  %v12114_v54 = vld [vmem:[#allocation45_spill] sm:$0xff] }
 0x844   :  { %7967 = vmatprep.subr.bf16.mxu0 %v12105_v23  ;;  %7999 = vmatprep.subr.bf16.mxu1 %v12106_v39  ;;  %v12124_v39 = vld [vmem:[#allocation55_spill] sm:$0xff]  ;;  %v12125_v23 = vld [vmem:[#allocation56_spill] sm:$0xff] }
 0x847   :  { %7969 = vmatpush1.bf16.msra.mxu0 %v12107_v46  ;;  %8001 = vmatpush1.bf16.msra.mxu1 %v12108_v20  ;;  %v12115_v46 = vld [vmem:[#allocation46_spill] sm:$0xff]  ;;  %v12116_v20 = vld [vmem:[#allocation47_spill] sm:$0xff] }
 0x848   :  { %8003 = vmatprep.subr.bf16.mxu0 %v12109_v25  ;;  %8035 = vmatprep.subr.bf16.mxu1 %v12110_v53  ;;  %v12117_v25 = vld [vmem:[#allocation48_spill] sm:$0xff]  ;;  %v12118_v53 = vld [vmem:[#allocation49_spill] sm:$0xff] }
 0x84a   :  { %3912 = vmatmul.mubr.f32.vlgmr.msra.gmra.mrb[28].mxu0 %v3517_v2  ;;  %3983 = vmatmul.mubr.f32.vlgmr.msra.gmra.mrb[28].mxu1 %v3517_v2  ;;  %v12119_v2 = vld [vmem:[#allocation50_spill] sm:$0xff] }
 0x84b   :  { %8005 = vmatpush1.bf16.msra.mxu0 %v12111_v24  ;;  %8037 = vmatpush1.bf16.msra.mxu1 %v12112_v41  ;;  %v12120_v24 = vld [vmem:[#allocation51_spill] sm:$0xff]  ;;  %v12121_v41 = vld [vmem:[#allocation52_spill] sm:$0xff] }
 0x84c   :  { %8007 = vmatprep.subr.bf16.mxu0 %v12113_v35  ;;  %8039 = vmatprep.subr.bf16.mxu1 %v12114_v54  ;;  %v12122_v35 = vld [vmem:[#allocation53_spill] sm:$0xff]  ;;  %v12123_v54 = vld [vmem:[#allocation54_spill] sm:$0xff] }
 0x84d   :  { %4081 = vmatprep.mubr.f32.mxu0 %v11675_v36  ;;  %4152 = vmatprep.mubr.f32.mxu1 %v11675_v36 }
 0x84f   :  { %8009 = vmatpush1.bf16.msra.mxu0 %v12115_v46  ;;  %8041 = vmatpush1.bf16.msra.mxu1 %v12116_v20  ;;  %v12126_v46 = vld [vmem:[#allocation57_spill] sm:$0xff]  ;;  %v12127_v20 = vld [vmem:[#allocation58_spill] sm:$0xff] }
 0x850   :  { %8011 = vmatprep.subr.bf16.mxu0 %v12117_v25  ;;  %8043 = vmatprep.subr.bf16.mxu1 %v12118_v53  ;;  %v12128_v25 = vld [vmem:[#allocation59_spill] sm:$0xff]  ;;  %v12129_v53 = vld [vmem:[#allocation60_spill] sm:$0xff] }
 0x853   :  { %8013 = vmatpush1.bf16.msra.mxu0 %v12119_v2  ;;  %8045 = vmatpush1.bf16.msra.mxu1 %v12120_v24  ;;  %v12130_v2 = vld [vmem:[#allocation61_spill] sm:$0xff]  ;;  %v12131_v24 = vld [vmem:[#allocation62_spill] sm:$0xff] }
 0x854   :  { %8015 = vmatprep.subr.bf16.mxu0 %v12121_v41  ;;  %8047 = vmatprep.subr.bf16.mxu1 %v12122_v35  ;;  %v12132_v41 = vld [vmem:[#allocation63_spill] sm:$0xff]  ;;  %v12133_v35 = vld [vmem:[#allocation64_spill] sm:$0xff] }
 0x857   :  { %8017 = vmatpush1.bf16.msra.mxu0 %v12123_v54  ;;  %8049 = vmatpush1.bf16.msra.mxu1 %v12124_v39  ;;  %v12134_v54 = vld [vmem:[#allocation65_spill] sm:$0xff]  ;;  %v12135_v39 = vld [vmem:[#allocation66_spill] sm:$0xff] }
 0x858   :  { %8019 = vmatprep.subr.bf16.mxu0 %v12125_v23  ;;  %8051 = vmatprep.subr.bf16.mxu1 %v12126_v46  ;;  %v12136_v23 = vld [vmem:[#allocation67_spill] sm:$0xff]  ;;  %v12137_v46 = vld [vmem:[#allocation68_spill] sm:$0xff] }
 0x85b   :  { %8021 = vmatpush1.bf16.msra.mxu0 %v12127_v20  ;;  %8053 = vmatpush1.bf16.msra.mxu1 %v12128_v25  ;;  %v12138_v20 = vld [vmem:[#allocation69_spill] sm:$0xff]  ;;  %v12139_v25 = vld [vmem:[#allocation70_spill] sm:$0xff] }
 0x85c   :  { %8023 = vmatprep.subr.bf16.mxu0 %v12129_v53  ;;  %8055 = vmatprep.subr.bf16.mxu1 %v12130_v2  ;;  %v12140_v53 = vld [vmem:[#allocation71_spill] sm:$0xff]  ;;  %v12141_v2 = vld [vmem:[#allocation72_spill] sm:$0xff] }
 0x85f   :  { %8025 = vmatpush1.bf16.msra.mxu0 %v12131_v24  ;;  %8057 = vmatpush1.bf16.msra.mxu1 %v12132_v41  ;;  %v12142_v24 = vld [vmem:[#allocation73_spill] sm:$0xff] }
 0x860   :  { %8027 = vmatprep.subr.bf16.mxu0 %v12133_v35  ;;  %8059 = vmatprep.subr.bf16.mxu1 %v12134_v54 }
 0x863   :  { %8029 = vmatpush1.bf16.msra.mxu0 %v12135_v39  ;;  %8061 = vmatpush1.bf16.msra.mxu1 %v12136_v23 }
 0x864   :  { %8031 = vmatprep.subr.bf16.mxu0 %v12137_v46  ;;  %8063 = vmatprep.subr.bf16.mxu1 %v12138_v20  ;;  %v12145_v20 = vld [vmem:[#allocation109_spill] sm:$0xff] }
 0x867   :  { %8033 = vmatpush1.bf16.msra.mxu0 %v12139_v25  ;;  %8065 = vmatpush1.bf16.msra.mxu1 %v12140_v53 }
 0x868   :  { %8067 = vmatprep.subr.bf16.mxu0 %v12141_v2  ;;  %8099 = vmatprep.subr.bf16.mxu1 %v12142_v24 }
 0x8fd   :  { %v3726_v41 = vpop.f32.mrb[26].mxu0  ;;  %v3797_v35 = vpop.f32.mrb[26].mxu1 }
 0x8fe   :  { %v3802_v54 = vadd.f32 %v3726_v41, %v12143_v61  ;;  %v3728_v42 = vpop.f32.mrb[27].mxu0  ;;  %v3799_v39 = vpop.f32.mrb[27].mxu1  ;;  %v3804_v25 = vadd.f32 %v3797_v35, %v12145_v20 }
 0x8ff   :  { %v3803_v23 = vadd.f32 %v3728_v42, %v12144_v37  ;;  %v3805_v53 = vadd.f32 %v3799_v39, %v12146_v51  ;;  %v3837_v61 = vpop.permute.xlu1 %3836 }
 0x900   :  { %v6559_v29 = vmul.f32 -1.442695, %v3802_v54  ;;  %v6561_v55 = vmul.f32 -1.442695, %v3804_v25  ;;  %v12147_v54 = vld [vmem:[#allocation107_spill] sm:$0xff] }
 0x901   :  { %v6560_v46 = vmul.f32 -1.442695, %v3803_v23  ;;  %v3839_v23 = vmul.f32 %v3837_v61, %v12147_v54 }
 0x902   :  { %9163 = vpow2.f32 %v6559_v29 }
 0x903   :  { %9165 = vpow2.f32 %v6560_v46  ;;  %v3840_v46 = vmul.f32 %v3837_v61, %v11883_v3 }
 0x904   :  { %9167 = vtanh.f32 %v3805_v53  ;;  %v3843_v53 = vadd.f32 %v3839_v23, %v11747_v16 }
 0x905   :  { %9169 = vpow2.f32 %v6561_v55 }
 0x90c   :  { %v9164_v2 = vpop.eup %9163 }
 0x90d   :  { %v3815_v21 = vadd.f32 1.0, %v9164_v2  ;;  %v9166_v24 = vpop.eup %9165 }
 0x90e   :  { %v3816_v41 = vadd.f32 1.0, %v9166_v24  ;;  %v9168_v59 = vpop.eup %9167 }
 0x90f   :  { %9171 = vrcp.f32 %v3815_v21  ;;  %v9170_v42 = vpop.eup %9169  ;;  %v3844_v21 = vadd.f32 %v3840_v46, %v11748_v0 }
 0x910   :  { %9173 = vrcp.f32 %v3816_v41  ;;  %v3817_v39 = vadd.f32 1.0, %v9170_v42  ;;  %v3841_v42 = vmul.f32 %v3837_v61, %v11750_v14 }
 0x912   :  { %9175 = vrcp.f32 %v3817_v39 }
 0x919   :  { %v9172_v29 = vpop.eup %9171 }
 0x91a   :  { %v3826_v35 = vmul.f32 %v9172_v29, %v9168_v59  ;;  %v9174_v20 = vpop.eup %9173 }
 0x91b   :  { %v3825_v25 = vmul.f32 %v9174_v20, %v10604_v33  ;;  %v3842_v33 = vmul.f32 %v3837_v61, %v9880_v52  ;;  %v3845_v20 = vadd.f32 %v3841_v42, %v9876_v31 }
 0x91d   :  { %v3913_v2 = vpop.f32.mrb[28].mxu0  ;;  %v3984_v55 = vpop.f32.mrb[28].mxu1  ;;  %v10726_v24 = vadd.f32 %v3826_v35, %v3825_v25  ;;  %v3846_v46 = vadd.f32 %v3842_v33, %v9884_v27 }
 0x91e   :  { %v3989_v41 = vadd.f32 %v3913_v2, %v3843_v53  ;;  %v3915_v51 = vpop.f32.mrb[29].mxu0  ;;  %v3986_v37 = vpop.f32.mrb[29].mxu1  ;;  %v3991_v23 = vadd.f32 %v3984_v55, %v3845_v20 }
 0x91f   :  { %v3990_v54 = vadd.f32 %v3915_v51, %v3844_v21  ;;  %9177 = vtanh.f32 %v10726_v24  ;;  %v9176_v35 = vpop.eup %9175  ;;  %v3992_v25 = vadd.f32 %v3986_v37, %v3846_v46 }
 0x920   :  { %v6563_v59 = vmul.f32 -1.442695, %v3989_v41  ;;  %v6565_v39 = vmul.f32 -1.442695, %v3991_v23 }
 0x921   :  { %v6564_v29 = vmul.f32 -1.442695, %v3990_v54 }
 0x922   :  { %9179 = vpow2.f32 %v6563_v59 }
 0x923   :  { %9181 = vpow2.f32 %v6564_v29 }
 0x924   :  { %9183 = vtanh.f32 %v3992_v25  ;;  %v12149_v25 = vld [vmem:[#allocation14_spill] sm:$0xff] }
 0x925   :  { %9185 = vpow2.f32 %v6565_v39  ;;  %v12151_v39 = vld [vmem:[#allocation16_spill] sm:$0xff] }
 0x929   :  { %v9178_v53 = vpop.eup %9177 }
 0x92a   :  { %v3829_v51 = vmul.f32 %v9178_v53, %v9176_v35  ;;  %v12148_v35 = vld [vmem:[#allocation13_spill] sm:$0xff]  ;;  %v12150_v53 = vld [vmem:[#allocation15_spill] sm:$0xff] }
 0x92c   :  { %v9180_v2 = vpop.eup %9179  ;;  %3831 = vst [vmem:[#allocation2 + $0xc] sm:$0x3] %v3829_v51  ;;  %4082 = vmatmul.mubr.f32.vlgmr.msra.gmra.mrb[30].mxu0 %v3829_v51  ;;  %4153 = vmatmul.mubr.f32.vlgmr.msra.gmra.mrb[30].mxu1 %v3829_v51  ;;  %v12152_v51 = vld [vmem:[#allocation17_spill] sm:$0xff] }
 0x92d   :  { %v4002_v21 = vadd.f32 1.0, %v9180_v2  ;;  %v9182_v54 = vpop.eup %9181  ;;  %8069 = vmatpush1.bf16.msra.mxu0 %v11751_v44  ;;  %8101 = vmatpush1.bf16.msra.mxu1 %v11752_v26  ;;  %v12153_v2 = vld [vmem:[#allocation18_spill] sm:$0xff] }
 0x92e   :  { %v4003_v61 = vadd.f32 1.0, %v9182_v54  ;;  %8071 = vmatprep.subr.bf16.mxu0 %v11753_v38  ;;  %8103 = vmatprep.subr.bf16.mxu1 %v11754_v47  ;;  %v9184_v37 = vpop.eup %9183  ;;  %v12155_v54 = vld [vmem:[#allocation20_spill] sm:$0xff] }
 0x92f   :  { %9187 = vrcp.f32 %v4002_v21  ;;  %4223 = vmatprep.mubr.f32.mxu0 %v11675_v36  ;;  %4294 = vmatprep.mubr.f32.mxu1 %v11675_v36  ;;  %v9186_v55 = vpop.eup %9185  ;;  %v12154_v21 = vld [vmem:[#allocation19_spill] sm:$0xff] }
 0x930   :  { %9189 = vrcp.f32 %v4003_v61  ;;  %v4004_v29 = vadd.f32 1.0, %v9186_v55  ;;  %v12156_v61 = vld [vmem:[#allocation21_spill] sm:$0xff]  ;;  %v12158_v55 = vld [vmem:[#allocation23_spill] sm:$0xff] }
 0x931   :  { %8073 = vmatpush1.bf16.msra.mxu0 %v11755_v63  ;;  %8105 = vmatpush1.bf16.msra.mxu1 %v11817_v58 }
 0x932   :  { %8075 = vmatprep.subr.bf16.mxu0 %v11818_v50  ;;  %8107 = vmatprep.subr.bf16.mxu1 %v11819_v60  ;;  %9191 = vrcp.f32 %v4004_v29  ;;  %v12162_v29 = vld [vmem:[#allocation27_spill] sm:$0xff] }
 0x935   :  { %8077 = vmatpush1.bf16.msra.mxu0 %v11820_v5  ;;  %8109 = vmatpush1.bf16.msra.mxu1 %v11821_v17 }
 0x936   :  { %8079 = vmatprep.subr.bf16.mxu0 %v11822_v48  ;;  %8111 = vmatprep.subr.bf16.mxu1 %v11823_v32 }
 0x939   :  { %v9188_v41 = vpop.eup %9187  ;;  %8081 = vmatpush1.bf16.msra.mxu0 %v11763_v12  ;;  %8113 = vmatpush1.bf16.msra.mxu1 %v11764_v7 }
 0x93a   :  { %v4013_v59 = vmul.f32 %v9188_v41, %v9184_v37  ;;  %v9190_v42 = vpop.eup %9189  ;;  %8083 = vmatprep.subr.bf16.mxu0 %v11824_v6  ;;  %8115 = vmatprep.subr.bf16.mxu1 %v11884_v4  ;;  %v12157_v37 = vld [vmem:[#allocation22_spill] sm:$0xff]  ;;  %v12159_v41 = vld [vmem:[#allocation24_spill] sm:$0xff] }
 0x93b   :  { %v4012_v33 = vmul.f32 %v9190_v42, %v10630_v28  ;;  %v12161_v42 = vld [vmem:[#allocation26_spill] sm:$0xff] }
 0x93c   :  { %v9192_v28 = vpop.eup %9191 }
 0x93d   :  { %v10752_v20 = vadd.f32 %v4013_v59, %v4012_v33  ;;  %8085 = vmatpush1.bf16.msra.mxu0 %v11826_v18  ;;  %8117 = vmatpush1.bf16.msra.mxu1 %v11827_v9  ;;  %v12160_v59 = vld [vmem:[#allocation25_spill] sm:$0xff]  ;;  %v12163_v33 = vld [vmem:[#allocation28_spill] sm:$0xff] }
 0x93e   :  { %8087 = vmatprep.subr.bf16.mxu0 %v11828_v22  ;;  %8119 = vmatprep.subr.bf16.mxu1 %v11829_v43 }
 0x93f   :  { %9193 = vtanh.f32 %v10752_v20 }
 0x941   :  { %8089 = vmatpush1.bf16.msra.mxu0 %v11830_v40  ;;  %8121 = vmatpush1.bf16.msra.mxu1 %v11831_v45 }
 0x942   :  { %8091 = vmatprep.subr.bf16.mxu0 %v11832_v30  ;;  %8123 = vmatprep.subr.bf16.mxu1 %v11774_v62 }
 0x945   :  { %8093 = vmatpush1.bf16.msra.mxu0 %v11775_v8  ;;  %8125 = vmatpush1.bf16.msra.mxu1 %v11776_v49 }
 0x946   :  { %8095 = vmatprep.subr.bf16.mxu0 %v11777_v56  ;;  %8127 = vmatprep.subr.bf16.mxu1 %v11778_v1 }
 0x949   :  { %v9194_v23 = vpop.eup %9193  ;;  %8097 = vmatpush1.bf16.msra.mxu0 %v11779_v57  ;;  %8129 = vmatpush1.bf16.msra.mxu1 %v11780_v13 }
 0x94a   :  { %v4016_v46 = vmul.f32 %v9194_v23, %v9192_v28  ;;  %8131 = vmatprep.subr.bf16.mxu0 %v11781_v10  ;;  %8163 = vmatprep.subr.bf16.mxu1 %v11782_v34  ;;  %v12164_v28 = vld [vmem:[#allocation29_spill] sm:$0xff]  ;;  %v12165_v23 = vld [vmem:[#allocation30_spill] sm:$0xff] }
 0x94c   :  { %4224 = vmatmul.mubr.f32.vlgmr.msra.gmra.mrb[30].mxu0 %v4016_v46  ;;  %4295 = vmatmul.mubr.f32.vlgmr.msra.gmra.mrb[30].mxu1 %v4016_v46 }
 0x94d   :  { %8133 = vmatpush1.bf16.msra.mxu0 %v9529_v11  ;;  %8165 = vmatpush1.bf16.msra.mxu1 %v9532_v15 }
 0x94e   :  { %8135 = vmatprep.subr.bf16.mxu0 %v9536_v19  ;;  %8167 = vmatprep.subr.bf16.mxu1 %v12148_v35 }
 0x94f   :  { %4420 = vmatprep.mubr.f32.mxu0 %v11675_v36  ;;  %4491 = vmatprep.mubr.f32.mxu1 %v11675_v36 }
 0x951   :  { %8137 = vmatpush1.bf16.msra.mxu0 %v12149_v25  ;;  %8169 = vmatpush1.bf16.msra.mxu1 %v12150_v53 }
 0x952   :  { %8139 = vmatprep.subr.bf16.mxu0 %v12151_v39  ;;  %8171 = vmatprep.subr.bf16.mxu1 %v12152_v51  ;;  %v12212_v39 = vld [vmem:[#allocation113_spill] sm:$0xff] }
 0x955   :  { %8141 = vmatpush1.bf16.msra.mxu0 %v12153_v2  ;;  %8173 = vmatpush1.bf16.msra.mxu1 %v12154_v21  ;;  %v12210_v2 = vld [vmem:[#allocation106_spill] sm:$0xff] }
 0x956   :  { %8143 = vmatprep.subr.bf16.mxu0 %v12155_v54  ;;  %8175 = vmatprep.subr.bf16.mxu1 %v12156_v61  ;;  %v12166_v54 = vld [vmem:[#allocation31_spill] sm:$0xff]  ;;  %v12167_v61 = vld [vmem:[#allocation32_spill] sm:$0xff] }
 0x959   :  { %8145 = vmatpush1.bf16.msra.mxu0 %v12157_v37  ;;  %8177 = vmatpush1.bf16.msra.mxu1 %v12158_v55  ;;  %v12168_v37 = vld [vmem:[#allocation33_spill] sm:$0xff]  ;;  %v12169_v55 = vld [vmem:[#allocation34_spill] sm:$0xff] }
 0x95a   :  { %8147 = vmatprep.subr.bf16.mxu0 %v12159_v41  ;;  %8179 = vmatprep.subr.bf16.mxu1 %v12160_v59  ;;  %v12170_v41 = vld [vmem:[#allocation35_spill] sm:$0xff]  ;;  %v12171_v59 = vld [vmem:[#allocation36_spill] sm:$0xff] }
 0x95d   :  { %8149 = vmatpush1.bf16.msra.mxu0 %v12161_v42  ;;  %8181 = vmatpush1.bf16.msra.mxu1 %v12162_v29  ;;  %v12172_v42 = vld [vmem:[#allocation37_spill] sm:$0xff]  ;;  %v12173_v29 = vld [vmem:[#allocation38_spill] sm:$0xff] }
 0x95e   :  { %8151 = vmatprep.subr.bf16.mxu0 %v12163_v33  ;;  %8183 = vmatprep.subr.bf16.mxu1 %v12164_v28  ;;  %v12174_v33 = vld [vmem:[#allocation39_spill] sm:$0xff]  ;;  %v12175_v28 = vld [vmem:[#allocation40_spill] sm:$0xff] }
 0x961   :  { %8153 = vmatpush1.bf16.msra.mxu0 %v12165_v23  ;;  %8185 = vmatpush1.bf16.msra.mxu1 %v12166_v54  ;;  %v12176_v23 = vld [vmem:[#allocation41_spill] sm:$0xff] }
 0x962   :  { %8155 = vmatprep.subr.bf16.mxu0 %v12167_v61  ;;  %8187 = vmatprep.subr.bf16.mxu1 %v12168_v37  ;;  %v12177_v61 = vld [vmem:[#allocation42_spill] sm:$0xff]  ;;  %v12178_v37 = vld [vmem:[#allocation43_spill] sm:$0xff]  ;;  %v12209_v54 = vld [vmem:[#allocation105_spill] sm:$0xff] }
 0x965   :  { %8157 = vmatpush1.bf16.msra.mxu0 %v12169_v55  ;;  %8189 = vmatpush1.bf16.msra.mxu1 %v12170_v41  ;;  %v12179_v55 = vld [vmem:[#allocation44_spill] sm:$0xff]  ;;  %v12180_v41 = vld [vmem:[#allocation45_spill] sm:$0xff] }
 0x966   :  { %8159 = vmatprep.subr.bf16.mxu0 %v12171_v59  ;;  %8191 = vmatprep.subr.bf16.mxu1 %v12172_v42  ;;  %v12190_v42 = vld [vmem:[#allocation55_spill] sm:$0xff]  ;;  %v12191_v59 = vld [vmem:[#allocation56_spill] sm:$0xff] }
 0x969   :  { %8161 = vmatpush1.bf16.msra.mxu0 %v12173_v29  ;;  %8193 = vmatpush1.bf16.msra.mxu1 %v12174_v33  ;;  %v12181_v29 = vld [vmem:[#allocation46_spill] sm:$0xff]  ;;  %v12182_v33 = vld [vmem:[#allocation47_spill] sm:$0xff] }
 0x96a   :  { %8195 = vmatprep.subr.bf16.mxu0 %v12175_v28  ;;  %8227 = vmatprep.subr.bf16.mxu1 %v12176_v23  ;;  %v12183_v28 = vld [vmem:[#allocation48_spill] sm:$0xff]  ;;  %v12184_v23 = vld [vmem:[#allocation49_spill] sm:$0xff] }
 0x96c   :  { %4421 = vmatmul.mubr.f32.vlgmr.msra.gmra.mrb[32].mxu0 %v4016_v46  ;;  %4492 = vmatmul.mubr.f32.vlgmr.msra.gmra.mrb[32].mxu1 %v4016_v46  ;;  %v12185_v46 = vld [vmem:[#allocation50_spill] sm:$0xff] }
 0x96d   :  { %8197 = vmatpush1.bf16.msra.mxu0 %v12177_v61  ;;  %8229 = vmatpush1.bf16.msra.mxu1 %v12178_v37  ;;  %v12186_v61 = vld [vmem:[#allocation51_spill] sm:$0xff]  ;;  %v12187_v37 = vld [vmem:[#allocation52_spill] sm:$0xff] }
 0x96e   :  { %8199 = vmatprep.subr.bf16.mxu0 %v12179_v55  ;;  %8231 = vmatprep.subr.bf16.mxu1 %v12180_v41  ;;  %v12188_v55 = vld [vmem:[#allocation53_spill] sm:$0xff]  ;;  %v12189_v41 = vld [vmem:[#allocation54_spill] sm:$0xff] }
 0x96f   :  { %4590 = vmatprep.mubr.f32.mxu0 %v11675_v36  ;;  %4661 = vmatprep.mubr.f32.mxu1 %v11675_v36 }
 0x971   :  { %8201 = vmatpush1.bf16.msra.mxu0 %v12181_v29  ;;  %8233 = vmatpush1.bf16.msra.mxu1 %v12182_v33  ;;  %v12192_v29 = vld [vmem:[#allocation57_spill] sm:$0xff]  ;;  %v12193_v33 = vld [vmem:[#allocation58_spill] sm:$0xff] }
 0x972   :  { %8203 = vmatprep.subr.bf16.mxu0 %v12183_v28  ;;  %8235 = vmatprep.subr.bf16.mxu1 %v12184_v23  ;;  %v12194_v28 = vld [vmem:[#allocation59_spill] sm:$0xff]  ;;  %v12195_v23 = vld [vmem:[#allocation60_spill] sm:$0xff] }
 0x975   :  { %8205 = vmatpush1.bf16.msra.mxu0 %v12185_v46  ;;  %8237 = vmatpush1.bf16.msra.mxu1 %v12186_v61  ;;  %v12196_v46 = vld [vmem:[#allocation61_spill] sm:$0xff]  ;;  %v12197_v61 = vld [vmem:[#allocation62_spill] sm:$0xff] }
 0x976   :  { %8207 = vmatprep.subr.bf16.mxu0 %v12187_v37  ;;  %8239 = vmatprep.subr.bf16.mxu1 %v12188_v55  ;;  %v12198_v37 = vld [vmem:[#allocation63_spill] sm:$0xff]  ;;  %v12199_v55 = vld [vmem:[#allocation64_spill] sm:$0xff] }
 0x979   :  { %8209 = vmatpush1.bf16.msra.mxu0 %v12189_v41  ;;  %8241 = vmatpush1.bf16.msra.mxu1 %v12190_v42  ;;  %v12200_v41 = vld [vmem:[#allocation65_spill] sm:$0xff]  ;;  %v12201_v42 = vld [vmem:[#allocation66_spill] sm:$0xff] }
 0x97a   :  { %8211 = vmatprep.subr.bf16.mxu0 %v12191_v59  ;;  %8243 = vmatprep.subr.bf16.mxu1 %v12192_v29  ;;  %v12202_v59 = vld [vmem:[#allocation67_spill] sm:$0xff]  ;;  %v12203_v29 = vld [vmem:[#allocation68_spill] sm:$0xff] }
 0x97d   :  { %8213 = vmatpush1.bf16.msra.mxu0 %v12193_v33  ;;  %8245 = vmatpush1.bf16.msra.mxu1 %v12194_v28  ;;  %v12204_v33 = vld [vmem:[#allocation69_spill] sm:$0xff]  ;;  %v12205_v28 = vld [vmem:[#allocation70_spill] sm:$0xff] }
 0x97e   :  { %8215 = vmatprep.subr.bf16.mxu0 %v12195_v23  ;;  %8247 = vmatprep.subr.bf16.mxu1 %v12196_v46  ;;  %v12206_v23 = vld [vmem:[#allocation71_spill] sm:$0xff]  ;;  %v12207_v46 = vld [vmem:[#allocation72_spill] sm:$0xff] }
 0x981   :  { %8217 = vmatpush1.bf16.msra.mxu0 %v12197_v61  ;;  %8249 = vmatpush1.bf16.msra.mxu1 %v12198_v37  ;;  %v12208_v61 = vld [vmem:[#allocation73_spill] sm:$0xff] }
 0x982   :  { %8219 = vmatprep.subr.bf16.mxu0 %v12199_v55  ;;  %8251 = vmatprep.subr.bf16.mxu1 %v12200_v41 }
 0x985   :  { %8221 = vmatpush1.bf16.msra.mxu0 %v12201_v42  ;;  %8253 = vmatpush1.bf16.msra.mxu1 %v12202_v59 }
 0x986   :  { %8223 = vmatprep.subr.bf16.mxu0 %v12203_v29  ;;  %8255 = vmatprep.subr.bf16.mxu1 %v12204_v33  ;;  %v12211_v33 = vld [vmem:[#allocation109_spill] sm:$0xff] }
 0x989   :  { %8225 = vmatpush1.bf16.msra.mxu0 %v12205_v28  ;;  %8257 = vmatpush1.bf16.msra.mxu1 %v12206_v23 }
 0x98a   :  { %8259 = vmatprep.subr.bf16.mxu0 %v12207_v46  ;;  %8291 = vmatprep.subr.bf16.mxu1 %v12208_v61 }
 0xa1f   :  { %v4225_v37 = vpop.f32.mrb[30].mxu0  ;;  %v4296_v55 = vpop.f32.mrb[30].mxu1 }
 0xa20   :  { %v4301_v41 = vadd.f32 %v4225_v37, %v12209_v54  ;;  %v4227_v21 = vpop.f32.mrb[31].mxu0  ;;  %v4298_v42 = vpop.f32.mrb[31].mxu1  ;;  %v4303_v28 = vadd.f32 %v4296_v55, %v12211_v33 }
 0xa21   :  { %v4302_v59 = vadd.f32 %v4227_v21, %v12210_v2  ;;  %v4304_v23 = vadd.f32 %v4298_v42, %v12212_v39 }
 0xa22   :  { %v6566_v51 = vmul.f32 -1.442695, %v4301_v41  ;;  %v6568_v53 = vmul.f32 -1.442695, %v4303_v28 }
 0xa23   :  { %v6567_v29 = vmul.f32 -1.442695, %v4302_v59 }
 0xa24   :  { %9195 = vpow2.f32 %v6566_v51 }
 0xa25   :  { %9197 = vpow2.f32 %v6567_v29 }
 0xa26   :  { %9199 = vtanh.f32 %v4304_v23 }
 0xa27   :  { %9201 = vpow2.f32 %v6568_v53 }
 0xa2e   :  { %v9196_v46 = vpop.eup %9195 }
 0xa2f   :  { %v4314_v25 = vadd.f32 1.0, %v9196_v46  ;;  %v9198_v61 = vpop.eup %9197  ;;  %v10892_v46 = vld [vmem:[#allocation3] ss:$0 sm:$0xff] }
 0xa30   :  { %v4315_v37 = vadd.f32 1.0, %v9198_v61  ;;  %v9200_v54 = vpop.eup %9199 }
 0xa31   :  { %9203 = vrcp.f32 %v4314_v25  ;;  %v9202_v35 = vpop.eup %9201 }
 0xa32   :  { %9205 = vrcp.f32 %v4315_v37  ;;  %v4316_v51 = vadd.f32 1.0, %v9202_v35  ;;  %v10854_v35 = vld [vmem:[%s11386_s7] ss:$0 sm:$0xff] }
 0xa34   :  { %9207 = vrcp.f32 %v4316_v51 }
 0xa3b   :  { %v9204_v21 = vpop.eup %9203 }
 0xa3c   :  { %v4325_v41 = vmul.f32 %v9204_v21, %v9200_v54  ;;  %v9206_v59 = vpop.eup %9205 }
 0xa3d   :  { %v4324_v29 = vmul.f32 %v9206_v59, %v10726_v24  ;;  %v12213_v59 = vld [vmem:[#allocation107_spill] sm:$0xff] }
 0xa3e   :  { %v9208_v25 = vpop.eup %9207 }
 0xa3f   :  { %v4422_v55 = vpop.f32.mrb[32].mxu0  ;;  %v10844_v33 = vpop.f32.mrb[32].mxu1  ;;  %v10846_v42 = vadd.f32 %v4325_v41, %v4324_v29 }
 0xa40   :  { %v4424_v28 = vpop.f32.mrb[33].mxu0  ;;  %v10848_v23 = vpop.f32.mrb[33].mxu1 }
 0xa41   :  { %9209 = vtanh.f32 %v10846_v42 }
 0xa4b   :  { %v9210_v53 = vpop.eup %9209 }
 0xa4c   :  { %v4328_v61 = vmul.f32 %v9210_v53, %v9208_v25 }
 0xa4e   :  { %4330 = vst [vmem:[#allocation2 + $0xe] sm:$0x3] %v4328_v61  ;;  %4591 = vmatmul.mubr.f32.vlgmr.msra.gmra.mrb[34].mxu0 %v4328_v61  ;;  %4662 = vmatmul.mubr.f32.vlgmr.msra.gmra.mrb[34].mxu1 %v4328_v61  ;;  %v4331_v24 = vmul.f32 %v10854_v35, %v4328_v61 }
 0xa4f   :  { %8261 = vmatpush1.bf16.msra.mxu0 %v11751_v44  ;;  %8293 = vmatpush1.bf16.msra.mxu1 %v11752_v26 }
 0xa50   :  { %v4333_v54 = vsel %vm4332_vm0, %v4331_v24, 0.0  ;;  %8263 = vmatprep.subr.bf16.mxu0 %v11753_v38  ;;  %8295 = vmatprep.subr.bf16.mxu1 %v11754_v47 }
 0xa51   :  { %4334 = vadd.xlane.f32.xlu0 %v4333_v54  ;;  %4732 = vmatprep.mubr.f32.mxu0 %v11675_v36 }
 0xa52   :  { %4803 = vmatprep.mubr.f32.mxu1 %v11675_v36 }
 0xa53   :  { %8265 = vmatpush1.bf16.msra.mxu0 %v11755_v63  ;;  %8297 = vmatpush1.bf16.msra.mxu1 %v11817_v58 }
 0xa54   :  { %8267 = vmatprep.subr.bf16.mxu0 %v11818_v50  ;;  %8299 = vmatprep.subr.bf16.mxu1 %v11819_v60 }
 0xa57   :  { %8269 = vmatpush1.bf16.msra.mxu0 %v11820_v5  ;;  %8301 = vmatpush1.bf16.msra.mxu1 %v11821_v17 }
 0xa58   :  { %8271 = vmatprep.subr.bf16.mxu0 %v11822_v48  ;;  %8303 = vmatprep.subr.bf16.mxu1 %v11823_v32 }
 0xa5b   :  { %8273 = vmatpush1.bf16.msra.mxu0 %v11763_v12  ;;  %8305 = vmatpush1.bf16.msra.mxu1 %v11764_v7 }
 0xa5c   :  { %8275 = vmatprep.subr.bf16.mxu0 %v11824_v6  ;;  %8307 = vmatprep.subr.bf16.mxu1 %v11884_v4 }
 0xa5f   :  { %8277 = vmatpush1.bf16.msra.mxu0 %v11826_v18  ;;  %8309 = vmatpush1.bf16.msra.mxu1 %v11827_v9 }
 0xa60   :  { %8279 = vmatprep.subr.bf16.mxu0 %v11828_v22  ;;  %8311 = vmatprep.subr.bf16.mxu1 %v11829_v43 }
 0xa63   :  { %8281 = vmatpush1.bf16.msra.mxu0 %v11830_v40  ;;  %8313 = vmatpush1.bf16.msra.mxu1 %v11831_v45 }
 0xa64   :  { %8283 = vmatprep.subr.bf16.mxu0 %v11832_v30  ;;  %8315 = vmatprep.subr.bf16.mxu1 %v11774_v62 }
 0xa67   :  { %8285 = vmatpush1.bf16.msra.mxu0 %v11775_v8  ;;  %8317 = vmatpush1.bf16.msra.mxu1 %v11776_v49 }
 0xa68   :  { %8287 = vmatprep.subr.bf16.mxu0 %v11777_v56  ;;  %8319 = vmatprep.subr.bf16.mxu1 %v11778_v1 }
 0xa6b   :  { %8289 = vmatpush1.bf16.msra.mxu0 %v11779_v57  ;;  %8321 = vmatpush1.bf16.msra.mxu1 %v11780_v13 }
 0xa6c   :  { %8323 = vmatprep.subr.bf16.mxu0 %v11781_v10  ;;  %8355 = vmatprep.subr.bf16.mxu1 %v11782_v34 }
 0xade   :  { %v4335_v37 = vpop.xlane.xlu0 %4334 }
 0xadf   :  { %v4342_v21 = vadd.f32 %v10892_v46, %v4335_v37 }
 0xae1   :  { %4345 = vperm.xlu1 %8954, %v4342_v21  }
 0xb60   :  { %v4346_v41 = vpop.permute.xlu1 %4345 }
 0xb61   :  { %v4348_v51 = vmul.f32 %v4346_v41, %v12213_v59  ;;  %v4349_v29 = vmul.f32 %v4346_v41, %v11883_v3  ;;  %v4350_v61 = vmul.f32 %v4346_v41, %v11750_v14  ;;  %v4351_v37 = vmul.f32 %v4346_v41, %v9880_v52 }
 0xb63   :  { %v4352_v25 = vadd.f32 %v4348_v51, %v11747_v16  ;;  %v4353_v53 = vadd.f32 %v4349_v29, %v11748_v0  ;;  %v4354_v13 = vadd.f32 %v4350_v61, %v9876_v31  ;;  %v4355_v3 = vadd.f32 %v4351_v37, %v9884_v27  ;;  %v12218_v37 = vld [vmem:[#allocation17_spill] sm:$0xff] }
 0xb65   :  { %v4498_v24 = vadd.f32 %v4422_v55, %v4352_v25  ;;  %v4499_v54 = vadd.f32 %v4424_v28, %v4353_v53  ;;  %v4500_v21 = vadd.f32 %v10844_v33, %v4354_v13  ;;  %v4501_v51 = vadd.f32 %v10848_v23, %v4355_v3 }
 0xb67   :  { %v6570_v34 = vmul.f32 -1.442695, %v4498_v24  ;;  %v6571_v10 = vmul.f32 -1.442695, %v4499_v54  ;;  %v6572_v59 = vmul.f32 -1.442695, %v4500_v21 }
 0xb68   :  { %v12216_v24 = vld [vmem:[#allocation15_spill] sm:$0xff]  ;;  %v12217_v54 = vld [vmem:[#allocation16_spill] sm:$0xff]  ;;  %v12219_v21 = vld [vmem:[#allocation18_spill] sm:$0xff] }
 0xb69   :  { %9211 = vpow2.f32 %v6570_v34 }
 0xb6a   :  { %9213 = vpow2.f32 %v6571_v10 }
 0xb6b   :  { %9215 = vpow2.f32 %v6572_v59 }
 0xb6c   :  { %9217 = vtanh.f32 %v4501_v51  ;;  %v12220_v51 = vld [vmem:[#allocation19_spill] sm:$0xff] }
 0xb73   :  { %v9212_v29 = vpop.eup %9211 }
 0xb74   :  { %v9214_v0 = vpop.eup %9213  ;;  %v4511_v55 = vadd.f32 1.0, %v9212_v29  ;;  %v12221_v29 = vld [vmem:[#allocation20_spill] sm:$0xff] }
 0xb75   :  { %v4512_v28 = vadd.f32 1.0, %v9214_v0  ;;  %v9216_v25 = vpop.eup %9215  ;;  %v12214_v0 = vld [vmem:[#allocation13_spill] sm:$0xff] }
 0xb76   :  { %9219 = vrcp.f32 %v4511_v55  ;;  %v9218_v53 = vpop.eup %9217  ;;  %v4513_v10 = vadd.f32 1.0, %v9216_v25  ;;  %v12222_v55 = vld [vmem:[#allocation21_spill] sm:$0xff]  ;;  %v12224_v25 = vld [vmem:[#allocation23_spill] sm:$0xff] }
 0xb77   :  { %9221 = vrcp.f32 %v4512_v28  ;;  %v12223_v28 = vld [vmem:[#allocation22_spill] sm:$0xff] }
 0xb78   :  { %9223 = vrcp.f32 %v4513_v10  ;;  %v12228_v10 = vld [vmem:[#allocation27_spill] sm:$0xff] }
 0xb80   :  { %v9220_v41 = vpop.eup %9219 }
 0xb81   :  { %v9222_v34 = vpop.eup %9221  ;;  %v4522_v61 = vmul.f32 %v9220_v41, %v9218_v53  ;;  %v12225_v53 = vld [vmem:[#allocation24_spill] sm:$0xff]  ;;  %v12226_v41 = vld [vmem:[#allocation25_spill] sm:$0xff] }
 0xb82   :  { %v4521_v13 = vmul.f32 %v9222_v34, %v10752_v20  ;;  %v9224_v3 = vpop.eup %9223  ;;  %v12215_v20 = vld [vmem:[#allocation14_spill] sm:$0xff] }
 0xb83   :  { %v12227_v34 = vld [vmem:[#allocation26_spill] sm:$0xff] }
 0xb84   :  { %v10906_v33 = vadd.f32 %v4522_v61, %v4521_v13  ;;  %v12229_v61 = vld [vmem:[#allocation28_spill] sm:$0xff]  ;;  %v12230_v13 = vld [vmem:[#allocation29_spill] sm:$0xff] }
 0xb86   :  { %9225 = vtanh.f32 %v10906_v33 }
 0xb90   :  { %v9226_v23 = vpop.eup %9225 }
 0xb91   :  { %v4525_v59 = vmul.f32 %v9226_v23, %v9224_v3  ;;  %v12231_v3 = vld [vmem:[#allocation30_spill] sm:$0xff]  ;;  %v12232_v23 = vld [vmem:[#allocation31_spill] sm:$0xff] }
 0xb93   :  { %4733 = vmatmul.mubr.f32.vlgmr.msra.gmra.mrb[34].mxu0 %v4525_v59  ;;  %4804 = vmatmul.mubr.f32.vlgmr.msra.gmra.mrb[34].mxu1 %v4525_v59 }
 0xb94   :  { %8325 = vmatpush1.bf16.msra.mxu0 %v9529_v11  ;;  %8357 = vmatpush1.bf16.msra.mxu1 %v9532_v15 }
 0xb95   :  { %8327 = vmatprep.subr.bf16.mxu0 %v9536_v19  ;;  %8359 = vmatprep.subr.bf16.mxu1 %v12214_v0 }
 0xb96   :  { %4922 = vmatprep.mubr.f32.mxu0 %v11675_v36  ;;  %4993 = vmatprep.mubr.f32.mxu1 %v11675_v36 }
 0xb98   :  { %8329 = vmatpush1.bf16.msra.mxu0 %v12215_v20  ;;  %8361 = vmatpush1.bf16.msra.mxu1 %v12216_v24 }
 0xb99   :  { %8331 = vmatprep.subr.bf16.mxu0 %v12217_v54  ;;  %8363 = vmatprep.subr.bf16.mxu1 %v12218_v37 }
 0xb9c   :  { %8333 = vmatpush1.bf16.msra.mxu0 %v12219_v21  ;;  %8365 = vmatpush1.bf16.msra.mxu1 %v12220_v51 }
 0xb9d   :  { %8335 = vmatprep.subr.bf16.mxu0 %v12221_v29  ;;  %8367 = vmatprep.subr.bf16.mxu1 %v12222_v55  ;;  %v12233_v55 = vld [vmem:[#allocation32_spill] sm:$0xff] }
 0xba0   :  { %8337 = vmatpush1.bf16.msra.mxu0 %v12223_v28  ;;  %8369 = vmatpush1.bf16.msra.mxu1 %v12224_v25  ;;  %v12234_v28 = vld [vmem:[#allocation33_spill] sm:$0xff]  ;;  %v12235_v25 = vld [vmem:[#allocation34_spill] sm:$0xff] }
 0xba1   :  { %8339 = vmatprep.subr.bf16.mxu0 %v12225_v53  ;;  %8371 = vmatprep.subr.bf16.mxu1 %v12226_v41  ;;  %v12236_v53 = vld [vmem:[#allocation35_spill] sm:$0xff]  ;;  %v12237_v41 = vld [vmem:[#allocation36_spill] sm:$0xff] }
 0xba4   :  { %8341 = vmatpush1.bf16.msra.mxu0 %v12227_v34  ;;  %8373 = vmatpush1.bf16.msra.mxu1 %v12228_v10  ;;  %v12238_v34 = vld [vmem:[#allocation37_spill] sm:$0xff]  ;;  %v12239_v10 = vld [vmem:[#allocation38_spill] sm:$0xff] }
 0xba5   :  { %8343 = vmatprep.subr.bf16.mxu0 %v12229_v61  ;;  %8375 = vmatprep.subr.bf16.mxu1 %v12230_v13  ;;  %v12240_v61 = vld [vmem:[#allocation39_spill] sm:$0xff]  ;;  %v12241_v13 = vld [vmem:[#allocation40_spill] sm:$0xff] }
 0xba8   :  { %8345 = vmatpush1.bf16.msra.mxu0 %v12231_v3  ;;  %8377 = vmatpush1.bf16.msra.mxu1 %v12232_v23  ;;  %v12242_v3 = vld [vmem:[#allocation41_spill] sm:$0xff] }
 0xba9   :  { %8347 = vmatprep.subr.bf16.mxu0 %v12233_v55  ;;  %8379 = vmatprep.subr.bf16.mxu1 %v12234_v28  ;;  %v12243_v55 = vld [vmem:[#allocation42_spill] sm:$0xff]  ;;  %v12244_v28 = vld [vmem:[#allocation43_spill] sm:$0xff]  ;;  %v12275_v23 = vld [vmem:[#allocation105_spill] sm:$0xff] }
 0xbac   :  { %8349 = vmatpush1.bf16.msra.mxu0 %v12235_v25  ;;  %8381 = vmatpush1.bf16.msra.mxu1 %v12236_v53  ;;  %v12245_v25 = vld [vmem:[#allocation44_spill] sm:$0xff]  ;;  %v12246_v53 = vld [vmem:[#allocation45_spill] sm:$0xff] }
 0xbad   :  { %8351 = vmatprep.subr.bf16.mxu0 %v12237_v41  ;;  %8383 = vmatprep.subr.bf16.mxu1 %v12238_v34  ;;  %v12256_v34 = vld [vmem:[#allocation55_spill] sm:$0xff]  ;;  %v12257_v41 = vld [vmem:[#allocation56_spill] sm:$0xff] }
 0xbb0   :  { %8353 = vmatpush1.bf16.msra.mxu0 %v12239_v10  ;;  %8385 = vmatpush1.bf16.msra.mxu1 %v12240_v61  ;;  %v12247_v10 = vld [vmem:[#allocation46_spill] sm:$0xff]  ;;  %v12248_v61 = vld [vmem:[#allocation47_spill] sm:$0xff] }
 0xbb1   :  { %8387 = vmatprep.subr.bf16.mxu0 %v12241_v13  ;;  %8419 = vmatprep.subr.bf16.mxu1 %v12242_v3  ;;  %v12249_v13 = vld [vmem:[#allocation48_spill] sm:$0xff]  ;;  %v12250_v3 = vld [vmem:[#allocation49_spill] sm:$0xff] }
 0xbb3   :  { %4923 = vmatmul.mubr.f32.vlgmr.msra.gmra.mrb[36].mxu0 %v4525_v59  ;;  %4994 = vmatmul.mubr.f32.vlgmr.msra.gmra.mrb[36].mxu1 %v4525_v59  ;;  %v12251_v59 = vld [vmem:[#allocation50_spill] sm:$0xff] }
 0xbb4   :  { %8389 = vmatpush1.bf16.msra.mxu0 %v12243_v55  ;;  %8421 = vmatpush1.bf16.msra.mxu1 %v12244_v28  ;;  %v12252_v55 = vld [vmem:[#allocation51_spill] sm:$0xff]  ;;  %v12253_v28 = vld [vmem:[#allocation52_spill] sm:$0xff] }
 0xbb5   :  { %8391 = vmatprep.subr.bf16.mxu0 %v12245_v25  ;;  %8423 = vmatprep.subr.bf16.mxu1 %v12246_v53  ;;  %v12254_v25 = vld [vmem:[#allocation53_spill] sm:$0xff]  ;;  %v12255_v53 = vld [vmem:[#allocation54_spill] sm:$0xff] }
 0xbb6   :  { %5092 = vmatprep.mubr.f32.mxu0 %v11675_v36  ;;  %5163 = vmatprep.mubr.f32.mxu1 %v11675_v36 }
 0xbb8   :  { %8393 = vmatpush1.bf16.msra.mxu0 %v12247_v10  ;;  %8425 = vmatpush1.bf16.msra.mxu1 %v12248_v61  ;;  %v12258_v10 = vld [vmem:[#allocation57_spill] sm:$0xff]  ;;  %v12259_v61 = vld [vmem:[#allocation58_spill] sm:$0xff] }
 0xbb9   :  { %8395 = vmatprep.subr.bf16.mxu0 %v12249_v13  ;;  %8427 = vmatprep.subr.bf16.mxu1 %v12250_v3  ;;  %v12260_v13 = vld [vmem:[#allocation59_spill] sm:$0xff]  ;;  %v12261_v3 = vld [vmem:[#allocation60_spill] sm:$0xff] }
 0xbbc   :  { %8397 = vmatpush1.bf16.msra.mxu0 %v12251_v59  ;;  %8429 = vmatpush1.bf16.msra.mxu1 %v12252_v55  ;;  %v12262_v59 = vld [vmem:[#allocation61_spill] sm:$0xff]  ;;  %v12263_v55 = vld [vmem:[#allocation62_spill] sm:$0xff] }
 0xbbd   :  { %8399 = vmatprep.subr.bf16.mxu0 %v12253_v28  ;;  %8431 = vmatprep.subr.bf16.mxu1 %v12254_v25  ;;  %v12264_v28 = vld [vmem:[#allocation63_spill] sm:$0xff]  ;;  %v12265_v25 = vld [vmem:[#allocation64_spill] sm:$0xff] }
 0xbc0   :  { %8401 = vmatpush1.bf16.msra.mxu0 %v12255_v53  ;;  %8433 = vmatpush1.bf16.msra.mxu1 %v12256_v34  ;;  %v12266_v53 = vld [vmem:[#allocation65_spill] sm:$0xff]  ;;  %v12267_v34 = vld [vmem:[#allocation66_spill] sm:$0xff] }
 0xbc1   :  { %8403 = vmatprep.subr.bf16.mxu0 %v12257_v41  ;;  %8435 = vmatprep.subr.bf16.mxu1 %v12258_v10  ;;  %v12268_v41 = vld [vmem:[#allocation67_spill] sm:$0xff]  ;;  %v12269_v10 = vld [vmem:[#allocation68_spill] sm:$0xff] }
 0xbc4   :  { %8405 = vmatpush1.bf16.msra.mxu0 %v12259_v61  ;;  %8437 = vmatpush1.bf16.msra.mxu1 %v12260_v13  ;;  %v12270_v61 = vld [vmem:[#allocation69_spill] sm:$0xff]  ;;  %v12271_v13 = vld [vmem:[#allocation70_spill] sm:$0xff] }
 0xbc5   :  { %8407 = vmatprep.subr.bf16.mxu0 %v12261_v3  ;;  %8439 = vmatprep.subr.bf16.mxu1 %v12262_v59  ;;  %v12272_v3 = vld [vmem:[#allocation71_spill] sm:$0xff]  ;;  %v12273_v59 = vld [vmem:[#allocation72_spill] sm:$0xff] }
 0xbc8   :  { %8409 = vmatpush1.bf16.msra.mxu0 %v12263_v55  ;;  %8441 = vmatpush1.bf16.msra.mxu1 %v12264_v28  ;;  %v12274_v55 = vld [vmem:[#allocation73_spill] sm:$0xff] }
 0xbc9   :  { %8411 = vmatprep.subr.bf16.mxu0 %v12265_v25  ;;  %8443 = vmatprep.subr.bf16.mxu1 %v12266_v53 }
 0xbcc   :  { %8413 = vmatpush1.bf16.msra.mxu0 %v12267_v34  ;;  %8445 = vmatpush1.bf16.msra.mxu1 %v12268_v41 }
 0xbcd   :  { %8415 = vmatprep.subr.bf16.mxu0 %v12269_v10  ;;  %8447 = vmatprep.subr.bf16.mxu1 %v12270_v61  ;;  %v12276_v61 = vld [vmem:[#allocation109_spill] sm:$0xff] }
 0xbd0   :  { %8417 = vmatpush1.bf16.msra.mxu0 %v12271_v13  ;;  %8449 = vmatpush1.bf16.msra.mxu1 %v12272_v3 }
 0xbd1   :  { %8451 = vmatprep.subr.bf16.mxu0 %v12273_v59  ;;  %8483 = vmatprep.subr.bf16.mxu1 %v12274_v55 }
 0xc66   :  { %v4734_v28 = vpop.f32.mrb[34].mxu0  ;;  %v4805_v25 = vpop.f32.mrb[34].mxu1 }
 0xc67   :  { %v4810_v53 = vadd.f32 %v4734_v28, %v12275_v23  ;;  %v4736_v29 = vpop.f32.mrb[35].mxu0  ;;  %v4807_v34 = vpop.f32.mrb[35].mxu1  ;;  %v4812_v13 = vadd.f32 %v4805_v25, %v12276_v61 }
 0xc68   :  { %v4811_v41 = vadd.f32 %v4736_v29, %v12210_v2  ;;  %v4813_v3 = vadd.f32 %v4807_v34, %v12212_v39 }
 0xc69   :  { %v6573_v51 = vmul.f32 -1.442695, %v4810_v53  ;;  %v6575_v21 = vmul.f32 -1.442695, %v4812_v13 }
 0xc6a   :  { %v6574_v10 = vmul.f32 -1.442695, %v4811_v41 }
 0xc6b   :  { %9227 = vpow2.f32 %v6573_v51 }
 0xc6c   :  { %9229 = vpow2.f32 %v6574_v10 }
 0xc6d   :  { %9231 = vtanh.f32 %v4813_v3 }
 0xc6e   :  { %9233 = vpow2.f32 %v6575_v21 }
 0xc75   :  { %v9228_v59 = vpop.eup %9227 }
 0xc76   :  { %v4823_v37 = vadd.f32 1.0, %v9228_v59  ;;  %v9230_v55 = vpop.eup %9229  ;;  %v12278_v59 = vld [vmem:[#allocation11_spill] sm:$0xff] }
 0xc77   :  { %v4824_v28 = vadd.f32 1.0, %v9230_v55  ;;  %v9232_v23 = vpop.eup %9231 }
 0xc78   :  { %9235 = vrcp.f32 %v4823_v37  ;;  %v9234_v54 = vpop.eup %9233 }
 0xc79   :  { %9237 = vrcp.f32 %v4824_v28  ;;  %v4825_v51 = vadd.f32 1.0, %v9234_v54  ;;  %v12279_v28 = vld [vmem:[#allocation12_spill] sm:$0xff] }
 0xc7b   :  { %9239 = vrcp.f32 %v4825_v51  ;;  %v12280_v51 = vld [vmem:[#allocation107_spill] sm:$0xff] }
 0xc82   :  { %v9236_v29 = vpop.eup %9235 }
 0xc83   :  { %v4834_v53 = vmul.f32 %v9236_v29, %v9232_v23  ;;  %v9238_v41 = vpop.eup %9237  ;;  %v12277_v23 = vld [vmem:[#allocation103_spill] sm:$0xff] }
 0xc84   :  { %v4833_v10 = vmul.f32 %v9238_v41, %v10846_v42 }
 0xc85   :  { %v9240_v37 = vpop.eup %9239 }
 0xc86   :  { %v4924_v25 = vpop.f32.mrb[36].mxu0  ;;  %v10982_v61 = vpop.f32.mrb[36].mxu1  ;;  %v10984_v34 = vadd.f32 %v4834_v53, %v4833_v10 }
 0xc87   :  { %v4926_v13 = vpop.f32.mrb[37].mxu0  ;;  %v10986_v3 = vpop.f32.mrb[37].mxu1 }
 0xc88   :  { %9241 = vtanh.f32 %v10984_v34 }
 0xc92   :  { %v9242_v21 = vpop.eup %9241 }
 0xc93   :  { %v4837_v55 = vmul.f32 %v9242_v21, %v9240_v37  ;;  %v12281_v37 = vld [vmem:[#allocation108_spill] sm:$0xff] }
 0xc95   :  { %4839 = vst [vmem:[#allocation2 + $0x10] sm:$0x3] %v4837_v55  ;;  %5093 = vmatmul.mubr.f32.vlgmr.msra.gmra.mrb[38].mxu0 %v4837_v55  ;;  %5164 = vmatmul.mubr.f32.vlgmr.msra.gmra.mrb[38].mxu1 %v4837_v55  ;;  %v4840_v54 = vmul.f32 %v10854_v35, %v4837_v55 }
 0xc96   :  { %8453 = vmatpush1.bf16.msra.mxu0 %v11751_v44  ;;  %8485 = vmatpush1.bf16.msra.mxu1 %v11752_v26 }
 0xc97   :  { %v4841_v42 = vsel %vm4332_vm0, %v4840_v54, 0.0  ;;  %8455 = vmatprep.subr.bf16.mxu0 %v11753_v38  ;;  %8487 = vmatprep.subr.bf16.mxu1 %v11754_v47  ;;  %v12282_v54 = vld [vmem:[#allocation111_spill] sm:$0xff] }
 0xc98   :  { %4842 = vadd.xlane.f32.xlu1 %v4841_v42  ;;  %5234 = vmatprep.mubr.f32.mxu0 %v11675_v36 }
 0xc99   :  { %5305 = vmatprep.mubr.f32.mxu1 %v11675_v36 }
 0xc9a   :  { %8457 = vmatpush1.bf16.msra.mxu0 %v11755_v63  ;;  %8489 = vmatpush1.bf16.msra.mxu1 %v11817_v58 }
 0xc9b   :  { %8459 = vmatprep.subr.bf16.mxu0 %v11818_v50  ;;  %8491 = vmatprep.subr.bf16.mxu1 %v11819_v60 }
 0xc9e   :  { %8461 = vmatpush1.bf16.msra.mxu0 %v11820_v5  ;;  %8493 = vmatpush1.bf16.msra.mxu1 %v11821_v17 }
 0xc9f   :  { %8463 = vmatprep.subr.bf16.mxu0 %v11822_v48  ;;  %8495 = vmatprep.subr.bf16.mxu1 %v11823_v32 }
 0xca2   :  { %8465 = vmatpush1.bf16.msra.mxu0 %v11763_v12  ;;  %8497 = vmatpush1.bf16.msra.mxu1 %v11764_v7 }
 0xca3   :  { %8467 = vmatprep.subr.bf16.mxu0 %v11824_v6  ;;  %8499 = vmatprep.subr.bf16.mxu1 %v11884_v4 }
 0xca6   :  { %8469 = vmatpush1.bf16.msra.mxu0 %v11826_v18  ;;  %8501 = vmatpush1.bf16.msra.mxu1 %v11827_v9 }
 0xca7   :  { %8471 = vmatprep.subr.bf16.mxu0 %v11828_v22  ;;  %8503 = vmatprep.subr.bf16.mxu1 %v11829_v43 }
 0xcaa   :  { %8473 = vmatpush1.bf16.msra.mxu0 %v11830_v40  ;;  %8505 = vmatpush1.bf16.msra.mxu1 %v11831_v45 }
 0xcab   :  { %8475 = vmatprep.subr.bf16.mxu0 %v11832_v30  ;;  %8507 = vmatprep.subr.bf16.mxu1 %v11774_v62 }
 0xcae   :  { %8477 = vmatpush1.bf16.msra.mxu0 %v11775_v8  ;;  %8509 = vmatpush1.bf16.msra.mxu1 %v11776_v49 }
 0xcaf   :  { %8479 = vmatprep.subr.bf16.mxu0 %v11777_v56  ;;  %8511 = vmatprep.subr.bf16.mxu1 %v11778_v1 }
 0xcb2   :  { %8481 = vmatpush1.bf16.msra.mxu0 %v11779_v57  ;;  %8513 = vmatpush1.bf16.msra.mxu1 %v12277_v23 }
 0xcb3   :  { %8515 = vmatprep.subr.bf16.mxu0 %v12278_v59  ;;  %8547 = vmatprep.subr.bf16.mxu1 %v12279_v28 }
 0xd25   :  { %v4843_v29 = vpop.xlane.xlu1 %4842 }
 0xd26   :  { %v4844_v53 = vadd.f32 %v10892_v46, %v4843_v29 }
 0xd28   :  { %4847 = vperm.xlu0 %8953, %v4844_v53  }
 0xda7   :  { %v4848_v41 = vpop.permute.xlu0 %4847 }
 0xda8   :  { %v4850_v10 = vmul.f32 %v4848_v41, %v12280_v51  ;;  %v4851_v21 = vmul.f32 %v4848_v41, %v12281_v37  ;;  %v4852_v57 = vmul.f32 %v4848_v41, %v11750_v14  ;;  %v4853_v29 = vmul.f32 %v4848_v41, %v9880_v52 }
 0xdaa   :  { %v4854_v55 = vadd.f32 %v4850_v10, %v11747_v16  ;;  %v4855_v42 = vadd.f32 %v4851_v21, %v12282_v54  ;;  %v4856_v28 = vadd.f32 %v4852_v57, %v9876_v31  ;;  %v4857_v37 = vadd.f32 %v4853_v29, %v9884_v27  ;;  %v12287_v29 = vld [vmem:[#allocation20_spill] sm:$0xff] }
 0xdac   :  { %v5000_v23 = vadd.f32 %v4924_v25, %v4854_v55  ;;  %v5001_v1 = vadd.f32 %v4926_v13, %v4855_v42  ;;  %v5002_v53 = vadd.f32 %v10982_v61, %v4856_v28  ;;  %v5003_v10 = vadd.f32 %v10986_v3, %v4857_v37  ;;  %v12284_v55 = vld [vmem:[#allocation17_spill] sm:$0xff]  ;;  %v12286_v42 = vld [vmem:[#allocation19_spill] sm:$0xff] }
 0xdae   :  { %v6576_v59 = vmul.f32 -1.442695, %v5000_v23  ;;  %v6577_v56 = vmul.f32 -1.442695, %v5001_v1  ;;  %v6578_v51 = vmul.f32 -1.442695, %v5002_v53 }
 0xdaf   :  { %v12288_v53 = vld [vmem:[#allocation21_spill] sm:$0xff] }
 0xdb0   :  { %9243 = vpow2.f32 %v6576_v59 }
 0xdb1   :  { %9245 = vpow2.f32 %v6577_v56 }
 0xdb2   :  { %9247 = vpow2.f32 %v6578_v51 }
 0xdb3   :  { %9249 = vtanh.f32 %v5003_v10  ;;  %v12289_v10 = vld [vmem:[#allocation22_spill] sm:$0xff] }
 0xdba   :  { %v9244_v21 = vpop.eup %9243 }
 0xdbb   :  { %v9246_v54 = vpop.eup %9245  ;;  %v5013_v25 = vadd.f32 1.0, %v9244_v21  ;;  %v12290_v21 = vld [vmem:[#allocation23_spill] sm:$0xff] }
 0xdbc   :  { %v5014_v13 = vadd.f32 1.0, %v9246_v54  ;;  %v9248_v57 = vpop.eup %9247  ;;  %v12285_v54 = vld [vmem:[#allocation18_spill] sm:$0xff] }
 0xdbd   :  { %9251 = vrcp.f32 %v5013_v25  ;;  %v9250_v1 = vpop.eup %9249  ;;  %v5015_v56 = vadd.f32 1.0, %v9248_v57  ;;  %v12291_v25 = vld [vmem:[#allocation24_spill] sm:$0xff]  ;;  %v12293_v57 = vld [vmem:[#allocation26_spill] sm:$0xff] }
 0xdbe   :  { %9253 = vrcp.f32 %v5014_v13  ;;  %v12292_v13 = vld [vmem:[#allocation25_spill] sm:$0xff] }
 0xdbf   :  { %9255 = vrcp.f32 %v5015_v56  ;;  %v12297_v56 = vld [vmem:[#allocation30_spill] sm:$0xff] }
 0xdc7   :  { %v9252_v23 = vpop.eup %9251 }
 0xdc8   :  { %v9254_v59 = vpop.eup %9253  ;;  %v5024_v41 = vmul.f32 %v9252_v23, %v9250_v1  ;;  %v12294_v1 = vld [vmem:[#allocation27_spill] sm:$0xff]  ;;  %v12295_v23 = vld [vmem:[#allocation28_spill] sm:$0xff] }
 0xdc9   :  { %v5023_v61 = vmul.f32 %v9254_v59, %v10906_v33  ;;  %v9256_v3 = vpop.eup %9255  ;;  %v12283_v33 = vld [vmem:[#allocation16_spill] sm:$0xff]  ;;  %v12296_v59 = vld [vmem:[#allocation29_spill] sm:$0xff] }
 0xdcb   :  { %v11037_v28 = vadd.f32 %v5024_v41, %v5023_v61  ;;  %v12298_v41 = vld [vmem:[#allocation31_spill] sm:$0xff]  ;;  %v12299_v61 = vld [vmem:[#allocation32_spill] sm:$0xff] }
 0xdcd   :  { %9257 = vtanh.f32 %v11037_v28 }
 0xdd7   :  { %v9258_v51 = vpop.eup %9257 }
 0xdd8   :  { %v5027_v37 = vmul.f32 %v9258_v51, %v9256_v3  ;;  %v12300_v3 = vld [vmem:[#allocation33_spill] sm:$0xff]  ;;  %v12301_v51 = vld [vmem:[#allocation34_spill] sm:$0xff] }
 0xdda   :  { %5235 = vmatmul.mubr.f32.vlgmr.msra.gmra.mrb[38].mxu0 %v5027_v37  ;;  %5306 = vmatmul.mubr.f32.vlgmr.msra.gmra.mrb[38].mxu1 %v5027_v37 }
 0xddb   :  { %8517 = vmatpush1.bf16.msra.mxu0 %v9529_v11  ;;  %8549 = vmatpush1.bf16.msra.mxu1 %v9532_v15 }
 0xddc   :  { %8519 = vmatprep.subr.bf16.mxu0 %v9536_v19  ;;  %8551 = vmatprep.subr.bf16.mxu1 %v12214_v0 }
 0xddd   :  { %5424 = vmatprep.mubr.f32.mxu0 %v11675_v36  ;;  %5495 = vmatprep.mubr.f32.mxu1 %v11675_v36 }
 0xddf   :  { %8521 = vmatpush1.bf16.msra.mxu0 %v12215_v20  ;;  %8553 = vmatpush1.bf16.msra.mxu1 %v12216_v24 }
 0xde0   :  { %8523 = vmatprep.subr.bf16.mxu0 %v12283_v33  ;;  %8555 = vmatprep.subr.bf16.mxu1 %v12284_v55 }
 0xde3   :  { %8525 = vmatpush1.bf16.msra.mxu0 %v12285_v54  ;;  %8557 = vmatpush1.bf16.msra.mxu1 %v12286_v42 }
 0xde4   :  { %8527 = vmatprep.subr.bf16.mxu0 %v12287_v29  ;;  %8559 = vmatprep.subr.bf16.mxu1 %v12288_v53 }
 0xde7   :  { %8529 = vmatpush1.bf16.msra.mxu0 %v12289_v10  ;;  %8561 = vmatpush1.bf16.msra.mxu1 %v12290_v21 }
 0xde8   :  { %8531 = vmatprep.subr.bf16.mxu0 %v12291_v25  ;;  %8563 = vmatprep.subr.bf16.mxu1 %v12292_v13  ;;  %v12302_v25 = vld [vmem:[#allocation35_spill] sm:$0xff]  ;;  %v12303_v13 = vld [vmem:[#allocation36_spill] sm:$0xff] }
 0xdeb   :  { %8533 = vmatpush1.bf16.msra.mxu0 %v12293_v57  ;;  %8565 = vmatpush1.bf16.msra.mxu1 %v12294_v1  ;;  %v12304_v57 = vld [vmem:[#allocation37_spill] sm:$0xff]  ;;  %v12305_v1 = vld [vmem:[#allocation38_spill] sm:$0xff] }
 0xdec   :  { %8535 = vmatprep.subr.bf16.mxu0 %v12295_v23  ;;  %8567 = vmatprep.subr.bf16.mxu1 %v12296_v59  ;;  %v12306_v23 = vld [vmem:[#allocation39_spill] sm:$0xff]  ;;  %v12307_v59 = vld [vmem:[#allocation40_spill] sm:$0xff] }
 0xdef   :  { %8537 = vmatpush1.bf16.msra.mxu0 %v12297_v56  ;;  %8569 = vmatpush1.bf16.msra.mxu1 %v12298_v41  ;;  %v12308_v56 = vld [vmem:[#allocation41_spill] sm:$0xff] }
 0xdf0   :  { %8539 = vmatprep.subr.bf16.mxu0 %v12299_v61  ;;  %8571 = vmatprep.subr.bf16.mxu1 %v12300_v3  ;;  %v12309_v61 = vld [vmem:[#allocation42_spill] sm:$0xff]  ;;  %v12310_v3 = vld [vmem:[#allocation43_spill] sm:$0xff]  ;;  %v12341_v41 = vld [vmem:[#allocation105_spill] sm:$0xff] }
 0xdf3   :  { %8541 = vmatpush1.bf16.msra.mxu0 %v12301_v51  ;;  %8573 = vmatpush1.bf16.msra.mxu1 %v12302_v25  ;;  %v12311_v51 = vld [vmem:[#allocation44_spill] sm:$0xff]  ;;  %v12312_v25 = vld [vmem:[#allocation45_spill] sm:$0xff] }
 0xdf4   :  { %8543 = vmatprep.subr.bf16.mxu0 %v12303_v13  ;;  %8575 = vmatprep.subr.bf16.mxu1 %v12304_v57  ;;  %v12322_v57 = vld [vmem:[#allocation55_spill] sm:$0xff]  ;;  %v12323_v13 = vld [vmem:[#allocation56_spill] sm:$0xff] }
 0xdf7   :  { %8545 = vmatpush1.bf16.msra.mxu0 %v12305_v1  ;;  %8577 = vmatpush1.bf16.msra.mxu1 %v12306_v23  ;;  %v12313_v1 = vld [vmem:[#allocation46_spill] sm:$0xff]  ;;  %v12314_v23 = vld [vmem:[#allocation47_spill] sm:$0xff] }
 0xdf8   :  { %8579 = vmatprep.subr.bf16.mxu0 %v12307_v59  ;;  %8611 = vmatprep.subr.bf16.mxu1 %v12308_v56  ;;  %v12315_v59 = vld [vmem:[#allocation48_spill] sm:$0xff]  ;;  %v12316_v56 = vld [vmem:[#allocation49_spill] sm:$0xff] }
 0xdfa   :  { %5425 = vmatmul.mubr.f32.vlgmr.msra.gmra.mrb[40].mxu0 %v5027_v37  ;;  %5496 = vmatmul.mubr.f32.vlgmr.msra.gmra.mrb[40].mxu1 %v5027_v37  ;;  %v12317_v37 = vld [vmem:[#allocation50_spill] sm:$0xff] }
 0xdfb   :  { %8581 = vmatpush1.bf16.msra.mxu0 %v12309_v61  ;;  %8613 = vmatpush1.bf16.msra.mxu1 %v12310_v3  ;;  %v12318_v61 = vld [vmem:[#allocation51_spill] sm:$0xff]  ;;  %v12319_v3 = vld [vmem:[#allocation52_spill] sm:$0xff] }
 0xdfc   :  { %8583 = vmatprep.subr.bf16.mxu0 %v12311_v51  ;;  %8615 = vmatprep.subr.bf16.mxu1 %v12312_v25  ;;  %v12320_v51 = vld [vmem:[#allocation53_spill] sm:$0xff]  ;;  %v12321_v25 = vld [vmem:[#allocation54_spill] sm:$0xff] }
 0xdfd   :  { %5594 = vmatprep.mubr.f32.mxu0 %v11675_v36  ;;  %5665 = vmatprep.mubr.f32.mxu1 %v11675_v36 }
 0xdff   :  { %8585 = vmatpush1.bf16.msra.mxu0 %v12313_v1  ;;  %8617 = vmatpush1.bf16.msra.mxu1 %v12314_v23  ;;  %v12324_v1 = vld [vmem:[#allocation57_spill] sm:$0xff]  ;;  %v12325_v23 = vld [vmem:[#allocation58_spill] sm:$0xff] }
 0xe00   :  { %8587 = vmatprep.subr.bf16.mxu0 %v12315_v59  ;;  %8619 = vmatprep.subr.bf16.mxu1 %v12316_v56  ;;  %v12326_v59 = vld [vmem:[#allocation59_spill] sm:$0xff]  ;;  %v12327_v56 = vld [vmem:[#allocation60_spill] sm:$0xff] }
 0xe03   :  { %8589 = vmatpush1.bf16.msra.mxu0 %v12317_v37  ;;  %8621 = vmatpush1.bf16.msra.mxu1 %v12318_v61  ;;  %v12328_v37 = vld [vmem:[#allocation61_spill] sm:$0xff]  ;;  %v12329_v61 = vld [vmem:[#allocation62_spill] sm:$0xff] }
 0xe04   :  { %8591 = vmatprep.subr.bf16.mxu0 %v12319_v3  ;;  %8623 = vmatprep.subr.bf16.mxu1 %v12320_v51  ;;  %v12330_v3 = vld [vmem:[#allocation63_spill] sm:$0xff]  ;;  %v12331_v51 = vld [vmem:[#allocation64_spill] sm:$0xff] }
 0xe07   :  { %8593 = vmatpush1.bf16.msra.mxu0 %v12321_v25  ;;  %8625 = vmatpush1.bf16.msra.mxu1 %v12322_v57  ;;  %v12332_v25 = vld [vmem:[#allocation65_spill] sm:$0xff]  ;;  %v12333_v57 = vld [vmem:[#allocation66_spill] sm:$0xff] }
 0xe08   :  { %8595 = vmatprep.subr.bf16.mxu0 %v12323_v13  ;;  %8627 = vmatprep.subr.bf16.mxu1 %v12324_v1  ;;  %v12334_v13 = vld [vmem:[#allocation67_spill] sm:$0xff]  ;;  %v12335_v1 = vld [vmem:[#allocation68_spill] sm:$0xff] }
 0xe0b   :  { %8597 = vmatpush1.bf16.msra.mxu0 %v12325_v23  ;;  %8629 = vmatpush1.bf16.msra.mxu1 %v12326_v59  ;;  %v12336_v23 = vld [vmem:[#allocation69_spill] sm:$0xff]  ;;  %v12337_v59 = vld [vmem:[#allocation70_spill] sm:$0xff] }
 0xe0c   :  { %8599 = vmatprep.subr.bf16.mxu0 %v12327_v56  ;;  %8631 = vmatprep.subr.bf16.mxu1 %v12328_v37  ;;  %v12338_v56 = vld [vmem:[#allocation71_spill] sm:$0xff]  ;;  %v12339_v37 = vld [vmem:[#allocation72_spill] sm:$0xff] }
 0xe0f   :  { %8601 = vmatpush1.bf16.msra.mxu0 %v12329_v61  ;;  %8633 = vmatpush1.bf16.msra.mxu1 %v12330_v3  ;;  %v12340_v61 = vld [vmem:[#allocation73_spill] sm:$0xff] }
 0xe10   :  { %8603 = vmatprep.subr.bf16.mxu0 %v12331_v51  ;;  %8635 = vmatprep.subr.bf16.mxu1 %v12332_v25 }
 0xe13   :  { %8605 = vmatpush1.bf16.msra.mxu0 %v12333_v57  ;;  %8637 = vmatpush1.bf16.msra.mxu1 %v12334_v13 }
 0xe14   :  { %8607 = vmatprep.subr.bf16.mxu0 %v12335_v1  ;;  %8639 = vmatprep.subr.bf16.mxu1 %v12336_v23  ;;  %v12342_v23 = vld [vmem:[#allocation109_spill] sm:$0xff] }
 0xe17   :  { %8609 = vmatpush1.bf16.msra.mxu0 %v12337_v59  ;;  %8641 = vmatpush1.bf16.msra.mxu1 %v12338_v56 }
 0xe18   :  { %8643 = vmatprep.subr.bf16.mxu0 %v12339_v37  ;;  %8675 = vmatprep.subr.bf16.mxu1 %v12340_v61 }
 0xead   :  { %v5236_v3 = vpop.f32.mrb[38].mxu0  ;;  %v5307_v51 = vpop.f32.mrb[38].mxu1 }
 0xeae   :  { %v5312_v25 = vadd.f32 %v5236_v3, %v12341_v41  ;;  %v5238_v21 = vpop.f32.mrb[39].mxu0  ;;  %v5309_v57 = vpop.f32.mrb[39].mxu1  ;;  %v5314_v59 = vadd.f32 %v5307_v51, %v12342_v23 }
 0xeaf   :  { %v5313_v13 = vadd.f32 %v5238_v21, %v12210_v2  ;;  %v5315_v56 = vadd.f32 %v5309_v57, %v12212_v39 }
 0xeb0   :  { %v6579_v10 = vmul.f32 -1.442695, %v5312_v25  ;;  %v6581_v53 = vmul.f32 -1.442695, %v5314_v59 }
 0xeb1   :  { %v6580_v1 = vmul.f32 -1.442695, %v5313_v13 }
 0xeb2   :  { %9259 = vpow2.f32 %v6579_v10 }
 0xeb3   :  { %9261 = vpow2.f32 %v6580_v1 }
 0xeb4   :  { %9263 = vtanh.f32 %v5315_v56 }
 0xeb5   :  { %9265 = vpow2.f32 %v6581_v53 }
 0xebc   :  { %v9260_v37 = vpop.eup %9259 }
 0xebd   :  { %v5325_v29 = vadd.f32 1.0, %v9260_v37  ;;  %v9262_v61 = vpop.eup %9261  ;;  %v12345_v37 = vld [vmem:[#allocation102_spill] sm:$0xff] }
 0xebe   :  { %v5326_v3 = vadd.f32 1.0, %v9262_v61  ;;  %v9264_v41 = vpop.eup %9263 }
 0xebf   :  { %9267 = vrcp.f32 %v5325_v29  ;;  %v9266_v42 = vpop.eup %9265 }
 0xec0   :  { %9269 = vrcp.f32 %v5326_v3  ;;  %v5327_v10 = vadd.f32 1.0, %v9266_v42  ;;  %v12346_v3 = vld [vmem:[#allocation103_spill] sm:$0xff] }
 0xec2   :  { %9271 = vrcp.f32 %v5327_v10 }
 0xec9   :  { %v9268_v21 = vpop.eup %9267 }
 0xeca   :  { %v5336_v25 = vmul.f32 %v9268_v21, %v9264_v41  ;;  %v9270_v13 = vpop.eup %9269  ;;  %v12344_v41 = vld [vmem:[#allocation101_spill] sm:$0xff]  ;;  %v12347_v21 = vld [vmem:[#allocation11_spill] sm:$0xff] }
 0xecb   :  { %v5335_v1 = vmul.f32 %v9270_v13, %v10984_v34 }
 0xecc   :  { %v9272_v29 = vpop.eup %9271 }
 0xecd   :  { %v5426_v51 = vpop.f32.mrb[40].mxu0  ;;  %v11113_v23 = vpop.f32.mrb[40].mxu1  ;;  %v11115_v57 = vadd.f32 %v5336_v25, %v5335_v1  ;;  %v12348_v25 = vld [vmem:[#allocation12_spill] sm:$0xff] }
 0xece   :  { %v5428_v59 = vpop.f32.mrb[41].mxu0  ;;  %v11117_v56 = vpop.f32.mrb[41].mxu1 }
 0xecf   :  { %9273 = vtanh.f32 %v11115_v57 }
 0xed9   :  { %v9274_v53 = vpop.eup %9273 }
 0xeda   :  { %v5339_v61 = vmul.f32 %v9274_v53, %v9272_v29  ;;  %v12349_v29 = vld [vmem:[#allocation107_spill] sm:$0xff] }
 0xedc   :  { %5341 = vst [vmem:[#allocation2 + $0x12] sm:$0x3] %v5339_v61  ;;  %5595 = vmatmul.mubr.f32.vlgmr.msra.gmra.mrb[42].mxu0 %v5339_v61  ;;  %5666 = vmatmul.mubr.f32.vlgmr.msra.gmra.mrb[42].mxu1 %v5339_v61  ;;  %v5342_v42 = vmul.f32 %v10854_v35, %v5339_v61  ;;  %v12343_v35 = vld [vmem:[#allocation100_spill] sm:$0xff] }
 0xedd   :  { %8645 = vmatpush1.bf16.msra.mxu0 %v11751_v44  ;;  %8677 = vmatpush1.bf16.msra.mxu1 %v11752_v26  ;;  %v12350_v61 = vld [vmem:[#allocation108_spill] sm:$0xff] }
 0xede   :  { %v5343_v34 = vsel %vm4332_vm0, %v5342_v42, 0.0  ;;  %8647 = vmatprep.subr.bf16.mxu0 %v11753_v38  ;;  %8679 = vmatprep.subr.bf16.mxu1 %v11754_v47 }
 0xedf   :  { %5344 = vadd.xlane.f32.xlu1 %v5343_v34  ;;  %5736 = vmatprep.mubr.f32.mxu0 %v11675_v36 }
 0xee0   :  { %5807 = vmatprep.mubr.f32.mxu1 %v11675_v36 }
 0xee1   :  { %8649 = vmatpush1.bf16.msra.mxu0 %v11755_v63  ;;  %8681 = vmatpush1.bf16.msra.mxu1 %v11817_v58 }
 0xee2   :  { %8651 = vmatprep.subr.bf16.mxu0 %v11818_v50  ;;  %8683 = vmatprep.subr.bf16.mxu1 %v11819_v60 }
 0xee5   :  { %8653 = vmatpush1.bf16.msra.mxu0 %v11820_v5  ;;  %8685 = vmatpush1.bf16.msra.mxu1 %v11821_v17 }
 0xee6   :  { %8655 = vmatprep.subr.bf16.mxu0 %v11822_v48  ;;  %8687 = vmatprep.subr.bf16.mxu1 %v11823_v32 }
 0xee9   :  { %8657 = vmatpush1.bf16.msra.mxu0 %v11763_v12  ;;  %8689 = vmatpush1.bf16.msra.mxu1 %v11764_v7 }
 0xeea   :  { %8659 = vmatprep.subr.bf16.mxu0 %v11824_v6  ;;  %8691 = vmatprep.subr.bf16.mxu1 %v11884_v4 }
 0xeed   :  { %8661 = vmatpush1.bf16.msra.mxu0 %v11826_v18  ;;  %8693 = vmatpush1.bf16.msra.mxu1 %v11827_v9 }
 0xeee   :  { %8663 = vmatprep.subr.bf16.mxu0 %v11828_v22  ;;  %8695 = vmatprep.subr.bf16.mxu1 %v11829_v43 }
 0xef1   :  { %8665 = vmatpush1.bf16.msra.mxu0 %v11830_v40  ;;  %8697 = vmatpush1.bf16.msra.mxu1 %v11831_v45 }
 0xef2   :  { %8667 = vmatprep.subr.bf16.mxu0 %v11832_v30  ;;  %8699 = vmatprep.subr.bf16.mxu1 %v11774_v62 }
 0xef5   :  { %8669 = vmatpush1.bf16.msra.mxu0 %v11775_v8  ;;  %8701 = vmatpush1.bf16.msra.mxu1 %v11776_v49 }
 0xef6   :  { %8671 = vmatprep.subr.bf16.mxu0 %v12343_v35  ;;  %8703 = vmatprep.subr.bf16.mxu1 %v12344_v41  ;;  %v12351_v41 = vld [vmem:[#allocation111_spill] sm:$0xff] }
 0xef9   :  { %8673 = vmatpush1.bf16.msra.mxu0 %v12345_v37  ;;  %8705 = vmatpush1.bf16.msra.mxu1 %v12346_v3 }
 0xefa   :  { %8707 = vmatprep.subr.bf16.mxu0 %v12347_v21  ;;  %8739 = vmatprep.subr.bf16.mxu1 %v12348_v25 }
 0xf6c   :  { %v5345_v13 = vpop.xlane.xlu1 %5344 }
 0xf6d   :  { %v5346_v10 = vadd.f32 %v10892_v46, %v5345_v13 }
 0xf6f   :  { %5349 = vperm.xlu1 %8954, %v5346_v10  }
 0xfee   :  { %v5350_v1 = vpop.permute.xlu1 %5349 }
 0xfef   :  { %v5352_v53 = vmul.f32 %v5350_v1, %v12349_v29  ;;  %v5353_v42 = vmul.f32 %v5350_v1, %v12350_v61  ;;  %v5354_v37 = vmul.f32 %v5350_v1, %v11750_v14  ;;  %v5355_v46 = vmul.f32 %v5350_v1, %v9880_v52 }
 0xff1   :  { %v5356_v34 = vadd.f32 %v5352_v53, %v11747_v16  ;;  %v5357_v35 = vadd.f32 %v5353_v42, %v12351_v41  ;;  %v5358_v25 = vadd.f32 %v5354_v37, %v9876_v31  ;;  %v5359_v10 = vadd.f32 %v5355_v46, %v9884_v27  ;;  %v12364_v46 = vld [vmem:[#allocation31_spill] sm:$0xff] }
 0xff3   :  { %v5502_v3 = vadd.f32 %v5426_v51, %v5356_v34  ;;  %v5503_v49 = vadd.f32 %v5428_v59, %v5357_v35  ;;  %v5504_v13 = vadd.f32 %v11113_v23, %v5358_v25  ;;  %v5505_v53 = vadd.f32 %v11117_v56, %v5359_v10  ;;  %v12363_v25 = vld [vmem:[#allocation30_spill] sm:$0xff]  ;;  %v12366_v10 = vld [vmem:[#allocation33_spill] sm:$0xff] }
 0xff5   :  { %v6582_v21 = vmul.f32 -1.442695, %v5502_v3  ;;  %v6583_v8 = vmul.f32 -1.442695, %v5503_v49  ;;  %v6584_v61 = vmul.f32 -1.442695, %v5504_v13 }
 0xff6   :  { %v12365_v13 = vld [vmem:[#allocation32_spill] sm:$0xff] }
 0xff7   :  { %9275 = vpow2.f32 %v6582_v21 }
 0xff8   :  { %9277 = vpow2.f32 %v6583_v8 }
 0xff9   :  { %9279 = vpow2.f32 %v6584_v61 }
 0xffa   :  { %9281 = vtanh.f32 %v5505_v53  ;;  %v12367_v53 = vld [vmem:[#allocation34_spill] sm:$0xff] }
0x1001   :  { %v9276_v42 = vpop.eup %9275 }
0x1002   :  { %v9278_v41 = vpop.eup %9277  ;;  %v5515_v51 = vadd.f32 1.0, %v9276_v42  ;;  %v12368_v42 = vld [vmem:[#allocation35_spill] sm:$0xff] }
0x1003   :  { %v5516_v59 = vadd.f32 1.0, %v9278_v41  ;;  %v9280_v49 = vpop.eup %9279  ;;  %v12357_v41 = vld [vmem:[#allocation24_spill] sm:$0xff] }
0x1004   :  { %9283 = vrcp.f32 %v5515_v51  ;;  %v9282_v35 = vpop.eup %9281  ;;  %v5517_v8 = vadd.f32 1.0, %v9280_v49  ;;  %v12369_v51 = vld [vmem:[#allocation36_spill] sm:$0xff]  ;;  %v12371_v49 = vld [vmem:[#allocation38_spill] sm:$0xff] }
0x1005   :  { %9285 = vrcp.f32 %v5516_v59  ;;  %v12370_v59 = vld [vmem:[#allocation37_spill] sm:$0xff] }
0x1006   :  { %9287 = vrcp.f32 %v5517_v8  ;;  %v12375_v8 = vld [vmem:[#allocation42_spill] sm:$0xff] }
0x100e   :  { %v9284_v37 = vpop.eup %9283 }
0x100f   :  { %v9286_v3 = vpop.eup %9285  ;;  %v5526_v1 = vmul.f32 %v9284_v37, %v9282_v35  ;;  %v12372_v35 = vld [vmem:[#allocation39_spill] sm:$0xff]  ;;  %v12373_v37 = vld [vmem:[#allocation40_spill] sm:$0xff] }
0x1010   :  { %v5525_v23 = vmul.f32 %v9286_v3, %v11037_v28  ;;  %v9288_v56 = vpop.eup %9287  ;;  %v12356_v28 = vld [vmem:[#allocation23_spill] sm:$0xff]  ;;  %v12374_v3 = vld [vmem:[#allocation41_spill] sm:$0xff] }
0x1012   :  { %v11168_v34 = vadd.f32 %v5526_v1, %v5525_v23  ;;  %v12376_v1 = vld [vmem:[#allocation43_spill] sm:$0xff]  ;;  %v12377_v23 = vld [vmem:[#allocation44_spill] sm:$0xff] }
0x1014   :  { %9289 = vtanh.f32 %v11168_v34 }
0x101e   :  { %v9290_v61 = vpop.eup %9289 }
0x101f   :  { %v5529_v21 = vmul.f32 %v9290_v61, %v9288_v56  ;;  %v12378_v56 = vld [vmem:[#allocation45_spill] sm:$0xff]  ;;  %v12379_v61 = vld [vmem:[#allocation46_spill] sm:$0xff] }
0x1021   :  { %5737 = vmatmul.mubr.f32.vlgmr.msra.gmra.mrb[42].mxu0 %v5529_v21  ;;  %5808 = vmatmul.mubr.f32.vlgmr.msra.gmra.mrb[42].mxu1 %v5529_v21 }
0x1022   :  { %8709 = vmatpush1.bf16.msra.mxu0 %v9529_v11  ;;  %8741 = vmatpush1.bf16.msra.mxu1 %v9532_v15  ;;  %v12352_v11 = vld [vmem:[#allocation19_spill] sm:$0xff]  ;;  %v12353_v15 = vld [vmem:[#allocation20_spill] sm:$0xff] }
0x1023   :  { %8711 = vmatprep.subr.bf16.mxu0 %v9536_v19  ;;  %8743 = vmatprep.subr.bf16.mxu1 %v12214_v0  ;;  %v12354_v19 = vld [vmem:[#allocation21_spill] sm:$0xff]  ;;  %v12355_v0 = vld [vmem:[#allocation22_spill] sm:$0xff] }
0x1024   :  { %5926 = vmatprep.mubr.f32.mxu0 %v11675_v36  ;;  %5997 = vmatprep.mubr.f32.mxu1 %v11675_v36 }
0x1026   :  { %8713 = vmatpush1.bf16.msra.mxu0 %v12215_v20  ;;  %8745 = vmatpush1.bf16.msra.mxu1 %v12216_v24  ;;  %v12358_v20 = vld [vmem:[#allocation25_spill] sm:$0xff]  ;;  %v12359_v24 = vld [vmem:[#allocation26_spill] sm:$0xff] }
0x1027   :  { %8715 = vmatprep.subr.bf16.mxu0 %v12283_v33  ;;  %8747 = vmatprep.subr.bf16.mxu1 %v12284_v55  ;;  %v12360_v33 = vld [vmem:[#allocation27_spill] sm:$0xff]  ;;  %v12361_v55 = vld [vmem:[#allocation28_spill] sm:$0xff] }
0x102a   :  { %8717 = vmatpush1.bf16.msra.mxu0 %v12285_v54  ;;  %8749 = vmatpush1.bf16.msra.mxu1 %v12352_v11  ;;  %v12362_v54 = vld [vmem:[#allocation29_spill] sm:$0xff]  ;;  %v12380_v11 = vld [vmem:[#allocation47_spill] sm:$0xff] }
0x102b   :  { %8719 = vmatprep.subr.bf16.mxu0 %v12353_v15  ;;  %8751 = vmatprep.subr.bf16.mxu1 %v12354_v19  ;;  %v12381_v15 = vld [vmem:[#allocation48_spill] sm:$0xff]  ;;  %v12382_v19 = vld [vmem:[#allocation49_spill] sm:$0xff] }
0x102e   :  { %8721 = vmatpush1.bf16.msra.mxu0 %v12355_v0  ;;  %8753 = vmatpush1.bf16.msra.mxu1 %v12356_v28  ;;  %v12384_v0 = vld [vmem:[#allocation51_spill] sm:$0xff]  ;;  %v12385_v28 = vld [vmem:[#allocation52_spill] sm:$0xff] }
0x102f   :  { %8723 = vmatprep.subr.bf16.mxu0 %v12357_v41  ;;  %8755 = vmatprep.subr.bf16.mxu1 %v12358_v20  ;;  %v12386_v41 = vld [vmem:[#allocation53_spill] sm:$0xff]  ;;  %v12387_v20 = vld [vmem:[#allocation54_spill] sm:$0xff] }
0x1032   :  { %8725 = vmatpush1.bf16.msra.mxu0 %v12359_v24  ;;  %8757 = vmatpush1.bf16.msra.mxu1 %v12360_v33  ;;  %v12388_v24 = vld [vmem:[#allocation55_spill] sm:$0xff]  ;;  %v12389_v33 = vld [vmem:[#allocation56_spill] sm:$0xff] }
0x1033   :  { %8727 = vmatprep.subr.bf16.mxu0 %v12361_v55  ;;  %8759 = vmatprep.subr.bf16.mxu1 %v12362_v54  ;;  %v12390_v55 = vld [vmem:[#allocation57_spill] sm:$0xff]  ;;  %v12391_v54 = vld [vmem:[#allocation58_spill] sm:$0xff] }
0x1036   :  { %8729 = vmatpush1.bf16.msra.mxu0 %v12363_v25  ;;  %8761 = vmatpush1.bf16.msra.mxu1 %v12364_v46  ;;  %v12392_v25 = vld [vmem:[#allocation59_spill] sm:$0xff]  ;;  %v12393_v46 = vld [vmem:[#allocation60_spill] sm:$0xff] }
0x1037   :  { %8731 = vmatprep.subr.bf16.mxu0 %v12365_v13  ;;  %8763 = vmatprep.subr.bf16.mxu1 %v12366_v10  ;;  %v12394_v13 = vld [vmem:[#allocation61_spill] sm:$0xff]  ;;  %v12395_v10 = vld [vmem:[#allocation62_spill] sm:$0xff] }
0x103a   :  { %8733 = vmatpush1.bf16.msra.mxu0 %v12367_v53  ;;  %8765 = vmatpush1.bf16.msra.mxu1 %v12368_v42  ;;  %v12396_v53 = vld [vmem:[#allocation63_spill] sm:$0xff]  ;;  %v12397_v42 = vld [vmem:[#allocation64_spill] sm:$0xff] }
0x103b   :  { %8735 = vmatprep.subr.bf16.mxu0 %v12369_v51  ;;  %8767 = vmatprep.subr.bf16.mxu1 %v12370_v59  ;;  %v12398_v51 = vld [vmem:[#allocation65_spill] sm:$0xff]  ;;  %v12399_v59 = vld [vmem:[#allocation66_spill] sm:$0xff] }
0x103e   :  { %8737 = vmatpush1.bf16.msra.mxu0 %v12371_v49  ;;  %8769 = vmatpush1.bf16.msra.mxu1 %v12372_v35  ;;  %v12400_v49 = vld [vmem:[#allocation67_spill] sm:$0xff]  ;;  %v12401_v35 = vld [vmem:[#allocation68_spill] sm:$0xff] }
0x103f   :  { %8771 = vmatprep.subr.bf16.mxu0 %v12373_v37  ;;  %8803 = vmatprep.subr.bf16.mxu1 %v12374_v3  ;;  %v12402_v37 = vld [vmem:[#allocation69_spill] sm:$0xff]  ;;  %v12403_v3 = vld [vmem:[#allocation70_spill] sm:$0xff] }
0x1041   :  { %5927 = vmatmul.mubr.f32.vlgmr.msra.gmra.mrb[44].mxu0 %v5529_v21  ;;  %5998 = vmatmul.mubr.f32.vlgmr.msra.gmra.mrb[44].mxu1 %v5529_v21  ;;  %v12383_v21 = vld [vmem:[#allocation50_spill] sm:$0xff] }
0x1042   :  { %8773 = vmatpush1.bf16.msra.mxu0 %v12375_v8  ;;  %8805 = vmatpush1.bf16.msra.mxu1 %v12376_v1  ;;  %v12404_v8 = vld [vmem:[#allocation71_spill] sm:$0xff]  ;;  %v12405_v1 = vld [vmem:[#allocation72_spill] sm:$0xff] }
0x1043   :  { %8775 = vmatprep.subr.bf16.mxu0 %v12377_v23  ;;  %8807 = vmatprep.subr.bf16.mxu1 %v12378_v56  ;;  %v12406_v23 = vld [vmem:[#allocation73_spill] sm:$0xff] }
0x1044   :  { %6096 = vmatprep.mubr.f32.mxu0 %v11675_v36  ;;  %6167 = vmatprep.mubr.f32.mxu1 %v11675_v36 }
0x1046   :  { %8777 = vmatpush1.bf16.msra.mxu0 %v12379_v61  ;;  %8809 = vmatpush1.bf16.msra.mxu1 %v12380_v11  ;;  %v12407_v11 = vld [vmem:[#allocation105_spill] sm:$0xff] }
0x1047   :  { %8779 = vmatprep.subr.bf16.mxu0 %v12381_v15  ;;  %8811 = vmatprep.subr.bf16.mxu1 %v12382_v19 }
0x104a   :  { %8781 = vmatpush1.bf16.msra.mxu0 %v12383_v21  ;;  %8813 = vmatpush1.bf16.msra.mxu1 %v12384_v0 }
0x104b   :  { %8783 = vmatprep.subr.bf16.mxu0 %v12385_v28  ;;  %8815 = vmatprep.subr.bf16.mxu1 %v12386_v41 }
0x104e   :  { %8785 = vmatpush1.bf16.msra.mxu0 %v12387_v20  ;;  %8817 = vmatpush1.bf16.msra.mxu1 %v12388_v24  ;;  %v12408_v20 = vld [vmem:[#allocation109_spill] sm:$0xff] }
0x104f   :  { %8787 = vmatprep.subr.bf16.mxu0 %v12389_v33  ;;  %8819 = vmatprep.subr.bf16.mxu1 %v12390_v55 }
0x1052   :  { %8789 = vmatpush1.bf16.msra.mxu0 %v12391_v54  ;;  %8821 = vmatpush1.bf16.msra.mxu1 %v12392_v25 }
0x1053   :  { %8791 = vmatprep.subr.bf16.mxu0 %v12393_v46  ;;  %8823 = vmatprep.subr.bf16.mxu1 %v12394_v13 }
0x1056   :  { %8793 = vmatpush1.bf16.msra.mxu0 %v12395_v10  ;;  %8825 = vmatpush1.bf16.msra.mxu1 %v12396_v53 }
0x1057   :  { %8795 = vmatprep.subr.bf16.mxu0 %v12397_v42  ;;  %8827 = vmatprep.subr.bf16.mxu1 %v12398_v51 }
0x105a   :  { %8797 = vmatpush1.bf16.msra.mxu0 %v12399_v59  ;;  %8829 = vmatpush1.bf16.msra.mxu1 %v12400_v49 }
0x105b   :  { %8799 = vmatprep.subr.bf16.mxu0 %v12401_v35  ;;  %8831 = vmatprep.subr.bf16.mxu1 %v12402_v37 }
0x105e   :  { %8801 = vmatpush1.bf16.msra.mxu0 %v12403_v3  ;;  %8833 = vmatpush1.bf16.msra.mxu1 %v12404_v8 }
0x105f   :  { %8835 = vmatprep.subr.bf16.mxu0 %v12405_v1  ;;  %8867 = vmatprep.subr.bf16.mxu1 %v12406_v23 }
0x10f4   :  { %v5738_v56 = vpop.f32.mrb[42].mxu0  ;;  %v5809_v61 = vpop.f32.mrb[42].mxu1 }
0x10f5   :  { %v5814_v15 = vadd.f32 %v5738_v56, %v12407_v11  ;;  %v5740_v19 = vpop.f32.mrb[43].mxu0  ;;  %v5811_v21 = vpop.f32.mrb[43].mxu1  ;;  %v5816_v24 = vadd.f32 %v5809_v61, %v12408_v20 }
0x10f6   :  { %v5815_v0 = vadd.f32 %v5740_v19, %v12210_v2  ;;  %v5817_v33 = vadd.f32 %v5811_v21, %v12212_v39  ;;  %v6347_v19 = vld [vmem:[#allocation2 + $0x2] sm:$0x3] }
0x10f7   :  { %v6585_v28 = vmul.f32 -1.442695, %v5814_v15  ;;  %v6587_v55 = vmul.f32 -1.442695, %v5816_v24  ;;  %v9340_v24 = vld [vmem:[#allocation3] ss:$0 sm:$0xff] }
0x10f8   :  { %v6586_v41 = vmul.f32 -1.442695, %v5815_v0 }
0x10f9   :  { %9291 = vpow2.f32 %v6585_v28 }
0x10fa   :  { %9293 = vpow2.f32 %v6586_v41  ;;  %v6348_v41 = vld [vmem:[#allocation2 + $0x4] sm:$0x3] }
0x10fb   :  { %9295 = vtanh.f32 %v5817_v33 }
0x10fc   :  { %9297 = vpow2.f32 %v6587_v55  ;;  %v6346_v55 = vld [vmem:[#allocation2] sm:$0x3] }
0x1103   :  { %v9292_v54 = vpop.eup %9291 }
0x1104   :  { %v5827_v25 = vadd.f32 1.0, %v9292_v54  ;;  %v9294_v46 = vpop.eup %9293 }
0x1105   :  { %v5828_v13 = vadd.f32 1.0, %v9294_v46  ;;  %v9296_v10 = vpop.eup %9295 }
0x1106   :  { %9299 = vrcp.f32 %v5827_v25  ;;  %v9298_v53 = vpop.eup %9297  ;;  %v6354_v25 = vld [vmem:[#allocation2 + $0x10] sm:$0x3] }
0x1107   :  { %9301 = vrcp.f32 %v5828_v13  ;;  %v5829_v49 = vadd.f32 1.0, %v9298_v53 }
0x1109   :  { %9303 = vrcp.f32 %v5829_v49 }
0x1110   :  { %v9300_v42 = vpop.eup %9299 }
0x1111   :  { %v5838_v51 = vmul.f32 %v9300_v42, %v9296_v10  ;;  %v9302_v59 = vpop.eup %9301  ;;  %v6352_v10 = vld [vmem:[#allocation2 + $0xc] sm:$0x3] }
0x1112   :  { %v5837_v35 = vmul.f32 %v9302_v59, %v11115_v57  ;;  %v11258_v57 = vld [vmem:[%s11386_s7] ss:$0 sm:$0xff] }
0x1113   :  { %v9304_v56 = vpop.eup %9303  ;;  %v6359_v28 = vmul.f32 %v11258_v57, %v6347_v19  ;;  %v6358_v54 = vmul.f32 %v11258_v57, %v6346_v55  ;;  %v6366_v13 = vmul.f32 %v11258_v57, %v6354_v25  ;;  %v6364_v42 = vmul.f32 %v11258_v57, %v6352_v10 }
0x1114   :  { %v11244_v37 = vpop.f32.mrb[44].mxu0  ;;  %v11246_v3 = vpop.f32.mrb[44].mxu1  ;;  %v11248_v8 = vadd.f32 %v5838_v51, %v5837_v35  ;;  %v6353_v51 = vld [vmem:[#allocation2 + $0xe] sm:$0x3] }
0x1115   :  { %v11250_v1 = vpop.f32.mrb[45].mxu0  ;;  %v11252_v23 = vpop.f32.mrb[45].mxu1  ;;  %v6370_v46 = vsel %vm4332_vm0, %v6358_v54, 0.0  ;;  %v6394_v53 = vsel %vm4332_vm0, %v6366_v13, 0.0  ;;  %v6388_v59 = vsel %vm4332_vm0, %v6364_v42, 0.0  ;;  %v6365_v49 = vmul.f32 %v11258_v57, %v6353_v51 }
0x1116   :  { %9305 = vtanh.f32 %v11248_v8 }
0x1117   :  { %v6391_v35 = vsel %vm4332_vm0, %v6365_v49, 0.0 }
0x1120   :  { %v9306_v61 = vpop.eup %9305 }
0x1121   :  { %v5841_v15 = vmul.f32 %v9306_v61, %v9304_v56 }
0x1123   :  { %5843 = vst [vmem:[#allocation2 + $0x14] sm:$0x3] %v5841_v15  ;;  %6097 = vmatmul.mubr.f32.vlgmr.msra.gmra.mrb[46].mxu0 %v5841_v15  ;;  %6168 = vmatmul.mubr.f32.vlgmr.msra.gmra.mrb[46].mxu1 %v5841_v15  ;;  %v5844_v21 = vmul.f32 %v11258_v57, %v5841_v15  ;;  %v12415_v15 = vld [vmem:[#allocation108_spill] sm:$0xff] }
0x1124   :  { %8837 = vmatpush1.bf16.msra.mxu0 %v11751_v44  ;;  %8869 = vmatpush1.bf16.msra.mxu1 %v11752_v26  ;;  %v6373_v44 = vsel %vm4332_vm0, %v6359_v28, 0.0  ;;  %v6360_v26 = vmul.f32 %v11258_v57, %v6348_v41 }
0x1125   :  { %v5845_v0 = vsel %vm4332_vm0, %v5844_v21, 0.0  ;;  %8839 = vmatprep.subr.bf16.mxu0 %v11753_v38  ;;  %8871 = vmatprep.subr.bf16.mxu1 %v11754_v47  ;;  %v6349_v38 = vld [vmem:[#allocation2 + $0x6] sm:$0x3] }
0x1126   :  { %5846 = vadd.xlane.f32.xlu0 %v5845_v0  ;;  %6238 = vmatprep.mubr.f32.mxu0 %v11675_v36  ;;  %v6361_v47 = vmul.f32 %v11258_v57, %v6349_v38  ;;  %v12416_v0 = vld [vmem:[#allocation111_spill] sm:$0xff] }
0x1127   :  { %6309 = vmatprep.mubr.f32.mxu1 %v11675_v36  ;;  %v6376_v36 = vsel %vm4332_vm0, %v6360_v26, 0.0 }
0x1128   :  { %8841 = vmatpush1.bf16.msra.mxu0 %v11755_v63  ;;  %8873 = vmatpush1.bf16.msra.mxu1 %v11817_v58  ;;  %v6350_v63 = vld [vmem:[#allocation2 + $0x8] sm:$0x3]  ;;  %v6379_v58 = vsel %vm4332_vm0, %v6361_v47, 0.0 }
0x1129   :  { %8843 = vmatprep.subr.bf16.mxu0 %v11818_v50  ;;  %8875 = vmatprep.subr.bf16.mxu1 %v11819_v60  ;;  %v6362_v50 = vmul.f32 %v11258_v57, %v6350_v63  ;;  %v6351_v60 = vld [vmem:[#allocation2 + $0xa] sm:$0x3] }
0x112a   :  { %6374 = vadd.xlane.f32.xlu0 %v6373_v44 }
0x112c   :  { %8845 = vmatpush1.bf16.msra.mxu0 %v11820_v5  ;;  %8877 = vmatpush1.bf16.msra.mxu1 %v11821_v17  ;;  %v6382_v5 = vsel %vm4332_vm0, %v6362_v50, 0.0 }
0x112d   :  { %8847 = vmatprep.subr.bf16.mxu0 %v11822_v48  ;;  %8879 = vmatprep.subr.bf16.mxu1 %v11823_v32  ;;  %v6356_v32 = vld [vmem:[#allocation2 + $0x14] sm:$0x3] }
0x112e   :  { %6377 = vadd.xlane.f32.xlu0 %v6376_v36 }
0x1130   :  { %8849 = vmatpush1.bf16.msra.mxu0 %v11763_v12  ;;  %8881 = vmatpush1.bf16.msra.mxu1 %v11764_v7  ;;  %v6363_v12 = vmul.f32 %v11258_v57, %v6351_v60  ;;  %v6355_v7 = vld [vmem:[#allocation2 + $0x12] sm:$0x3] }
0x1131   :  { %8851 = vmatprep.subr.bf16.mxu0 %v11824_v6  ;;  %8883 = vmatprep.subr.bf16.mxu1 %v11884_v4  ;;  %v6367_v48 = vmul.f32 %v11258_v57, %v6355_v7  ;;  %v12409_v6 = vld [vmem:[#allocation98_spill] sm:$0xff] }
0x1132   :  { %6380 = vadd.xlane.f32.xlu0 %v6379_v58  ;;  %v6385_v17 = vsel %vm4332_vm0, %v6363_v12, 0.0 }
0x1134   :  { %8853 = vmatpush1.bf16.msra.mxu0 %v11826_v18  ;;  %8885 = vmatpush1.bf16.msra.mxu1 %v11827_v9  ;;  %v12410_v18 = vld [vmem:[#allocation99_spill] sm:$0xff]  ;;  %v6397_v9 = vsel %vm4332_vm0, %v6367_v48, 0.0 }
0x1135   :  { %8855 = vmatprep.subr.bf16.mxu0 %v11828_v22  ;;  %8887 = vmatprep.subr.bf16.mxu1 %v11829_v43  ;;  %v6368_v22 = vmul.f32 %v11258_v57, %v6356_v32  ;;  %v12411_v43 = vld [vmem:[#allocation100_spill] sm:$0xff] }
0x1136   :  { %6383 = vadd.xlane.f32.xlu0 %v6382_v5 }
0x1138   :  { %8857 = vmatpush1.bf16.msra.mxu0 %v11830_v40  ;;  %8889 = vmatpush1.bf16.msra.mxu1 %v11831_v45  ;;  %v12412_v40 = vld [vmem:[#allocation101_spill] sm:$0xff]  ;;  %v12413_v45 = vld [vmem:[#allocation102_spill] sm:$0xff] }
0x1139   :  { %8859 = vmatprep.subr.bf16.mxu0 %v11832_v30  ;;  %8891 = vmatprep.subr.bf16.mxu1 %v11774_v62  ;;  %v12414_v30 = vld [vmem:[#allocation103_spill] sm:$0xff]  ;;  %v6400_v62 = vsel %vm4332_vm0, %v6368_v22, 0.0 }
0x113a   :  { %6386 = vadd.xlane.f32.xlu0 %v6385_v17 }
0x113c   :  { %8861 = vmatpush1.bf16.msra.mxu0 %v12409_v6  ;;  %8893 = vmatpush1.bf16.msra.mxu1 %v12410_v18 }
0x113d   :  { %8863 = vmatprep.subr.bf16.mxu0 %v12411_v43  ;;  %8895 = vmatprep.subr.bf16.mxu1 %v12412_v40 }
0x113e   :  { %6398 = vadd.xlane.f32.xlu0 %v6397_v9 }
0x1140   :  { %8865 = vmatpush1.bf16.msra.mxu0 %v12413_v45  ;;  %8897 = vmatpush1.bf16.msra.mxu1 %v12414_v30 }
0x1142   :  { %6401 = vadd.xlane.f32.xlu0 %v6400_v62  ;;  %v12417_v62 = vlaneseq }
0x11b3   :  { %v5847_v4 = vpop.xlane.xlu0 %5846 }
0x11b4   :  { %v5848_v33 = vadd.f32 %v9340_v24, %v5847_v4  ;;  %v6435_v4 = vand.u32 127, %v12417_v62 }
0x11b6   :  { %5851 = vperm.xlu1 %8954, %v5848_v33  }
0x11b7   :  { %v6375_v12 = vpop.xlane.xlu0 %6374 }
0x11da   :  { %6371 = vadd.xlane.f32.xlu1 %v6370_v46 }
0x11de   :  { %6395 = vadd.xlane.f32.xlu1 %v6394_v53 }
0x11e2   :  { %6389 = vadd.xlane.f32.xlu1 %v6388_v59 }
0x11e6   :  { %6392 = vadd.xlane.f32.xlu1 %v6391_v35 }
0x11f7   :  { %6407 = vperm.xlu1 %8954, %v9340_v24  }
0x1235   :  { %v5852_v56 = vpop.permute.xlu1 %5851 }
0x1236   :  { %v5854_v61 = vmul.f32 %v5852_v56, %v12349_v29  ;;  %v5855_v19 = vmul.f32 %v5852_v56, %v12415_v15  ;;  %v5856_v41 = vmul.f32 %v5852_v56, %v11750_v14  ;;  %v5857_v63 = vmul.f32 %v5852_v56, %v9880_v52 }
0x1238   :  { %v5858_v21 = vadd.f32 %v5854_v61, %v11747_v16  ;;  %v5859_v28 = vadd.f32 %v5855_v19, %v12416_v0  ;;  %v5860_v47 = vadd.f32 %v5856_v41, %v9876_v31  ;;  %v5861_v16 = vadd.f32 %v5857_v63, %v9884_v27 }
0x123a   :  { %v6004_v44 = vadd.f32 %v11244_v37, %v5858_v21  ;;  %v6005_v26 = vadd.f32 %v11250_v1, %v5859_v28  ;;  %v6006_v29 = vadd.f32 %v11246_v3, %v5860_v47  ;;  %v6007_v50 = vadd.f32 %v11252_v23, %v5861_v16  ;;  %v6378_v23 = vpop.xlane.xlu0 %6377 }
0x123c   :  { %v6588_v38 = vmul.f32 -1.442695, %v6004_v44  ;;  %v6589_v36 = vmul.f32 -1.442695, %v6005_v26  ;;  %v6590_v58 = vmul.f32 -1.442695, %v6006_v29 }
0x123e   :  { %9307 = vpow2.f32 %v6588_v38  ;;  %v6381_v32 = vpop.xlane.xlu0 %6380 }
0x123f   :  { %9309 = vpow2.f32 %v6589_v36 }
0x1240   :  { %9311 = vpow2.f32 %v6590_v58 }
0x1241   :  { %9313 = vtanh.f32 %v6007_v50 }
0x1242   :  { %v6384_v22 = vpop.xlane.xlu0 %6383 }
0x1246   :  { %v6387_v45 = vpop.xlane.xlu0 %6386 }
0x1248   :  { %v9308_v14 = vpop.eup %9307 }
0x1249   :  { %v9310_v60 = vpop.eup %9309  ;;  %v6017_v37 = vadd.f32 1.0, %v9308_v14 }
0x124a   :  { %v6018_v1 = vadd.f32 1.0, %v9310_v60  ;;  %v9312_v31 = vpop.eup %9311  ;;  %v6399_v24 = vpop.xlane.xlu0 %6398 }
0x124b   :  { %9315 = vrcp.f32 %v6017_v37  ;;  %v9314_v5 = vpop.eup %9313  ;;  %v6019_v17 = vadd.f32 1.0, %v9312_v31 }
0x124c   :  { %9317 = vrcp.f32 %v6018_v1 }
0x124d   :  { %9319 = vrcp.f32 %v6019_v17 }
0x124e   :  { %v6402_v10 = vpop.xlane.xlu0 %6401 }
0x1255   :  { %v9316_v52 = vpop.eup %9315 }
0x1256   :  { %v9318_v7 = vpop.eup %9317  ;;  %v6028_v3 = vmul.f32 %v9316_v52, %v9314_v5 }
0x1257   :  { %v6027_v27 = vmul.f32 %v9318_v7, %v11168_v34  ;;  %v9320_v6 = vpop.eup %9319  ;;  %v12418_v34 = vld [vmem:[#allocation104_spill] sm:$0xff] }
0x1258   :  { %v11331_v55 = vsub.s32 %v6435_v4, %v12418_v34 }
0x1259   :  { %v6029_v48 = vadd.f32 %v6028_v3, %v6027_v27 }
0x125b   :  { %9321 = vtanh.f32 %v6029_v48 }
0x1265   :  { %v9322_v18 = vpop.eup %9321 }
0x1266   :  { %v6031_v9 = vmul.f32 %v9322_v18, %v9320_v6 }
0x1267   :  { %v6372_v43 = vpop.xlane.xlu1 %6371 }
0x1268   :  { %6239 = vmatmul.mubr.f32.vlgmr.msra.gmra.mrb[46].mxu0 %v6031_v9  ;;  %6310 = vmatmul.mubr.f32.vlgmr.msra.gmra.mrb[46].mxu1 %v6031_v9 }
0x126b   :  { %v6396_v40 = vpop.xlane.xlu1 %6395 }
0x126f   :  { %v6390_v30 = vpop.xlane.xlu1 %6389 }
0x1273   :  { %v6393_v33 = vpop.xlane.xlu1 %6392 }
0x1277   :  { %v11333_v54 = vpop.permute.xlu1 %6407 }
0x1278   :  { %v6410_v25 = vadd.f32 %v11333_v54, %v6372_v43  ;;  %v6411_v46 = vadd.f32 %v11333_v54, %v6375_v12  ;;  %v6412_v13 = vadd.f32 %v11333_v54, %v6378_v23  ;;  %v6413_v53 = vadd.f32 %v11333_v54, %v6381_v32 }
0x1279   :  { %v6414_v42 = vadd.f32 %v11333_v54, %v6384_v22  ;;  %v6418_v51 = vadd.f32 %v11333_v54, %v6396_v40  ;;  %v6419_v59 = vadd.f32 %v11333_v54, %v6399_v24  ;;  %v6420_v49 = vadd.f32 %v11333_v54, %v6402_v10 }
0x127a   :  { %v6439_v35 = vrot.slane %v6410_v25, %v11331_v55  ;;  %v6415_v56 = vadd.f32 %v11333_v54, %v6387_v45  ;;  %v6443_v61 = vrot.slane %v6411_v46, %v11331_v55  ;;  %v6447_v15 = vrot.slane %v6412_v13, %v11331_v55 }
0x127b   :  { %v6416_v19 = vadd.f32 %v11333_v54, %v6390_v30  ;;  %v6417_v21 = vadd.f32 %v11333_v54, %v6393_v33  ;;  %v6471_v0 = vrot.slane %v6418_v51, %v11331_v55  ;;  %v6451_v28 = vrot.slane %v6413_v53, %v11331_v55 }
0x127c   :  { %v6475_v41 = vrot.slane %v6419_v59, %v11331_v55  ;;  %v6479_v44 = vrot.slane %v6420_v49, %v11331_v55  ;;  %v6485_v26 = vsel %vm6484_vm1, %v6443_v61, %v6439_v35  ;;  %v6455_v38 = vrot.slane %v6414_v42, %v11331_v55 }
0x127d   :  { %v6487_v36 = vsel %vm6486_vm2, %v6447_v15, %v6485_v26  ;;  %v6459_v47 = vrot.slane %v6415_v56, %v11331_v55  ;;  %v6463_v16 = vrot.slane %v6416_v19, %v11331_v55  ;;  %v6467_v14 = vrot.slane %v6417_v21, %v11331_v55 }
0x127e   :  { %v6489_v63 = vsel %vm6488_vm3, %v6451_v28, %v6487_v36  ;;  %v6498_v29 = vsel %vm6484_vm1, %v6475_v41, %v6471_v0 }
0x127f   :  { %v6491_v58 = vsel %vm6490_vm4, %v6455_v38, %v6489_v63  ;;  %v6499_v50 = vsel %vm6486_vm2, %v6479_v44, %v6498_v29 }
0x1280   :  { %v6493_v60 = vsel %vm6492_vm5, %v6459_v47, %v6491_v58 }
0x1281   :  { %v6495_v37 = vsel %vm6494_vm6, %v6463_v16, %v6493_v60 }
0x1282   :  { %v6497_v1 = vsel %vm6496_vm7, %v6467_v14, %v6495_v37 }
0x1283   :  { %6504 = vst.msk [vmem:[%s11388_s9] sm:$0xff] %vm6503_vm8, %v6497_v1 }
0x133b   :  { %v6240_v31 = vpop.f32.mrb[46].mxu0  ;;  %v6311_v5 = vpop.f32.mrb[46].mxu1 }
0x133c   :  { %v6316_v52 = vadd.f32 %v6240_v31, %v12407_v11  ;;  %v6242_v12 = vpop.f32.mrb[47].mxu0  ;;  %v6313_v7 = vpop.f32.mrb[47].mxu1  ;;  %v6318_v48 = vadd.f32 %v6311_v5, %v12408_v20 }
0x133d   :  { %v6317_v17 = vadd.f32 %v6242_v12, %v12210_v2  ;;  %v6319_v23 = vadd.f32 %v6313_v7, %v12212_v39 }
0x133e   :  { %v6591_v3 = vmul.f32 -1.442695, %v6316_v52  ;;  %v6593_v32 = vmul.f32 -1.442695, %v6318_v48 }
0x133f   :  { %v6592_v27 = vmul.f32 -1.442695, %v6317_v17 }
0x1340   :  { %9323 = vpow2.f32 %v6591_v3 }
0x1341   :  { %9325 = vpow2.f32 %v6592_v27 }
0x1342   :  { %9327 = vtanh.f32 %v6319_v23 }
0x1343   :  { %9329 = vpow2.f32 %v6593_v32 }
0x134a   :  { %v9324_v6 = vpop.eup %9323 }
0x134b   :  { %v6329_v18 = vadd.f32 1.0, %v9324_v6  ;;  %v9326_v9 = vpop.eup %9325 }
0x134c   :  { %v6330_v11 = vadd.f32 1.0, %v9326_v9  ;;  %v9328_v22 = vpop.eup %9327 }
0x134d   :  { %9331 = vrcp.f32 %v6329_v18  ;;  %v9330_v43 = vpop.eup %9329 }
0x134e   :  { %9333 = vrcp.f32 %v6330_v11  ;;  %v6331_v30 = vadd.f32 1.0, %v9330_v43 }
0x1350   :  { %9335 = vrcp.f32 %v6331_v30 }
0x1357   :  { %v9332_v2 = vpop.eup %9331 }
0x1358   :  { %v6340_v40 = vmul.f32 %v9332_v2, %v9328_v22  ;;  %v9334_v45 = vpop.eup %9333 }
0x1359   :  { %v6339_v62 = vmul.f32 %v9334_v45, %v11248_v8 }
0x135a   :  { %v9336_v39 = vpop.eup %9335 }
0x135b   :  { %v6341_v20 = vadd.f32 %v6340_v40, %v6339_v62 }
0x135d   :  { %9337 = vtanh.f32 %v6341_v20 }
0x1367   :  { %v9338_v4 = vpop.eup %9337 }
0x1368   :  { %v6343_v24 = vmul.f32 %v9338_v4, %v9336_v39 }
0x136a   :  { %6345 = vst [vmem:[#allocation2 + $0x16] sm:$0x3] %v6343_v24 }
0x1371   :  { %v6357_v33 = vld [vmem:[#allocation2 + $0x16] sm:$0x3] }
0x1372   :  { %v6369_v34 = vmul.f32 %v11258_v57, %v6357_v33 }
0x1374   :  { %v6403_v25 = vsel %vm4332_vm0, %v6369_v34, 0.0 }
0x1375   :  { %6404 = vadd.xlane.f32.xlu0 %v6403_v25 }
0x1402   :  { %v6405_v46 = vpop.xlane.xlu0 %6404 }
0x1403   :  { %v6421_v13 = vadd.f32 %v11333_v54, %v6405_v46 }
0x1405   :  { %v6483_v10 = vrot.slane %v6421_v13, %v11331_v55 }
0x1407   :  { %v6500_v8 = vsel %vm6488_vm3, %v6483_v10, %v6499_v50 }
0x1408   :  { %6506 = vst.msk [vmem:[%s11388_s9 + $0x8] sm:$0xf] %vm6505_vm9, %v6500_v8 }
0x1409   :  { %6511 = vsyncpa [#allocation5], 1 }
0x140a   :  { %6512 = vsyncpa [#allocation7], 1 }

</bundles_post_ra>
